<compile_context>
chip_gen: v7x
topology: tpu7x:2x2x1
jax: 0.10.0
libtpu: 0.0.40
codegen_flags: <defaults>
</compile_context>

<pallas_src>
import functools
import math

import jax
import jax.numpy as jnp
from jax.experimental import pallas as pl
from jax.experimental.pallas import tpu as pltpu


# ----------------------------------------------------------------------------
# Model configuration (image_size=64, channels=1, n_classes=10)
# ----------------------------------------------------------------------------
_LAYERS = [
    # (Cin, Cout, stride, has_bn)
    (1,   16, 2, False),
    (16,  32, 1, True),
    (32,  64, 2, True),
    (64, 128, 1, True),
    (128, 256, 2, True),
    (256, 512, 1, True),
]
_N_CLASSES = 10
_FLAT = 8 * 8 * 512          # 32768
_HEAD_N = 128                # 1 (adv) + 10 (aux classes), lane-padded to 128


def _round_up(x, m):
    return ((x + m - 1) // m) * m


# ----------------------------------------------------------------------------
# Pallas kernels
# ----------------------------------------------------------------------------
def _conv_mm_kernel(p_ref, w_ref, shift_ref, o_ref):
    """One (M-tile, Cout-tile) of: patches @ W_folded + shift, LeakyReLU(0.2).

    BN scale is pre-folded into the weight columns, so the kernel only adds the
    per-channel shift (zero for the no-BN first layer / padded channels).
    """
    acc = jnp.dot(p_ref[...], w_ref[...], preferred_element_type=jnp.float32)
    y = acc + shift_ref[...]                       # (tm, tn) + (1, tn)
    o_ref[...] = jnp.where(y > 0, y, 0.2 * y)      # LeakyReLU(0.2)


def _head_kernel(flat_ref, w_ref, b_ref, out_ref, acc_ref, *, n_classes):
    """Fused adversarial + auxiliary heads.

    Single matmul over the lane-padded (F, 128) weight, tiled over K (grid axis 0,
    reduction).  Column 0 = adv logit, columns 1..n_classes = aux logits which get
    a masked softmax; remaining lanes are zero padding.
    """
    k = pl.program_id(0)

    @pl.when(k == 0)
    def _init():
        acc_ref[...] = jnp.zeros_like(acc_ref)

    acc_ref[...] += jnp.dot(flat_ref[...], w_ref[...],
                            preferred_element_type=jnp.float32)

    @pl.when(k == pl.num_programs(0) - 1)
    def _finalize():
        logits = acc_ref[...] + b_ref[...]                      # (B, 128)
        col = jax.lax.broadcasted_iota(jnp.int32, logits.shape, 1)
        aux_mask = (col >= 1) & (col <= n_classes)
        masked = jnp.where(aux_mask, logits, -jnp.inf)
        m = jnp.max(masked, axis=-1, keepdims=True)
        e = jnp.where(aux_mask, jnp.exp(masked - m), 0.0)
        s = jnp.sum(e, axis=-1, keepdims=True)
        sm = e / s                                              # softmax(dim=1)
        out_ref[...] = jnp.where(col == 0, logits, sm)


# ----------------------------------------------------------------------------
# Glue: im2col patch extraction (pure reshuffling, no FLOPs; fused by XLA)
# ----------------------------------------------------------------------------
def _im2col(x_nhwc, ksize, stride, pad):
    B, H, W, C = x_nhwc.shape
    xp = jnp.pad(x_nhwc, ((0, 0), (pad, pad), (pad, pad), (0, 0)))
    Ho = (H + 2 * pad - ksize) // stride + 1
    Wo = (W + 2 * pad - ksize) // stride + 1
    cols = []
    for dy in range(ksize):
        for dx in range(ksize):
            cols.append(xp[:, dy:dy + stride * Ho:stride,
                           dx:dx + stride * Wo:stride, :])      # (B, Ho, Wo, C)
    patches = jnp.stack(cols, axis=-2)                          # (B, Ho, Wo, 9, C)
    return patches.reshape(B * Ho * Wo, ksize * ksize * C), (B, Ho, Wo)


def _conv_bn_lrelu(x_nhwc, w_mat_bf16, shift_row, stride):
    """x: (B,H,W,Cin) f32; w_mat: (9*Cin, Cp) bf16 with BN scale folded, Cp%128==0."""
    B = x_nhwc.shape[0]
    K, Cp = w_mat_bf16.shape
    patches, (_, Ho, Wo) = _im2col(x_nhwc, 3, stride, 1)
    M = patches.shape[0]
    patches = patches.astype(jnp.bfloat16)

    # M tile: big tiles amortize per-step overhead; keep >=2 M-tiles when possible
    # so v7x can shard, and pad M up to a tile multiple (never one giant block).
    M128 = _round_up(M, 128)
    if M128 >= 1024:
        tm = 512
    elif M128 >= 512:
        tm = 256
    else:
        tm = M128
    M_pad = _round_up(M, tm)
    if M_pad != M:
        patches = jnp.pad(patches, ((0, M_pad - M), (0, 0)))

    tn = min(Cp, 128)
    grid = (M_pad // tm, Cp // tn)

    out = pl.pallas_call(
        _conv_mm_kernel,
        out_shape=jax.ShapeDtypeStruct((M_pad, Cp), jnp.float32),
        grid_spec=pltpu.PrefetchScalarGridSpec(
            num_scalar_prefetch=0,
            grid=grid,
            in_specs=[
                pl.BlockSpec((tm, K), lambda i, j: (i, 0)),
                pl.BlockSpec((K, tn), lambda i, j: (0, j)),
                pl.BlockSpec((1, tn), lambda i, j: (0, j)),
            ],
            out_specs=pl.BlockSpec((tm, tn), lambda i, j: (i, j)),
        ),
        compiler_params=pltpu.CompilerParams(
            dimension_semantics=("parallel", "parallel"),
            vmem_limit_bytes=32 * 1024 * 1024),
    )(patches, w_mat_bf16, shift_row)

    if M_pad != M:
        out = out[:M]
    return out.reshape(B, Ho, Wo, Cp)


def _heads(flat_f32, w_head_bf16, b_head):
    """Fused adv + aux heads: (B, F) @ (F, 128) tiled over K with a VMEM acc."""
    B, F = flat_f32.shape
    flat = flat_f32.astype(jnp.bfloat16)
    tk = 2048
    assert F % tk == 0
    nk = F // tk

    return pl.pallas_call(
        functools.partial(_head_kernel, n_classes=_N_CLASSES),
        out_shape=jax.ShapeDtypeStruct((B, _HEAD_N), jnp.float32),
        grid_spec=pltpu.PrefetchScalarGridSpec(
            num_scalar_prefetch=0,
            grid=(nk,),
            in_specs=[
                pl.BlockSpec((B, tk), lambda k: (0, k)),
                pl.BlockSpec((tk, _HEAD_N), lambda k: (k, 0)),
                pl.BlockSpec((1, _HEAD_N), lambda k: (0, 0)),
            ],
            out_specs=pl.BlockSpec((B, _HEAD_N), lambda k: (0, 0)),
            scratch_shapes=[pltpu.VMEM((B, _HEAD_N), jnp.float32)],
        ),
        compiler_params=pltpu.CompilerParams(
            dimension_semantics=("arbitrary",),
            vmem_limit_bytes=32 * 1024 * 1024),
    )(flat, w_head_bf16, b_head)


# ----------------------------------------------------------------------------
# Parameter construction (deterministic, in-script).  All host-side folding /
# padding / dtype-casting is done ONCE here.
# ----------------------------------------------------------------------------
def init_params(key):
    eps = 1e-5
    params = {"w_mat": [], "shift": []}
    for (cin, cout, _stride, has_bn) in _LAYERS:
        key, k = jax.random.split(key)
        fan_in = cin * 9
        w = jax.random.normal(k, (3, 3, cin, cout), jnp.float32) / jnp.sqrt(fan_in)
        if has_bn:
            # Eval-mode BN, fresh PyTorch defaults: gamma=1, beta=0, mean=0, var=1.
            scale = jnp.full((cout,), 1.0 / math.sqrt(1.0 + eps), jnp.float32)
        else:
            scale = jnp.ones((cout,), jnp.float32)
        shift = jnp.zeros((cout,), jnp.float32)
        # Fold BN scale into the weight columns; reshape to the matmul layout.
        w_mat = (w * scale[None, None, None, :]).reshape(9 * cin, cout)
        # Pad Cout to a multiple of 128 -> lane-dense stores; padded channels = 0.
        cp = _round_up(cout, 128)
        if cp != cout:
            w_mat = jnp.pad(w_mat, ((0, 0), (0, cp - cout)))
            shift = jnp.pad(shift, (0, cp - cout))
        params["w_mat"].append(w_mat.astype(jnp.bfloat16))
        params["shift"].append(shift.reshape(1, cp))

    # Heads: Linear(32768, 1) and Linear(32768, 10) + Softmax, fused and padded.
    key, k1, k2, k3, k4 = jax.random.split(key, 5)
    w_adv = jax.random.normal(k1, (_FLAT, 1), jnp.float32) / jnp.sqrt(_FLAT)
    b_adv = jax.random.normal(k2, (1,), jnp.float32) * 0.01
    w_aux = jax.random.normal(k3, (_FLAT, _N_CLASSES), jnp.float32) / jnp.sqrt(_FLAT)
    b_aux = jax.random.normal(k4, (_N_CLASSES,), jnp.float32) * 0.01

    w_head = jnp.concatenate([w_adv, w_aux], axis=1)        # (F, 11), torch row order
    # Torch flattens NCHW (C,H,W-major); our activations are NHWC.  Permute the
    # weight rows once so the runtime flatten needs no transpose.
    w_head = (w_head.reshape(512, 8, 8, 1 + _N_CLASSES)
              .transpose(1, 2, 0, 3)
              .reshape(_FLAT, 1 + _N_CLASSES))
    b_head = jnp.concatenate([b_adv, b_aux])                # (11,)
    w_head = jnp.pad(w_head, ((0, 0), (0, _HEAD_N - (1 + _N_CLASSES))))
    b_head = jnp.pad(b_head, (0, _HEAD_N - (1 + _N_CLASSES)))
    params["w_head"] = w_head.astype(jnp.bfloat16)
    params["b_head"] = b_head.reshape(1, _HEAD_N)
    return params


# ----------------------------------------------------------------------------
# Forward
# ----------------------------------------------------------------------------
@jax.jit
def discriminator_forward(params, x_nchw):
    B = x_nchw.shape[0]
    x = jnp.transpose(x_nchw.astype(jnp.float32), (0, 2, 3, 1))   # NCHW -> NHWC

    for li, (cin, _cout, stride, _has_bn) in enumerate(_LAYERS):
        # Dropout(0.5) is identity in eval mode.
        x = _conv_bn_lrelu(x[..., :cin], params["w_mat"][li],
                           params["shift"][li], stride)

    x = x[..., :_LAYERS[-1][1]]                 # (B, 8, 8, 512); no-op for Cout=512
    flat = x.reshape(B, _FLAT)                  # NHWC flatten; head rows pre-permuted

    head = _heads(flat, params["w_head"], params["b_head"])   # (B, 128)
    fc_dis = jnp.squeeze(head[:, :1])            # matches fc_dis.squeeze()
    fc_aux = head[:, 1:1 + _N_CLASSES]           # softmax already applied in-kernel
    return fc_dis, fc_aux


# ----------------------------------------------------------------------------
if __name__ == "__main__":
    key = jax.random.PRNGKey(0)
    pkey, xkey = jax.random.split(key)
    params = init_params(pkey)

    # image_size=64 is required by Linear(8*8*512, ...); batch=2, channels=1.
    x = jax.random.normal(xkey, (2, 1, 64, 64), jnp.float32)

    fc_dis, fc_aux = discriminator_forward(params, x)
    jax.block_until_ready((fc_dis, fc_aux))

    assert fc_dis.shape == (2,), fc_dis.shape
    assert fc_aux.shape == (2, 10), fc_aux.shape
    assert bool(jnp.all(jnp.isfinite(fc_dis))) and bool(jnp.all(jnp.isfinite(fc_aux)))
    # Softmax rows sum to 1.
    assert bool(jnp.allclose(jnp.sum(fc_aux, axis=1), 1.0, atol=1e-5))

    print("KERNEL_OK")
</pallas_src>

<mosaic_0001>
module attributes {stable_mosaic.version = 11 : i64} {
  func.func @_conv_mm_kernel(%arg0: i32, %arg1: i32, %arg2: memref<512x9xbf16, #tpu.memory_space<vmem>>, %arg3: memref<9x128xbf16, #tpu.memory_space<vmem>>, %arg4: memref<1x128xf32, #tpu.memory_space<vmem>>, %arg5: memref<512x128xf32, #tpu.memory_space<vmem>>) attributes {dimension_semantics = [#tpu.dimension_semantics<parallel>, #tpu.dimension_semantics<parallel>], iteration_bounds = array<i64: 4, 1>, scalar_prefetch = 0 : i64, scratch_operands = 0 : i64, tpu.core_type = #tpu.core_type<tc>, window_params = [{transform_indices = @transform_0, window_bounds = array<i64: 512, 9>}, {transform_indices = @transform_1, window_bounds = array<i64: 9, 128>}, {transform_indices = @transform_2, window_bounds = array<i64: 1, 128>}, {transform_indices = @transform_3, window_bounds = array<i64: 512, 128>}]} {
    %c0 = arith.constant 0 : index
    %c0_0 = arith.constant 0 : index
    %0 = vector.load %arg2[%c0, %c0_0] : memref<512x9xbf16, #tpu.memory_space<vmem>>, vector<512x9xbf16>
    %c0_1 = arith.constant 0 : index
    %c0_2 = arith.constant 0 : index
    %1 = vector.load %arg3[%c0_1, %c0_2] : memref<9x128xbf16, #tpu.memory_space<vmem>>, vector<9x128xbf16>
    %cst = arith.constant dense<0.000000e+00> : vector<512x128xf32>
    %2 = tpu.matmul %0, %1, %cst {dimension_numbers = #tpu.dot_dimension_numbers<[1], [0], [0], [1], [0, 0, 1, 1], [], []>} : vector<512x9xbf16>, vector<9x128xbf16>, vector<512x128xf32> -> vector<512x128xf32>
    %c0_3 = arith.constant 0 : index
    %c0_4 = arith.constant 0 : index
    %3 = vector.load %arg4[%c0_3, %c0_4] : memref<1x128xf32, #tpu.memory_space<vmem>>, vector<1x128xf32>
    %4 = vector.broadcast %3 : vector<1x128xf32> to vector<512x128xf32>
    %5 = arith.addf %2, %4 : vector<512x128xf32>
    %cst_5 = arith.constant 0.000000e+00 : f32
    %6 = vector.broadcast %cst_5 : f32 to vector<512x128xf32>
    %7 = arith.cmpf ogt, %5, %6 : vector<512x128xf32>
    %cst_6 = arith.constant 2.000000e-01 : f32
    %8 = vector.broadcast %cst_6 : f32 to vector<512x128xf32>
    %9 = arith.mulf %8, %5 : vector<512x128xf32>
    %10 = arith.select %7, %5, %9 : vector<512x128xi1>, vector<512x128xf32>
    %c0_7 = arith.constant 0 : index
    %c0_8 = arith.constant 0 : index
    %11 = vector.load %arg5[%c0_7, %c0_8] : memref<512x128xf32, #tpu.memory_space<vmem>>, vector<512x128xf32>
    tpu.vector_store %arg5[%c0_7, %c0_8], %10 {strides = array<i32>} : memref<512x128xf32, #tpu.memory_space<vmem>>, vector<512x128xf32>,
    return
  }
  func.func @transform_0(%arg0: i32, %arg1: i32) -> (i32, i32) {
    %c0_i32 = arith.constant 0 : i32
    %c0_i32_0 = arith.constant 0 : i32
    return %arg0, %c0_i32 : i32, i32
  }
  func.func @transform_1(%arg0: i32, %arg1: i32) -> (i32, i32) {
    %c0_i32 = arith.constant 0 : i32
    %c0_i32_0 = arith.constant 0 : i32
    return %c0_i32, %arg1 : i32, i32
  }
  func.func @transform_2(%arg0: i32, %arg1: i32) -> (i32, i32) {
    %c0_i32 = arith.constant 0 : i32
    %c0_i32_0 = arith.constant 0 : i32
    return %c0_i32, %arg1 : i32, i32
  }
  func.func @transform_3(%arg0: i32, %arg1: i32) -> (i32, i32) {
    %c0_i32 = arith.constant 0 : i32
    return %arg0, %arg1 : i32, i32
  }
}

module attributes {stable_mosaic.version = 11 : i64} {
  func.func @_conv_mm_kernel(%arg0: i32, %arg1: i32, %arg2: memref<512x144xbf16, #tpu.memory_space<vmem>>, %arg3: memref<144x128xbf16, #tpu.memory_space<vmem>>, %arg4: memref<1x128xf32, #tpu.memory_space<vmem>>, %arg5: memref<512x128xf32, #tpu.memory_space<vmem>>) attributes {dimension_semantics = [#tpu.dimension_semantics<parallel>, #tpu.dimension_semantics<parallel>], iteration_bounds = array<i64: 4, 1>, scalar_prefetch = 0 : i64, scratch_operands = 0 : i64, tpu.core_type = #tpu.core_type<tc>, window_params = [{transform_indices = @transform_0, window_bounds = array<i64: 512, 144>}, {transform_indices = @transform_1, window_bounds = array<i64: 144, 128>}, {transform_indices = @transform_2, window_bounds = array<i64: 1, 128>}, {transform_indices = @transform_3, window_bounds = array<i64: 512, 128>}]} {
    %c0 = arith.constant 0 : index
    %c0_0 = arith.constant 0 : index
    %0 = vector.load %arg2[%c0, %c0_0] : memref<512x144xbf16, #tpu.memory_space<vmem>>, vector<512x144xbf16>
    %c0_1 = arith.constant 0 : index
    %c0_2 = arith.constant 0 : index
    %1 = vector.load %arg3[%c0_1, %c0_2] : memref<144x128xbf16, #tpu.memory_space<vmem>>, vector<144x128xbf16>
    %cst = arith.constant dense<0.000000e+00> : vector<512x128xf32>
    %2 = tpu.matmul %0, %1, %cst {dimension_numbers = #tpu.dot_dimension_numbers<[1], [0], [0], [1], [0, 0, 1, 1], [], []>} : vector<512x144xbf16>, vector<144x128xbf16>, vector<512x128xf32> -> vector<512x128xf32>
    %c0_3 = arith.constant 0 : index
    %c0_4 = arith.constant 0 : index
    %3 = vector.load %arg4[%c0_3, %c0_4] : memref<1x128xf32, #tpu.memory_space<vmem>>, vector<1x128xf32>
    %4 = vector.broadcast %3 : vector<1x128xf32> to vector<512x128xf32>
    %5 = arith.addf %2, %4 : vector<512x128xf32>
    %cst_5 = arith.constant 0.000000e+00 : f32
    %6 = vector.broadcast %cst_5 : f32 to vector<512x128xf32>
    %7 = arith.cmpf ogt, %5, %6 : vector<512x128xf32>
    %cst_6 = arith.constant 2.000000e-01 : f32
    %8 = vector.broadcast %cst_6 : f32 to vector<512x128xf32>
    %9 = arith.mulf %8, %5 : vector<512x128xf32>
    %10 = arith.select %7, %5, %9 : vector<512x128xi1>, vector<512x128xf32>
    %c0_7 = arith.constant 0 : index
    %c0_8 = arith.constant 0 : index
    %11 = vector.load %arg5[%c0_7, %c0_8] : memref<512x128xf32, #tpu.memory_space<vmem>>, vector<512x128xf32>
    tpu.vector_store %arg5[%c0_7, %c0_8], %10 {strides = array<i32>} : memref<512x128xf32, #tpu.memory_space<vmem>>, vector<512x128xf32>,
    return
  }
  func.func @transform_0(%arg0: i32, %arg1: i32) -> (i32, i32) {
    %c0_i32 = arith.constant 0 : i32
    %c0_i32_0 = arith.constant 0 : i32
    return %arg0, %c0_i32 : i32, i32
  }
  func.func @transform_1(%arg0: i32, %arg1: i32) -> (i32, i32) {
    %c0_i32 = arith.constant 0 : i32
    %c0_i32_0 = arith.constant 0 : i32
    return %c0_i32, %arg1 : i32, i32
  }
  func.func @transform_2(%arg0: i32, %arg1: i32) -> (i32, i32) {
    %c0_i32 = arith.constant 0 : i32
    %c0_i32_0 = arith.constant 0 : i32
    return %c0_i32, %arg1 : i32, i32
  }
  func.func @transform_3(%arg0: i32, %arg1: i32) -> (i32, i32) {
    %c0_i32 = arith.constant 0 : i32
    return %arg0, %arg1 : i32, i32
  }
}

module attributes {stable_mosaic.version = 11 : i64} {
  func.func @_conv_mm_kernel(%arg0: i32, %arg1: i32, %arg2: memref<256x288xbf16, #tpu.memory_space<vmem>>, %arg3: memref<288x128xbf16, #tpu.memory_space<vmem>>, %arg4: memref<1x128xf32, #tpu.memory_space<vmem>>, %arg5: memref<256x128xf32, #tpu.memory_space<vmem>>) attributes {dimension_semantics = [#tpu.dimension_semantics<parallel>, #tpu.dimension_semantics<parallel>], iteration_bounds = array<i64: 2, 1>, scalar_prefetch = 0 : i64, scratch_operands = 0 : i64, tpu.core_type = #tpu.core_type<tc>, window_params = [{transform_indices = @transform_0, window_bounds = array<i64: 256, 288>}, {transform_indices = @transform_1, window_bounds = array<i64: 288, 128>}, {transform_indices = @transform_2, window_bounds = array<i64: 1, 128>}, {transform_indices = @transform_3, window_bounds = array<i64: 256, 128>}]} {
    %c0 = arith.constant 0 : index
    %c0_0 = arith.constant 0 : index
    %0 = vector.load %arg2[%c0, %c0_0] : memref<256x288xbf16, #tpu.memory_space<vmem>>, vector<256x288xbf16>
    %c0_1 = arith.constant 0 : index
    %c0_2 = arith.constant 0 : index
    %1 = vector.load %arg3[%c0_1, %c0_2] : memref<288x128xbf16, #tpu.memory_space<vmem>>, vector<288x128xbf16>
    %cst = arith.constant dense<0.000000e+00> : vector<256x128xf32>
    %2 = tpu.matmul %0, %1, %cst {dimension_numbers = #tpu.dot_dimension_numbers<[1], [0], [0], [1], [0, 0, 1, 1], [], []>} : vector<256x288xbf16>, vector<288x128xbf16>, vector<256x128xf32> -> vector<256x128xf32>
    %c0_3 = arith.constant 0 : index
    %c0_4 = arith.constant 0 : index
    %3 = vector.load %arg4[%c0_3, %c0_4] : memref<1x128xf32, #tpu.memory_space<vmem>>, vector<1x128xf32>
    %4 = vector.broadcast %3 : vector<1x128xf32> to vector<256x128xf32>
    %5 = arith.addf %2, %4 : vector<256x128xf32>
    %cst_5 = arith.constant 0.000000e+00 : f32
    %6 = vector.broadcast %cst_5 : f32 to vector<256x128xf32>
    %7 = arith.cmpf ogt, %5, %6 : vector<256x128xf32>
    %cst_6 = arith.constant 2.000000e-01 : f32
    %8 = vector.broadcast %cst_6 : f32 to vector<256x128xf32>
    %9 = arith.mulf %8, %5 : vector<256x128xf32>
    %10 = arith.select %7, %5, %9 : vector<256x128xi1>, vector<256x128xf32>
    %c0_7 = arith.constant 0 : index
    %c0_8 = arith.constant 0 : index
    %11 = vector.load %arg5[%c0_7, %c0_8] : memref<256x128xf32, #tpu.memory_space<vmem>>, vector<256x128xf32>
    tpu.vector_store %arg5[%c0_7, %c0_8], %10 {strides = array<i32>} : memref<256x128xf32, #tpu.memory_space<vmem>>, vector<256x128xf32>,
    return
  }
  func.func @transform_0(%arg0: i32, %arg1: i32) -> (i32, i32) {
    %c0_i32 = arith.constant 0 : i32
    %c0_i32_0 = arith.constant 0 : i32
    return %arg0, %c0_i32 : i32, i32
  }
  func.func @transform_1(%arg0: i32, %arg1: i32) -> (i32, i32) {
    %c0_i32 = arith.constant 0 : i32
    %c0_i32_0 = arith.constant 0 : i32
    return %c0_i32, %arg1 : i32, i32
  }
  func.func @transform_2(%arg0: i32, %arg1: i32) -> (i32, i32) {
    %c0_i32 = arith.constant 0 : i32
    %c0_i32_0 = arith.constant 0 : i32
    return %c0_i32, %arg1 : i32, i32
  }
  func.func @transform_3(%arg0: i32, %arg1: i32) -> (i32, i32) {
    %c0_i32 = arith.constant 0 : i32
    return %arg0, %arg1 : i32, i32
  }
}

module attributes {stable_mosaic.version = 11 : i64} {
  func.func @_conv_mm_kernel(%arg0: i32, %arg1: i32, %arg2: memref<256x576xbf16, #tpu.memory_space<vmem>>, %arg3: memref<576x128xbf16, #tpu.memory_space<vmem>>, %arg4: memref<1x128xf32, #tpu.memory_space<vmem>>, %arg5: memref<256x128xf32, #tpu.memory_space<vmem>>) attributes {dimension_semantics = [#tpu.dimension_semantics<parallel>, #tpu.dimension_semantics<parallel>], iteration_bounds = array<i64: 2, 1>, scalar_prefetch = 0 : i64, scratch_operands = 0 : i64, tpu.core_type = #tpu.core_type<tc>, window_params = [{transform_indices = @transform_0, window_bounds = array<i64: 256, 576>}, {transform_indices = @transform_1, window_bounds = array<i64: 576, 128>}, {transform_indices = @transform_2, window_bounds = array<i64: 1, 128>}, {transform_indices = @transform_3, window_bounds = array<i64: 256, 128>}]} {
    %c0 = arith.constant 0 : index
    %c0_0 = arith.constant 0 : index
    %0 = vector.load %arg2[%c0, %c0_0] : memref<256x576xbf16, #tpu.memory_space<vmem>>, vector<256x576xbf16>
    %c0_1 = arith.constant 0 : index
    %c0_2 = arith.constant 0 : index
    %1 = vector.load %arg3[%c0_1, %c0_2] : memref<576x128xbf16, #tpu.memory_space<vmem>>, vector<576x128xbf16>
    %cst = arith.constant dense<0.000000e+00> : vector<256x128xf32>
    %2 = tpu.matmul %0, %1, %cst {dimension_numbers = #tpu.dot_dimension_numbers<[1], [0], [0], [1], [0, 0, 1, 1], [], []>} : vector<256x576xbf16>, vector<576x128xbf16>, vector<256x128xf32> -> vector<256x128xf32>
    %c0_3 = arith.constant 0 : index
    %c0_4 = arith.constant 0 : index
    %3 = vector.load %arg4[%c0_3, %c0_4] : memref<1x128xf32, #tpu.memory_space<vmem>>, vector<1x128xf32>
    %4 = vector.broadcast %3 : vector<1x128xf32> to vector<256x128xf32>
    %5 = arith.addf %2, %4 : vector<256x128xf32>
    %cst_5 = arith.constant 0.000000e+00 : f32
    %6 = vector.broadcast %cst_5 : f32 to vector<256x128xf32>
    %7 = arith.cmpf ogt, %5, %6 : vector<256x128xf32>
    %cst_6 = arith.constant 2.000000e-01 : f32
    %8 = vector.broadcast %cst_6 : f32 to vector<256x128xf32>
    %9 = arith.mulf %8, %5 : vector<256x128xf32>
    %10 = arith.select %7, %5, %9 : vector<256x128xi1>, vector<256x128xf32>
    %c0_7 = arith.constant 0 : index
    %c0_8 = arith.constant 0 : index
    %11 = vector.load %arg5[%c0_7, %c0_8] : memref<256x128xf32, #tpu.memory_space<vmem>>, vector<256x128xf32>
    tpu.vector_store %arg5[%c0_7, %c0_8], %10 {strides = array<i32>} : memref<256x128xf32, #tpu.memory_space<vmem>>, vector<256x128xf32>,
    return
  }
  func.func @transform_0(%arg0: i32, %arg1: i32) -> (i32, i32) {
    %c0_i32 = arith.constant 0 : i32
    %c0_i32_0 = arith.constant 0 : i32
    return %arg0, %c0_i32 : i32, i32
  }
  func.func @transform_1(%arg0: i32, %arg1: i32) -> (i32, i32) {
    %c0_i32 = arith.constant 0 : i32
    %c0_i32_0 = arith.constant 0 : i32
    return %c0_i32, %arg1 : i32, i32
  }
  func.func @transform_2(%arg0: i32, %arg1: i32) -> (i32, i32) {
    %c0_i32 = arith.constant 0 : i32
    %c0_i32_0 = arith.constant 0 : i32
    return %c0_i32, %arg1 : i32, i32
  }
  func.func @transform_3(%arg0: i32, %arg1: i32) -> (i32, i32) {
    %c0_i32 = arith.constant 0 : i32
    return %arg0, %arg1 : i32, i32
  }
}

module attributes {stable_mosaic.version = 11 : i64} {
  func.func @_conv_mm_kernel(%arg0: i32, %arg1: i32, %arg2: memref<128x1152xbf16, #tpu.memory_space<vmem>>, %arg3: memref<1152x128xbf16, #tpu.memory_space<vmem>>, %arg4: memref<1x128xf32, #tpu.memory_space<vmem>>, %arg5: memref<128x128xf32, #tpu.memory_space<vmem>>) attributes {dimension_semantics = [#tpu.dimension_semantics<parallel>, #tpu.dimension_semantics<parallel>], iteration_bounds = array<i64: 1, 2>, scalar_prefetch = 0 : i64, scratch_operands = 0 : i64, tpu.core_type = #tpu.core_type<tc>, window_params = [{transform_indices = @transform_0, window_bounds = array<i64: 128, 1152>}, {transform_indices = @transform_1, window_bounds = array<i64: 1152, 128>}, {transform_indices = @transform_2, window_bounds = array<i64: 1, 128>}, {transform_indices = @transform_3, window_bounds = array<i64: 128, 128>}]} {
    %c0 = arith.constant 0 : index
    %c0_0 = arith.constant 0 : index
    %0 = vector.load %arg2[%c0, %c0_0] : memref<128x1152xbf16, #tpu.memory_space<vmem>>, vector<128x1152xbf16>
    %c0_1 = arith.constant 0 : index
    %c0_2 = arith.constant 0 : index
    %1 = vector.load %arg3[%c0_1, %c0_2] : memref<1152x128xbf16, #tpu.memory_space<vmem>>, vector<1152x128xbf16>
    %cst = arith.constant dense<0.000000e+00> : vector<128x128xf32>
    %2 = tpu.matmul %0, %1, %cst {dimension_numbers = #tpu.dot_dimension_numbers<[1], [0], [0], [1], [0, 0, 1, 1], [], []>} : vector<128x1152xbf16>, vector<1152x128xbf16>, vector<128x128xf32> -> vector<128x128xf32>
    %c0_3 = arith.constant 0 : index
    %c0_4 = arith.constant 0 : index
    %3 = vector.load %arg4[%c0_3, %c0_4] : memref<1x128xf32, #tpu.memory_space<vmem>>, vector<1x128xf32>
    %4 = vector.broadcast %3 : vector<1x128xf32> to vector<128x128xf32>
    %5 = arith.addf %2, %4 : vector<128x128xf32>
    %cst_5 = arith.constant 0.000000e+00 : f32
    %6 = vector.broadcast %cst_5 : f32 to vector<128x128xf32>
    %7 = arith.cmpf ogt, %5, %6 : vector<128x128xf32>
    %cst_6 = arith.constant 2.000000e-01 : f32
    %8 = vector.broadcast %cst_6 : f32 to vector<128x128xf32>
    %9 = arith.mulf %8, %5 : vector<128x128xf32>
    %10 = arith.select %7, %5, %9 : vector<128x128xi1>, vector<128x128xf32>
    %c0_7 = arith.constant 0 : index
    %c0_8 = arith.constant 0 : index
    %11 = vector.load %arg5[%c0_7, %c0_8] : memref<128x128xf32, #tpu.memory_space<vmem>>, vector<128x128xf32>
    tpu.vector_store %arg5[%c0_7, %c0_8], %10 {strides = array<i32>} : memref<128x128xf32, #tpu.memory_space<vmem>>, vector<128x128xf32>,
    return
  }
  func.func @transform_0(%arg0: i32, %arg1: i32) -> (i32, i32) {
    %c0_i32 = arith.constant 0 : i32
    %c0_i32_0 = arith.constant 0 : i32
    return %arg0, %c0_i32 : i32, i32
  }
  func.func @transform_1(%arg0: i32, %arg1: i32) -> (i32, i32) {
    %c0_i32 = arith.constant 0 : i32
    %c0_i32_0 = arith.constant 0 : i32
    return %c0_i32, %arg1 : i32, i32
  }
  func.func @transform_2(%arg0: i32, %arg1: i32) -> (i32, i32) {
    %c0_i32 = arith.constant 0 : i32
    %c0_i32_0 = arith.constant 0 : i32
    return %c0_i32, %arg1 : i32, i32
  }
  func.func @transform_3(%arg0: i32, %arg1: i32) -> (i32, i32) {
    %c0_i32 = arith.constant 0 : i32
    return %arg0, %arg1 : i32, i32
  }
}

module attributes {stable_mosaic.version = 11 : i64} {
  func.func @_conv_mm_kernel(%arg0: i32, %arg1: i32, %arg2: memref<128x2304xbf16, #tpu.memory_space<vmem>>, %arg3: memref<2304x128xbf16, #tpu.memory_space<vmem>>, %arg4: memref<1x128xf32, #tpu.memory_space<vmem>>, %arg5: memref<128x128xf32, #tpu.memory_space<vmem>>) attributes {dimension_semantics = [#tpu.dimension_semantics<parallel>, #tpu.dimension_semantics<parallel>], iteration_bounds = array<i64: 1, 4>, scalar_prefetch = 0 : i64, scratch_operands = 0 : i64, tpu.core_type = #tpu.core_type<tc>, window_params = [{transform_indices = @transform_0, window_bounds = array<i64: 128, 2304>}, {transform_indices = @transform_1, window_bounds = array<i64: 2304, 128>}, {transform_indices = @transform_2, window_bounds = array<i64: 1, 128>}, {transform_indices = @transform_3, window_bounds = array<i64: 128, 128>}]} {
    %c0 = arith.constant 0 : index
    %c0_0 = arith.constant 0 : index
    %0 = vector.load %arg2[%c0, %c0_0] : memref<128x2304xbf16, #tpu.memory_space<vmem>>, vector<128x2304xbf16>
    %c0_1 = arith.constant 0 : index
    %c0_2 = arith.constant 0 : index
    %1 = vector.load %arg3[%c0_1, %c0_2] : memref<2304x128xbf16, #tpu.memory_space<vmem>>, vector<2304x128xbf16>
    %cst = arith.constant dense<0.000000e+00> : vector<128x128xf32>
    %2 = tpu.matmul %0, %1, %cst {dimension_numbers = #tpu.dot_dimension_numbers<[1], [0], [0], [1], [0, 0, 1, 1], [], []>} : vector<128x2304xbf16>, vector<2304x128xbf16>, vector<128x128xf32> -> vector<128x128xf32>
    %c0_3 = arith.constant 0 : index
    %c0_4 = arith.constant 0 : index
    %3 = vector.load %arg4[%c0_3, %c0_4] : memref<1x128xf32, #tpu.memory_space<vmem>>, vector<1x128xf32>
    %4 = vector.broadcast %3 : vector<1x128xf32> to vector<128x128xf32>
    %5 = arith.addf %2, %4 : vector<128x128xf32>
    %cst_5 = arith.constant 0.000000e+00 : f32
    %6 = vector.broadcast %cst_5 : f32 to vector<128x128xf32>
    %7 = arith.cmpf ogt, %5, %6 : vector<128x128xf32>
    %cst_6 = arith.constant 2.000000e-01 : f32
    %8 = vector.broadcast %cst_6 : f32 to vector<128x128xf32>
    %9 = arith.mulf %8, %5 : vector<128x128xf32>
    %10 = arith.select %7, %5, %9 : vector<128x128xi1>, vector<128x128xf32>
    %c0_7 = arith.constant 0 : index
    %c0_8 = arith.constant 0 : index
    %11 = vector.load %arg5[%c0_7, %c0_8] : memref<128x128xf32, #tpu.memory_space<vmem>>, vector<128x128xf32>
    tpu.vector_store %arg5[%c0_7, %c0_8], %10 {strides = array<i32>} : memref<128x128xf32, #tpu.memory_space<vmem>>, vector<128x128xf32>,
    return
  }
  func.func @transform_0(%arg0: i32, %arg1: i32) -> (i32, i32) {
    %c0_i32 = arith.constant 0 : i32
    %c0_i32_0 = arith.constant 0 : i32
    return %arg0, %c0_i32 : i32, i32
  }
  func.func @transform_1(%arg0: i32, %arg1: i32) -> (i32, i32) {
    %c0_i32 = arith.constant 0 : i32
    %c0_i32_0 = arith.constant 0 : i32
    return %c0_i32, %arg1 : i32, i32
  }
  func.func @transform_2(%arg0: i32, %arg1: i32) -> (i32, i32) {
    %c0_i32 = arith.constant 0 : i32
    %c0_i32_0 = arith.constant 0 : i32
    return %c0_i32, %arg1 : i32, i32
  }
  func.func @transform_3(%arg0: i32, %arg1: i32) -> (i32, i32) {
    %c0_i32 = arith.constant 0 : i32
    return %arg0, %arg1 : i32, i32
  }
}

module attributes {stable_mosaic.version = 11 : i64} {
  func.func @_head_kernel(%arg0: i32, %arg1: memref<2x2048xbf16, #tpu.memory_space<vmem>>, %arg2: memref<2048x128xbf16, #tpu.memory_space<vmem>>, %arg3: memref<1x128xf32, #tpu.memory_space<vmem>>, %arg4: memref<2x128xf32, #tpu.memory_space<vmem>>, %arg5: memref<2x128xf32, #tpu.memory_space<vmem>>) attributes {dimension_semantics = [#tpu.dimension_semantics<arbitrary>], iteration_bounds = array<i64: 16>, scalar_prefetch = 0 : i64, scratch_operands = 1 : i64, tpu.core_type = #tpu.core_type<tc>, window_params = [{transform_indices = @transform_0, window_bounds = array<i64: 2, 2048>}, {transform_indices = @transform_1, window_bounds = array<i64: 2048, 128>}, {pipeline_mode = #tpu.pipeline_mode<synchronous>, transform_indices = @transform_2, window_bounds = array<i64: 1, 128>}, {pipeline_mode = #tpu.pipeline_mode<synchronous>, transform_indices = @transform_3, window_bounds = array<i64: 2, 128>}]} {
    %c0_i32 = arith.constant 0 : i32
    %0 = arith.cmpi eq, %arg0, %c0_i32 : i32
    %1 = arith.extui %0 : i1 to i32
    %c0_i32_0 = arith.constant 0 : i32
    %2 = arith.cmpi ne, %1, %c0_i32_0 : i32
    scf.if %2 {
      %cst_9 = arith.constant 0.000000e+00 : f32
      %12 = vector.broadcast %cst_9 : f32 to vector<2x128xf32>
      %c0_10 = arith.constant 0 : index
      %c0_11 = arith.constant 0 : index
      %13 = vector.load %arg5[%c0_10, %c0_11] : memref<2x128xf32, #tpu.memory_space<vmem>>, vector<2x128xf32>
      tpu.vector_store %arg5[%c0_10, %c0_11], %12 {strides = array<i32>} : memref<2x128xf32, #tpu.memory_space<vmem>>, vector<2x128xf32>,
    } else {
    }
    %c0 = arith.constant 0 : index
    %c0_1 = arith.constant 0 : index
    %3 = vector.load %arg5[%c0, %c0_1] : memref<2x128xf32, #tpu.memory_space<vmem>>, vector<2x128xf32>
    %c0_2 = arith.constant 0 : index
    %c0_3 = arith.constant 0 : index
    %4 = vector.load %arg1[%c0_2, %c0_3] : memref<2x2048xbf16, #tpu.memory_space<vmem>>, vector<2x2048xbf16>
    %c0_4 = arith.constant 0 : index
    %c0_5 = arith.constant 0 : index
    %5 = vector.load %arg2[%c0_4, %c0_5] : memref<2048x128xbf16, #tpu.memory_space<vmem>>, vector<2048x128xbf16>
    %cst = arith.constant dense<0.000000e+00> : vector<2x128xf32>
    %6 = tpu.matmul %4, %5, %cst {dimension_numbers = #tpu.dot_dimension_numbers<[1], [0], [0], [1], [0, 0, 1, 1], [], []>} : vector<2x2048xbf16>, vector<2048x128xbf16>, vector<2x128xf32> -> vector<2x128xf32>
    %7 = arith.addf %3, %6 : vector<2x128xf32>
    %c0_6 = arith.constant 0 : index
    %c0_7 = arith.constant 0 : index
    %8 = vector.load %arg5[%c0_6, %c0_7] : memref<2x128xf32, #tpu.memory_space<vmem>>, vector<2x128xf32>
    tpu.vector_store %arg5[%c0_6, %c0_7], %7 {strides = array<i32>} : memref<2x128xf32, #tpu.memory_space<vmem>>, vector<2x128xf32>,
    %c15_i32 = arith.constant 15 : i32
    %9 = arith.cmpi eq, %arg0, %c15_i32 : i32
    %10 = arith.extui %9 : i1 to i32
    %c0_i32_8 = arith.constant 0 : i32
    %11 = arith.cmpi ne, %10, %c0_i32_8 : i32
    scf.if %11 {
      %c0_9 = arith.constant 0 : index
      %c0_10 = arith.constant 0 : index
      %12 = vector.load %arg5[%c0_9, %c0_10] : memref<2x128xf32, #tpu.memory_space<vmem>>, vector<2x128xf32>
      %c0_11 = arith.constant 0 : index
      %c0_12 = arith.constant 0 : index
      %13 = vector.load %arg3[%c0_11, %c0_12] : memref<1x128xf32, #tpu.memory_space<vmem>>, vector<1x128xf32>
      %14 = vector.broadcast %13 : vector<1x128xf32> to vector<2x128xf32>
      %15 = arith.addf %12, %14 : vector<2x128xf32>
      %16 = tpu.iota {dimensions = array<i32: 1>} : vector<2x128xi32>
      %c1_i32 = arith.constant 1 : i32
      %17 = vector.broadcast %c1_i32 : i32 to vector<2x128xi32>
      %18 = arith.cmpi sge, %16, %17 : vector<2x128xi32>
      %c10_i32 = arith.constant 10 : i32
      %19 = vector.broadcast %c10_i32 : i32 to vector<2x128xi32>
      %20 = arith.cmpi sle, %16, %19 : vector<2x128xi32>
      %21 = arith.andi %18, %20 : vector<2x128xi1>
      %cst_13 = arith.constant 0xFF800000 : f32
      %22 = vector.broadcast %cst_13 : f32 to vector<2x128xf32>
      %23 = arith.select %21, %15, %22 : vector<2x128xi1>, vector<2x128xf32>
      %cst_14 = arith.constant dense<0xFF800000> : vector<2xf32>
      %24 = vector.multi_reduction <maximumf>, %23, %cst_14 [1] : vector<2x128xf32> to vector<2xf32>
      %25 = vector.shape_cast %24 : vector<2xf32> to vector<2x1xf32>
      %26 = vector.broadcast %25 : vector<2x1xf32> to vector<2x128xf32>
      %27 = arith.subf %23, %26 : vector<2x128xf32>
      %28 = math.exp %27 : vector<2x128xf32>
      %cst_15 = arith.constant 0.000000e+00 : f32
      %29 = vector.broadcast %cst_15 : f32 to vector<2x128xf32>
      %30 = arith.select %21, %28, %29 : vector<2x128xi1>, vector<2x128xf32>
      %cst_16 = arith.constant dense<0.000000e+00> : vector<2xf32>
      %31 = vector.multi_reduction <add>, %30, %cst_16 [1] : vector<2x128xf32> to vector<2xf32>
      %32 = vector.shape_cast %31 : vector<2xf32> to vector<2x1xf32>
      %33 = vector.broadcast %32 : vector<2x1xf32> to vector<2x128xf32>
      %34 = arith.divf %30, %33 : vector<2x128xf32>
      %c0_i32_17 = arith.constant 0 : i32
      %35 = vector.broadcast %c0_i32_17 : i32 to vector<2x128xi32>
      %36 = arith.cmpi eq, %16, %35 : vector<2x128xi32>
      %37 = arith.select %36, %15, %34 : vector<2x128xi1>, vector<2x128xf32>
      %c0_18 = arith.constant 0 : index
      %c0_19 = arith.constant 0 : index
      %38 = vector.load %arg4[%c0_18, %c0_19] : memref<2x128xf32, #tpu.memory_space<vmem>>, vector<2x128xf32>
      tpu.vector_store %arg4[%c0_18, %c0_19], %37 {strides = array<i32>} : memref<2x128xf32, #tpu.memory_space<vmem>>, vector<2x128xf32>,
    } else {
    }
    return
  }
  func.func @transform_0(%arg0: i32) -> (i32, i32) {
    %c0_i32 = arith.constant 0 : i32
    %c0_i32_0 = arith.constant 0 : i32
    return %c0_i32, %arg0 : i32, i32
  }
  func.func @transform_1(%arg0: i32) -> (i32, i32) {
    %c0_i32 = arith.constant 0 : i32
    %c0_i32_0 = arith.constant 0 : i32
    return %arg0, %c0_i32 : i32, i32
  }
  func.func @transform_2(%arg0: i32) -> (i32, i32) {
    %c0_i32 = arith.constant 0 : i32
    %c0_i32_0 = arith.constant 0 : i32
    %c0_i32_1 = arith.constant 0 : i32
    return %c0_i32, %c0_i32_0 : i32, i32
  }
  func.func @transform_3(%arg0: i32) -> (i32, i32) {
    %c0_i32 = arith.constant 0 : i32
    %c0_i32_0 = arith.constant 0 : i32
    %c0_i32_1 = arith.constant 0 : i32
    return %c0_i32, %c0_i32_0 : i32, i32
  }
}

</mosaic_0001>

<bundles_post_ra>
// kernel: discriminator_forward.7
= control target key start
LH: loop header
LB: loop body
LE: loop exit
PB: predicated region body
PF: predicated region fallthrough
CT: control target
= control target key end

     0   :  { %s1498_s12 = smov 0   ;;  %s1500_s13 = smov 0   ;;  %s1739_s0 = inlined_call_operand.vmem [shape: bf16[2048,9], index: 0, kind: input, shape index: {}]   ;;  %s1740_s1 = inlined_call_operand.vmem [shape: bf16[9,128], index: 1, kind: input, shape index: {}]   ;;  %s1741_s2 = inlined_call_operand.vmem [shape: f32[1,128], index: 2, kind: input, shape index: {}]   ;;  %s1742_s3 = inlined_call_operand.vmem [shape: f32[2048,128], index: 3, kind: output, shape index: {}]  }
   0x1   :  { %s1502_s14 = smov 0  }
   0x2 LB: > { %s25_s15 = sadd.s32 1, %s1471_s13  ;;  %p1221_p0 = scmp.ge.s32.totalorder %s1475_s14, 1  ;;  %s1475_s14 = sphi %s1502_s14, %s13_s14   ;;  %s1471_s13 = sphi %s1500_s13, %s1744_s13   ;;  %s1467_s12 = sphi %s1498_s12, %s1743_s12  }
   0x3   : > { %p27_p1 = scmp.ge.s32.totalorder %s25_s15, 4  ;;  %p169_p2 = scmp.lt.s32.totalorder %s1475_s14, 5 }
   0x5   : > { %s1746_s15 = smov (%p27_p1, %s25_s15), 0  ;;  %p170_p3 = pnand %p1221_p0, %p169_p2 }
   0x6   : > { %v1420_v0 = vld [vmem:[%s1740_s1] sm:$0x1f] (!%p170_p3)   ;;  %vm561_vm0 = vcmask (!%p170_p3), 1043456   ;;  %vm562_vm1 = vcmask (!%p170_p3), 1044480   ;;  %s1222_s18 = sshll.u32 (!%p170_p3), %s1467_s12, 6  ;;  %v1477_v1 = vmov (!%p170_p3), 65535  }
   0x7   : > { %173 = sbr.rel (%p170_p3) target bundleno = 300 (0x12c), region = 32  ;;  %v563_v2 = vsel (!%p170_p3), %vm561_vm0, 4294967295, %v1477_v1  ;;  %p204_p4 = scmp.lt.s32.totalorder (!%p170_p3), %s1222_s18, 255  ;;  %vm464_vm2 = vcmask (!%p170_p3), 72704   ;;  %v1594_v37 = vld [vmem:[%s1741_s2] ss:$0 sm:$0xff] (!%p170_p3) }
   0x8   : > { %v564_v3 = vsel (!%p170_p3), %vm562_vm1, %v563_v2, 0 }
   0x9   : > { %v566_v4 = vand.u32 (!%p170_p3), %v1420_v0, %v564_v3 }
   0xb   : > { %1327 = vmatprep.subr.bf16.mxu0 (!%p170_p3), %v566_v4  ;;  %1393 = vmatprep.subr.bf16.mxu1 (!%p170_p3), %v566_v4 }
   0xc   : > { %1328 = vmatpush3.bf16.msra.mxu0 (!%p170_p3), %v566_v4  ;;  %1394 = vmatpush3.bf16.msra.mxu1 (!%p170_p3), %v566_v4 }
   0xe   : > { %s1748_s18 = smov (!%p204_p4, %s1222_s18), 255 }
   0xf   : > { %s1223_s19 = sshll.u32 %s1748_s18, 2  ;;  %s1225_s25 = sshll.u32 %s1748_s18, 3 }
  0x10   : > { %s1525_s22 = scalar_lea.vmem %s1739_s0, %s1223_s19  ;;  %s1603_s28 = scalar_lea.vmem %s1742_s3, %s1225_s25 }
  0x11   : > { %v1421_v5 = vld [vmem:[%s1525_s22] sm:$0xff]   ;;  %v1423_v7 = vld [vmem:[%s1525_s22 + $0x8] sm:$0xff]   ;;  %v1425_v9 = vld [vmem:[%s1525_s22 + $0x10] sm:$0xff]  }
  0x12   : > { %v1422_v6 = vld [vmem:[%s1525_s22 + $0x80] sm:$0xff]   ;;  %1329 = vmatprep.mubr.msk.bf16.mxu0 %vm464_vm2, %v1421_v5  ;;  %v1424_v8 = vld [vmem:[%s1525_s22 + $0x88] sm:$0xff]   ;;  %v1426_v10 = vld [vmem:[%s1525_s22 + $0x90] sm:$0xff]  }
  0x13   : > { %1361 = vmatprep.mubr.msk.bf16.mxu1 %vm464_vm2, %v1422_v6  ;;  %1330 = vmatmul.mubr.msk.bf16.vlgmr.msra.gmra.mrb[0].mxu0 %vm464_vm2, %v1423_v7  ;;  %v1427_v11 = vld [vmem:[%s1525_s22 + $0x18] sm:$0xff]   ;;  %v1429_v13 = vld [vmem:[%s1525_s22 + $0x20] sm:$0xff]   ;;  %v1431_v15 = vld [vmem:[%s1525_s22 + $0x28] sm:$0xff]  }
  0x14   : > { %1362 = vmatmul.mubr.msk.bf16.vlgmr.msra.gmra.mrb[0].mxu1 %vm464_vm2, %v1424_v8  ;;  %1333 = vmatprep.mubr.msk.bf16.mxu0 %vm464_vm2, %v1425_v9  ;;  %v1428_v12 = vld [vmem:[%s1525_s22 + $0x98] sm:$0xff]   ;;  %v1430_v14 = vld [vmem:[%s1525_s22 + $0xa0] sm:$0xff]   ;;  %v1432_v16 = vld [vmem:[%s1525_s22 + $0xa8] sm:$0xff]  }
  0x15   : > { %1365 = vmatprep.mubr.msk.bf16.mxu1 %vm464_vm2, %v1426_v10  ;;  %v1433_v17 = vld [vmem:[%s1525_s22 + $0x30] sm:$0xff]   ;;  %v1435_v19 = vld [vmem:[%s1525_s22 + $0x38] sm:$0xff]   ;;  %v1437_v21 = vld [vmem:[%s1525_s22 + $0x40] sm:$0xff]  }
  0x16   : > { %v1434_v18 = vld [vmem:[%s1525_s22 + $0xb0] sm:$0xff]   ;;  %v1436_v20 = vld [vmem:[%s1525_s22 + $0xb8] sm:$0xff]   ;;  %v1438_v22 = vld [vmem:[%s1525_s22 + $0xc0] sm:$0xff]  }
  0x17   : > { %v1439_v23 = vld [vmem:[%s1525_s22 + $0x48] sm:$0xff]   ;;  %v1441_v25 = vld [vmem:[%s1525_s22 + $0x50] sm:$0xff]   ;;  %v1443_v27 = vld [vmem:[%s1525_s22 + $0x58] sm:$0xff]  }
  0x18   : > { %v1440_v24 = vld [vmem:[%s1525_s22 + $0xc8] sm:$0xff]   ;;  %v1442_v26 = vld [vmem:[%s1525_s22 + $0xd0] sm:$0xff]   ;;  %v1444_v28 = vld [vmem:[%s1525_s22 + $0xd8] sm:$0xff]  }
  0x19   : > { %v1445_v29 = vld [vmem:[%s1525_s22 + $0x60] sm:$0xff]   ;;  %v1447_v31 = vld [vmem:[%s1525_s22 + $0x68] sm:$0xff]   ;;  %v1449_v33 = vld [vmem:[%s1525_s22 + $0x70] sm:$0xff]  }
  0x1a   : > { %v1446_v30 = vld [vmem:[%s1525_s22 + $0xe0] sm:$0xff]   ;;  %v1448_v32 = vld [vmem:[%s1525_s22 + $0xe8] sm:$0xff]   ;;  %v1450_v34 = vld [vmem:[%s1525_s22 + $0xf0] sm:$0xff]  }
  0x1b   : > { %1334 = vmatmul.mubr.msk.bf16.gmra.mrb[4].mxu0 %vm464_vm2, %v1427_v11  ;;  %v1451_v35 = vld [vmem:[%s1525_s22 + $0x78] sm:$0xff]  }
  0x1c   : > { %1366 = vmatmul.mubr.msk.bf16.gmra.mrb[4].mxu1 %vm464_vm2, %v1428_v12  ;;  %1337 = vmatprep.mubr.msk.bf16.mxu0 %vm464_vm2, %v1429_v13  ;;  %v1452_v36 = vld [vmem:[%s1525_s22 + $0xf8] sm:$0xff]  }
  0x1d   : > { %1369 = vmatprep.mubr.msk.bf16.mxu1 %vm464_vm2, %v1430_v14 }
  0x23   : > { %1338 = vmatmul.mubr.msk.bf16.gmra.mrb[8].mxu0 %vm464_vm2, %v1431_v15 }
  0x24   : > { %1370 = vmatmul.mubr.msk.bf16.gmra.mrb[8].mxu1 %vm464_vm2, %v1432_v16  ;;  %1341 = vmatprep.mubr.msk.bf16.mxu0 %vm464_vm2, %v1433_v17 }
  0x25   : > { %1373 = vmatprep.mubr.msk.bf16.mxu1 %vm464_vm2, %v1434_v18 }
  0x2b   : > { %1342 = vmatmul.mubr.msk.bf16.gmra.mrb[12].mxu0 %vm464_vm2, %v1435_v19 }
  0x2c   : > { %1374 = vmatmul.mubr.msk.bf16.gmra.mrb[12].mxu1 %vm464_vm2, %v1436_v20  ;;  %1345 = vmatprep.mubr.msk.bf16.mxu0 %vm464_vm2, %v1437_v21 }
  0x2d   : > { %1377 = vmatprep.mubr.msk.bf16.mxu1 %vm464_vm2, %v1438_v22 }
  0x33   : > { %1346 = vmatmul.mubr.msk.bf16.gmra.mrb[16].mxu0 %vm464_vm2, %v1439_v23 }
  0x34   : > { %1378 = vmatmul.mubr.msk.bf16.gmra.mrb[16].mxu1 %vm464_vm2, %v1440_v24  ;;  %1349 = vmatprep.mubr.msk.bf16.mxu0 %vm464_vm2, %v1441_v25 }
  0x35   : > { %1381 = vmatprep.mubr.msk.bf16.mxu1 %vm464_vm2, %v1442_v26 }
  0x3b   : > { %1350 = vmatmul.mubr.msk.bf16.gmra.mrb[20].mxu0 %vm464_vm2, %v1443_v27 }
  0x3c   : > { %1382 = vmatmul.mubr.msk.bf16.gmra.mrb[20].mxu1 %vm464_vm2, %v1444_v28  ;;  %1353 = vmatprep.mubr.msk.bf16.mxu0 %vm464_vm2, %v1445_v29 }
  0x3d   : > { %1385 = vmatprep.mubr.msk.bf16.mxu1 %vm464_vm2, %v1446_v30 }
  0x43   : > { %1354 = vmatmul.mubr.msk.bf16.gmra.mrb[24].mxu0 %vm464_vm2, %v1447_v31 }
  0x44   : > { %1386 = vmatmul.mubr.msk.bf16.gmra.mrb[24].mxu1 %vm464_vm2, %v1448_v32  ;;  %1357 = vmatprep.mubr.msk.bf16.mxu0 %vm464_vm2, %v1449_v33 }
  0x45   : > { %1389 = vmatprep.mubr.msk.bf16.mxu1 %vm464_vm2, %v1450_v34 }
  0x4b   : > { %1358 = vmatmul.mubr.msk.bf16.gmra.mrb[28].mxu0 %vm464_vm2, %v1451_v35 }
  0x4c   : > { %1390 = vmatmul.mubr.msk.bf16.gmra.mrb[28].mxu1 %vm464_vm2, %v1452_v36 }
  0xe6   : > { %v1331_v38 = vpop.f32.mrb[0].mxu0 }
  0xe7   : > { %v611_v39 = vadd.f32 %v1331_v38, %v1594_v37  ;;  %v1363_v40 = vpop.f32.mrb[0].mxu1  ;;  %v602_v41 = vpop.f32.mrb[1].mxu0 }
  0xe8   : > { %v739_v42 = vadd.f32 %v1363_v40, %v1594_v37  ;;  %v603_v43 = vadd.f32 %v1594_v37, %v602_v41  ;;  %v730_v44 = vpop.f32.mrb[1].mxu1  ;;  %v1332_v45 = vpop.f32.mrb[2].mxu0 }
  0xe9   : > { %vm859_vm3 = vcmp.gt.f32.partialorder %v611_v39, 0.0  ;;  %v923_v46 = vmul.f32 0.2, %v611_v39  ;;  %v731_v47 = vadd.f32 %v1594_v37, %v730_v44  ;;  %v614_v48 = vadd.f32 %v1332_v45, %v1594_v37  ;;  %v1364_v49 = vpop.f32.mrb[2].mxu1  ;;  %v605_v50 = vpop.f32.mrb[3].mxu0 }
  0xea   : > { %vm891_vm4 = vcmp.gt.f32.partialorder %v739_v42, 0.0  ;;  %v955_v51 = vmul.f32 0.2, %v739_v42  ;;  %vm857_vm5 = vcmp.gt.f32.partialorder %v603_v43, 0.0  ;;  %v921_v52 = vmul.f32 0.2, %v603_v43 }
  0xeb   : > { %v987_v53 = vsel %vm859_vm3, %v611_v39, %v923_v46  ;;  %vm889_vm6 = vcmp.gt.f32.partialorder %v731_v47, 0.0  ;;  %v953_v54 = vmul.f32 0.2, %v731_v47  ;;  %vm860_vm7 = vcmp.gt.f32.partialorder %v614_v48, 0.0  ;;  %v733_v55 = vpop.f32.mrb[3].mxu1 }
  0xec   : > { %1051 = vst [vmem:[%s1603_s28 + $0x10] sm:$0xff] %v987_v53  ;;  %v1019_v56 = vsel %vm891_vm4, %v739_v42, %v955_v51  ;;  %v985_v57 = vsel %vm857_vm5, %v603_v43, %v921_v52  ;;  %v924_v58 = vmul.f32 0.2, %v614_v48  ;;  %v742_v59 = vadd.f32 %v1364_v49, %v1594_v37 }
  0xed   : > { %1083 = vst [vmem:[%s1603_s28 + $0x110] sm:$0xff] %v1019_v56  ;;  %1049 = vst [vmem:[%s1603_s28] sm:$0xff] %v985_v57  ;;  %v1017_v60 = vsel %vm889_vm6, %v731_v47, %v953_v54  ;;  %v606_v61 = vadd.f32 %v1594_v37, %v605_v50  ;;  %v734_v62 = vadd.f32 %v1594_v37, %v733_v55 }
  0xee   : > { %1081 = vst [vmem:[%s1603_s28 + $0x100] sm:$0xff] %v1017_v60  ;;  %v988_v63 = vsel %vm860_vm7, %v614_v48, %v924_v58  ;;  %vm892_vm8 = vcmp.gt.f32.partialorder %v742_v59, 0.0  ;;  %v956_v0 = vmul.f32 0.2, %v742_v59  ;;  %v1335_v1 = vpop.f32.mrb[4].mxu0 }
  0xef   : > { %1052 = vst [vmem:[%s1603_s28 + $0x18] sm:$0xff] %v988_v63  ;;  %vm858_vm9 = vcmp.gt.f32.partialorder %v606_v61, 0.0  ;;  %v922_v2 = vmul.f32 0.2, %v606_v61  ;;  %vm890_vm10 = vcmp.gt.f32.partialorder %v734_v62, 0.0  ;;  %v627_v5 = vadd.f32 %v1335_v1, %v1594_v37  ;;  %v1367_v6 = vpop.f32.mrb[4].mxu1 }
  0xf0   : > { %v954_v3 = vmul.f32 0.2, %v734_v62  ;;  %v1020_v4 = vsel %vm892_vm8, %v742_v59, %v956_v0  ;;  %v618_v7 = vpop.f32.mrb[5].mxu0  ;;  %v755_v10 = vadd.f32 %v1367_v6, %v1594_v37  ;;  %v746_v12 = vpop.f32.mrb[5].mxu1 }
  0xf1   : > { %1084 = vst [vmem:[%s1603_s28 + $0x118] sm:$0xff] %v1020_v4  ;;  %v986_v8 = vsel %vm858_vm9, %v606_v61, %v922_v2  ;;  %v619_v11 = vadd.f32 %v1594_v37, %v618_v7  ;;  %v1336_v13 = vpop.f32.mrb[6].mxu0  ;;  %vm863_vm11 = vcmp.gt.f32.partialorder %v627_v5, 0.0  ;;  %v927_v14 = vmul.f32 0.2, %v627_v5  ;;  %v1368_v17 = vpop.f32.mrb[6].mxu1 }
  0xf2   : > { %v1018_v9 = vsel %vm890_vm10, %v734_v62, %v954_v3  ;;  %1050 = vst [vmem:[%s1603_s28 + $0x8] sm:$0xff] %v986_v8  ;;  %v747_v15 = vadd.f32 %v1594_v37, %v746_v12  ;;  %v630_v16 = vadd.f32 %v1336_v13, %v1594_v37  ;;  %v621_v18 = vpop.f32.mrb[7].mxu0  ;;  %vm895_vm12 = vcmp.gt.f32.partialorder %v755_v10, 0.0  ;;  %v749_v23 = vpop.f32.mrb[7].mxu1 }
  0xf3   : > { %1082 = vst [vmem:[%s1603_s28 + $0x108] sm:$0xff] %v1018_v9  ;;  %v959_v19 = vmul.f32 0.2, %v755_v10  ;;  %vm861_vm13 = vcmp.gt.f32.partialorder %v619_v11, 0.0  ;;  %v925_v20 = vmul.f32 0.2, %v619_v11  ;;  %v991_v21 = vsel %vm863_vm11, %v627_v5, %v927_v14 }
  0xf4   : > { %vm893_vm14 = vcmp.gt.f32.partialorder %v747_v15, 0.0  ;;  %v957_v22 = vmul.f32 0.2, %v747_v15  ;;  %vm864_vm15 = vcmp.gt.f32.partialorder %v630_v16, 0.0  ;;  %1055 = vst [vmem:[%s1603_s28 + $0x30] sm:$0xff] %v991_v21  ;;  %v758_v27 = vadd.f32 %v1368_v17, %v1594_v37 }
  0xf5   : > { %v1023_v24 = vsel %vm895_vm12, %v755_v10, %v959_v19  ;;  %v989_v25 = vsel %vm861_vm13, %v619_v11, %v925_v20  ;;  %v928_v26 = vmul.f32 0.2, %v630_v16  ;;  %v622_v29 = vadd.f32 %v1594_v37, %v621_v18 }
  0xf6   : > { %1087 = vst [vmem:[%s1603_s28 + $0x130] sm:$0xff] %v1023_v24  ;;  %1053 = vst [vmem:[%s1603_s28 + $0x20] sm:$0xff] %v989_v25  ;;  %v1021_v28 = vsel %vm893_vm14, %v747_v15, %v957_v22  ;;  %v750_v30 = vadd.f32 %v1594_v37, %v749_v23  ;;  %v1339_v31 = vpop.f32.mrb[8].mxu0  ;;  %vm896_vm0 = vcmp.gt.f32.partialorder %v758_v27, 0.0  ;;  %v960_v33 = vmul.f32 0.2, %v758_v27 }
  0xf7   : > { %1085 = vst [vmem:[%s1603_s28 + $0x120] sm:$0xff] %v1021_v28  ;;  %v992_v32 = vsel %vm864_vm15, %v630_v16, %v928_v26  ;;  %v643_v34 = vadd.f32 %v1339_v31, %v1594_v37  ;;  %v1371_v35 = vpop.f32.mrb[8].mxu1  ;;  %v634_v36 = vpop.f32.mrb[9].mxu0  ;;  %vm862_vm1 = vcmp.gt.f32.partialorder %v622_v29, 0.0  ;;  %v926_v38 = vmul.f32 0.2, %v622_v29 }
  0xf8   : > { %1056 = vst [vmem:[%s1603_s28 + $0x38] sm:$0xff] %v992_v32  ;;  %vm894_vm2 = vcmp.gt.f32.partialorder %v750_v30, 0.0  ;;  %v958_v39 = vmul.f32 0.2, %v750_v30  ;;  %v1024_v40 = vsel %vm896_vm0, %v758_v27, %v960_v33  ;;  %v771_v42 = vadd.f32 %v1371_v35, %v1594_v37  ;;  %v762_v43 = vpop.f32.mrb[9].mxu1  ;;  %v1340_v44 = vpop.f32.mrb[10].mxu0 }
  0xf9   : > { %vm867_vm3 = vcmp.gt.f32.partialorder %v643_v34, 0.0  ;;  %v931_v41 = vmul.f32 0.2, %v643_v34  ;;  %1088 = vst [vmem:[%s1603_s28 + $0x138] sm:$0xff] %v1024_v40  ;;  %v990_v45 = vsel %vm862_vm1, %v622_v29, %v926_v38  ;;  %v635_v47 = vadd.f32 %v1594_v37, %v634_v36  ;;  %v1372_v49 = vpop.f32.mrb[10].mxu1  ;;  %v637_v50 = vpop.f32.mrb[11].mxu0 }
  0xfa   : > { %v1022_v46 = vsel %vm894_vm2, %v750_v30, %v958_v39  ;;  %v763_v48 = vadd.f32 %v1594_v37, %v762_v43  ;;  %1054 = vst [vmem:[%s1603_s28 + $0x28] sm:$0xff] %v990_v45  ;;  %vm899_vm4 = vcmp.gt.f32.partialorder %v771_v42, 0.0  ;;  %v963_v52 = vmul.f32 0.2, %v771_v42  ;;  %v765_v54 = vpop.f32.mrb[11].mxu1 }
  0xfb   : > { %1086 = vst [vmem:[%s1603_s28 + $0x128] sm:$0xff] %v1022_v46  ;;  %v995_v51 = vsel %vm867_vm3, %v643_v34, %v931_v41  ;;  %v646_v53 = vadd.f32 %v1340_v44, %v1594_v37  ;;  %vm865_vm5 = vcmp.gt.f32.partialorder %v635_v47, 0.0  ;;  %v929_v55 = vmul.f32 0.2, %v635_v47 }
  0xfc   : > { %1059 = vst [vmem:[%s1603_s28 + $0x50] sm:$0xff] %v995_v51  ;;  %vm897_vm6 = vcmp.gt.f32.partialorder %v763_v48, 0.0  ;;  %v961_v56 = vmul.f32 0.2, %v763_v48  ;;  %v1027_v57 = vsel %vm899_vm4, %v771_v42, %v963_v52  ;;  %v774_v59 = vadd.f32 %v1372_v49, %v1594_v37 }
  0xfd   : > { %vm868_vm7 = vcmp.gt.f32.partialorder %v646_v53, 0.0  ;;  %v932_v58 = vmul.f32 0.2, %v646_v53  ;;  %1091 = vst [vmem:[%s1603_s28 + $0x150] sm:$0xff] %v1027_v57  ;;  %v993_v60 = vsel %vm865_vm5, %v635_v47, %v929_v55  ;;  %v638_v62 = vadd.f32 %v1594_v37, %v637_v50 }
  0xfe   : > { %v1025_v61 = vsel %vm897_vm6, %v763_v48, %v961_v56  ;;  %v766_v63 = vadd.f32 %v1594_v37, %v765_v54  ;;  %v1343_v0 = vpop.f32.mrb[12].mxu0  ;;  %1057 = vst [vmem:[%s1603_s28 + $0x40] sm:$0xff] %v993_v60  ;;  %vm900_vm8 = vcmp.gt.f32.partialorder %v774_v59, 0.0  ;;  %v964_v2 = vmul.f32 0.2, %v774_v59 }
  0xff   : > { %1089 = vst [vmem:[%s1603_s28 + $0x140] sm:$0xff] %v1025_v61  ;;  %v996_v1 = vsel %vm868_vm7, %v646_v53, %v932_v58  ;;  %v659_v3 = vadd.f32 %v1343_v0, %v1594_v37  ;;  %v1375_v4 = vpop.f32.mrb[12].mxu1  ;;  %v650_v5 = vpop.f32.mrb[13].mxu0  ;;  %vm866_vm9 = vcmp.gt.f32.partialorder %v638_v62, 0.0  ;;  %v930_v6 = vmul.f32 0.2, %v638_v62 }
 0x100   : > { %1060 = vst [vmem:[%s1603_s28 + $0x58] sm:$0xff] %v996_v1  ;;  %vm898_vm10 = vcmp.gt.f32.partialorder %v766_v63, 0.0  ;;  %v962_v7 = vmul.f32 0.2, %v766_v63  ;;  %v1028_v8 = vsel %vm900_vm8, %v774_v59, %v964_v2  ;;  %v787_v10 = vadd.f32 %v1375_v4, %v1594_v37  ;;  %v778_v11 = vpop.f32.mrb[13].mxu1  ;;  %v1344_v12 = vpop.f32.mrb[14].mxu0 }
 0x101   : > { %vm871_vm11 = vcmp.gt.f32.partialorder %v659_v3, 0.0  ;;  %v935_v9 = vmul.f32 0.2, %v659_v3  ;;  %1092 = vst [vmem:[%s1603_s28 + $0x158] sm:$0xff] %v1028_v8  ;;  %v994_v13 = vsel %vm866_vm9, %v638_v62, %v930_v6  ;;  %v651_v15 = vadd.f32 %v1594_v37, %v650_v5  ;;  %v1376_v17 = vpop.f32.mrb[14].mxu1  ;;  %v653_v18 = vpop.f32.mrb[15].mxu0 }
 0x102   : > { %v1026_v14 = vsel %vm898_vm10, %v766_v63, %v962_v7  ;;  %v779_v16 = vadd.f32 %v1594_v37, %v778_v11  ;;  %1058 = vst [vmem:[%s1603_s28 + $0x48] sm:$0xff] %v994_v13  ;;  %vm903_vm12 = vcmp.gt.f32.partialorder %v787_v10, 0.0  ;;  %v967_v20 = vmul.f32 0.2, %v787_v10  ;;  %v781_v22 = vpop.f32.mrb[15].mxu1 }
 0x103   : > { %1090 = vst [vmem:[%s1603_s28 + $0x148] sm:$0xff] %v1026_v14  ;;  %v999_v19 = vsel %vm871_vm11, %v659_v3, %v935_v9  ;;  %v662_v21 = vadd.f32 %v1344_v12, %v1594_v37  ;;  %vm869_vm13 = vcmp.gt.f32.partialorder %v651_v15, 0.0  ;;  %v933_v23 = vmul.f32 0.2, %v651_v15 }
 0x104   : > { %1063 = vst [vmem:[%s1603_s28 + $0x70] sm:$0xff] %v999_v19  ;;  %vm901_vm14 = vcmp.gt.f32.partialorder %v779_v16, 0.0  ;;  %v965_v24 = vmul.f32 0.2, %v779_v16  ;;  %v1031_v25 = vsel %vm903_vm12, %v787_v10, %v967_v20  ;;  %v790_v27 = vadd.f32 %v1376_v17, %v1594_v37 }
 0x105   : > { %vm872_vm15 = vcmp.gt.f32.partialorder %v662_v21, 0.0  ;;  %v936_v26 = vmul.f32 0.2, %v662_v21  ;;  %1095 = vst [vmem:[%s1603_s28 + $0x170] sm:$0xff] %v1031_v25  ;;  %v997_v28 = vsel %vm869_vm13, %v651_v15, %v933_v23  ;;  %v654_v30 = vadd.f32 %v1594_v37, %v653_v18 }
 0x106   : > { %v1029_v29 = vsel %vm901_vm14, %v779_v16, %v965_v24  ;;  %v782_v31 = vadd.f32 %v1594_v37, %v781_v22  ;;  %v1347_v32 = vpop.f32.mrb[16].mxu0  ;;  %1061 = vst [vmem:[%s1603_s28 + $0x60] sm:$0xff] %v997_v28  ;;  %vm904_vm0 = vcmp.gt.f32.partialorder %v790_v27, 0.0  ;;  %v968_v34 = vmul.f32 0.2, %v790_v27 }
 0x107   : > { %1093 = vst [vmem:[%s1603_s28 + $0x160] sm:$0xff] %v1029_v29  ;;  %v1000_v33 = vsel %vm872_vm15, %v662_v21, %v936_v26  ;;  %v675_v35 = vadd.f32 %v1347_v32, %v1594_v37  ;;  %v1379_v36 = vpop.f32.mrb[16].mxu1  ;;  %v666_v38 = vpop.f32.mrb[17].mxu0  ;;  %vm870_vm1 = vcmp.gt.f32.partialorder %v654_v30, 0.0  ;;  %v934_v39 = vmul.f32 0.2, %v654_v30 }
 0x108   : > { %1064 = vst [vmem:[%s1603_s28 + $0x78] sm:$0xff] %v1000_v33  ;;  %vm902_vm2 = vcmp.gt.f32.partialorder %v782_v31, 0.0  ;;  %v966_v40 = vmul.f32 0.2, %v782_v31  ;;  %v1032_v41 = vsel %vm904_vm0, %v790_v27, %v968_v34  ;;  %v803_v43 = vadd.f32 %v1379_v36, %v1594_v37  ;;  %v794_v44 = vpop.f32.mrb[17].mxu1  ;;  %v1348_v45 = vpop.f32.mrb[18].mxu0 }
 0x109   : > { %vm875_vm3 = vcmp.gt.f32.partialorder %v675_v35, 0.0  ;;  %v939_v42 = vmul.f32 0.2, %v675_v35  ;;  %1096 = vst [vmem:[%s1603_s28 + $0x178] sm:$0xff] %v1032_v41  ;;  %v998_v46 = vsel %vm870_vm1, %v654_v30, %v934_v39  ;;  %v667_v48 = vadd.f32 %v1594_v37, %v666_v38  ;;  %v1380_v50 = vpop.f32.mrb[18].mxu1  ;;  %v669_v51 = vpop.f32.mrb[19].mxu0 }
 0x10a   : > { %v1030_v47 = vsel %vm902_vm2, %v782_v31, %v966_v40  ;;  %v795_v49 = vadd.f32 %v1594_v37, %v794_v44  ;;  %1062 = vst [vmem:[%s1603_s28 + $0x68] sm:$0xff] %v998_v46  ;;  %vm907_vm4 = vcmp.gt.f32.partialorder %v803_v43, 0.0  ;;  %v971_v53 = vmul.f32 0.2, %v803_v43  ;;  %v797_v55 = vpop.f32.mrb[19].mxu1 }
 0x10b   : > { %1094 = vst [vmem:[%s1603_s28 + $0x168] sm:$0xff] %v1030_v47  ;;  %v1003_v52 = vsel %vm875_vm3, %v675_v35, %v939_v42  ;;  %v678_v54 = vadd.f32 %v1348_v45, %v1594_v37  ;;  %vm873_vm5 = vcmp.gt.f32.partialorder %v667_v48, 0.0  ;;  %v937_v56 = vmul.f32 0.2, %v667_v48 }
 0x10c   : > { %1067 = vst [vmem:[%s1603_s28 + $0x90] sm:$0xff] %v1003_v52  ;;  %vm905_vm6 = vcmp.gt.f32.partialorder %v795_v49, 0.0  ;;  %v969_v57 = vmul.f32 0.2, %v795_v49  ;;  %v1035_v58 = vsel %vm907_vm4, %v803_v43, %v971_v53  ;;  %v806_v60 = vadd.f32 %v1380_v50, %v1594_v37 }
 0x10d   : > { %vm876_vm7 = vcmp.gt.f32.partialorder %v678_v54, 0.0  ;;  %v940_v59 = vmul.f32 0.2, %v678_v54  ;;  %1099 = vst [vmem:[%s1603_s28 + $0x190] sm:$0xff] %v1035_v58  ;;  %v1001_v61 = vsel %vm873_vm5, %v667_v48, %v937_v56  ;;  %v670_v63 = vadd.f32 %v1594_v37, %v669_v51 }
 0x10e   : > { %v1033_v62 = vsel %vm905_vm6, %v795_v49, %v969_v57  ;;  %v798_v0 = vadd.f32 %v1594_v37, %v797_v55  ;;  %v1351_v1 = vpop.f32.mrb[20].mxu0  ;;  %1065 = vst [vmem:[%s1603_s28 + $0x80] sm:$0xff] %v1001_v61  ;;  %vm908_vm8 = vcmp.gt.f32.partialorder %v806_v60, 0.0  ;;  %v972_v3 = vmul.f32 0.2, %v806_v60 }
 0x10f   : > { %1097 = vst [vmem:[%s1603_s28 + $0x180] sm:$0xff] %v1033_v62  ;;  %v1004_v2 = vsel %vm876_vm7, %v678_v54, %v940_v59  ;;  %v691_v4 = vadd.f32 %v1351_v1, %v1594_v37  ;;  %v1383_v5 = vpop.f32.mrb[20].mxu1  ;;  %v682_v6 = vpop.f32.mrb[21].mxu0  ;;  %vm874_vm9 = vcmp.gt.f32.partialorder %v670_v63, 0.0  ;;  %v938_v7 = vmul.f32 0.2, %v670_v63 }
 0x110   : > { %1068 = vst [vmem:[%s1603_s28 + $0x98] sm:$0xff] %v1004_v2  ;;  %vm906_vm10 = vcmp.gt.f32.partialorder %v798_v0, 0.0  ;;  %v970_v8 = vmul.f32 0.2, %v798_v0  ;;  %v1036_v9 = vsel %vm908_vm8, %v806_v60, %v972_v3  ;;  %v819_v11 = vadd.f32 %v1383_v5, %v1594_v37  ;;  %v810_v12 = vpop.f32.mrb[21].mxu1  ;;  %v1352_v13 = vpop.f32.mrb[22].mxu0 }
 0x111   : > { %vm879_vm11 = vcmp.gt.f32.partialorder %v691_v4, 0.0  ;;  %v943_v10 = vmul.f32 0.2, %v691_v4  ;;  %1100 = vst [vmem:[%s1603_s28 + $0x198] sm:$0xff] %v1036_v9  ;;  %v1002_v14 = vsel %vm874_vm9, %v670_v63, %v938_v7  ;;  %v683_v16 = vadd.f32 %v1594_v37, %v682_v6  ;;  %v1384_v18 = vpop.f32.mrb[22].mxu1  ;;  %v685_v19 = vpop.f32.mrb[23].mxu0 }
 0x112   : > { %v1034_v15 = vsel %vm906_vm10, %v798_v0, %v970_v8  ;;  %v811_v17 = vadd.f32 %v1594_v37, %v810_v12  ;;  %1066 = vst [vmem:[%s1603_s28 + $0x88] sm:$0xff] %v1002_v14  ;;  %vm911_vm12 = vcmp.gt.f32.partialorder %v819_v11, 0.0  ;;  %v975_v21 = vmul.f32 0.2, %v819_v11  ;;  %v813_v23 = vpop.f32.mrb[23].mxu1 }
 0x113   : > { %1098 = vst [vmem:[%s1603_s28 + $0x188] sm:$0xff] %v1034_v15  ;;  %v1007_v20 = vsel %vm879_vm11, %v691_v4, %v943_v10  ;;  %v694_v22 = vadd.f32 %v1352_v13, %v1594_v37  ;;  %vm877_vm13 = vcmp.gt.f32.partialorder %v683_v16, 0.0  ;;  %v941_v24 = vmul.f32 0.2, %v683_v16 }
 0x114   : > { %1071 = vst [vmem:[%s1603_s28 + $0xb0] sm:$0xff] %v1007_v20  ;;  %vm909_vm14 = vcmp.gt.f32.partialorder %v811_v17, 0.0  ;;  %v973_v25 = vmul.f32 0.2, %v811_v17  ;;  %v1039_v26 = vsel %vm911_vm12, %v819_v11, %v975_v21  ;;  %v822_v28 = vadd.f32 %v1384_v18, %v1594_v37 }
 0x115   : > { %vm880_vm15 = vcmp.gt.f32.partialorder %v694_v22, 0.0  ;;  %v944_v27 = vmul.f32 0.2, %v694_v22  ;;  %1103 = vst [vmem:[%s1603_s28 + $0x1b0] sm:$0xff] %v1039_v26  ;;  %v1005_v29 = vsel %vm877_vm13, %v683_v16, %v941_v24  ;;  %v686_v31 = vadd.f32 %v1594_v37, %v685_v19 }
 0x116   : > { %v1037_v30 = vsel %vm909_vm14, %v811_v17, %v973_v25  ;;  %v814_v32 = vadd.f32 %v1594_v37, %v813_v23  ;;  %v1355_v33 = vpop.f32.mrb[24].mxu0  ;;  %1069 = vst [vmem:[%s1603_s28 + $0xa0] sm:$0xff] %v1005_v29  ;;  %vm912_vm0 = vcmp.gt.f32.partialorder %v822_v28, 0.0  ;;  %v976_v35 = vmul.f32 0.2, %v822_v28 }
 0x117   : > { %1101 = vst [vmem:[%s1603_s28 + $0x1a0] sm:$0xff] %v1037_v30  ;;  %v1008_v34 = vsel %vm880_vm15, %v694_v22, %v944_v27  ;;  %v707_v36 = vadd.f32 %v1355_v33, %v1594_v37  ;;  %v1387_v38 = vpop.f32.mrb[24].mxu1  ;;  %v698_v39 = vpop.f32.mrb[25].mxu0  ;;  %vm878_vm1 = vcmp.gt.f32.partialorder %v686_v31, 0.0  ;;  %v942_v40 = vmul.f32 0.2, %v686_v31 }
 0x118   : > { %1072 = vst [vmem:[%s1603_s28 + $0xb8] sm:$0xff] %v1008_v34  ;;  %vm910_vm2 = vcmp.gt.f32.partialorder %v814_v32, 0.0  ;;  %v974_v41 = vmul.f32 0.2, %v814_v32  ;;  %v1040_v42 = vsel %vm912_vm0, %v822_v28, %v976_v35  ;;  %v835_v44 = vadd.f32 %v1387_v38, %v1594_v37  ;;  %v826_v45 = vpop.f32.mrb[25].mxu1  ;;  %v1356_v46 = vpop.f32.mrb[26].mxu0 }
 0x119   : > { %vm883_vm3 = vcmp.gt.f32.partialorder %v707_v36, 0.0  ;;  %v947_v43 = vmul.f32 0.2, %v707_v36  ;;  %1104 = vst [vmem:[%s1603_s28 + $0x1b8] sm:$0xff] %v1040_v42  ;;  %v1006_v47 = vsel %vm878_vm1, %v686_v31, %v942_v40  ;;  %v699_v49 = vadd.f32 %v1594_v37, %v698_v39  ;;  %v1388_v51 = vpop.f32.mrb[26].mxu1  ;;  %v701_v52 = vpop.f32.mrb[27].mxu0 }
 0x11a   : > { %v1038_v48 = vsel %vm910_vm2, %v814_v32, %v974_v41  ;;  %v827_v50 = vadd.f32 %v1594_v37, %v826_v45  ;;  %1070 = vst [vmem:[%s1603_s28 + $0xa8] sm:$0xff] %v1006_v47  ;;  %vm915_vm4 = vcmp.gt.f32.partialorder %v835_v44, 0.0  ;;  %v979_v54 = vmul.f32 0.2, %v835_v44  ;;  %v829_v56 = vpop.f32.mrb[27].mxu1 }
 0x11b   : > { %1102 = vst [vmem:[%s1603_s28 + $0x1a8] sm:$0xff] %v1038_v48  ;;  %v1011_v53 = vsel %vm883_vm3, %v707_v36, %v947_v43  ;;  %v710_v55 = vadd.f32 %v1356_v46, %v1594_v37  ;;  %vm881_vm5 = vcmp.gt.f32.partialorder %v699_v49, 0.0  ;;  %v945_v57 = vmul.f32 0.2, %v699_v49 }
 0x11c   : > { %1075 = vst [vmem:[%s1603_s28 + $0xd0] sm:$0xff] %v1011_v53  ;;  %vm913_vm6 = vcmp.gt.f32.partialorder %v827_v50, 0.0  ;;  %v977_v58 = vmul.f32 0.2, %v827_v50  ;;  %v1043_v59 = vsel %vm915_vm4, %v835_v44, %v979_v54  ;;  %v838_v61 = vadd.f32 %v1388_v51, %v1594_v37 }
 0x11d   : > { %vm884_vm7 = vcmp.gt.f32.partialorder %v710_v55, 0.0  ;;  %v948_v60 = vmul.f32 0.2, %v710_v55  ;;  %1107 = vst [vmem:[%s1603_s28 + $0x1d0] sm:$0xff] %v1043_v59  ;;  %v1009_v62 = vsel %vm881_vm5, %v699_v49, %v945_v57  ;;  %v702_v0 = vadd.f32 %v1594_v37, %v701_v52 }
 0x11e   : > { %v1041_v63 = vsel %vm913_vm6, %v827_v50, %v977_v58  ;;  %v830_v1 = vadd.f32 %v1594_v37, %v829_v56  ;;  %v1359_v2 = vpop.f32.mrb[28].mxu0  ;;  %1073 = vst [vmem:[%s1603_s28 + $0xc0] sm:$0xff] %v1009_v62  ;;  %vm916_vm8 = vcmp.gt.f32.partialorder %v838_v61, 0.0  ;;  %v980_v4 = vmul.f32 0.2, %v838_v61 }
 0x11f   : > { %1105 = vst [vmem:[%s1603_s28 + $0x1c0] sm:$0xff] %v1041_v63  ;;  %v1012_v3 = vsel %vm884_vm7, %v710_v55, %v948_v60  ;;  %v723_v5 = vadd.f32 %v1359_v2, %v1594_v37  ;;  %v1391_v6 = vpop.f32.mrb[28].mxu1  ;;  %v714_v7 = vpop.f32.mrb[29].mxu0  ;;  %vm882_vm9 = vcmp.gt.f32.partialorder %v702_v0, 0.0  ;;  %v946_v8 = vmul.f32 0.2, %v702_v0 }
 0x120   : > { %1076 = vst [vmem:[%s1603_s28 + $0xd8] sm:$0xff] %v1012_v3  ;;  %vm914_vm10 = vcmp.gt.f32.partialorder %v830_v1, 0.0  ;;  %v978_v9 = vmul.f32 0.2, %v830_v1  ;;  %v1044_v10 = vsel %vm916_vm8, %v838_v61, %v980_v4  ;;  %v851_v12 = vadd.f32 %v1391_v6, %v1594_v37  ;;  %v842_v13 = vpop.f32.mrb[29].mxu1  ;;  %v1360_v14 = vpop.f32.mrb[30].mxu0 }
 0x121   : > { %vm887_vm11 = vcmp.gt.f32.partialorder %v723_v5, 0.0  ;;  %v951_v11 = vmul.f32 0.2, %v723_v5  ;;  %1108 = vst [vmem:[%s1603_s28 + $0x1d8] sm:$0xff] %v1044_v10  ;;  %v1010_v15 = vsel %vm882_vm9, %v702_v0, %v946_v8  ;;  %v715_v17 = vadd.f32 %v1594_v37, %v714_v7  ;;  %v1392_v19 = vpop.f32.mrb[30].mxu1  ;;  %v717_v20 = vpop.f32.mrb[31].mxu0 }
 0x122   : > { %v1042_v16 = vsel %vm914_vm10, %v830_v1, %v978_v9  ;;  %v843_v18 = vadd.f32 %v1594_v37, %v842_v13  ;;  %1074 = vst [vmem:[%s1603_s28 + $0xc8] sm:$0xff] %v1010_v15  ;;  %vm919_vm12 = vcmp.gt.f32.partialorder %v851_v12, 0.0  ;;  %v983_v22 = vmul.f32 0.2, %v851_v12  ;;  %v845_v24 = vpop.f32.mrb[31].mxu1 }
 0x123   : > { %1106 = vst [vmem:[%s1603_s28 + $0x1c8] sm:$0xff] %v1042_v16  ;;  %v1015_v21 = vsel %vm887_vm11, %v723_v5, %v951_v11  ;;  %v726_v23 = vadd.f32 %v1360_v14, %v1594_v37  ;;  %vm885_vm13 = vcmp.gt.f32.partialorder %v715_v17, 0.0  ;;  %v949_v25 = vmul.f32 0.2, %v715_v17 }
 0x124   : > { %1079 = vst [vmem:[%s1603_s28 + $0xf0] sm:$0xff] %v1015_v21  ;;  %vm917_vm14 = vcmp.gt.f32.partialorder %v843_v18, 0.0  ;;  %v981_v26 = vmul.f32 0.2, %v843_v18  ;;  %v1047_v27 = vsel %vm919_vm12, %v851_v12, %v983_v22  ;;  %v854_v29 = vadd.f32 %v1392_v19, %v1594_v37 }
 0x125   : > { %vm888_vm15 = vcmp.gt.f32.partialorder %v726_v23, 0.0  ;;  %v952_v28 = vmul.f32 0.2, %v726_v23  ;;  %1111 = vst [vmem:[%s1603_s28 + $0x1f0] sm:$0xff] %v1047_v27  ;;  %v1013_v30 = vsel %vm885_vm13, %v715_v17, %v949_v25  ;;  %v718_v32 = vadd.f32 %v1594_v37, %v717_v20 }
 0x126   : > { %v1045_v31 = vsel %vm917_vm14, %v843_v18, %v981_v26  ;;  %v846_v33 = vadd.f32 %v1594_v37, %v845_v24  ;;  %1077 = vst [vmem:[%s1603_s28 + $0xe0] sm:$0xff] %v1013_v30  ;;  %vm920_vm0 = vcmp.gt.f32.partialorder %v854_v29, 0.0  ;;  %v984_v35 = vmul.f32 0.2, %v854_v29 }
 0x127   : > { %1109 = vst [vmem:[%s1603_s28 + $0x1e0] sm:$0xff] %v1045_v31  ;;  %v1016_v34 = vsel %vm888_vm15, %v726_v23, %v952_v28  ;;  %vm886_vm1 = vcmp.gt.f32.partialorder %v718_v32, 0.0  ;;  %v950_v36 = vmul.f32 0.2, %v718_v32 }
 0x128   : > { %1080 = vst [vmem:[%s1603_s28 + $0xf8] sm:$0xff] %v1016_v34  ;;  %vm918_vm2 = vcmp.gt.f32.partialorder %v846_v33, 0.0  ;;  %v982_v38 = vmul.f32 0.2, %v846_v33  ;;  %v1048_v39 = vsel %vm920_vm0, %v854_v29, %v984_v35 }
 0x129   : > { %1112 = vst [vmem:[%s1603_s28 + $0x1f8] sm:$0xff] %v1048_v39  ;;  %v1014_v40 = vsel %vm886_vm1, %v718_v32, %v950_v36 }
 0x12a   : > { %v1046_v41 = vsel %vm918_vm2, %v846_v33, %v982_v38  ;;  %1078 = vst [vmem:[%s1603_s28 + $0xe8] sm:$0xff] %v1014_v40 }
 0x12b   : > { %1110 = vst [vmem:[%s1603_s28 + $0x1e8] sm:$0xff] %v1046_v41 }
 0x12c PF: > { %s13_s14 = sadd.s32 1, %s1475_s14   ;;  %s1743_s12 = smov %s1471_s13 }
 0x12d   : > { %p10_p5 = scmp.ge.s32.totalorder %s13_s14, 6   ;;  %s1744_s13 = smov %s1746_s15 }
 0x12f   :  { %12 = sbr.rel (!%p10_p5) target bundleno = 2 (0x2), region = 68 }

// kernel: discriminator_forward.8
= control target key start
LH: loop header
LB: loop body
LE: loop exit
PB: predicated region body
PF: predicated region fallthrough
CT: control target
= control target key end

     0   :  { %s1718_s12 = smov 0   ;;  %s1720_s13 = smov 0   ;;  %s2018_s0 = inlined_call_operand.vmem [shape: bf16[2048,144], index: 0, kind: input, shape index: {}]   ;;  %s2019_s1 = inlined_call_operand.vmem [shape: bf16[144,128], index: 1, kind: input, shape index: {}]   ;;  %s2020_s2 = inlined_call_operand.vmem [shape: f32[1,128], index: 2, kind: input, shape index: {}]   ;;  %s2021_s3 = inlined_call_operand.vmem [shape: f32[2048,128], index: 3, kind: output, shape index: {}]  }
   0x1   :  { %s1722_s14 = smov 0  }
   0x2 LB: > { %s25_s15 = sadd.s32 1, %s1691_s13  ;;  %p1410_p0 = scmp.ge.s32.totalorder %s1695_s14, 1  ;;  %s1695_s14 = sphi %s1722_s14, %s13_s14   ;;  %s1691_s13 = sphi %s1720_s13, %s2023_s13   ;;  %s1687_s12 = sphi %s1718_s12, %s2022_s12  }
   0x3   : > { %p27_p1 = scmp.ge.s32.totalorder %s25_s15, 4  ;;  %p170_p2 = scmp.lt.s32.totalorder %s1695_s14, 5 }
   0x5   : > { %s2025_s15 = smov (%p27_p1, %s25_s15), 0  ;;  %p171_p3 = pnand %p1410_p0, %p170_p2 }
   0x6   : > { %v1568_v0 = vld [vmem:[%s2019_s1] sm:$0xff] (!%p171_p3)   ;;  %v1697_v1 = vmov (!%p171_p3), 0   ;;  %s1411_s18 = sshll.u32 (!%p171_p3), %s1687_s12, 6  ;;  %v1569_v2 = vld [vmem:[%s2019_s1 + $0x8] sm:$0xff] (!%p171_p3)   ;;  %v1570_v3 = vld [vmem:[%s2019_s1 + $0x10] sm:$0xff] (!%p171_p3)   ;;  %vm660_vm0 = vcmask (!%p171_p3), 130048  }
   0x7   : > { %174 = sbr.rel (%p171_p3) target bundleno = 385 (0x181), region = 32  ;;  %757 = vmatprep.subr.bf16.mxu0 (!%p171_p3), %v1697_v1  ;;  %1525 = vmatprep.subr.bf16.mxu1 (!%p171_p3), %v1697_v1  ;;  %p206_p4 = scmp.lt.s32.totalorder (!%p171_p3), %s1411_s18, 255  ;;  %v1571_v4 = vld [vmem:[%s2019_s1 + $0x18] sm:$0xff] (!%p171_p3)   ;;  %v1572_v7 = vld [vmem:[%s2019_s1 + $0x20] sm:$0xff] (!%p171_p3)   ;;  %v1573_v8 = vld [vmem:[%s2019_s1 + $0x28] sm:$0xff] (!%p171_p3)  }
   0x8   : > { %758 = vmatpush1.bf16.msra.mxu0 (!%p171_p3), %v1568_v0  ;;  %1534 = vmatpush1.bf16.msra.mxu1 (!%p171_p3), %v1568_v0  ;;  %v1574_v9 = vld [vmem:[%s2019_s1 + $0x30] sm:$0xff] (!%p171_p3)   ;;  %v1575_v10 = vld [vmem:[%s2019_s1 + $0x38] sm:$0xff] (!%p171_p3)   ;;  %v1576_v11 = vld [vmem:[%s2019_s1 + $0x40] sm:$0xff] (!%p171_p3)  }
   0x9   : > { %759 = vmatprep.subr.bf16.mxu0 (!%p171_p3), %v1697_v1  ;;  %1526 = vmatprep.subr.bf16.mxu1 (!%p171_p3), %v1697_v1 }
   0xc   : > { %760 = vmatpush1.bf16.msra.mxu0 (!%p171_p3), %v1569_v2  ;;  %1535 = vmatpush1.bf16.msra.mxu1 (!%p171_p3), %v1569_v2 }
   0xd   : > { %761 = vmatprep.subr.bf16.mxu0 (!%p171_p3), %v1697_v1  ;;  %1527 = vmatprep.subr.bf16.mxu1 (!%p171_p3), %v1697_v1 }
   0xe   : > { %s2027_s18 = smov (!%p206_p4, %s1411_s18), 255 }
   0xf   : > { %s1524_s23 = sshll.u32 %s2027_s18, 3 }
  0x10   : > { %s1753_s26 = scalar_lea.vmem %s2018_s0, %s1524_s23  ;;  %762 = vmatpush1.bf16.msra.mxu0 %v1570_v3  ;;  %1536 = vmatpush1.bf16.msra.mxu1 %v1570_v3  ;;  %s1881_s20 = scalar_lea.vmem %s2021_s3, %s1524_s23 }
  0x11   : > { %v1579_v5 = vld [vmem:[%s1753_s26 + $0x4] ss:$8 sps:$4 sm:$0xff]   ;;  %763 = vmatprep.subr.bf16.mxu0 %v1697_v1  ;;  %1528 = vmatprep.subr.bf16.mxu1 %v1697_v1  ;;  %v1577_v12 = vld [vmem:[%s1753_s26] ss:$8 sps:$4 sm:$0xff]   ;;  %v1583_v14 = vld [vmem:[%s1753_s26 + $0x14] ss:$8 sps:$4 sm:$0xff]  }
  0x12   : > { %v1582_v6 = vld [vmem:[%s1753_s26 + $0x104] ss:$8 sps:$4 sm:$0xff]   ;;  %1490 = vmatprep.mubr.msk.bf16.mxu0 %vm660_vm0, %v1579_v5  ;;  %v1580_v13 = vld [vmem:[%s1753_s26 + $0x100] ss:$8 sps:$4 sm:$0xff]   ;;  %v1585_v15 = vld [vmem:[%s1753_s26 + $0x114] ss:$8 sps:$4 sm:$0xff]  }
  0x13   : > { %1506 = vmatprep.mubr.msk.bf16.mxu1 %vm660_vm0, %v1582_v6  ;;  %v1587_v16 = vld [vmem:[%s1753_s26 + $0x10] ss:$8 sps:$4 sm:$0xff]   ;;  %v1589_v18 = vld [vmem:[%s1753_s26 + $0x24] ss:$8 sps:$4 sm:$0xff]   ;;  %v1593_v20 = vld [vmem:[%s1753_s26 + $0x20] ss:$8 sps:$4 sm:$0xff]  }
  0x14   : > { %764 = vmatpush1.bf16.msra.mxu0 %v1571_v4  ;;  %1537 = vmatpush1.bf16.msra.mxu1 %v1571_v4  ;;  %v1588_v17 = vld [vmem:[%s1753_s26 + $0x110] ss:$8 sps:$4 sm:$0xff]   ;;  %v1591_v19 = vld [vmem:[%s1753_s26 + $0x124] ss:$8 sps:$4 sm:$0xff]   ;;  %v1594_v21 = vld [vmem:[%s1753_s26 + $0x120] ss:$8 sps:$4 sm:$0xff]  }
  0x15   : > { %765 = vmatprep.subr.bf16.mxu0 %v1697_v1  ;;  %1529 = vmatprep.subr.bf16.mxu1 %v1697_v1  ;;  %v1595_v22 = vld [vmem:[%s1753_s26 + $0x34] ss:$8 sps:$4 sm:$0xff]   ;;  %v1599_v24 = vld [vmem:[%s1753_s26 + $0x30] ss:$8 sps:$4 sm:$0xff]   ;;  %v1601_v26 = vld [vmem:[%s1753_s26 + $0x44] ss:$8 sps:$4 sm:$0xff]  }
  0x16   : > { %v1597_v23 = vld [vmem:[%s1753_s26 + $0x134] ss:$8 sps:$4 sm:$0xff]   ;;  %v1600_v25 = vld [vmem:[%s1753_s26 + $0x130] ss:$8 sps:$4 sm:$0xff]   ;;  %v1603_v27 = vld [vmem:[%s1753_s26 + $0x144] ss:$8 sps:$4 sm:$0xff]  }
  0x17   : > { %v1605_v28 = vld [vmem:[%s1753_s26 + $0x40] ss:$8 sps:$4 sm:$0xff]   ;;  %v1607_v30 = vld [vmem:[%s1753_s26 + $0x54] ss:$8 sps:$4 sm:$0xff]   ;;  %v1611_v32 = vld [vmem:[%s1753_s26 + $0x50] ss:$8 sps:$4 sm:$0xff]  }
  0x18   : > { %766 = vmatpush1.bf16.msra.mxu0 %v1572_v7  ;;  %1538 = vmatpush1.bf16.msra.mxu1 %v1572_v7  ;;  %v1606_v29 = vld [vmem:[%s1753_s26 + $0x140] ss:$8 sps:$4 sm:$0xff]   ;;  %v1609_v31 = vld [vmem:[%s1753_s26 + $0x154] ss:$8 sps:$4 sm:$0xff]   ;;  %v1612_v33 = vld [vmem:[%s1753_s26 + $0x150] ss:$8 sps:$4 sm:$0xff]  }
  0x19   : > { %767 = vmatprep.subr.bf16.mxu0 %v1697_v1  ;;  %1530 = vmatprep.subr.bf16.mxu1 %v1697_v1  ;;  %v1613_v34 = vld [vmem:[%s1753_s26 + $0x64] ss:$8 sps:$4 sm:$0xff]   ;;  %v1617_v36 = vld [vmem:[%s1753_s26 + $0x60] ss:$8 sps:$4 sm:$0xff]   ;;  %v1619_v38 = vld [vmem:[%s1753_s26 + $0x74] ss:$8 sps:$4 sm:$0xff]  }
  0x1a   : > { %v1615_v35 = vld [vmem:[%s1753_s26 + $0x164] ss:$8 sps:$4 sm:$0xff]   ;;  %v1618_v37 = vld [vmem:[%s1753_s26 + $0x160] ss:$8 sps:$4 sm:$0xff]   ;;  %v1621_v39 = vld [vmem:[%s1753_s26 + $0x174] ss:$8 sps:$4 sm:$0xff]  }
  0x1b   : > { %v1623_v40 = vld [vmem:[%s1753_s26 + $0x70] ss:$8 sps:$4 sm:$0xff]   ;;  %v1625_v42 = vld [vmem:[%s1753_s26 + $0x84] ss:$8 sps:$4 sm:$0xff]   ;;  %v1629_v44 = vld [vmem:[%s1753_s26 + $0x80] ss:$8 sps:$4 sm:$0xff]  }
  0x1c   : > { %768 = vmatpush1.bf16.msra.mxu0 %v1573_v8  ;;  %1539 = vmatpush1.bf16.msra.mxu1 %v1573_v8  ;;  %v1624_v41 = vld [vmem:[%s1753_s26 + $0x170] ss:$8 sps:$4 sm:$0xff]   ;;  %v1627_v43 = vld [vmem:[%s1753_s26 + $0x184] ss:$8 sps:$4 sm:$0xff]   ;;  %v1630_v45 = vld [vmem:[%s1753_s26 + $0x180] ss:$8 sps:$4 sm:$0xff]  }
  0x1d   : > { %769 = vmatprep.subr.bf16.mxu0 %v1697_v1  ;;  %1531 = vmatprep.subr.bf16.mxu1 %v1697_v1  ;;  %v1631_v46 = vld [vmem:[%s1753_s26 + $0x94] ss:$8 sps:$4 sm:$0xff]   ;;  %v1635_v48 = vld [vmem:[%s1753_s26 + $0x90] ss:$8 sps:$4 sm:$0xff]   ;;  %v1637_v50 = vld [vmem:[%s1753_s26 + $0xa4] ss:$8 sps:$4 sm:$0xff]  }
  0x1e   : > { %v1633_v47 = vld [vmem:[%s1753_s26 + $0x194] ss:$8 sps:$4 sm:$0xff]   ;;  %v1636_v49 = vld [vmem:[%s1753_s26 + $0x190] ss:$8 sps:$4 sm:$0xff]   ;;  %v1639_v51 = vld [vmem:[%s1753_s26 + $0x1a4] ss:$8 sps:$4 sm:$0xff]  }
  0x1f   : > { %v1641_v52 = vld [vmem:[%s1753_s26 + $0xa0] ss:$8 sps:$4 sm:$0xff]   ;;  %v1643_v54 = vld [vmem:[%s1753_s26 + $0xb4] ss:$8 sps:$4 sm:$0xff]   ;;  %v1647_v56 = vld [vmem:[%s1753_s26 + $0xb0] ss:$8 sps:$4 sm:$0xff]  }
  0x20   : > { %770 = vmatpush1.bf16.msra.mxu0 %v1574_v9  ;;  %1540 = vmatpush1.bf16.msra.mxu1 %v1574_v9  ;;  %v1642_v53 = vld [vmem:[%s1753_s26 + $0x1a0] ss:$8 sps:$4 sm:$0xff]   ;;  %v1645_v55 = vld [vmem:[%s1753_s26 + $0x1b4] ss:$8 sps:$4 sm:$0xff]   ;;  %v1648_v57 = vld [vmem:[%s1753_s26 + $0x1b0] ss:$8 sps:$4 sm:$0xff]  }
  0x21   : > { %771 = vmatprep.subr.bf16.mxu0 %v1697_v1  ;;  %1532 = vmatprep.subr.bf16.mxu1 %v1697_v1  ;;  %v1649_v58 = vld [vmem:[%s1753_s26 + $0xc4] ss:$8 sps:$4 sm:$0xff]   ;;  %v1653_v60 = vld [vmem:[%s1753_s26 + $0xc0] ss:$8 sps:$4 sm:$0xff]   ;;  %v1655_v62 = vld [vmem:[%s1753_s26 + $0xd4] ss:$8 sps:$4 sm:$0xff]  }
  0x22   : > { %v1651_v59 = vld [vmem:[%s1753_s26 + $0x1c4] ss:$8 sps:$4 sm:$0xff]   ;;  %v1654_v61 = vld [vmem:[%s1753_s26 + $0x1c0] ss:$8 sps:$4 sm:$0xff]   ;;  %v1657_v63 = vld [vmem:[%s1753_s26 + $0x1d4] ss:$8 sps:$4 sm:$0xff]  }
  0x23   : > { %v1659_v0 = vld [vmem:[%s1753_s26 + $0xd0] ss:$8 sps:$4 sm:$0xff]   ;;  %v1661_v2 = vld [vmem:[%s1753_s26 + $0xe4] ss:$8 sps:$4 sm:$0xff]   ;;  %v1665_v4 = vld [vmem:[%s1753_s26 + $0xe0] ss:$8 sps:$4 sm:$0xff]  }
  0x24   : > { %772 = vmatpush1.bf16.msra.mxu0 %v1575_v10  ;;  %1541 = vmatpush1.bf16.msra.mxu1 %v1575_v10  ;;  %v1663_v3 = vld [vmem:[%s1753_s26 + $0x1e4] ss:$8 sps:$4 sm:$0xff]   ;;  %v1666_v5 = vld [vmem:[%s1753_s26 + $0x1e0] ss:$8 sps:$4 sm:$0xff]   ;;  %v1667_v6 = vld [vmem:[%s1753_s26 + $0xf4] ss:$8 sps:$4 sm:$0xff]  }
  0x25   : > { %773 = vmatprep.subr.bf16.mxu0 %v1697_v1  ;;  %1533 = vmatprep.subr.bf16.mxu1 %v1697_v1  ;;  %v1660_v1 = vld [vmem:[%s1753_s26 + $0x1d0] ss:$8 sps:$4 sm:$0xff]   ;;  %v1669_v7 = vld [vmem:[%s1753_s26 + $0x1f4] ss:$8 sps:$4 sm:$0xff]   ;;  %v1872_v10 = vld [vmem:[%s2020_s2] ss:$0 sm:$0xff] }
  0x26   : > { %v1671_v8 = vld [vmem:[%s1753_s26 + $0xf0] ss:$8 sps:$4 sm:$0xff]  }
  0x27   : > { %v1672_v9 = vld [vmem:[%s1753_s26 + $0x1f0] ss:$8 sps:$4 sm:$0xff]  }
  0x28   : > { %774 = vmatpush1.bf16.msra.mxu0 %v1576_v11  ;;  %1542 = vmatpush1.bf16.msra.mxu1 %v1576_v11 }
  0x2b   : > { %790 = vmatmul.mubr.bf16.vlgmr.msra.gmra.mrb[0].mxu0 %v1577_v12  ;;  %918 = vmatmul.mubr.bf16.vlgmr.msra.gmra.mrb[0].mxu1 %v1580_v13 }
  0x2c   : > { %1491 = vmatprep.mubr.msk.bf16.mxu0 %vm660_vm0, %v1583_v14  ;;  %1507 = vmatprep.mubr.msk.bf16.mxu1 %vm660_vm0, %v1585_v15 }
  0x33   : > { %798 = vmatmul.mubr.bf16.gmra.mrb[4].mxu0 %v1587_v16  ;;  %926 = vmatmul.mubr.bf16.gmra.mrb[4].mxu1 %v1588_v17 }
  0x34   : > { %1492 = vmatprep.mubr.msk.bf16.mxu0 %vm660_vm0, %v1589_v18  ;;  %1508 = vmatprep.mubr.msk.bf16.mxu1 %vm660_vm0, %v1591_v19 }
  0x3b   : > { %806 = vmatmul.mubr.bf16.gmra.mrb[8].mxu0 %v1593_v20  ;;  %934 = vmatmul.mubr.bf16.gmra.mrb[8].mxu1 %v1594_v21 }
  0x3c   : > { %1493 = vmatprep.mubr.msk.bf16.mxu0 %vm660_vm0, %v1595_v22  ;;  %1509 = vmatprep.mubr.msk.bf16.mxu1 %vm660_vm0, %v1597_v23 }
  0x43   : > { %814 = vmatmul.mubr.bf16.gmra.mrb[12].mxu0 %v1599_v24  ;;  %942 = vmatmul.mubr.bf16.gmra.mrb[12].mxu1 %v1600_v25 }
  0x44   : > { %1494 = vmatprep.mubr.msk.bf16.mxu0 %vm660_vm0, %v1601_v26  ;;  %1510 = vmatprep.mubr.msk.bf16.mxu1 %vm660_vm0, %v1603_v27 }
  0x4b   : > { %822 = vmatmul.mubr.bf16.gmra.mrb[16].mxu0 %v1605_v28  ;;  %950 = vmatmul.mubr.bf16.gmra.mrb[16].mxu1 %v1606_v29 }
  0x4c   : > { %1495 = vmatprep.mubr.msk.bf16.mxu0 %vm660_vm0, %v1607_v30  ;;  %1511 = vmatprep.mubr.msk.bf16.mxu1 %vm660_vm0, %v1609_v31 }
  0x53   : > { %830 = vmatmul.mubr.bf16.gmra.mrb[20].mxu0 %v1611_v32  ;;  %958 = vmatmul.mubr.bf16.gmra.mrb[20].mxu1 %v1612_v33 }
  0x54   : > { %1496 = vmatprep.mubr.msk.bf16.mxu0 %vm660_vm0, %v1613_v34  ;;  %1512 = vmatprep.mubr.msk.bf16.mxu1 %vm660_vm0, %v1615_v35 }
  0x5b   : > { %838 = vmatmul.mubr.bf16.gmra.mrb[24].mxu0 %v1617_v36  ;;  %966 = vmatmul.mubr.bf16.gmra.mrb[24].mxu1 %v1618_v37 }
  0x5c   : > { %1497 = vmatprep.mubr.msk.bf16.mxu0 %vm660_vm0, %v1619_v38  ;;  %1513 = vmatprep.mubr.msk.bf16.mxu1 %vm660_vm0, %v1621_v39 }
  0x63   : > { %846 = vmatmul.mubr.bf16.gmra.mrb[28].mxu0 %v1623_v40  ;;  %974 = vmatmul.mubr.bf16.gmra.mrb[28].mxu1 %v1624_v41 }
  0x64   : > { %1498 = vmatprep.mubr.msk.bf16.mxu0 %vm660_vm0, %v1625_v42  ;;  %1514 = vmatprep.mubr.msk.bf16.mxu1 %vm660_vm0, %v1627_v43 }
  0x6b   : > { %854 = vmatmul.mubr.bf16.gmra.mrb[32].mxu0 %v1629_v44  ;;  %982 = vmatmul.mubr.bf16.gmra.mrb[32].mxu1 %v1630_v45 }
  0x6c   : > { %1499 = vmatprep.mubr.msk.bf16.mxu0 %vm660_vm0, %v1631_v46  ;;  %1515 = vmatprep.mubr.msk.bf16.mxu1 %vm660_vm0, %v1633_v47 }
  0x73   : > { %862 = vmatmul.mubr.bf16.gmra.mrb[36].mxu0 %v1635_v48  ;;  %990 = vmatmul.mubr.bf16.gmra.mrb[36].mxu1 %v1636_v49 }
  0x74   : > { %1500 = vmatprep.mubr.msk.bf16.mxu0 %vm660_vm0, %v1637_v50  ;;  %1516 = vmatprep.mubr.msk.bf16.mxu1 %vm660_vm0, %v1639_v51 }
  0x7b   : > { %870 = vmatmul.mubr.bf16.gmra.mrb[40].mxu0 %v1641_v52  ;;  %998 = vmatmul.mubr.bf16.gmra.mrb[40].mxu1 %v1642_v53 }
  0x7c   : > { %1501 = vmatprep.mubr.msk.bf16.mxu0 %vm660_vm0, %v1643_v54  ;;  %1517 = vmatprep.mubr.msk.bf16.mxu1 %vm660_vm0, %v1645_v55 }
  0x83   : > { %878 = vmatmul.mubr.bf16.gmra.mrb[44].mxu0 %v1647_v56  ;;  %1006 = vmatmul.mubr.bf16.gmra.mrb[44].mxu1 %v1648_v57 }
  0x84   : > { %1502 = vmatprep.mubr.msk.bf16.mxu0 %vm660_vm0, %v1649_v58  ;;  %1518 = vmatprep.mubr.msk.bf16.mxu1 %vm660_vm0, %v1651_v59 }
  0x8b   : > { %886 = vmatmul.mubr.bf16.gmra.mrb[48].mxu0 %v1653_v60  ;;  %1014 = vmatmul.mubr.bf16.gmra.mrb[48].mxu1 %v1654_v61 }
  0x8c   : > { %1503 = vmatprep.mubr.msk.bf16.mxu0 %vm660_vm0, %v1655_v62  ;;  %1519 = vmatprep.mubr.msk.bf16.mxu1 %vm660_vm0, %v1657_v63 }
  0x93   : > { %894 = vmatmul.mubr.bf16.gmra.mrb[52].mxu0 %v1659_v0  ;;  %1022 = vmatmul.mubr.bf16.gmra.mrb[52].mxu1 %v1660_v1 }
  0x94   : > { %1504 = vmatprep.mubr.msk.bf16.mxu0 %vm660_vm0, %v1661_v2  ;;  %1520 = vmatprep.mubr.msk.bf16.mxu1 %vm660_vm0, %v1663_v3 }
  0x9b   : > { %902 = vmatmul.mubr.bf16.gmra.mrb[56].mxu0 %v1665_v4  ;;  %1030 = vmatmul.mubr.bf16.gmra.mrb[56].mxu1 %v1666_v5 }
  0x9c   : > { %1505 = vmatprep.mubr.msk.bf16.mxu0 %vm660_vm0, %v1667_v6  ;;  %1521 = vmatprep.mubr.msk.bf16.mxu1 %vm660_vm0, %v1669_v7 }
  0xa3   : > { %910 = vmatmul.mubr.bf16.gmra.mrb[60].mxu0 %v1671_v8  ;;  %1038 = vmatmul.mubr.bf16.gmra.mrb[60].mxu1 %v1672_v9 }
  0xfe   : > { %v791_v11 = vpop.f32.mrb[0].mxu0  ;;  %v919_v12 = vpop.f32.mrb[0].mxu1 }
  0xff   : > { %v792_v13 = vadd.f32 %v1872_v10, %v791_v11  ;;  %v920_v14 = vadd.f32 %v1872_v10, %v919_v12  ;;  %v793_v15 = vpop.f32.mrb[1].mxu0  ;;  %v921_v16 = vpop.f32.mrb[1].mxu1 }
 0x100   : > { %v794_v17 = vpop.f32.mrb[2].mxu0  ;;  %v922_v18 = vpop.f32.mrb[2].mxu1 }
 0x101   : > { %vm1046_vm1 = vcmp.gt.f32.partialorder %v792_v13, 0.0  ;;  %v1110_v19 = vmul.f32 0.2, %v792_v13  ;;  %vm1078_vm2 = vcmp.gt.f32.partialorder %v920_v14, 0.0  ;;  %v1142_v20 = vmul.f32 0.2, %v920_v14 }
 0x102   : > { %v795_v21 = vadd.f32 %v1872_v10, %v794_v17  ;;  %v923_v22 = vadd.f32 %v1872_v10, %v922_v18  ;;  %v796_v23 = vpop.f32.mrb[3].mxu0  ;;  %v924_v24 = vpop.f32.mrb[3].mxu1 }
 0x103   : > { %v1174_v25 = vsel %vm1046_vm1, %v792_v13, %v1110_v19  ;;  %v1206_v26 = vsel %vm1078_vm2, %v920_v14, %v1142_v20 }
 0x104   : > { %1238 = vst [vmem:[%s1881_s20] sm:$0xff] %v1174_v25  ;;  %1270 = vst [vmem:[%s1881_s20 + $0x100] sm:$0xff] %v1206_v26  ;;  %vm1047_vm3 = vcmp.gt.f32.partialorder %v795_v21, 0.0  ;;  %v1111_v27 = vmul.f32 0.2, %v795_v21  ;;  %vm1079_vm4 = vcmp.gt.f32.partialorder %v923_v22, 0.0 }
 0x105   : > { %v1143_v28 = vmul.f32 0.2, %v923_v22 }
 0x106   : > { %v1175_v29 = vsel %vm1047_vm3, %v795_v21, %v1111_v27  ;;  %v799_v31 = vpop.f32.mrb[4].mxu0  ;;  %v927_v32 = vpop.f32.mrb[4].mxu1 }
 0x107   : > { %v1207_v30 = vsel %vm1079_vm4, %v923_v22, %v1143_v28  ;;  %1239 = vst [vmem:[%s1881_s20 + $0x8] sm:$0xff] %v1175_v29  ;;  %v800_v33 = vadd.f32 %v1872_v10, %v799_v31  ;;  %v928_v34 = vadd.f32 %v1872_v10, %v927_v32  ;;  %v801_v35 = vpop.f32.mrb[5].mxu0  ;;  %v929_v36 = vpop.f32.mrb[5].mxu1 }
 0x108   : > { %1271 = vst [vmem:[%s1881_s20 + $0x108] sm:$0xff] %v1207_v30  ;;  %v802_v37 = vpop.f32.mrb[6].mxu0  ;;  %v930_v38 = vpop.f32.mrb[6].mxu1 }
 0x109   : > { %vm1048_vm5 = vcmp.gt.f32.partialorder %v800_v33, 0.0  ;;  %v1112_v39 = vmul.f32 0.2, %v800_v33  ;;  %vm1080_vm6 = vcmp.gt.f32.partialorder %v928_v34, 0.0  ;;  %v1144_v40 = vmul.f32 0.2, %v928_v34 }
 0x10a   : > { %v803_v41 = vadd.f32 %v1872_v10, %v802_v37  ;;  %v931_v42 = vadd.f32 %v1872_v10, %v930_v38  ;;  %v804_v43 = vpop.f32.mrb[7].mxu0  ;;  %v932_v44 = vpop.f32.mrb[7].mxu1 }
 0x10b   : > { %v1176_v45 = vsel %vm1048_vm5, %v800_v33, %v1112_v39  ;;  %v1208_v46 = vsel %vm1080_vm6, %v928_v34, %v1144_v40 }
 0x10c   : > { %1240 = vst [vmem:[%s1881_s20 + $0x10] sm:$0xff] %v1176_v45  ;;  %1272 = vst [vmem:[%s1881_s20 + $0x110] sm:$0xff] %v1208_v46  ;;  %vm1049_vm7 = vcmp.gt.f32.partialorder %v803_v41, 0.0  ;;  %v1113_v47 = vmul.f32 0.2, %v803_v41  ;;  %vm1081_vm8 = vcmp.gt.f32.partialorder %v931_v42, 0.0 }
 0x10d   : > { %v1145_v48 = vmul.f32 0.2, %v931_v42 }
 0x10e   : > { %v1177_v49 = vsel %vm1049_vm7, %v803_v41, %v1113_v47  ;;  %v807_v51 = vpop.f32.mrb[8].mxu0  ;;  %v935_v52 = vpop.f32.mrb[8].mxu1 }
 0x10f   : > { %v1209_v50 = vsel %vm1081_vm8, %v931_v42, %v1145_v48  ;;  %1241 = vst [vmem:[%s1881_s20 + $0x18] sm:$0xff] %v1177_v49  ;;  %v808_v53 = vadd.f32 %v1872_v10, %v807_v51  ;;  %v936_v54 = vadd.f32 %v1872_v10, %v935_v52  ;;  %v809_v55 = vpop.f32.mrb[9].mxu0  ;;  %v937_v56 = vpop.f32.mrb[9].mxu1 }
 0x110   : > { %1273 = vst [vmem:[%s1881_s20 + $0x118] sm:$0xff] %v1209_v50  ;;  %v810_v57 = vpop.f32.mrb[10].mxu0  ;;  %v938_v58 = vpop.f32.mrb[10].mxu1 }
 0x111   : > { %vm1050_vm9 = vcmp.gt.f32.partialorder %v808_v53, 0.0  ;;  %v1114_v59 = vmul.f32 0.2, %v808_v53  ;;  %vm1082_vm10 = vcmp.gt.f32.partialorder %v936_v54, 0.0  ;;  %v1146_v60 = vmul.f32 0.2, %v936_v54 }
 0x112   : > { %v811_v61 = vadd.f32 %v1872_v10, %v810_v57  ;;  %v939_v62 = vadd.f32 %v1872_v10, %v938_v58  ;;  %v812_v63 = vpop.f32.mrb[11].mxu0  ;;  %v940_v0 = vpop.f32.mrb[11].mxu1 }
 0x113   : > { %v1178_v1 = vsel %vm1050_vm9, %v808_v53, %v1114_v59  ;;  %v1210_v2 = vsel %vm1082_vm10, %v936_v54, %v1146_v60 }
 0x114   : > { %1242 = vst [vmem:[%s1881_s20 + $0x20] sm:$0xff] %v1178_v1  ;;  %1274 = vst [vmem:[%s1881_s20 + $0x120] sm:$0xff] %v1210_v2  ;;  %vm1051_vm11 = vcmp.gt.f32.partialorder %v811_v61, 0.0  ;;  %v1115_v3 = vmul.f32 0.2, %v811_v61  ;;  %vm1083_vm12 = vcmp.gt.f32.partialorder %v939_v62, 0.0 }
 0x115   : > { %v1147_v4 = vmul.f32 0.2, %v939_v62 }
 0x116   : > { %v1179_v5 = vsel %vm1051_vm11, %v811_v61, %v1115_v3  ;;  %v815_v7 = vpop.f32.mrb[12].mxu0  ;;  %v943_v8 = vpop.f32.mrb[12].mxu1 }
 0x117   : > { %v1211_v6 = vsel %vm1083_vm12, %v939_v62, %v1147_v4  ;;  %1243 = vst [vmem:[%s1881_s20 + $0x28] sm:$0xff] %v1179_v5  ;;  %v816_v9 = vadd.f32 %v1872_v10, %v815_v7  ;;  %v944_v11 = vadd.f32 %v1872_v10, %v943_v8  ;;  %v817_v12 = vpop.f32.mrb[13].mxu0  ;;  %v945_v13 = vpop.f32.mrb[13].mxu1 }
 0x118   : > { %1275 = vst [vmem:[%s1881_s20 + $0x128] sm:$0xff] %v1211_v6  ;;  %v818_v14 = vpop.f32.mrb[14].mxu0  ;;  %v946_v15 = vpop.f32.mrb[14].mxu1 }
 0x119   : > { %vm1052_vm13 = vcmp.gt.f32.partialorder %v816_v9, 0.0  ;;  %v1116_v16 = vmul.f32 0.2, %v816_v9  ;;  %vm1084_vm14 = vcmp.gt.f32.partialorder %v944_v11, 0.0  ;;  %v1148_v17 = vmul.f32 0.2, %v944_v11 }
 0x11a   : > { %v819_v18 = vadd.f32 %v1872_v10, %v818_v14  ;;  %v947_v19 = vadd.f32 %v1872_v10, %v946_v15  ;;  %v820_v20 = vpop.f32.mrb[15].mxu0  ;;  %v948_v21 = vpop.f32.mrb[15].mxu1 }
 0x11b   : > { %v1180_v22 = vsel %vm1052_vm13, %v816_v9, %v1116_v16  ;;  %v1212_v23 = vsel %vm1084_vm14, %v944_v11, %v1148_v17 }
 0x11c   : > { %1244 = vst [vmem:[%s1881_s20 + $0x30] sm:$0xff] %v1180_v22  ;;  %1276 = vst [vmem:[%s1881_s20 + $0x130] sm:$0xff] %v1212_v23  ;;  %vm1053_vm15 = vcmp.gt.f32.partialorder %v819_v18, 0.0  ;;  %v1117_v24 = vmul.f32 0.2, %v819_v18  ;;  %vm1085_vm0 = vcmp.gt.f32.partialorder %v947_v19, 0.0 }
 0x11d   : > { %v1149_v25 = vmul.f32 0.2, %v947_v19 }
 0x11e   : > { %v1181_v26 = vsel %vm1053_vm15, %v819_v18, %v1117_v24  ;;  %v823_v28 = vpop.f32.mrb[16].mxu0  ;;  %v951_v29 = vpop.f32.mrb[16].mxu1 }
 0x11f   : > { %v1213_v27 = vsel %vm1085_vm0, %v947_v19, %v1149_v25  ;;  %1245 = vst [vmem:[%s1881_s20 + $0x38] sm:$0xff] %v1181_v26  ;;  %v824_v30 = vadd.f32 %v1872_v10, %v823_v28  ;;  %v952_v31 = vadd.f32 %v1872_v10, %v951_v29  ;;  %v825_v32 = vpop.f32.mrb[17].mxu0  ;;  %v953_v33 = vpop.f32.mrb[17].mxu1 }
 0x120   : > { %1277 = vst [vmem:[%s1881_s20 + $0x138] sm:$0xff] %v1213_v27  ;;  %v826_v34 = vpop.f32.mrb[18].mxu0  ;;  %v954_v35 = vpop.f32.mrb[18].mxu1 }
 0x121   : > { %vm1054_vm1 = vcmp.gt.f32.partialorder %v824_v30, 0.0  ;;  %v1118_v36 = vmul.f32 0.2, %v824_v30  ;;  %vm1086_vm2 = vcmp.gt.f32.partialorder %v952_v31, 0.0  ;;  %v1150_v37 = vmul.f32 0.2, %v952_v31 }
 0x122   : > { %v827_v38 = vadd.f32 %v1872_v10, %v826_v34  ;;  %v955_v39 = vadd.f32 %v1872_v10, %v954_v35  ;;  %v828_v40 = vpop.f32.mrb[19].mxu0  ;;  %v956_v41 = vpop.f32.mrb[19].mxu1 }
 0x123   : > { %v1182_v42 = vsel %vm1054_vm1, %v824_v30, %v1118_v36  ;;  %v1214_v43 = vsel %vm1086_vm2, %v952_v31, %v1150_v37 }
 0x124   : > { %1246 = vst [vmem:[%s1881_s20 + $0x40] sm:$0xff] %v1182_v42  ;;  %1278 = vst [vmem:[%s1881_s20 + $0x140] sm:$0xff] %v1214_v43  ;;  %vm1055_vm3 = vcmp.gt.f32.partialorder %v827_v38, 0.0  ;;  %v1119_v44 = vmul.f32 0.2, %v827_v38  ;;  %vm1087_vm4 = vcmp.gt.f32.partialorder %v955_v39, 0.0 }
 0x125   : > { %v1151_v45 = vmul.f32 0.2, %v955_v39 }
 0x126   : > { %v1183_v46 = vsel %vm1055_vm3, %v827_v38, %v1119_v44  ;;  %v831_v48 = vpop.f32.mrb[20].mxu0  ;;  %v959_v49 = vpop.f32.mrb[20].mxu1 }
 0x127   : > { %v1215_v47 = vsel %vm1087_vm4, %v955_v39, %v1151_v45  ;;  %1247 = vst [vmem:[%s1881_s20 + $0x48] sm:$0xff] %v1183_v46  ;;  %v832_v50 = vadd.f32 %v1872_v10, %v831_v48  ;;  %v960_v51 = vadd.f32 %v1872_v10, %v959_v49  ;;  %v833_v52 = vpop.f32.mrb[21].mxu0  ;;  %v961_v53 = vpop.f32.mrb[21].mxu1 }
 0x128   : > { %1279 = vst [vmem:[%s1881_s20 + $0x148] sm:$0xff] %v1215_v47  ;;  %v834_v54 = vpop.f32.mrb[22].mxu0  ;;  %v962_v55 = vpop.f32.mrb[22].mxu1 }
 0x129   : > { %vm1056_vm5 = vcmp.gt.f32.partialorder %v832_v50, 0.0  ;;  %v1120_v56 = vmul.f32 0.2, %v832_v50  ;;  %vm1088_vm6 = vcmp.gt.f32.partialorder %v960_v51, 0.0  ;;  %v1152_v57 = vmul.f32 0.2, %v960_v51 }
 0x12a   : > { %v835_v58 = vadd.f32 %v1872_v10, %v834_v54  ;;  %v963_v59 = vadd.f32 %v1872_v10, %v962_v55  ;;  %v836_v60 = vpop.f32.mrb[23].mxu0  ;;  %v964_v61 = vpop.f32.mrb[23].mxu1 }
 0x12b   : > { %v1184_v62 = vsel %vm1056_vm5, %v832_v50, %v1120_v56  ;;  %v1216_v63 = vsel %vm1088_vm6, %v960_v51, %v1152_v57 }
 0x12c   : > { %1248 = vst [vmem:[%s1881_s20 + $0x50] sm:$0xff] %v1184_v62  ;;  %1280 = vst [vmem:[%s1881_s20 + $0x150] sm:$0xff] %v1216_v63  ;;  %vm1057_vm7 = vcmp.gt.f32.partialorder %v835_v58, 0.0  ;;  %v1121_v0 = vmul.f32 0.2, %v835_v58  ;;  %vm1089_vm8 = vcmp.gt.f32.partialorder %v963_v59, 0.0 }
 0x12d   : > { %v1153_v1 = vmul.f32 0.2, %v963_v59 }
 0x12e   : > { %v1185_v2 = vsel %vm1057_vm7, %v835_v58, %v1121_v0  ;;  %v839_v4 = vpop.f32.mrb[24].mxu0  ;;  %v967_v5 = vpop.f32.mrb[24].mxu1 }
 0x12f   : > { %v1217_v3 = vsel %vm1089_vm8, %v963_v59, %v1153_v1  ;;  %1249 = vst [vmem:[%s1881_s20 + $0x58] sm:$0xff] %v1185_v2  ;;  %v840_v6 = vadd.f32 %v1872_v10, %v839_v4  ;;  %v968_v7 = vadd.f32 %v1872_v10, %v967_v5  ;;  %v841_v8 = vpop.f32.mrb[25].mxu0  ;;  %v969_v9 = vpop.f32.mrb[25].mxu1 }
 0x130   : > { %1281 = vst [vmem:[%s1881_s20 + $0x158] sm:$0xff] %v1217_v3  ;;  %v842_v11 = vpop.f32.mrb[26].mxu0  ;;  %v970_v12 = vpop.f32.mrb[26].mxu1 }
 0x131   : > { %vm1058_vm9 = vcmp.gt.f32.partialorder %v840_v6, 0.0  ;;  %v1122_v13 = vmul.f32 0.2, %v840_v6  ;;  %vm1090_vm10 = vcmp.gt.f32.partialorder %v968_v7, 0.0  ;;  %v1154_v14 = vmul.f32 0.2, %v968_v7 }
 0x132   : > { %v843_v15 = vadd.f32 %v1872_v10, %v842_v11  ;;  %v971_v16 = vadd.f32 %v1872_v10, %v970_v12  ;;  %v844_v17 = vpop.f32.mrb[27].mxu0  ;;  %v972_v18 = vpop.f32.mrb[27].mxu1 }
 0x133   : > { %v1186_v19 = vsel %vm1058_vm9, %v840_v6, %v1122_v13  ;;  %v1218_v20 = vsel %vm1090_vm10, %v968_v7, %v1154_v14 }
 0x134   : > { %1250 = vst [vmem:[%s1881_s20 + $0x60] sm:$0xff] %v1186_v19  ;;  %1282 = vst [vmem:[%s1881_s20 + $0x160] sm:$0xff] %v1218_v20  ;;  %vm1059_vm11 = vcmp.gt.f32.partialorder %v843_v15, 0.0  ;;  %v1123_v21 = vmul.f32 0.2, %v843_v15  ;;  %vm1091_vm12 = vcmp.gt.f32.partialorder %v971_v16, 0.0 }
 0x135   : > { %v1155_v22 = vmul.f32 0.2, %v971_v16 }
 0x136   : > { %v1187_v23 = vsel %vm1059_vm11, %v843_v15, %v1123_v21  ;;  %v847_v25 = vpop.f32.mrb[28].mxu0  ;;  %v975_v26 = vpop.f32.mrb[28].mxu1 }
 0x137   : > { %v1219_v24 = vsel %vm1091_vm12, %v971_v16, %v1155_v22  ;;  %1251 = vst [vmem:[%s1881_s20 + $0x68] sm:$0xff] %v1187_v23  ;;  %v848_v27 = vadd.f32 %v1872_v10, %v847_v25  ;;  %v976_v28 = vadd.f32 %v1872_v10, %v975_v26  ;;  %v849_v29 = vpop.f32.mrb[29].mxu0  ;;  %v977_v30 = vpop.f32.mrb[29].mxu1 }
 0x138   : > { %1283 = vst [vmem:[%s1881_s20 + $0x168] sm:$0xff] %v1219_v24  ;;  %v850_v31 = vpop.f32.mrb[30].mxu0  ;;  %v978_v32 = vpop.f32.mrb[30].mxu1 }
 0x139   : > { %vm1060_vm13 = vcmp.gt.f32.partialorder %v848_v27, 0.0  ;;  %v1124_v33 = vmul.f32 0.2, %v848_v27  ;;  %vm1092_vm14 = vcmp.gt.f32.partialorder %v976_v28, 0.0  ;;  %v1156_v34 = vmul.f32 0.2, %v976_v28 }
 0x13a   : > { %v851_v35 = vadd.f32 %v1872_v10, %v850_v31  ;;  %v979_v36 = vadd.f32 %v1872_v10, %v978_v32  ;;  %v852_v37 = vpop.f32.mrb[31].mxu0  ;;  %v980_v38 = vpop.f32.mrb[31].mxu1 }
 0x13b   : > { %v1188_v39 = vsel %vm1060_vm13, %v848_v27, %v1124_v33  ;;  %v1220_v40 = vsel %vm1092_vm14, %v976_v28, %v1156_v34 }
 0x13c   : > { %1252 = vst [vmem:[%s1881_s20 + $0x70] sm:$0xff] %v1188_v39  ;;  %1284 = vst [vmem:[%s1881_s20 + $0x170] sm:$0xff] %v1220_v40  ;;  %vm1061_vm15 = vcmp.gt.f32.partialorder %v851_v35, 0.0  ;;  %v1125_v41 = vmul.f32 0.2, %v851_v35  ;;  %vm1093_vm0 = vcmp.gt.f32.partialorder %v979_v36, 0.0 }
 0x13d   : > { %v1157_v42 = vmul.f32 0.2, %v979_v36 }
 0x13e   : > { %v1189_v43 = vsel %vm1061_vm15, %v851_v35, %v1125_v41  ;;  %v855_v45 = vpop.f32.mrb[32].mxu0  ;;  %v983_v46 = vpop.f32.mrb[32].mxu1 }
 0x13f   : > { %v1221_v44 = vsel %vm1093_vm0, %v979_v36, %v1157_v42  ;;  %1253 = vst [vmem:[%s1881_s20 + $0x78] sm:$0xff] %v1189_v43  ;;  %v856_v47 = vadd.f32 %v1872_v10, %v855_v45  ;;  %v984_v48 = vadd.f32 %v1872_v10, %v983_v46  ;;  %v857_v49 = vpop.f32.mrb[33].mxu0  ;;  %v985_v50 = vpop.f32.mrb[33].mxu1 }
 0x140   : > { %1285 = vst [vmem:[%s1881_s20 + $0x178] sm:$0xff] %v1221_v44  ;;  %v858_v51 = vpop.f32.mrb[34].mxu0  ;;  %v986_v52 = vpop.f32.mrb[34].mxu1 }
 0x141   : > { %vm1062_vm1 = vcmp.gt.f32.partialorder %v856_v47, 0.0  ;;  %v1126_v53 = vmul.f32 0.2, %v856_v47  ;;  %vm1094_vm2 = vcmp.gt.f32.partialorder %v984_v48, 0.0  ;;  %v1158_v54 = vmul.f32 0.2, %v984_v48 }
 0x142   : > { %v859_v55 = vadd.f32 %v1872_v10, %v858_v51  ;;  %v987_v56 = vadd.f32 %v1872_v10, %v986_v52  ;;  %v860_v57 = vpop.f32.mrb[35].mxu0  ;;  %v988_v58 = vpop.f32.mrb[35].mxu1 }
 0x143   : > { %v1190_v59 = vsel %vm1062_vm1, %v856_v47, %v1126_v53  ;;  %v1222_v60 = vsel %vm1094_vm2, %v984_v48, %v1158_v54 }
 0x144   : > { %1254 = vst [vmem:[%s1881_s20 + $0x80] sm:$0xff] %v1190_v59  ;;  %1286 = vst [vmem:[%s1881_s20 + $0x180] sm:$0xff] %v1222_v60  ;;  %vm1063_vm3 = vcmp.gt.f32.partialorder %v859_v55, 0.0  ;;  %v1127_v61 = vmul.f32 0.2, %v859_v55  ;;  %vm1095_vm4 = vcmp.gt.f32.partialorder %v987_v56, 0.0 }
 0x145   : > { %v1159_v62 = vmul.f32 0.2, %v987_v56 }
 0x146   : > { %v1191_v63 = vsel %vm1063_vm3, %v859_v55, %v1127_v61  ;;  %v863_v1 = vpop.f32.mrb[36].mxu0  ;;  %v991_v2 = vpop.f32.mrb[36].mxu1 }
 0x147   : > { %v1223_v0 = vsel %vm1095_vm4, %v987_v56, %v1159_v62  ;;  %1255 = vst [vmem:[%s1881_s20 + $0x88] sm:$0xff] %v1191_v63  ;;  %v864_v3 = vadd.f32 %v1872_v10, %v863_v1  ;;  %v992_v4 = vadd.f32 %v1872_v10, %v991_v2  ;;  %v865_v5 = vpop.f32.mrb[37].mxu0  ;;  %v993_v6 = vpop.f32.mrb[37].mxu1 }
 0x148   : > { %1287 = vst [vmem:[%s1881_s20 + $0x188] sm:$0xff] %v1223_v0  ;;  %v866_v7 = vpop.f32.mrb[38].mxu0  ;;  %v994_v8 = vpop.f32.mrb[38].mxu1 }
 0x149   : > { %vm1064_vm5 = vcmp.gt.f32.partialorder %v864_v3, 0.0  ;;  %v1128_v9 = vmul.f32 0.2, %v864_v3  ;;  %vm1096_vm6 = vcmp.gt.f32.partialorder %v992_v4, 0.0  ;;  %v1160_v11 = vmul.f32 0.2, %v992_v4 }
 0x14a   : > { %v867_v12 = vadd.f32 %v1872_v10, %v866_v7  ;;  %v995_v13 = vadd.f32 %v1872_v10, %v994_v8  ;;  %v868_v14 = vpop.f32.mrb[39].mxu0  ;;  %v996_v15 = vpop.f32.mrb[39].mxu1 }
 0x14b   : > { %v1192_v16 = vsel %vm1064_vm5, %v864_v3, %v1128_v9  ;;  %v1224_v17 = vsel %vm1096_vm6, %v992_v4, %v1160_v11 }
 0x14c   : > { %1256 = vst [vmem:[%s1881_s20 + $0x90] sm:$0xff] %v1192_v16  ;;  %1288 = vst [vmem:[%s1881_s20 + $0x190] sm:$0xff] %v1224_v17  ;;  %vm1065_vm7 = vcmp.gt.f32.partialorder %v867_v12, 0.0  ;;  %v1129_v18 = vmul.f32 0.2, %v867_v12  ;;  %vm1097_vm8 = vcmp.gt.f32.partialorder %v995_v13, 0.0 }
 0x14d   : > { %v1161_v19 = vmul.f32 0.2, %v995_v13 }
 0x14e   : > { %v1193_v20 = vsel %vm1065_vm7, %v867_v12, %v1129_v18  ;;  %v871_v22 = vpop.f32.mrb[40].mxu0  ;;  %v999_v23 = vpop.f32.mrb[40].mxu1 }
 0x14f   : > { %v1225_v21 = vsel %vm1097_vm8, %v995_v13, %v1161_v19  ;;  %1257 = vst [vmem:[%s1881_s20 + $0x98] sm:$0xff] %v1193_v20  ;;  %v872_v24 = vadd.f32 %v1872_v10, %v871_v22  ;;  %v1000_v25 = vadd.f32 %v1872_v10, %v999_v23  ;;  %v873_v26 = vpop.f32.mrb[41].mxu0  ;;  %v1001_v27 = vpop.f32.mrb[41].mxu1 }
 0x150   : > { %1289 = vst [vmem:[%s1881_s20 + $0x198] sm:$0xff] %v1225_v21  ;;  %v874_v28 = vpop.f32.mrb[42].mxu0  ;;  %v1002_v29 = vpop.f32.mrb[42].mxu1 }
 0x151   : > { %vm1066_vm9 = vcmp.gt.f32.partialorder %v872_v24, 0.0  ;;  %v1130_v30 = vmul.f32 0.2, %v872_v24  ;;  %vm1098_vm10 = vcmp.gt.f32.partialorder %v1000_v25, 0.0  ;;  %v1162_v31 = vmul.f32 0.2, %v1000_v25 }
 0x152   : > { %v875_v32 = vadd.f32 %v1872_v10, %v874_v28  ;;  %v1003_v33 = vadd.f32 %v1872_v10, %v1002_v29  ;;  %v876_v34 = vpop.f32.mrb[43].mxu0  ;;  %v1004_v35 = vpop.f32.mrb[43].mxu1 }
 0x153   : > { %v1194_v36 = vsel %vm1066_vm9, %v872_v24, %v1130_v30  ;;  %v1226_v37 = vsel %vm1098_vm10, %v1000_v25, %v1162_v31 }
 0x154   : > { %1258 = vst [vmem:[%s1881_s20 + $0xa0] sm:$0xff] %v1194_v36  ;;  %1290 = vst [vmem:[%s1881_s20 + $0x1a0] sm:$0xff] %v1226_v37  ;;  %vm1067_vm11 = vcmp.gt.f32.partialorder %v875_v32, 0.0  ;;  %v1131_v38 = vmul.f32 0.2, %v875_v32  ;;  %vm1099_vm12 = vcmp.gt.f32.partialorder %v1003_v33, 0.0 }
 0x155   : > { %v1163_v39 = vmul.f32 0.2, %v1003_v33 }
 0x156   : > { %v1195_v40 = vsel %vm1067_vm11, %v875_v32, %v1131_v38  ;;  %v879_v42 = vpop.f32.mrb[44].mxu0  ;;  %v1007_v43 = vpop.f32.mrb[44].mxu1 }
 0x157   : > { %v1227_v41 = vsel %vm1099_vm12, %v1003_v33, %v1163_v39  ;;  %1259 = vst [vmem:[%s1881_s20 + $0xa8] sm:$0xff] %v1195_v40  ;;  %v880_v44 = vadd.f32 %v1872_v10, %v879_v42  ;;  %v1008_v45 = vadd.f32 %v1872_v10, %v1007_v43  ;;  %v881_v46 = vpop.f32.mrb[45].mxu0  ;;  %v1009_v47 = vpop.f32.mrb[45].mxu1 }
 0x158   : > { %1291 = vst [vmem:[%s1881_s20 + $0x1a8] sm:$0xff] %v1227_v41  ;;  %v882_v48 = vpop.f32.mrb[46].mxu0  ;;  %v1010_v49 = vpop.f32.mrb[46].mxu1 }
 0x159   : > { %vm1068_vm13 = vcmp.gt.f32.partialorder %v880_v44, 0.0  ;;  %v1132_v50 = vmul.f32 0.2, %v880_v44  ;;  %vm1100_vm14 = vcmp.gt.f32.partialorder %v1008_v45, 0.0  ;;  %v1164_v51 = vmul.f32 0.2, %v1008_v45 }
 0x15a   : > { %v883_v52 = vadd.f32 %v1872_v10, %v882_v48  ;;  %v1011_v53 = vadd.f32 %v1872_v10, %v1010_v49  ;;  %v884_v54 = vpop.f32.mrb[47].mxu0  ;;  %v1012_v55 = vpop.f32.mrb[47].mxu1 }
 0x15b   : > { %v1196_v56 = vsel %vm1068_vm13, %v880_v44, %v1132_v50  ;;  %v1228_v57 = vsel %vm1100_vm14, %v1008_v45, %v1164_v51 }
 0x15c   : > { %1260 = vst [vmem:[%s1881_s20 + $0xb0] sm:$0xff] %v1196_v56  ;;  %1292 = vst [vmem:[%s1881_s20 + $0x1b0] sm:$0xff] %v1228_v57  ;;  %vm1069_vm15 = vcmp.gt.f32.partialorder %v883_v52, 0.0  ;;  %v1133_v58 = vmul.f32 0.2, %v883_v52  ;;  %vm1101_vm0 = vcmp.gt.f32.partialorder %v1011_v53, 0.0 }
 0x15d   : > { %v1165_v59 = vmul.f32 0.2, %v1011_v53 }
 0x15e   : > { %v1197_v60 = vsel %vm1069_vm15, %v883_v52, %v1133_v58  ;;  %v887_v62 = vpop.f32.mrb[48].mxu0  ;;  %v1015_v63 = vpop.f32.mrb[48].mxu1 }
 0x15f   : > { %v1229_v61 = vsel %vm1101_vm0, %v1011_v53, %v1165_v59  ;;  %1261 = vst [vmem:[%s1881_s20 + $0xb8] sm:$0xff] %v1197_v60  ;;  %v888_v0 = vadd.f32 %v1872_v10, %v887_v62  ;;  %v1016_v1 = vadd.f32 %v1872_v10, %v1015_v63  ;;  %v889_v2 = vpop.f32.mrb[49].mxu0  ;;  %v1017_v3 = vpop.f32.mrb[49].mxu1 }
 0x160   : > { %1293 = vst [vmem:[%s1881_s20 + $0x1b8] sm:$0xff] %v1229_v61  ;;  %v890_v4 = vpop.f32.mrb[50].mxu0  ;;  %v1018_v5 = vpop.f32.mrb[50].mxu1 }
 0x161   : > { %vm1070_vm1 = vcmp.gt.f32.partialorder %v888_v0, 0.0  ;;  %v1134_v6 = vmul.f32 0.2, %v888_v0  ;;  %vm1102_vm2 = vcmp.gt.f32.partialorder %v1016_v1, 0.0  ;;  %v1166_v7 = vmul.f32 0.2, %v1016_v1 }
 0x162   : > { %v891_v8 = vadd.f32 %v1872_v10, %v890_v4  ;;  %v1019_v9 = vadd.f32 %v1872_v10, %v1018_v5  ;;  %v892_v11 = vpop.f32.mrb[51].mxu0  ;;  %v1020_v12 = vpop.f32.mrb[51].mxu1 }
 0x163   : > { %v1198_v13 = vsel %vm1070_vm1, %v888_v0, %v1134_v6  ;;  %v1230_v14 = vsel %vm1102_vm2, %v1016_v1, %v1166_v7 }
 0x164   : > { %1262 = vst [vmem:[%s1881_s20 + $0xc0] sm:$0xff] %v1198_v13  ;;  %1294 = vst [vmem:[%s1881_s20 + $0x1c0] sm:$0xff] %v1230_v14  ;;  %vm1071_vm3 = vcmp.gt.f32.partialorder %v891_v8, 0.0  ;;  %v1135_v15 = vmul.f32 0.2, %v891_v8  ;;  %vm1103_vm4 = vcmp.gt.f32.partialorder %v1019_v9, 0.0 }
 0x165   : > { %v1167_v16 = vmul.f32 0.2, %v1019_v9 }
 0x166   : > { %v1199_v17 = vsel %vm1071_vm3, %v891_v8, %v1135_v15  ;;  %v895_v19 = vpop.f32.mrb[52].mxu0  ;;  %v1023_v20 = vpop.f32.mrb[52].mxu1 }
 0x167   : > { %v1231_v18 = vsel %vm1103_vm4, %v1019_v9, %v1167_v16  ;;  %1263 = vst [vmem:[%s1881_s20 + $0xc8] sm:$0xff] %v1199_v17  ;;  %v896_v21 = vadd.f32 %v1872_v10, %v895_v19  ;;  %v1024_v22 = vadd.f32 %v1872_v10, %v1023_v20  ;;  %v897_v23 = vpop.f32.mrb[53].mxu0  ;;  %v1025_v24 = vpop.f32.mrb[53].mxu1 }
 0x168   : > { %1295 = vst [vmem:[%s1881_s20 + $0x1c8] sm:$0xff] %v1231_v18  ;;  %v898_v25 = vpop.f32.mrb[54].mxu0  ;;  %v1026_v26 = vpop.f32.mrb[54].mxu1 }
 0x169   : > { %vm1072_vm5 = vcmp.gt.f32.partialorder %v896_v21, 0.0  ;;  %v1136_v27 = vmul.f32 0.2, %v896_v21  ;;  %vm1104_vm6 = vcmp.gt.f32.partialorder %v1024_v22, 0.0  ;;  %v1168_v28 = vmul.f32 0.2, %v1024_v22 }
 0x16a   : > { %v899_v29 = vadd.f32 %v1872_v10, %v898_v25  ;;  %v1027_v30 = vadd.f32 %v1872_v10, %v1026_v26  ;;  %v900_v31 = vpop.f32.mrb[55].mxu0  ;;  %v1028_v32 = vpop.f32.mrb[55].mxu1 }
 0x16b   : > { %v1200_v33 = vsel %vm1072_vm5, %v896_v21, %v1136_v27  ;;  %v1232_v34 = vsel %vm1104_vm6, %v1024_v22, %v1168_v28 }
 0x16c   : > { %1264 = vst [vmem:[%s1881_s20 + $0xd0] sm:$0xff] %v1200_v33  ;;  %1296 = vst [vmem:[%s1881_s20 + $0x1d0] sm:$0xff] %v1232_v34  ;;  %vm1073_vm7 = vcmp.gt.f32.partialorder %v899_v29, 0.0  ;;  %v1137_v35 = vmul.f32 0.2, %v899_v29  ;;  %vm1105_vm8 = vcmp.gt.f32.partialorder %v1027_v30, 0.0 }
 0x16d   : > { %v1169_v36 = vmul.f32 0.2, %v1027_v30 }
 0x16e   : > { %v1201_v37 = vsel %vm1073_vm7, %v899_v29, %v1137_v35  ;;  %v903_v39 = vpop.f32.mrb[56].mxu0  ;;  %v1031_v40 = vpop.f32.mrb[56].mxu1 }
 0x16f   : > { %v1233_v38 = vsel %vm1105_vm8, %v1027_v30, %v1169_v36  ;;  %1265 = vst [vmem:[%s1881_s20 + $0xd8] sm:$0xff] %v1201_v37  ;;  %v904_v41 = vadd.f32 %v1872_v10, %v903_v39  ;;  %v1032_v42 = vadd.f32 %v1872_v10, %v1031_v40  ;;  %v905_v43 = vpop.f32.mrb[57].mxu0  ;;  %v1033_v44 = vpop.f32.mrb[57].mxu1 }
 0x170   : > { %1297 = vst [vmem:[%s1881_s20 + $0x1d8] sm:$0xff] %v1233_v38  ;;  %v906_v45 = vpop.f32.mrb[58].mxu0  ;;  %v1034_v46 = vpop.f32.mrb[58].mxu1 }
 0x171   : > { %vm1074_vm9 = vcmp.gt.f32.partialorder %v904_v41, 0.0  ;;  %v1138_v47 = vmul.f32 0.2, %v904_v41  ;;  %vm1106_vm10 = vcmp.gt.f32.partialorder %v1032_v42, 0.0  ;;  %v1170_v48 = vmul.f32 0.2, %v1032_v42 }
 0x172   : > { %v907_v49 = vadd.f32 %v1872_v10, %v906_v45  ;;  %v1035_v50 = vadd.f32 %v1872_v10, %v1034_v46  ;;  %v908_v51 = vpop.f32.mrb[59].mxu0  ;;  %v1036_v52 = vpop.f32.mrb[59].mxu1 }
 0x173   : > { %v1202_v53 = vsel %vm1074_vm9, %v904_v41, %v1138_v47  ;;  %v1234_v54 = vsel %vm1106_vm10, %v1032_v42, %v1170_v48 }
 0x174   : > { %1266 = vst [vmem:[%s1881_s20 + $0xe0] sm:$0xff] %v1202_v53  ;;  %1298 = vst [vmem:[%s1881_s20 + $0x1e0] sm:$0xff] %v1234_v54  ;;  %vm1075_vm11 = vcmp.gt.f32.partialorder %v907_v49, 0.0  ;;  %v1139_v55 = vmul.f32 0.2, %v907_v49  ;;  %vm1107_vm12 = vcmp.gt.f32.partialorder %v1035_v50, 0.0 }
 0x175   : > { %v1171_v56 = vmul.f32 0.2, %v1035_v50 }
 0x176   : > { %v1203_v57 = vsel %vm1075_vm11, %v907_v49, %v1139_v55  ;;  %v911_v59 = vpop.f32.mrb[60].mxu0  ;;  %v1039_v60 = vpop.f32.mrb[60].mxu1 }
 0x177   : > { %v1235_v58 = vsel %vm1107_vm12, %v1035_v50, %v1171_v56  ;;  %1267 = vst [vmem:[%s1881_s20 + $0xe8] sm:$0xff] %v1203_v57  ;;  %v912_v61 = vadd.f32 %v1872_v10, %v911_v59  ;;  %v1040_v62 = vadd.f32 %v1872_v10, %v1039_v60  ;;  %v913_v63 = vpop.f32.mrb[61].mxu0  ;;  %v1041_v0 = vpop.f32.mrb[61].mxu1 }
 0x178   : > { %1299 = vst [vmem:[%s1881_s20 + $0x1e8] sm:$0xff] %v1235_v58  ;;  %v914_v1 = vpop.f32.mrb[62].mxu0  ;;  %v1042_v2 = vpop.f32.mrb[62].mxu1 }
 0x179   : > { %vm1076_vm13 = vcmp.gt.f32.partialorder %v912_v61, 0.0  ;;  %v1140_v3 = vmul.f32 0.2, %v912_v61  ;;  %vm1108_vm14 = vcmp.gt.f32.partialorder %v1040_v62, 0.0  ;;  %v1172_v4 = vmul.f32 0.2, %v1040_v62 }
 0x17a   : > { %v915_v5 = vadd.f32 %v1872_v10, %v914_v1  ;;  %v1043_v6 = vadd.f32 %v1872_v10, %v1042_v2  ;;  %v916_v7 = vpop.f32.mrb[63].mxu0  ;;  %v1044_v8 = vpop.f32.mrb[63].mxu1 }
 0x17b   : > { %v1204_v9 = vsel %vm1076_vm13, %v912_v61, %v1140_v3  ;;  %v1236_v11 = vsel %vm1108_vm14, %v1040_v62, %v1172_v4 }
 0x17c   : > { %1268 = vst [vmem:[%s1881_s20 + $0xf0] sm:$0xff] %v1204_v9  ;;  %1300 = vst [vmem:[%s1881_s20 + $0x1f0] sm:$0xff] %v1236_v11  ;;  %vm1077_vm15 = vcmp.gt.f32.partialorder %v915_v5, 0.0  ;;  %v1141_v12 = vmul.f32 0.2, %v915_v5  ;;  %vm1109_vm0 = vcmp.gt.f32.partialorder %v1043_v6, 0.0 }
 0x17d   : > { %v1173_v13 = vmul.f32 0.2, %v1043_v6 }
 0x17e   : > { %v1205_v14 = vsel %vm1077_vm15, %v915_v5, %v1141_v12 }
 0x17f   : > { %v1237_v15 = vsel %vm1109_vm0, %v1043_v6, %v1173_v13  ;;  %1269 = vst [vmem:[%s1881_s20 + $0xf8] sm:$0xff] %v1205_v14 }
 0x180   : > { %1301 = vst [vmem:[%s1881_s20 + $0x1f8] sm:$0xff] %v1237_v15 }
 0x181 PF: > { %s13_s14 = sadd.s32 1, %s1695_s14   ;;  %s2022_s12 = smov %s1691_s13 }
 0x182   : > { %p10_p5 = scmp.ge.s32.totalorder %s13_s14, 6   ;;  %s2023_s13 = smov %s2025_s15 }
 0x184   :  { %12 = sbr.rel (!%p10_p5) target bundleno = 2 (0x2), region = 68 }

// kernel: discriminator_forward.9
= control target key start
LH: loop header
LB: loop body
LE: loop exit
PB: predicated region body
PF: predicated region fallthrough
CT: control target
= control target key end

     0   :  { %s1714_s12 = smov 0   ;;  %s1716_s13 = smov 0   ;;  %s1978_s0 = inlined_call_operand.vmem [shape: bf16[512,288], index: 0, kind: input, shape index: {}]   ;;  %s1979_s1 = inlined_call_operand.vmem [shape: bf16[288,128], index: 1, kind: input, shape index: {}]   ;;  %s1980_s2 = inlined_call_operand.vmem [shape: f32[1,128], index: 2, kind: input, shape index: {}]   ;;  %s1981_s3 = inlined_call_operand.vmem [shape: f32[512,128], index: 3, kind: output, shape index: {}]  }
   0x1   :  { %s1718_s14 = smov 0  }
   0x2 LB: > { %s25_s15 = sadd.s32 1, %s1688_s13  ;;  %p1291_p0 = scmp.ge.s32.totalorder %s1692_s14, 1  ;;  %s1692_s14 = sphi %s1718_s14, %s13_s14   ;;  %s1688_s13 = sphi %s1716_s13, %s1983_s13   ;;  %s1684_s12 = sphi %s1714_s12, %s1982_s12  }
   0x3   : > { %p27_p1 = scmp.ge.s32.totalorder %s25_s15, 2  ;;  %p170_p2 = scmp.lt.s32.totalorder %s1692_s14, 3 }
   0x5   : > { %s1985_s15 = smov (%p27_p1, %s25_s15), 0  ;;  %p171_p3 = pnand %p1291_p0, %p170_p2 }
   0x6   : > { %v1588_v0 = vld [vmem:[%s1979_s1 + $0x40] sm:$0xff] (!%p171_p3)   ;;  %s1292_s18 = sshll.u32 (!%p171_p3), %s1684_s12, 5  ;;  %v1590_v2 = vld [vmem:[%s1979_s1 + $0x48] sm:$0xff] (!%p171_p3)   ;;  %v1592_v4 = vld [vmem:[%s1979_s1 + $0x50] sm:$0xff] (!%p171_p3)   ;;  %vm684_vm0 = vcmask (!%p171_p3), 261120  }
   0x7   : > { %174 = sbr.rel (%p171_p3) target bundleno = 352 (0x160), region = 32  ;;  %v1589_v1 = vld [vmem:[%s1979_s1] sm:$0xff] (!%p171_p3)   ;;  %1381 = vmatprep.subr.bf16.mxu0 (!%p171_p3), %v1588_v0  ;;  %1547 = vmatprep.subr.bf16.mxu1 (!%p171_p3), %v1588_v0  ;;  %p206_p4 = scmp.lt.s32.totalorder (!%p171_p3), %s1292_s18, 63  ;;  %v1591_v3 = vld [vmem:[%s1979_s1 + $0x8] sm:$0xff] (!%p171_p3)   ;;  %v1593_v5 = vld [vmem:[%s1979_s1 + $0x10] sm:$0xff] (!%p171_p3)  }
   0x8   : > { %1382 = vmatpush3.bf16.msra.mxu0 (!%p171_p3), %v1589_v1  ;;  %1555 = vmatpush3.bf16.msra.mxu1 (!%p171_p3), %v1589_v1  ;;  %v1594_v6 = vld [vmem:[%s1979_s1 + $0x58] sm:$0xff] (!%p171_p3)   ;;  %v1596_v8 = vld [vmem:[%s1979_s1 + $0x60] sm:$0xff] (!%p171_p3)   ;;  %v1598_v10 = vld [vmem:[%s1979_s1 + $0x68] sm:$0xff] (!%p171_p3)  }
   0x9   : > { %1383 = vmatprep.subr.bf16.mxu0 (!%p171_p3), %v1590_v2  ;;  %1548 = vmatprep.subr.bf16.mxu1 (!%p171_p3), %v1590_v2  ;;  %v1595_v7 = vld [vmem:[%s1979_s1 + $0x18] sm:$0xff] (!%p171_p3)   ;;  %v1597_v9 = vld [vmem:[%s1979_s1 + $0x20] sm:$0xff] (!%p171_p3)   ;;  %v1599_v13 = vld [vmem:[%s1979_s1 + $0x28] sm:$0xff] (!%p171_p3)  }
   0xa   : > { %v1600_v14 = vld [vmem:[%s1979_s1 + $0x70] sm:$0xff] (!%p171_p3)   ;;  %v1602_v16 = vld [vmem:[%s1979_s1 + $0x78] sm:$0xff] (!%p171_p3)   ;;  %v1610_v18 = vld [vmem:[%s1979_s1 + $0x80] sm:$0xff] (!%p171_p3)  }
   0xb   : > { %v1601_v15 = vld [vmem:[%s1979_s1 + $0x30] sm:$0xff] (!%p171_p3)   ;;  %v1603_v17 = vld [vmem:[%s1979_s1 + $0x38] sm:$0xff] (!%p171_p3)   ;;  %v1623_v23 = vld [vmem:[%s1979_s1 + $0x88] sm:$0xff] (!%p171_p3)  }
   0xc   : > { %1384 = vmatpush3.bf16.msra.mxu0 (!%p171_p3), %v1591_v3  ;;  %1556 = vmatpush3.bf16.msra.mxu1 (!%p171_p3), %v1591_v3 }
   0xd   : > { %1385 = vmatprep.subr.bf16.mxu0 (!%p171_p3), %v1592_v4  ;;  %1549 = vmatprep.subr.bf16.mxu1 (!%p171_p3), %v1592_v4 }
   0xe   : > { %s1987_s18 = smov (!%p206_p4, %s1292_s18), 63 }
   0xf   : > { %s1563_s4 = smul.u32 12, %s1987_s18  ;;  %s1295_s9 = sshll.u32 %s1987_s18, 3 }
  0x10   : > { %1386 = vmatpush3.bf16.msra.mxu0 %v1593_v5  ;;  %1557 = vmatpush3.bf16.msra.mxu1 %v1593_v5  ;;  %s1891_s12 = scalar_lea.vmem %s1981_s3, %s1295_s9 }
  0x11   : > { %1387 = vmatprep.subr.bf16.mxu0 %v1594_v6  ;;  %1550 = vmatprep.subr.bf16.mxu1 %v1594_v6  ;;  %s1765_s11 = scalar_lea.vmem %s1978_s0, %s1563_s4 }
  0x12   : > { %v1606_v11 = vld [vmem:[%s1765_s11 + $0x4] ss:$12 sps:$4 sm:$0xff]   ;;  %v1604_v19 = vld [vmem:[%s1765_s11] ss:$12 sps:$4 sm:$0xff]   ;;  %v1611_v21 = vld [vmem:[%s1765_s11 + $0x1c] ss:$12 sps:$4 sm:$0xff]  }
  0x13   : > { %v1609_v12 = vld [vmem:[%s1765_s11 + $0x124] ss:$12 sps:$4 sm:$0xff]   ;;  %765 = vmatprep.mubr.bf16.mxu0 %v1606_v11  ;;  %v1607_v20 = vld [vmem:[%s1765_s11 + $0x120] ss:$12 sps:$4 sm:$0xff]   ;;  %v1613_v22 = vld [vmem:[%s1765_s11 + $0x13c] ss:$12 sps:$4 sm:$0xff]  }
  0x14   : > { %1388 = vmatpush3.bf16.msra.mxu0 %v1595_v7  ;;  %1558 = vmatpush3.bf16.msra.mxu1 %v1595_v7  ;;  %v1615_v24 = vld [vmem:[%s1765_s11 + $0x18] ss:$12 sps:$4 sm:$0xff]   ;;  %v1617_v26 = vld [vmem:[%s1765_s11 + $0x34] ss:$12 sps:$4 sm:$0xff]   ;;  %v1621_v28 = vld [vmem:[%s1765_s11 + $0x30] ss:$12 sps:$4 sm:$0xff]  }
  0x15   : > { %1389 = vmatprep.subr.bf16.mxu0 %v1596_v8  ;;  %1551 = vmatprep.subr.bf16.mxu1 %v1596_v8  ;;  %v1616_v25 = vld [vmem:[%s1765_s11 + $0x138] ss:$12 sps:$4 sm:$0xff]   ;;  %v1619_v27 = vld [vmem:[%s1765_s11 + $0x154] ss:$12 sps:$4 sm:$0xff]   ;;  %v1622_v29 = vld [vmem:[%s1765_s11 + $0x150] ss:$12 sps:$4 sm:$0xff]  }
  0x16   : > { %861 = vmatprep.mubr.bf16.mxu1 %v1609_v12  ;;  %v1624_v30 = vld [vmem:[%s1765_s11 + $0x4c] ss:$12 sps:$4 sm:$0xff]   ;;  %v1628_v32 = vld [vmem:[%s1765_s11 + $0x48] ss:$12 sps:$4 sm:$0xff]   ;;  %v1630_v34 = vld [vmem:[%s1765_s11 + $0x64] ss:$12 sps:$4 sm:$0xff]  }
  0x17   : > { %v1626_v31 = vld [vmem:[%s1765_s11 + $0x16c] ss:$12 sps:$4 sm:$0xff]   ;;  %v1629_v33 = vld [vmem:[%s1765_s11 + $0x168] ss:$12 sps:$4 sm:$0xff]   ;;  %v1639_v41 = vld [vmem:[%s1765_s11 + $0x50] ss:$12 sps:$4 sm:$0xff]  }
  0x18   : > { %1390 = vmatpush3.bf16.msra.mxu0 %v1597_v9  ;;  %1559 = vmatpush3.bf16.msra.mxu1 %v1597_v9  ;;  %v1632_v35 = vld [vmem:[%s1765_s11 + $0x8] ss:$12 sps:$4 sm:$0xff]   ;;  %v1633_v36 = vld [vmem:[%s1765_s11 + $0x60] ss:$12 sps:$4 sm:$0xff]   ;;  %v1637_v39 = vld [vmem:[%s1765_s11 + $0x38] ss:$12 sps:$4 sm:$0xff]  }
  0x19   : > { %1391 = vmatprep.subr.bf16.mxu0 %v1598_v10  ;;  %1552 = vmatprep.subr.bf16.mxu1 %v1598_v10  ;;  %v1634_v37 = vld [vmem:[%s1765_s11 + $0x20] ss:$12 sps:$4 sm:$0xff]   ;;  %v1635_v38 = vld [vmem:[%s1765_s11 + $0x7c] ss:$12 sps:$4 sm:$0xff]   ;;  %v1638_v40 = vld [vmem:[%s1765_s11 + $0x78] ss:$12 sps:$4 sm:$0xff]  }
  0x1a   : > { %v1640_v42 = vld [vmem:[%s1765_s11 + $0x94] ss:$12 sps:$4 sm:$0xff]   ;;  %v1643_v44 = vld [vmem:[%s1765_s11 + $0x90] ss:$12 sps:$4 sm:$0xff]   ;;  %v1645_v46 = vld [vmem:[%s1765_s11 + $0xac] ss:$12 sps:$4 sm:$0xff]  }
  0x1b   : > { %v1642_v43 = vld [vmem:[%s1765_s11 + $0x68] ss:$12 sps:$4 sm:$0xff]   ;;  %v1644_v45 = vld [vmem:[%s1765_s11 + $0x80] ss:$12 sps:$4 sm:$0xff]   ;;  %v1647_v47 = vld [vmem:[%s1765_s11 + $0x98] ss:$12 sps:$4 sm:$0xff]  }
  0x1c   : > { %1392 = vmatpush3.bf16.msra.mxu0 %v1599_v13  ;;  %1560 = vmatpush3.bf16.msra.mxu1 %v1599_v13  ;;  %v1648_v48 = vld [vmem:[%s1765_s11 + $0xa8] ss:$12 sps:$4 sm:$0xff]   ;;  %v1649_v49 = vld [vmem:[%s1765_s11 + $0xb0] ss:$12 sps:$4 sm:$0xff]   ;;  %v1653_v52 = vld [vmem:[%s1765_s11 + $0xc0] ss:$12 sps:$4 sm:$0xff]  }
  0x1d   : > { %1393 = vmatprep.subr.bf16.mxu0 %v1600_v14  ;;  %1553 = vmatprep.subr.bf16.mxu1 %v1600_v14  ;;  %v1650_v50 = vld [vmem:[%s1765_s11 + $0xc4] ss:$12 sps:$4 sm:$0xff]   ;;  %v1652_v51 = vld [vmem:[%s1765_s11 + $0xc8] ss:$12 sps:$4 sm:$0xff]   ;;  %v1654_v53 = vld [vmem:[%s1765_s11 + $0xe0] ss:$12 sps:$4 sm:$0xff]  }
  0x1e   : > { %v1655_v54 = vld [vmem:[%s1765_s11 + $0xdc] ss:$12 sps:$4 sm:$0xff]   ;;  %v1657_v55 = vld [vmem:[%s1765_s11 + $0xf8] ss:$12 sps:$4 sm:$0xff]   ;;  %v1660_v58 = vld [vmem:[%s1765_s11 + $0xf4] ss:$12 sps:$4 sm:$0xff]  }
  0x1f   : > { %v1658_v56 = vld [vmem:[%s1765_s11 + $0xd8] ss:$12 sps:$4 sm:$0xff]   ;;  %v1659_v57 = vld [vmem:[%s1765_s11 + $0x110] ss:$12 sps:$4 sm:$0xff]   ;;  %v1662_v59 = vld [vmem:[%s1765_s11 + $0x128] ss:$12 sps:$4 sm:$0xff]  }
  0x20   : > { %1394 = vmatpush3.bf16.msra.mxu0 %v1601_v15  ;;  %1561 = vmatpush3.bf16.msra.mxu1 %v1601_v15  ;;  %v1663_v60 = vld [vmem:[%s1765_s11 + $0xf0] ss:$12 sps:$4 sm:$0xff]   ;;  %v1664_v61 = vld [vmem:[%s1765_s11 + $0x140] ss:$12 sps:$4 sm:$0xff]   ;;  %v1667_v63 = vld [vmem:[%s1765_s11 + $0x158] ss:$12 sps:$4 sm:$0xff]  }
  0x21   : > { %1395 = vmatprep.subr.bf16.mxu0 %v1602_v16  ;;  %1554 = vmatprep.subr.bf16.mxu1 %v1602_v16  ;;  %v1665_v62 = vld [vmem:[%s1765_s11 + $0x10c] ss:$12 sps:$4 sm:$0xff]   ;;  %v1668_v0 = vld [vmem:[%s1765_s11 + $0x108] ss:$12 sps:$4 sm:$0xff]   ;;  %v1669_v1 = vld [vmem:[%s1765_s11 + $0x170] ss:$12 sps:$4 sm:$0xff]  }
  0x24   : > { %1396 = vmatpush3.bf16.msra.mxu0 %v1603_v17  ;;  %1562 = vmatpush3.bf16.msra.mxu1 %v1603_v17 }
  0x25   : > { %1511 = vmatprep.subr.bf16.mxu1 %v1610_v18 }
  0x27   : > { %766 = vmatmul.mubr.bf16.vlgmr.msra.gmra.mrb[0].mxu0 %v1604_v19  ;;  %862 = vmatmul.mubr.bf16.vlgmr.msra.gmra.mrb[0].mxu1 %v1607_v20 }
  0x28   : > { %1512 = vmatpush3.bf16.msra.mxu1 %v1610_v18  ;;  %773 = vmatprep.mubr.bf16.mxu0 %v1611_v21 }
  0x29   : > { %869 = vmatprep.mubr.bf16.mxu1 %v1613_v22  ;;  %1513 = vmatprep.subr.bf16.mxu1 %v1623_v23 }
  0x2c   : > { %1514 = vmatpush3.bf16.msra.mxu1 %v1623_v23 }
  0x2f   : > { %774 = vmatmul.mubr.bf16.gmra.mrb[4].mxu0 %v1615_v24  ;;  %870 = vmatmul.mubr.bf16.gmra.mrb[4].mxu1 %v1616_v25 }
  0x30   : > { %781 = vmatprep.mubr.bf16.mxu0 %v1617_v26  ;;  %877 = vmatprep.mubr.bf16.mxu1 %v1619_v27 }
  0x37   : > { %782 = vmatmul.mubr.bf16.gmra.mrb[8].mxu0 %v1621_v28  ;;  %878 = vmatmul.mubr.bf16.gmra.mrb[8].mxu1 %v1622_v29 }
  0x38   : > { %789 = vmatprep.mubr.bf16.mxu0 %v1624_v30  ;;  %885 = vmatprep.mubr.bf16.mxu1 %v1626_v31 }
  0x3f   : > { %790 = vmatmul.mubr.bf16.gmra.mrb[12].mxu0 %v1628_v32  ;;  %886 = vmatmul.mubr.bf16.gmra.mrb[12].mxu1 %v1629_v33 }
  0x40   : > { %797 = vmatprep.mubr.bf16.mxu0 %v1630_v34  ;;  %1515 = vmatprep.mubr.msk.bf16.mxu1 %vm684_vm0, %v1632_v35 }
  0x47   : > { %798 = vmatmul.mubr.bf16.gmra.mrb[16].mxu0 %v1633_v36  ;;  %1516 = vmatmul.mubr.msk.bf16.vlgmr.msra.gmra.mrb[16].mxu1 %vm684_vm0, %v1634_v37 }
  0x48   : > { %805 = vmatprep.mubr.bf16.mxu0 %v1635_v38  ;;  %1519 = vmatprep.mubr.msk.bf16.mxu1 %vm684_vm0, %v1637_v39 }
  0x4f   : > { %806 = vmatmul.mubr.bf16.gmra.mrb[20].mxu0 %v1638_v40  ;;  %1520 = vmatmul.mubr.msk.bf16.gmra.mrb[20].mxu1 %vm684_vm0, %v1639_v41 }
  0x50   : > { %813 = vmatprep.mubr.bf16.mxu0 %v1640_v42  ;;  %1523 = vmatprep.mubr.msk.bf16.mxu1 %vm684_vm0, %v1642_v43 }
  0x57   : > { %814 = vmatmul.mubr.bf16.gmra.mrb[24].mxu0 %v1643_v44  ;;  %1524 = vmatmul.mubr.msk.bf16.gmra.mrb[24].mxu1 %vm684_vm0, %v1644_v45 }
  0x58   : > { %821 = vmatprep.mubr.bf16.mxu0 %v1645_v46  ;;  %1527 = vmatprep.mubr.msk.bf16.mxu1 %vm684_vm0, %v1647_v47 }
  0x5f   : > { %822 = vmatmul.mubr.bf16.gmra.mrb[28].mxu0 %v1648_v48  ;;  %1528 = vmatmul.mubr.msk.bf16.gmra.mrb[28].mxu1 %vm684_vm0, %v1649_v49 }
  0x60   : > { %829 = vmatprep.mubr.bf16.mxu0 %v1650_v50  ;;  %1531 = vmatprep.mubr.msk.bf16.mxu1 %vm684_vm0, %v1652_v51  ;;  %v1879_v50 = vld [vmem:[%s1980_s2] ss:$0 sm:$0xff] }
  0x67   : > { %830 = vmatmul.mubr.bf16.gmra.mrb[32].mxu0 %v1653_v52  ;;  %1532 = vmatmul.mubr.msk.bf16.gmra.mrb[32].mxu1 %vm684_vm0, %v1654_v53 }
  0x68   : > { %837 = vmatprep.mubr.bf16.mxu0 %v1655_v54  ;;  %1535 = vmatprep.mubr.msk.bf16.mxu1 %vm684_vm0, %v1657_v55 }
  0x6f   : > { %838 = vmatmul.mubr.bf16.gmra.mrb[36].mxu0 %v1658_v56  ;;  %1536 = vmatmul.mubr.msk.bf16.gmra.mrb[36].mxu1 %vm684_vm0, %v1659_v57 }
  0x70   : > { %845 = vmatprep.mubr.bf16.mxu0 %v1660_v58  ;;  %1539 = vmatprep.mubr.msk.bf16.mxu1 %vm684_vm0, %v1662_v59 }
  0x77   : > { %846 = vmatmul.mubr.bf16.gmra.mrb[40].mxu0 %v1663_v60  ;;  %1540 = vmatmul.mubr.msk.bf16.gmra.mrb[40].mxu1 %vm684_vm0, %v1664_v61 }
  0x78   : > { %853 = vmatprep.mubr.bf16.mxu0 %v1665_v62  ;;  %1543 = vmatprep.mubr.msk.bf16.mxu1 %vm684_vm0, %v1667_v63 }
  0x7f   : > { %854 = vmatmul.mubr.bf16.gmra.mrb[44].mxu0 %v1668_v0  ;;  %1544 = vmatmul.mubr.msk.bf16.gmra.mrb[44].mxu1 %vm684_vm0, %v1669_v1 }
  0xfa   : > { %v1397_v2 = vpop.f32.mrb[0].mxu0  ;;  %v1469_v3 = vpop.f32.mrb[0].mxu1 }
  0xfb   : > { %v1398_v4 = vpop.f32.mrb[1].mxu0  ;;  %v1470_v5 = vpop.f32.mrb[1].mxu1 }
  0xfc   : > { %v1399_v6 = vadd.f32 %v1398_v4, %v1397_v2  ;;  %v1400_v7 = vpop.f32.mrb[2].mxu0  ;;  %v1858_v8 = vadd.f32 %v1470_v5, %v1469_v3  ;;  %v1472_v9 = vpop.f32.mrb[2].mxu1 }
  0xfd   : > { %v1401_v10 = vpop.f32.mrb[3].mxu0  ;;  %v1473_v11 = vpop.f32.mrb[3].mxu1 }
  0xfe   : > { %v1402_v12 = vadd.f32 %v1401_v10, %v1400_v7  ;;  %v1860_v13 = vadd.f32 %v1473_v11, %v1472_v9  ;;  %v768_v54 = vadd.f32 %v1399_v6, %v1879_v50 }
 0x100   : > { %v771_v63 = vadd.f32 %v1402_v12, %v1879_v50 }
 0x102   : > { %v1403_v14 = vpop.f32.mrb[4].mxu0  ;;  %v1475_v15 = vpop.f32.mrb[4].mxu1 }
 0x103   : > { %v1404_v16 = vpop.f32.mrb[5].mxu0  ;;  %v1476_v17 = vpop.f32.mrb[5].mxu1 }
 0x104   : > { %v1405_v18 = vadd.f32 %v1404_v16, %v1403_v14  ;;  %v1406_v19 = vpop.f32.mrb[6].mxu0  ;;  %v1862_v20 = vadd.f32 %v1476_v17, %v1475_v15  ;;  %v1478_v21 = vpop.f32.mrb[6].mxu1 }
 0x105   : > { %v1407_v22 = vpop.f32.mrb[7].mxu0  ;;  %v1479_v23 = vpop.f32.mrb[7].mxu1 }
 0x106   : > { %v1408_v24 = vadd.f32 %v1407_v22, %v1406_v19  ;;  %v1864_v25 = vadd.f32 %v1479_v23, %v1478_v21  ;;  %v776_v51 = vadd.f32 %v1405_v18, %v1879_v50 }
 0x108   : > { %v779_v58 = vadd.f32 %v1408_v24, %v1879_v50 }
 0x10a   : > { %v1409_v26 = vpop.f32.mrb[8].mxu0  ;;  %v1481_v27 = vpop.f32.mrb[8].mxu1 }
 0x10b   : > { %v1410_v28 = vpop.f32.mrb[9].mxu0  ;;  %v1482_v29 = vpop.f32.mrb[9].mxu1 }
 0x10c   : > { %v1411_v30 = vadd.f32 %v1410_v28, %v1409_v26  ;;  %v1412_v31 = vpop.f32.mrb[10].mxu0  ;;  %v1866_v32 = vadd.f32 %v1482_v29, %v1481_v27  ;;  %v1484_v33 = vpop.f32.mrb[10].mxu1 }
 0x10d   : > { %v1413_v34 = vpop.f32.mrb[11].mxu0  ;;  %v1485_v35 = vpop.f32.mrb[11].mxu1 }
 0x10e   : > { %v1868_v36 = vadd.f32 %v1413_v34, %v1412_v31  ;;  %v1870_v37 = vadd.f32 %v1485_v35, %v1484_v33  ;;  %v784_v18 = vadd.f32 %v1411_v30, %v1879_v50 }
 0x110   : > { %v787_v29 = vadd.f32 %v1868_v36, %v1879_v50 }
 0x112   : > { %v1415_v38 = vpop.f32.mrb[12].mxu0  ;;  %v1487_v39 = vpop.f32.mrb[12].mxu1 }
 0x113   : > { %v1416_v40 = vpop.f32.mrb[13].mxu0  ;;  %v1488_v41 = vpop.f32.mrb[13].mxu1 }
 0x114   : > { %v1417_v42 = vadd.f32 %v1416_v40, %v1415_v38  ;;  %v1418_v43 = vpop.f32.mrb[14].mxu0  ;;  %v1872_v44 = vadd.f32 %v1488_v41, %v1487_v39  ;;  %v1490_v45 = vpop.f32.mrb[14].mxu1 }
 0x115   : > { %v1419_v46 = vpop.f32.mrb[15].mxu0  ;;  %v1491_v47 = vpop.f32.mrb[15].mxu1 }
 0x116   : > { %v1420_v48 = vadd.f32 %v1419_v46, %v1418_v43  ;;  %v1874_v49 = vadd.f32 %v1491_v47, %v1490_v45  ;;  %v792_v14 = vadd.f32 %v1417_v42, %v1879_v50 }
 0x118   : > { %v795_v23 = vadd.f32 %v1420_v48, %v1879_v50 }
 0x11a   : > { %v1421_v52 = vpop.f32.mrb[16].mxu0  ;;  %v1517_v53 = vpop.f32.mrb[16].mxu1 }
 0x11b   : > { %v937_v55 = vadd.f32 %v1517_v53, %v776_v51  ;;  %v1422_v56 = vpop.f32.mrb[17].mxu0  ;;  %v928_v57 = vpop.f32.mrb[17].mxu1 }
 0x11c   : > { %v1885_v59 = vadd.f32 %v1422_v56, %v1421_v52  ;;  %v929_v60 = vadd.f32 %v928_v57, %v768_v54  ;;  %v1424_v61 = vpop.f32.mrb[18].mxu0  ;;  %v1518_v62 = vpop.f32.mrb[18].mxu1 }
 0x11d   : > { %vm1057_vm1 = vcmp.gt.f32.partialorder %v937_v55, 0.0  ;;  %v1089_v0 = vmul.f32 0.2, %v937_v55  ;;  %v940_v1 = vadd.f32 %v1518_v62, %v779_v58  ;;  %v1425_v2 = vpop.f32.mrb[19].mxu0  ;;  %v931_v3 = vpop.f32.mrb[19].mxu1 }
 0x11e   : > { %vm1055_vm2 = vcmp.gt.f32.partialorder %v929_v60, 0.0  ;;  %v1087_v4 = vmul.f32 0.2, %v929_v60  ;;  %v1426_v5 = vadd.f32 %v1425_v2, %v1424_v61  ;;  %v932_v6 = vadd.f32 %v931_v3, %v771_v63 }
 0x11f   : > { %v1121_v7 = vsel %vm1057_vm1, %v937_v55, %v1089_v0  ;;  %vm1058_vm3 = vcmp.gt.f32.partialorder %v940_v1, 0.0  ;;  %v1090_v9 = vmul.f32 0.2, %v940_v1  ;;  %v800_v51 = vadd.f32 %v1885_v59, %v1879_v50 }
 0x120   : > { %1153 = vst [vmem:[%s1891_s12 + $0x10] sm:$0xff] %v1121_v7  ;;  %v1119_v10 = vsel %vm1055_vm2, %v929_v60, %v1087_v4  ;;  %vm1056_vm4 = vcmp.gt.f32.partialorder %v932_v6, 0.0  ;;  %v1088_v11 = vmul.f32 0.2, %v932_v6  ;;  %v803_v61 = vadd.f32 %v1426_v5, %v1879_v50 }
 0x121   : > { %1151 = vst [vmem:[%s1891_s12] sm:$0xff] %v1119_v10  ;;  %v1122_v12 = vsel %vm1058_vm3, %v940_v1, %v1090_v9 }
 0x122   : > { %1154 = vst [vmem:[%s1891_s12 + $0x18] sm:$0xff] %v1122_v12  ;;  %v1120_v15 = vsel %vm1056_vm4, %v932_v6, %v1088_v11  ;;  %v1427_v16 = vpop.f32.mrb[20].mxu0  ;;  %v1521_v17 = vpop.f32.mrb[20].mxu1 }
 0x123   : > { %1152 = vst [vmem:[%s1891_s12 + $0x8] sm:$0xff] %v1120_v15  ;;  %v953_v19 = vadd.f32 %v1521_v17, %v792_v14  ;;  %v1428_v21 = vpop.f32.mrb[21].mxu0  ;;  %v944_v22 = vpop.f32.mrb[21].mxu1 }
 0x124   : > { %v1429_v24 = vadd.f32 %v1428_v21, %v1427_v16  ;;  %v945_v26 = vadd.f32 %v944_v22, %v784_v18  ;;  %v1430_v27 = vpop.f32.mrb[22].mxu0  ;;  %v1522_v28 = vpop.f32.mrb[22].mxu1 }
 0x125   : > { %vm1061_vm5 = vcmp.gt.f32.partialorder %v953_v19, 0.0  ;;  %v1093_v31 = vmul.f32 0.2, %v953_v19  ;;  %v956_v33 = vadd.f32 %v1522_v28, %v795_v23  ;;  %v1431_v34 = vpop.f32.mrb[23].mxu0  ;;  %v947_v30 = vpop.f32.mrb[23].mxu1 }
 0x126   : > { %vm1059_vm6 = vcmp.gt.f32.partialorder %v945_v26, 0.0  ;;  %v1091_v35 = vmul.f32 0.2, %v945_v26  ;;  %v1432_v38 = vadd.f32 %v1431_v34, %v1430_v27  ;;  %v948_v39 = vadd.f32 %v947_v30, %v787_v29 }
 0x127   : > { %v1125_v40 = vsel %vm1061_vm5, %v953_v19, %v1093_v31  ;;  %vm1062_vm7 = vcmp.gt.f32.partialorder %v956_v33, 0.0  ;;  %v1094_v41 = vmul.f32 0.2, %v956_v33  ;;  %v808_v45 = vadd.f32 %v1429_v24, %v1879_v50 }
 0x128   : > { %1157 = vst [vmem:[%s1891_s12 + $0x30] sm:$0xff] %v1125_v40  ;;  %v1123_v42 = vsel %vm1059_vm6, %v945_v26, %v1091_v35  ;;  %vm1060_vm8 = vcmp.gt.f32.partialorder %v948_v39, 0.0  ;;  %v1092_v43 = vmul.f32 0.2, %v948_v39  ;;  %v811_v55 = vadd.f32 %v1432_v38, %v1879_v50 }
 0x129   : > { %1155 = vst [vmem:[%s1891_s12 + $0x20] sm:$0xff] %v1123_v42  ;;  %v1126_v36 = vsel %vm1062_vm7, %v956_v33, %v1094_v41 }
 0x12a   : > { %1158 = vst [vmem:[%s1891_s12 + $0x38] sm:$0xff] %v1126_v36  ;;  %v1124_v46 = vsel %vm1060_vm8, %v948_v39, %v1092_v43  ;;  %v1433_v47 = vpop.f32.mrb[24].mxu0  ;;  %v1525_v48 = vpop.f32.mrb[24].mxu1 }
 0x12b   : > { %1156 = vst [vmem:[%s1891_s12 + $0x28] sm:$0xff] %v1124_v46  ;;  %v969_v52 = vadd.f32 %v1525_v48, %v808_v45  ;;  %v1434_v53 = vpop.f32.mrb[25].mxu0  ;;  %v960_v54 = vpop.f32.mrb[25].mxu1 }
 0x12c   : > { %v1435_v56 = vadd.f32 %v1434_v53, %v1433_v47  ;;  %v961_v57 = vadd.f32 %v960_v54, %v800_v51  ;;  %v1436_v58 = vpop.f32.mrb[26].mxu0  ;;  %v1526_v60 = vpop.f32.mrb[26].mxu1 }
 0x12d   : > { %vm1065_vm9 = vcmp.gt.f32.partialorder %v969_v52, 0.0  ;;  %v1097_v62 = vmul.f32 0.2, %v969_v52  ;;  %v972_v63 = vadd.f32 %v1526_v60, %v811_v55  ;;  %v1437_v0 = vpop.f32.mrb[27].mxu0  ;;  %v963_v59 = vpop.f32.mrb[27].mxu1 }
 0x12e   : > { %vm1063_vm10 = vcmp.gt.f32.partialorder %v961_v57, 0.0  ;;  %v1095_v1 = vmul.f32 0.2, %v961_v57  ;;  %v1438_v2 = vadd.f32 %v1437_v0, %v1436_v58  ;;  %v964_v3 = vadd.f32 %v963_v59, %v803_v61 }
 0x12f   : > { %v1129_v4 = vsel %vm1065_vm9, %v969_v52, %v1097_v62  ;;  %vm1066_vm11 = vcmp.gt.f32.partialorder %v972_v63, 0.0  ;;  %v1098_v6 = vmul.f32 0.2, %v972_v63  ;;  %v816_v14 = vadd.f32 %v1435_v56, %v1879_v50 }
 0x130   : > { %1161 = vst [vmem:[%s1891_s12 + $0x50] sm:$0xff] %v1129_v4  ;;  %v1127_v7 = vsel %vm1063_vm10, %v961_v57, %v1095_v1  ;;  %vm1064_vm12 = vcmp.gt.f32.partialorder %v964_v3, 0.0  ;;  %v1096_v9 = vmul.f32 0.2, %v964_v3  ;;  %v819_v23 = vadd.f32 %v1438_v2, %v1879_v50 }
 0x131   : > { %1159 = vst [vmem:[%s1891_s12 + $0x40] sm:$0xff] %v1127_v7  ;;  %v1130_v5 = vsel %vm1066_vm11, %v972_v63, %v1098_v6 }
 0x132   : > { %1162 = vst [vmem:[%s1891_s12 + $0x58] sm:$0xff] %v1130_v5  ;;  %v1128_v10 = vsel %vm1064_vm12, %v964_v3, %v1096_v9  ;;  %v1439_v11 = vpop.f32.mrb[28].mxu0  ;;  %v1529_v12 = vpop.f32.mrb[28].mxu1 }
 0x133   : > { %1160 = vst [vmem:[%s1891_s12 + $0x48] sm:$0xff] %v1128_v10  ;;  %v1440_v15 = vpop.f32.mrb[29].mxu0  ;;  %v976_v16 = vpop.f32.mrb[29].mxu1 }
 0x134   : > { %v1441_v17 = vadd.f32 %v1440_v15, %v1439_v11  ;;  %v977_v18 = vadd.f32 %v976_v16, %v816_v14  ;;  %v1442_v19 = vpop.f32.mrb[30].mxu0  ;;  %v1530_v21 = vpop.f32.mrb[30].mxu1  ;;  %v872_v14 = vadd.f32 %v1862_v20, %v1879_v50 }
 0x135   : > { %v1443_v22 = vpop.f32.mrb[31].mxu0  ;;  %v979_v24 = vpop.f32.mrb[31].mxu1 }
 0x136   : > { %v824_v26 = vadd.f32 %v1441_v17, %v1879_v50  ;;  %vm1067_vm13 = vcmp.gt.f32.partialorder %v977_v18, 0.0  ;;  %v1099_v27 = vmul.f32 0.2, %v977_v18  ;;  %v1444_v28 = vadd.f32 %v1443_v22, %v1442_v19 }
 0x137   : > { %v980_v29 = vadd.f32 %v979_v24, %v819_v23  ;;  %v864_v22 = vadd.f32 %v1858_v8, %v1879_v50  ;;  %v875_v24 = vadd.f32 %v1864_v25, %v1879_v50 }
 0x138   : > { %v985_v31 = vadd.f32 %v1529_v12, %v824_v26  ;;  %v1131_v33 = vsel %vm1067_vm13, %v977_v18, %v1099_v27  ;;  %v827_v34 = vadd.f32 %v1444_v28, %v1879_v50  ;;  %v867_v26 = vadd.f32 %v1860_v13, %v1879_v50 }
 0x139   : > { %1163 = vst [vmem:[%s1891_s12 + $0x60] sm:$0xff] %v1131_v33  ;;  %vm1068_vm14 = vcmp.gt.f32.partialorder %v980_v29, 0.0  ;;  %v1100_v30 = vmul.f32 0.2, %v980_v29 }
 0x13a   : > { %vm1069_vm15 = vcmp.gt.f32.partialorder %v985_v31, 0.0  ;;  %v1101_v35 = vmul.f32 0.2, %v985_v31  ;;  %v988_v38 = vadd.f32 %v1530_v21, %v827_v34  ;;  %v1445_v39 = vpop.f32.mrb[32].mxu0  ;;  %v1533_v40 = vpop.f32.mrb[32].mxu1 }
 0x13b   : > { %v1132_v41 = vsel %vm1068_vm14, %v980_v29, %v1100_v30  ;;  %v1446_v42 = vpop.f32.mrb[33].mxu0  ;;  %v992_v43 = vpop.f32.mrb[33].mxu1 }
 0x13c   : > { %v1133_v36 = vsel %vm1069_vm15, %v985_v31, %v1101_v35  ;;  %vm1070_vm0 = vcmp.gt.f32.partialorder %v988_v38, 0.0  ;;  %v1102_v45 = vmul.f32 0.2, %v988_v38  ;;  %1164 = vst [vmem:[%s1891_s12 + $0x68] sm:$0xff] %v1132_v41  ;;  %v1447_v46 = vadd.f32 %v1446_v42, %v1445_v39  ;;  %v1448_v47 = vpop.f32.mrb[34].mxu0  ;;  %v1534_v48 = vpop.f32.mrb[34].mxu1 }
 0x13d   : > { %1165 = vst [vmem:[%s1891_s12 + $0x70] sm:$0xff] %v1133_v36  ;;  %v1449_v51 = vpop.f32.mrb[35].mxu0  ;;  %v995_v52 = vpop.f32.mrb[35].mxu1 }
 0x13e   : > { %v1134_v53 = vsel %vm1070_vm0, %v988_v38, %v1102_v45  ;;  %v832_v54 = vadd.f32 %v1447_v46, %v1879_v50  ;;  %v1450_v55 = vadd.f32 %v1449_v51, %v1448_v47  ;;  %v888_v47 = vadd.f32 %v1872_v44, %v1879_v50 }
 0x13f   : > { %1166 = vst [vmem:[%s1891_s12 + $0x78] sm:$0xff] %v1134_v53  ;;  %v891_v44 = vadd.f32 %v1874_v49, %v1879_v50 }
 0x140   : > { %v993_v56 = vadd.f32 %v992_v43, %v832_v54  ;;  %v835_v57 = vadd.f32 %v1450_v55, %v1879_v50 }
 0x142   : > { %vm1071_vm1 = vcmp.gt.f32.partialorder %v993_v56, 0.0  ;;  %v1103_v58 = vmul.f32 0.2, %v993_v56  ;;  %v996_v60 = vadd.f32 %v995_v52, %v835_v57  ;;  %v1451_v61 = vpop.f32.mrb[36].mxu0  ;;  %v1925_v62 = vpop.f32.mrb[36].mxu1 }
 0x143   : > { %v1452_v63 = vpop.f32.mrb[37].mxu0  ;;  %v1008_v0 = vpop.f32.mrb[37].mxu1 }
 0x144   : > { %v1135_v59 = vsel %vm1071_vm1, %v993_v56, %v1103_v58  ;;  %vm1072_vm2 = vcmp.gt.f32.partialorder %v996_v60, 0.0  ;;  %v1104_v1 = vmul.f32 0.2, %v996_v60  ;;  %v1453_v2 = vadd.f32 %v1452_v63, %v1451_v61  ;;  %v1454_v3 = vpop.f32.mrb[38].mxu0  ;;  %v1927_v4 = vpop.f32.mrb[38].mxu1 }
 0x145   : > { %1167 = vst [vmem:[%s1891_s12 + $0x80] sm:$0xff] %v1135_v59  ;;  %v1455_v6 = vpop.f32.mrb[39].mxu0  ;;  %v1011_v7 = vpop.f32.mrb[39].mxu1 }
 0x146   : > { %v1136_v9 = vsel %vm1072_vm2, %v996_v60, %v1104_v1  ;;  %v840_v5 = vadd.f32 %v1453_v2, %v1879_v50  ;;  %v1456_v10 = vadd.f32 %v1455_v6, %v1454_v3 }
 0x147   : > { %1168 = vst [vmem:[%s1891_s12 + $0x88] sm:$0xff] %v1136_v9 }
 0x148   : > { %v1001_v11 = vadd.f32 %v1533_v40, %v840_v5  ;;  %v843_v12 = vadd.f32 %v1456_v10, %v1879_v50 }
 0x14a   : > { %vm1073_vm3 = vcmp.gt.f32.partialorder %v1001_v11, 0.0  ;;  %v1105_v15 = vmul.f32 0.2, %v1001_v11  ;;  %v1004_v16 = vadd.f32 %v1534_v48, %v843_v12  ;;  %v1457_v17 = vpop.f32.mrb[40].mxu0  ;;  %v1541_v18 = vpop.f32.mrb[40].mxu1  ;;  %v880_v48 = vadd.f32 %v1866_v32, %v1879_v50 }
 0x14b   : > { %v1033_v19 = vadd.f32 %v1541_v18, %v872_v14  ;;  %v1458_v21 = vpop.f32.mrb[41].mxu0  ;;  %v1024_v23 = vpop.f32.mrb[41].mxu1  ;;  %v883_v32 = vadd.f32 %v1870_v37, %v1879_v50 }
 0x14c   : > { %v1137_v27 = vsel %vm1073_vm3, %v1001_v11, %v1105_v15  ;;  %vm1074_vm4 = vcmp.gt.f32.partialorder %v1004_v16, 0.0  ;;  %v1106_v20 = vmul.f32 0.2, %v1004_v16  ;;  %v1459_v28 = vadd.f32 %v1458_v21, %v1457_v17  ;;  %v1460_v29 = vpop.f32.mrb[42].mxu0  ;;  %v1542_v31 = vpop.f32.mrb[42].mxu1 }
 0x14d   : > { %1169 = vst [vmem:[%s1891_s12 + $0x90] sm:$0xff] %v1137_v27  ;;  %vm1081_vm5 = vcmp.gt.f32.partialorder %v1033_v19, 0.0  ;;  %v1113_v33 = vmul.f32 0.2, %v1033_v19  ;;  %v1025_v34 = vadd.f32 %v1024_v23, %v864_v22  ;;  %v1036_v8 = vadd.f32 %v1542_v31, %v875_v24  ;;  %v1461_v30 = vpop.f32.mrb[43].mxu0  ;;  %v1027_v35 = vpop.f32.mrb[43].mxu1 }
 0x14e   : > { %v1138_v38 = vsel %vm1074_vm4, %v1004_v16, %v1106_v20  ;;  %v848_v25 = vadd.f32 %v1459_v28, %v1879_v50  ;;  %v1462_v39 = vadd.f32 %v1461_v30, %v1460_v29  ;;  %v1028_v13 = vadd.f32 %v1027_v35, %v867_v26 }
 0x14f   : > { %1170 = vst [vmem:[%s1891_s12 + $0x98] sm:$0xff] %v1138_v38  ;;  %v1145_v40 = vsel %vm1081_vm5, %v1033_v19, %v1113_v33  ;;  %vm1079_vm6 = vcmp.gt.f32.partialorder %v1025_v34, 0.0  ;;  %v1111_v41 = vmul.f32 0.2, %v1025_v34  ;;  %vm1082_vm7 = vcmp.gt.f32.partialorder %v1036_v8, 0.0 }
 0x150   : > { %1177 = vst [vmem:[%s1891_s12 + $0xd0] sm:$0xff] %v1145_v40  ;;  %v1009_v42 = vadd.f32 %v1008_v0, %v848_v25  ;;  %v1114_v43 = vmul.f32 0.2, %v1036_v8  ;;  %v851_v36 = vadd.f32 %v1462_v39, %v1879_v50  ;;  %vm1080_vm8 = vcmp.gt.f32.partialorder %v1028_v13, 0.0 }
 0x151   : > { %v1143_v45 = vsel %vm1079_vm6, %v1025_v34, %v1111_v41  ;;  %v1112_v46 = vmul.f32 0.2, %v1028_v13 }
 0x152   : > { %vm1075_vm9 = vcmp.gt.f32.partialorder %v1009_v42, 0.0  ;;  %v1107_v51 = vmul.f32 0.2, %v1009_v42  ;;  %1175 = vst [vmem:[%s1891_s12 + $0xc0] sm:$0xff] %v1143_v45  ;;  %v1146_v52 = vsel %vm1082_vm7, %v1036_v8, %v1114_v43  ;;  %v1012_v53 = vadd.f32 %v1011_v7, %v851_v36  ;;  %v1463_v54 = vpop.f32.mrb[44].mxu0  ;;  %v1545_v55 = vpop.f32.mrb[44].mxu1 }
 0x153   : > { %1178 = vst [vmem:[%s1891_s12 + $0xd8] sm:$0xff] %v1146_v52  ;;  %v1144_v56 = vsel %vm1080_vm8, %v1028_v13, %v1112_v46  ;;  %v1049_v57 = vadd.f32 %v1545_v55, %v888_v47  ;;  %v1464_v58 = vpop.f32.mrb[45].mxu0  ;;  %v1040_v60 = vpop.f32.mrb[45].mxu1 }
 0x154   : > { %v1139_v61 = vsel %vm1075_vm9, %v1009_v42, %v1107_v51  ;;  %vm1076_vm10 = vcmp.gt.f32.partialorder %v1012_v53, 0.0  ;;  %v1108_v63 = vmul.f32 0.2, %v1012_v53  ;;  %1176 = vst [vmem:[%s1891_s12 + $0xc8] sm:$0xff] %v1144_v56  ;;  %v1465_v0 = vadd.f32 %v1464_v58, %v1463_v54  ;;  %v1466_v59 = vpop.f32.mrb[46].mxu0  ;;  %v1546_v1 = vpop.f32.mrb[46].mxu1 }
 0x155   : > { %1171 = vst [vmem:[%s1891_s12 + $0xa0] sm:$0xff] %v1139_v61  ;;  %vm1085_vm11 = vcmp.gt.f32.partialorder %v1049_v57, 0.0  ;;  %v1117_v2 = vmul.f32 0.2, %v1049_v57  ;;  %v1041_v3 = vadd.f32 %v1040_v60, %v880_v48  ;;  %v1052_v6 = vadd.f32 %v1546_v1, %v891_v44  ;;  %v1467_v7 = vpop.f32.mrb[47].mxu0  ;;  %v1043_v9 = vpop.f32.mrb[47].mxu1 }
 0x156   : > { %v1140_v49 = vsel %vm1076_vm10, %v1012_v53, %v1108_v63  ;;  %v856_v5 = vadd.f32 %v1465_v0, %v1879_v50  ;;  %v1468_v37 = vadd.f32 %v1467_v7, %v1466_v59  ;;  %v1044_v10 = vadd.f32 %v1043_v9, %v883_v32 }
 0x157   : > { %1172 = vst [vmem:[%s1891_s12 + $0xa8] sm:$0xff] %v1140_v49  ;;  %v1149_v11 = vsel %vm1085_vm11, %v1049_v57, %v1117_v2  ;;  %vm1083_vm12 = vcmp.gt.f32.partialorder %v1041_v3, 0.0  ;;  %v1115_v12 = vmul.f32 0.2, %v1041_v3  ;;  %vm1086_vm13 = vcmp.gt.f32.partialorder %v1052_v6, 0.0 }
 0x158   : > { %1181 = vst [vmem:[%s1891_s12 + $0xf0] sm:$0xff] %v1149_v11  ;;  %v1017_v14 = vadd.f32 %v1925_v62, %v856_v5  ;;  %v1118_v15 = vmul.f32 0.2, %v1052_v6  ;;  %v859_v16 = vadd.f32 %v1468_v37, %v1879_v50  ;;  %vm1084_vm14 = vcmp.gt.f32.partialorder %v1044_v10, 0.0 }
 0x159   : > { %v1147_v17 = vsel %vm1083_vm12, %v1041_v3, %v1115_v12  ;;  %v1116_v18 = vmul.f32 0.2, %v1044_v10 }
 0x15a   : > { %vm1077_vm15 = vcmp.gt.f32.partialorder %v1017_v14, 0.0  ;;  %v1109_v19 = vmul.f32 0.2, %v1017_v14  ;;  %1179 = vst [vmem:[%s1891_s12 + $0xe0] sm:$0xff] %v1147_v17  ;;  %v1150_v21 = vsel %vm1086_vm13, %v1052_v6, %v1118_v15  ;;  %v1020_v22 = vadd.f32 %v1927_v4, %v859_v16 }
 0x15b   : > { %1182 = vst [vmem:[%s1891_s12 + $0xf8] sm:$0xff] %v1150_v21  ;;  %v1148_v23 = vsel %vm1084_vm14, %v1044_v10, %v1116_v18 }
 0x15c   : > { %v1141_v24 = vsel %vm1077_vm15, %v1017_v14, %v1109_v19  ;;  %vm1078_vm0 = vcmp.gt.f32.partialorder %v1020_v22, 0.0  ;;  %v1110_v62 = vmul.f32 0.2, %v1020_v22  ;;  %1180 = vst [vmem:[%s1891_s12 + $0xe8] sm:$0xff] %v1148_v23 }
 0x15d   : > { %1173 = vst [vmem:[%s1891_s12 + $0xb0] sm:$0xff] %v1141_v24 }
 0x15e   : > { %v1142_v26 = vsel %vm1078_vm0, %v1020_v22, %v1110_v62 }
 0x15f   : > { %1174 = vst [vmem:[%s1891_s12 + $0xb8] sm:$0xff] %v1142_v26 }
 0x160 PF: > { %s13_s14 = sadd.s32 1, %s1692_s14   ;;  %s1982_s12 = smov %s1688_s13 }
 0x161   : > { %p10_p5 = scmp.ge.s32.totalorder %s13_s14, 4   ;;  %s1983_s13 = smov %s1985_s15 }
 0x163   :  { %12 = sbr.rel (!%p10_p5) target bundleno = 2 (0x2), region = 68 }

// kernel: discriminator_forward.10
= control target key start
LH: loop header
LB: loop body
LE: loop exit
PB: predicated region body
PF: predicated region fallthrough
CT: control target
= control target key end

     0   :  { %s2445_s12 = smov 0   ;;  %s2447_s13 = smov 0   ;;  %s2870_s0 = inlined_call_operand.vmem [shape: bf16[512,576], index: 0, kind: input, shape index: {}]   ;;  %s2871_s1 = inlined_call_operand.vmem [shape: bf16[576,128], index: 1, kind: input, shape index: {}]   ;;  %s2872_s2 = inlined_call_operand.vmem [shape: f32[1,128], index: 2, kind: input, shape index: {}]   ;;  %s2873_s3 = inlined_call_operand.vmem [shape: f32[512,128], index: 3, kind: output, shape index: {}]  }
   0x1   :  { %s2449_s14 = smov 0  }
   0x2 LB: > { %s25_s15 = sadd.s32 1, %s2419_s13  ;;  %p1788_p0 = scmp.ge.s32.totalorder %s2423_s14, 1  ;;  %s2423_s14 = sphi %s2449_s14, %s13_s14   ;;  %s2419_s13 = sphi %s2447_s13, %s2875_s13   ;;  %s2415_s12 = sphi %s2445_s12, %s2874_s12  }
   0x3   : > { %p27_p1 = scmp.ge.s32.totalorder %s25_s15, 2  ;;  %p170_p2 = scmp.lt.s32.totalorder %s2423_s14, 3 }
   0x5   : > { %s2877_s15 = smov (%p27_p1, %s25_s15), 0  ;;  %p171_p3 = pnand %p1788_p0, %p170_p2 }
   0x6   : > { %v2253_v0 = vld [vmem:[%s2871_s1 + $0x40] sm:$0xff] (!%p171_p3)   ;;  %s1789_s18 = sshll.u32 (!%p171_p3), %s2415_s12, 5  ;;  %v2255_v2 = vld [vmem:[%s2871_s1 + $0x48] sm:$0xff] (!%p171_p3)   ;;  %v2257_v4 = vld [vmem:[%s2871_s1 + $0x50] sm:$0xff] (!%p171_p3)   ;;  %vm1020_vm0 = vcmask (!%p171_p3), 523264  }
   0x7   : > { %174 = sbr.rel (%p171_p3) target bundleno = 416 (0x1a0), region = 32  ;;  %v2254_v1 = vld [vmem:[%s2871_s1] sm:$0xff] (!%p171_p3)   ;;  %1928 = vmatprep.subr.bf16.mxu0 (!%p171_p3), %v2253_v0  ;;  %2212 = vmatprep.subr.bf16.mxu1 (!%p171_p3), %v2253_v0  ;;  %p206_p4 = scmp.lt.s32.totalorder (!%p171_p3), %s1789_s18, 63  ;;  %v2256_v3 = vld [vmem:[%s2871_s1 + $0x8] sm:$0xff] (!%p171_p3)   ;;  %v2258_v5 = vld [vmem:[%s2871_s1 + $0x10] sm:$0xff] (!%p171_p3)  }
   0x8   : > { %1929 = vmatpush3.bf16.msra.mxu0 (!%p171_p3), %v2254_v1  ;;  %2220 = vmatpush3.bf16.msra.mxu1 (!%p171_p3), %v2254_v1  ;;  %v2259_v6 = vld [vmem:[%s2871_s1 + $0x58] sm:$0xff] (!%p171_p3)   ;;  %v2261_v8 = vld [vmem:[%s2871_s1 + $0x60] sm:$0xff] (!%p171_p3)   ;;  %v2263_v10 = vld [vmem:[%s2871_s1 + $0x68] sm:$0xff] (!%p171_p3)  }
   0x9   : > { %1930 = vmatprep.subr.bf16.mxu0 (!%p171_p3), %v2255_v2  ;;  %2213 = vmatprep.subr.bf16.mxu1 (!%p171_p3), %v2255_v2  ;;  %v2260_v7 = vld [vmem:[%s2871_s1 + $0x18] sm:$0xff] (!%p171_p3)   ;;  %v2262_v9 = vld [vmem:[%s2871_s1 + $0x20] sm:$0xff] (!%p171_p3)   ;;  %v2264_v13 = vld [vmem:[%s2871_s1 + $0x28] sm:$0xff] (!%p171_p3)  }
   0xa   : > { %v2265_v14 = vld [vmem:[%s2871_s1 + $0x70] sm:$0xff] (!%p171_p3)   ;;  %v2267_v16 = vld [vmem:[%s2871_s1 + $0x78] sm:$0xff] (!%p171_p3)   ;;  %v2275_v18 = vld [vmem:[%s2871_s1 + $0xc0] sm:$0xff] (!%p171_p3)  }
   0xb   : > { %v2266_v15 = vld [vmem:[%s2871_s1 + $0x30] sm:$0xff] (!%p171_p3)   ;;  %v2268_v17 = vld [vmem:[%s2871_s1 + $0x38] sm:$0xff] (!%p171_p3)   ;;  %v2278_v19 = vld [vmem:[%s2871_s1 + $0x100] sm:$0xff] (!%p171_p3)  }
   0xc   : > { %1931 = vmatpush3.bf16.msra.mxu0 (!%p171_p3), %v2256_v3  ;;  %2221 = vmatpush3.bf16.msra.mxu1 (!%p171_p3), %v2256_v3  ;;  %v2276_v22 = vld [vmem:[%s2871_s1 + $0x80] sm:$0xff] (!%p171_p3)   ;;  %v2277_v23 = vld [vmem:[%s2871_s1 + $0xc8] sm:$0xff] (!%p171_p3)   ;;  %v2286_v28 = vld [vmem:[%s2871_s1 + $0xd0] sm:$0xff] (!%p171_p3)  }
   0xd   : > { %1932 = vmatprep.subr.bf16.mxu0 (!%p171_p3), %v2257_v4  ;;  %2214 = vmatprep.subr.bf16.mxu1 (!%p171_p3), %v2257_v4  ;;  %v2279_v26 = vld [vmem:[%s2871_s1 + $0x88] sm:$0xff] (!%p171_p3)   ;;  %v2287_v30 = vld [vmem:[%s2871_s1 + $0x90] sm:$0xff] (!%p171_p3)   ;;  %v2288_v31 = vld [vmem:[%s2871_s1 + $0xd8] sm:$0xff] (!%p171_p3)  }
   0xe   : > { %s2879_s18 = smov (!%p206_p4, %s1789_s18), 63  ;;  %v2289_v34 = vld [vmem:[%s2871_s1 + $0x98] sm:$0xff]   ;;  %v2309_v35 = vld [vmem:[%s2871_s1 + $0x108] sm:$0xff]   ;;  %v2296_v37 = vld [vmem:[%s2871_s1 + $0xe0] sm:$0xff]  }
   0xf   : > { %s2228_s4 = smul.u32 20, %s2879_s18  ;;  %v2297_v39 = vld [vmem:[%s2871_s1 + $0xa0] sm:$0xff]   ;;  %v2298_v40 = vld [vmem:[%s2871_s1 + $0xe8] sm:$0xff]   ;;  %v2306_v46 = vld [vmem:[%s2871_s1 + $0xf0] sm:$0xff]   ;;  %s1792_s27 = sshll.u32 %s2879_s18, 3 }
  0x10   : > { %1933 = vmatpush3.bf16.msra.mxu0 %v2258_v5  ;;  %2222 = vmatpush3.bf16.msra.mxu1 %v2258_v5  ;;  %v2299_v43 = vld [vmem:[%s2871_s1 + $0xa8] sm:$0xff]   ;;  %v2329_v47 = vld [vmem:[%s2871_s1 + $0x110] sm:$0xff]   ;;  %v2308_v49 = vld [vmem:[%s2871_s1 + $0xf8] sm:$0xff]   ;;  %s2767_s30 = scalar_lea.vmem %s2873_s3, %s1792_s27 }
  0x11   : > { %1934 = vmatprep.subr.bf16.mxu0 %v2259_v6  ;;  %2215 = vmatprep.subr.bf16.mxu1 %v2259_v6  ;;  %s2496_s11 = scalar_lea.vmem %s2870_s0, %s2228_s4  ;;  %v2307_v48 = vld [vmem:[%s2871_s1 + $0xb0] sm:$0xff]   ;;  %v2310_v52 = vld [vmem:[%s2871_s1 + $0xb8] sm:$0xff]  }
  0x12   : > { %v2271_v11 = vld [vmem:[%s2496_s11 + $0x4] ss:$20 sps:$4 sm:$0xff]   ;;  %v2269_v20 = vld [vmem:[%s2496_s11] ss:$20 sps:$4 sm:$0xff]   ;;  %v2284_v27 = vld [vmem:[%s2496_s11 + $0x28] ss:$20 sps:$4 sm:$0xff]  }
  0x13   : > { %v2274_v12 = vld [vmem:[%s2496_s11 + $0x1e4] ss:$20 sps:$4 sm:$0xff]   ;;  %1101 = vmatprep.mubr.bf16.mxu0 %v2271_v11  ;;  %v2272_v21 = vld [vmem:[%s2496_s11 + $0x1e0] ss:$20 sps:$4 sm:$0xff]   ;;  %v2285_v29 = vld [vmem:[%s2496_s11 + $0x208] ss:$20 sps:$4 sm:$0xff]  }
  0x14   : > { %1935 = vmatpush3.bf16.msra.mxu0 %v2260_v7  ;;  %2223 = vmatpush3.bf16.msra.mxu1 %v2260_v7  ;;  %v2280_v24 = vld [vmem:[%s2496_s11 + $0x2c] ss:$20 sps:$4 sm:$0xff]   ;;  %v2290_v32 = vld [vmem:[%s2496_s11 + $0x54] ss:$20 sps:$4 sm:$0xff]   ;;  %v2294_v36 = vld [vmem:[%s2496_s11 + $0x50] ss:$20 sps:$4 sm:$0xff]  }
  0x15   : > { %1936 = vmatprep.subr.bf16.mxu0 %v2261_v8  ;;  %2216 = vmatprep.subr.bf16.mxu1 %v2261_v8  ;;  %v2282_v25 = vld [vmem:[%s2496_s11 + $0x20c] ss:$20 sps:$4 sm:$0xff]   ;;  %v2292_v33 = vld [vmem:[%s2496_s11 + $0x234] ss:$20 sps:$4 sm:$0xff]   ;;  %v2295_v38 = vld [vmem:[%s2496_s11 + $0x230] ss:$20 sps:$4 sm:$0xff]  }
  0x16   : > { %1197 = vmatprep.mubr.bf16.mxu1 %v2274_v12  ;;  %v2300_v41 = vld [vmem:[%s2496_s11 + $0x7c] ss:$20 sps:$4 sm:$0xff]   ;;  %v2304_v44 = vld [vmem:[%s2496_s11 + $0x78] ss:$20 sps:$4 sm:$0xff]   ;;  %v2316_v54 = vld [vmem:[%s2496_s11 + $0xa0] ss:$20 sps:$4 sm:$0xff]  }
  0x17   : > { %v2302_v42 = vld [vmem:[%s2496_s11 + $0x25c] ss:$20 sps:$4 sm:$0xff]   ;;  %v2305_v45 = vld [vmem:[%s2496_s11 + $0x258] ss:$20 sps:$4 sm:$0xff]   ;;  %v2319_v57 = vld [vmem:[%s2496_s11 + $0x34] ss:$20 sps:$4 sm:$0xff]  }
  0x18   : > { %1937 = vmatpush3.bf16.msra.mxu0 %v2262_v9  ;;  %2224 = vmatpush3.bf16.msra.mxu1 %v2262_v9  ;;  %v2311_v50 = vld [vmem:[%s2496_s11 + $0xa4] ss:$20 sps:$4 sm:$0xff]   ;;  %v2315_v51 = vld [vmem:[%s2496_s11 + $0xc] ss:$20 sps:$4 sm:$0xff]   ;;  %v2313_v53 = vld [vmem:[%s2496_s11 + $0x8] ss:$20 sps:$4 sm:$0xff]  }
  0x19   : > { %1938 = vmatprep.subr.bf16.mxu0 %v2263_v10  ;;  %2217 = vmatprep.subr.bf16.mxu1 %v2263_v10  ;;  %v2317_v55 = vld [vmem:[%s2496_s11 + $0xcc] ss:$20 sps:$4 sm:$0xff]   ;;  %v2348_v56 = vld [vmem:[%s2871_s1 + $0x118] sm:$0xff]   ;;  %v2322_v59 = vld [vmem:[%s2496_s11 + $0x30] ss:$20 sps:$4 sm:$0xff]  }
  0x1a   : > { %v2321_v58 = vld [vmem:[%s2496_s11 + $0xc8] ss:$20 sps:$4 sm:$0xff]   ;;  %v2327_v62 = vld [vmem:[%s2496_s11 + $0xf0] ss:$20 sps:$4 sm:$0xff]   ;;  %v2328_v63 = vld [vmem:[%s2496_s11 + $0x58] ss:$20 sps:$4 sm:$0xff]  }
  0x1b   : > { %v2323_v60 = vld [vmem:[%s2496_s11 + $0xf4] ss:$20 sps:$4 sm:$0xff]   ;;  %v2325_v61 = vld [vmem:[%s2496_s11 + $0x5c] ss:$20 sps:$4 sm:$0xff]   ;;  %v2332_v1 = vld [vmem:[%s2496_s11 + $0x84] ss:$20 sps:$4 sm:$0xff]  }
  0x1c   : > { %1939 = vmatpush3.bf16.msra.mxu0 %v2264_v13  ;;  %2225 = vmatpush3.bf16.msra.mxu1 %v2264_v13  ;;  %v2330_v0 = vld [vmem:[%s2496_s11 + $0x11c] ss:$20 sps:$4 sm:$0xff]   ;;  %v2334_v2 = vld [vmem:[%s2496_s11 + $0x118] ss:$20 sps:$4 sm:$0xff]   ;;  %v2335_v3 = vld [vmem:[%s2496_s11 + $0x80] ss:$20 sps:$4 sm:$0xff]  }
  0x1d   : > { %1940 = vmatprep.subr.bf16.mxu0 %v2265_v14  ;;  %2218 = vmatprep.subr.bf16.mxu1 %v2265_v14  ;;  %v2336_v4 = vld [vmem:[%s2496_s11 + $0x144] ss:$20 sps:$4 sm:$0xff]   ;;  %v2338_v5 = vld [vmem:[%s2496_s11 + $0xac] ss:$20 sps:$4 sm:$0xff]   ;;  %v2341_v7 = vld [vmem:[%s2496_s11 + $0xa8] ss:$20 sps:$4 sm:$0xff]  }
  0x1e   : > { %v2340_v6 = vld [vmem:[%s2496_s11 + $0x140] ss:$20 sps:$4 sm:$0xff]   ;;  %v2346_v10 = vld [vmem:[%s2496_s11 + $0x168] ss:$20 sps:$4 sm:$0xff]   ;;  %v2347_v11 = vld [vmem:[%s2496_s11 + $0xd0] ss:$20 sps:$4 sm:$0xff]  }
  0x1f   : > { %v2342_v8 = vld [vmem:[%s2496_s11 + $0x16c] ss:$20 sps:$4 sm:$0xff]   ;;  %v2344_v9 = vld [vmem:[%s2496_s11 + $0xd4] ss:$20 sps:$4 sm:$0xff]   ;;  %v2351_v13 = vld [vmem:[%s2496_s11 + $0xfc] ss:$20 sps:$4 sm:$0xff]  }
  0x20   : > { %1941 = vmatpush3.bf16.msra.mxu0 %v2266_v15  ;;  %2226 = vmatpush3.bf16.msra.mxu1 %v2266_v15  ;;  %v2349_v12 = vld [vmem:[%s2496_s11 + $0x194] ss:$20 sps:$4 sm:$0xff]   ;;  %v2353_v14 = vld [vmem:[%s2496_s11 + $0x190] ss:$20 sps:$4 sm:$0xff]   ;;  %v2354_v15 = vld [vmem:[%s2496_s11 + $0xf8] ss:$20 sps:$4 sm:$0xff]  }
  0x21   : > { %1942 = vmatprep.subr.bf16.mxu0 %v2267_v16  ;;  %2219 = vmatprep.subr.bf16.mxu1 %v2267_v16  ;;  %v2355_v16 = vld [vmem:[%s2496_s11 + $0x1bc] ss:$20 sps:$4 sm:$0xff]  }
  0x24   : > { %1943 = vmatpush3.bf16.msra.mxu0 %v2268_v17  ;;  %2227 = vmatpush3.bf16.msra.mxu1 %v2268_v17  ;;  %v2357_v17 = vld [vmem:[%s2496_s11 + $0x124] ss:$20 sps:$4 sm:$0xff]  }
  0x25   : > { %2040 = vmatprep.subr.bf16.mxu1 %v2275_v18  ;;  %2172 = vmatprep.subr.bf16.mxu0 %v2278_v19  ;;  %v2359_v18 = vld [vmem:[%s2496_s11 + $0x1b8] ss:$20 sps:$4 sm:$0xff]  }
  0x27   : > { %1102 = vmatmul.mubr.bf16.vlgmr.msra.gmra.mrb[0].mxu0 %v2269_v20  ;;  %1198 = vmatmul.mubr.bf16.vlgmr.msra.gmra.mrb[0].mxu1 %v2272_v21  ;;  %v2361_v20 = vld [vmem:[%s2496_s11 + $0x14c] ss:$20 sps:$4 sm:$0xff]   ;;  %v2363_v21 = vld [vmem:[%s2496_s11 + $0x10] ss:$20 sps:$4 sm:$0xff]  }
  0x28   : > { %2041 = vmatpush3.bf16.msra.mxu1 %v2276_v22  ;;  %2173 = vmatpush3.bf16.msra.mxu0 %v2278_v19  ;;  %v2360_v19 = vld [vmem:[%s2496_s11 + $0x120] ss:$20 sps:$4 sm:$0xff]   ;;  %v2364_v22 = vld [vmem:[%s2496_s11 + $0x148] ss:$20 sps:$4 sm:$0xff]  }
  0x29   : > { %2042 = vmatprep.subr.bf16.mxu1 %v2277_v23  ;;  %1109 = vmatprep.mubr.bf16.mxu0 %v2280_v24  ;;  %v2365_v23 = vld [vmem:[%s2496_s11 + $0x38] ss:$20 sps:$4 sm:$0xff]   ;;  %v2366_v24 = vld [vmem:[%s2496_s11 + $0x174] ss:$20 sps:$4 sm:$0xff]  }
  0x2a   : > { %1205 = vmatprep.mubr.bf16.mxu1 %v2282_v25  ;;  %2174 = vmatprep.subr.bf16.mxu0 %v2309_v35  ;;  %v2368_v25 = vld [vmem:[%s2496_s11 + $0x60] ss:$20 sps:$4 sm:$0xff]  }
  0x2c   : > { %2043 = vmatpush3.bf16.msra.mxu1 %v2279_v26  ;;  %2175 = vmatpush3.bf16.msra.mxu0 %v2309_v35  ;;  %v2369_v26 = vld [vmem:[%s2496_s11 + $0x170] ss:$20 sps:$4 sm:$0xff]   ;;  %v2380_v35 = vld [vmem:[%s2496_s11 + $0x128] ss:$20 sps:$4 sm:$0xff]  }
  0x2d   : > { %2044 = vmatprep.subr.bf16.mxu1 %v2286_v28  ;;  %2176 = vmatprep.subr.bf16.mxu0 %v2329_v47  ;;  %v2371_v28 = vld [vmem:[%s2496_s11 + $0x19c] ss:$20 sps:$4 sm:$0xff]  }
  0x2f   : > { %1110 = vmatmul.mubr.bf16.gmra.mrb[4].mxu0 %v2284_v27  ;;  %1206 = vmatmul.mubr.bf16.gmra.mrb[4].mxu1 %v2285_v29  ;;  %v2370_v27 = vld [vmem:[%s2496_s11 + $0x88] ss:$20 sps:$4 sm:$0xff]   ;;  %v2373_v29 = vld [vmem:[%s2496_s11 + $0xb0] ss:$20 sps:$4 sm:$0xff]  }
  0x30   : > { %2045 = vmatpush3.bf16.msra.mxu1 %v2287_v30  ;;  %1117 = vmatprep.mubr.bf16.mxu0 %v2290_v32  ;;  %v2374_v30 = vld [vmem:[%s2496_s11 + $0x198] ss:$20 sps:$4 sm:$0xff]  }
  0x31   : > { %2046 = vmatprep.subr.bf16.mxu1 %v2288_v31  ;;  %1213 = vmatprep.mubr.bf16.mxu1 %v2292_v33  ;;  %v2375_v31 = vld [vmem:[%s2496_s11 + $0xd8] ss:$20 sps:$4 sm:$0xff]   ;;  %v2378_v33 = vld [vmem:[%s2496_s11 + $0x100] ss:$20 sps:$4 sm:$0xff]  }
  0x32   : > { %2177 = vmatpush3.bf16.msra.mxu0 %v2329_v47  ;;  %v2376_v32 = vld [vmem:[%s2496_s11 + $0x1c4] ss:$20 sps:$4 sm:$0xff]  }
  0x33   : > { %2178 = vmatprep.subr.bf16.mxu0 %v2348_v56  ;;  %v2395_v47 = vld [vmem:[%s2496_s11 + $0x218] ss:$20 sps:$4 sm:$0xff]  }
  0x34   : > { %2047 = vmatpush3.bf16.msra.mxu1 %v2289_v34  ;;  %v2379_v34 = vld [vmem:[%s2496_s11 + $0x1c0] ss:$20 sps:$4 sm:$0xff]  }
  0x35   : > { %2048 = vmatprep.subr.bf16.mxu1 %v2296_v37  ;;  %v2383_v37 = vld [vmem:[%s2496_s11 + $0x150] ss:$20 sps:$4 sm:$0xff]  }
  0x36   : > { %2179 = vmatpush3.bf16.msra.mxu0 %v2348_v56 }
  0x37   : > { %1118 = vmatmul.mubr.bf16.gmra.mrb[8].mxu0 %v2294_v36  ;;  %1214 = vmatmul.mubr.bf16.gmra.mrb[8].mxu1 %v2295_v38  ;;  %v2381_v36 = vld [vmem:[%s2496_s11 + $0x1ec] ss:$20 sps:$4 sm:$0xff]   ;;  %v2384_v38 = vld [vmem:[%s2496_s11 + $0x1e8] ss:$20 sps:$4 sm:$0xff]  }
  0x38   : > { %2049 = vmatpush3.bf16.msra.mxu1 %v2297_v39  ;;  %1125 = vmatprep.mubr.bf16.mxu0 %v2300_v41  ;;  %v2385_v39 = vld [vmem:[%s2496_s11 + $0x178] ss:$20 sps:$4 sm:$0xff]   ;;  %v2388_v41 = vld [vmem:[%s2496_s11 + $0x1a0] ss:$20 sps:$4 sm:$0xff]  }
  0x39   : > { %2050 = vmatprep.subr.bf16.mxu1 %v2298_v40  ;;  %1221 = vmatprep.mubr.bf16.mxu1 %v2302_v42  ;;  %v2386_v40 = vld [vmem:[%s2496_s11 + $0x214] ss:$20 sps:$4 sm:$0xff]   ;;  %v2389_v42 = vld [vmem:[%s2496_s11 + $0x210] ss:$20 sps:$4 sm:$0xff]  }
  0x3c   : > { %2051 = vmatpush3.bf16.msra.mxu1 %v2299_v43  ;;  %v2390_v43 = vld [vmem:[%s2496_s11 + $0x1c8] ss:$20 sps:$4 sm:$0xff]  }
  0x3d   : > { %2052 = vmatprep.subr.bf16.mxu1 %v2306_v46  ;;  %v2394_v46 = vld [vmem:[%s2496_s11 + $0x238] ss:$20 sps:$4 sm:$0xff]  }
  0x3f   : > { %1126 = vmatmul.mubr.bf16.gmra.mrb[12].mxu0 %v2304_v44  ;;  %1222 = vmatmul.mubr.bf16.gmra.mrb[12].mxu1 %v2305_v45  ;;  %v2391_v44 = vld [vmem:[%s2496_s11 + $0x23c] ss:$20 sps:$4 sm:$0xff]  }
  0x40   : > { %2053 = vmatpush3.bf16.msra.mxu1 %v2307_v48  ;;  %1133 = vmatprep.mubr.bf16.mxu0 %v2311_v50  ;;  %v2393_v45 = vld [vmem:[%s2496_s11 + $0x1f0] ss:$20 sps:$4 sm:$0xff]   ;;  %v2399_v50 = vld [vmem:[%s2496_s11 + $0x260] ss:$20 sps:$4 sm:$0xff]  }
  0x41   : > { %2054 = vmatprep.subr.bf16.mxu1 %v2308_v49  ;;  %1262 = vmatprep.mubr.bf16.mxu1 %v2315_v51  ;;  %v2396_v48 = vld [vmem:[%s2496_s11 + $0x264] ss:$20 sps:$4 sm:$0xff]   ;;  %v2398_v49 = vld [vmem:[%s2496_s11 + $0x240] ss:$20 sps:$4 sm:$0xff]   ;;  %v2400_v51 = vld [vmem:[%s2496_s11 + $0x268] ss:$20 sps:$4 sm:$0xff]  }
  0x44   : > { %2055 = vmatpush3.bf16.msra.mxu1 %v2310_v52 }
  0x47   : > { %1134 = vmatmul.mubr.bf16.gmra.mrb[16].mxu0 %v2316_v54  ;;  %1263 = vmatmul.mubr.bf16.vlgmr.msra.gmra.mrb[16].mxu1 %v2313_v53 }
  0x48   : > { %1141 = vmatprep.mubr.bf16.mxu0 %v2317_v55  ;;  %1270 = vmatprep.mubr.bf16.mxu1 %v2319_v57 }
  0x4f   : > { %1142 = vmatmul.mubr.bf16.gmra.mrb[20].mxu0 %v2321_v58  ;;  %1271 = vmatmul.mubr.bf16.gmra.mrb[20].mxu1 %v2322_v59 }
  0x50   : > { %1149 = vmatprep.mubr.bf16.mxu0 %v2323_v60  ;;  %1278 = vmatprep.mubr.bf16.mxu1 %v2325_v61 }
  0x57   : > { %1150 = vmatmul.mubr.bf16.gmra.mrb[24].mxu0 %v2327_v62  ;;  %1279 = vmatmul.mubr.bf16.gmra.mrb[24].mxu1 %v2328_v63 }
  0x58   : > { %1157 = vmatprep.mubr.bf16.mxu0 %v2330_v0  ;;  %1286 = vmatprep.mubr.bf16.mxu1 %v2332_v1 }
  0x5f   : > { %1158 = vmatmul.mubr.bf16.gmra.mrb[28].mxu0 %v2334_v2  ;;  %1287 = vmatmul.mubr.bf16.gmra.mrb[28].mxu1 %v2335_v3 }
  0x60   : > { %1165 = vmatprep.mubr.bf16.mxu0 %v2336_v4  ;;  %1294 = vmatprep.mubr.bf16.mxu1 %v2338_v5 }
  0x67   : > { %1166 = vmatmul.mubr.bf16.gmra.mrb[32].mxu0 %v2340_v6  ;;  %1295 = vmatmul.mubr.bf16.gmra.mrb[32].mxu1 %v2341_v7 }
  0x68   : > { %1173 = vmatprep.mubr.bf16.mxu0 %v2342_v8  ;;  %1302 = vmatprep.mubr.bf16.mxu1 %v2344_v9 }
  0x6f   : > { %1174 = vmatmul.mubr.bf16.gmra.mrb[36].mxu0 %v2346_v10  ;;  %1303 = vmatmul.mubr.bf16.gmra.mrb[36].mxu1 %v2347_v11 }
  0x70   : > { %1181 = vmatprep.mubr.bf16.mxu0 %v2349_v12  ;;  %1310 = vmatprep.mubr.bf16.mxu1 %v2351_v13 }
  0x77   : > { %1182 = vmatmul.mubr.bf16.gmra.mrb[40].mxu0 %v2353_v14  ;;  %1311 = vmatmul.mubr.bf16.gmra.mrb[40].mxu1 %v2354_v15 }
  0x78   : > { %1189 = vmatprep.mubr.bf16.mxu0 %v2355_v16  ;;  %1318 = vmatprep.mubr.bf16.mxu1 %v2357_v17 }
  0x7f   : > { %1190 = vmatmul.mubr.bf16.gmra.mrb[44].mxu0 %v2359_v18  ;;  %1319 = vmatmul.mubr.bf16.gmra.mrb[44].mxu1 %v2360_v19 }
  0x80   : > { %1326 = vmatprep.mubr.bf16.mxu1 %v2361_v20  ;;  %2180 = vmatprep.mubr.msk.bf16.mxu0 %vm1020_vm0, %v2363_v21 }
  0x87   : > { %1327 = vmatmul.mubr.bf16.gmra.mrb[48].mxu1 %v2364_v22  ;;  %2181 = vmatmul.mubr.msk.bf16.vlgmr.msra.gmra.mrb[48].mxu0 %vm1020_vm0, %v2365_v23 }
  0x88   : > { %1334 = vmatprep.mubr.bf16.mxu1 %v2366_v24  ;;  %2184 = vmatprep.mubr.msk.bf16.mxu0 %vm1020_vm0, %v2368_v25 }
  0x8f   : > { %1335 = vmatmul.mubr.bf16.gmra.mrb[52].mxu1 %v2369_v26  ;;  %2185 = vmatmul.mubr.msk.bf16.gmra.mrb[52].mxu0 %vm1020_vm0, %v2370_v27 }
  0x90   : > { %1342 = vmatprep.mubr.bf16.mxu1 %v2371_v28  ;;  %2188 = vmatprep.mubr.msk.bf16.mxu0 %vm1020_vm0, %v2373_v29 }
  0x97   : > { %1343 = vmatmul.mubr.bf16.gmra.mrb[56].mxu1 %v2374_v30  ;;  %2189 = vmatmul.mubr.msk.bf16.gmra.mrb[56].mxu0 %vm1020_vm0, %v2375_v31 }
  0x98   : > { %1350 = vmatprep.mubr.bf16.mxu1 %v2376_v32  ;;  %2192 = vmatprep.mubr.msk.bf16.mxu0 %vm1020_vm0, %v2378_v33 }
  0x9f   : > { %1351 = vmatmul.mubr.bf16.gmra.mrb[60].mxu1 %v2379_v34  ;;  %2193 = vmatmul.mubr.msk.bf16.gmra.mrb[60].mxu0 %vm1020_vm0, %v2380_v35 }
  0xa0   : > { %1358 = vmatprep.mubr.bf16.mxu1 %v2381_v36  ;;  %2196 = vmatprep.mubr.msk.bf16.mxu0 %vm1020_vm0, %v2383_v37 }
  0xa7   : > { %1359 = vmatmul.mubr.bf16.gmra.mrb[64].mxu1 %v2384_v38  ;;  %2197 = vmatmul.mubr.msk.bf16.gmra.mrb[64].mxu0 %vm1020_vm0, %v2385_v39  ;;  %v2694_v38 = vld [vmem:[%s2872_s2] ss:$0 sm:$0xff] }
  0xa8   : > { %1366 = vmatprep.mubr.bf16.mxu1 %v2386_v40  ;;  %2200 = vmatprep.mubr.msk.bf16.mxu0 %vm1020_vm0, %v2388_v41 }
  0xaf   : > { %1367 = vmatmul.mubr.bf16.gmra.mrb[68].mxu1 %v2389_v42  ;;  %2201 = vmatmul.mubr.msk.bf16.gmra.mrb[68].mxu0 %vm1020_vm0, %v2390_v43 }
  0xb0   : > { %1374 = vmatprep.mubr.bf16.mxu1 %v2391_v44  ;;  %2204 = vmatprep.mubr.msk.bf16.mxu0 %vm1020_vm0, %v2393_v45 }
  0xb7   : > { %1375 = vmatmul.mubr.bf16.gmra.mrb[72].mxu1 %v2394_v46  ;;  %2205 = vmatmul.mubr.msk.bf16.gmra.mrb[72].mxu0 %vm1020_vm0, %v2395_v47 }
  0xb8   : > { %1382 = vmatprep.mubr.bf16.mxu1 %v2396_v48  ;;  %2208 = vmatprep.mubr.msk.bf16.mxu0 %vm1020_vm0, %v2398_v49 }
  0xbf   : > { %1383 = vmatmul.mubr.bf16.gmra.mrb[76].mxu1 %v2399_v50  ;;  %2209 = vmatmul.mubr.msk.bf16.gmra.mrb[76].mxu0 %vm1020_vm0, %v2400_v51 }
  0xfa   : > { %v2016_v52 = vpop.f32.mrb[0].mxu1  ;;  %v1944_v53 = vpop.f32.mrb[0].mxu0 }
  0xfb   : > { %v2017_v54 = vpop.f32.mrb[1].mxu1  ;;  %v1945_v55 = vpop.f32.mrb[1].mxu0 }
  0xfc   : > { %v2675_v56 = vadd.f32 %v2017_v54, %v2016_v52  ;;  %v2019_v57 = vpop.f32.mrb[2].mxu1  ;;  %v1946_v58 = vadd.f32 %v1945_v55, %v1944_v53  ;;  %v1947_v59 = vpop.f32.mrb[2].mxu0 }
  0xfd   : > { %v2020_v60 = vpop.f32.mrb[3].mxu1  ;;  %v1948_v61 = vpop.f32.mrb[3].mxu0 }
  0xfe   : > { %v2677_v62 = vadd.f32 %v2020_v60, %v2019_v57  ;;  %v1949_v63 = vadd.f32 %v1948_v61, %v1947_v59  ;;  %v1104_v41 = vadd.f32 %v1946_v58, %v2694_v38 }
 0x100   : > { %v1107_v48 = vadd.f32 %v1949_v63, %v2694_v38 }
 0x102   : > { %v2022_v0 = vpop.f32.mrb[4].mxu1  ;;  %v1950_v1 = vpop.f32.mrb[4].mxu0 }
 0x103   : > { %v2023_v2 = vpop.f32.mrb[5].mxu1  ;;  %v1951_v3 = vpop.f32.mrb[5].mxu0 }
 0x104   : > { %v2679_v4 = vadd.f32 %v2023_v2, %v2022_v0  ;;  %v2025_v5 = vpop.f32.mrb[6].mxu1  ;;  %v1952_v6 = vadd.f32 %v1951_v3, %v1950_v1  ;;  %v1953_v7 = vpop.f32.mrb[6].mxu0 }
 0x105   : > { %v2026_v8 = vpop.f32.mrb[7].mxu1  ;;  %v1954_v9 = vpop.f32.mrb[7].mxu0 }
 0x106   : > { %v2681_v10 = vadd.f32 %v2026_v8, %v2025_v5  ;;  %v1955_v11 = vadd.f32 %v1954_v9, %v1953_v7  ;;  %v1112_v58 = vadd.f32 %v1952_v6, %v2694_v38 }
 0x108   : > { %v1115_v63 = vadd.f32 %v1955_v11, %v2694_v38 }
 0x10a   : > { %v2028_v12 = vpop.f32.mrb[8].mxu1  ;;  %v1956_v13 = vpop.f32.mrb[8].mxu0 }
 0x10b   : > { %v2029_v14 = vpop.f32.mrb[9].mxu1  ;;  %v1957_v15 = vpop.f32.mrb[9].mxu0 }
 0x10c   : > { %v2683_v16 = vadd.f32 %v2029_v14, %v2028_v12  ;;  %v2031_v17 = vpop.f32.mrb[10].mxu1  ;;  %v1958_v18 = vadd.f32 %v1957_v15, %v1956_v13  ;;  %v1959_v19 = vpop.f32.mrb[10].mxu0 }
 0x10d   : > { %v2032_v20 = vpop.f32.mrb[11].mxu1  ;;  %v1960_v21 = vpop.f32.mrb[11].mxu0 }
 0x10e   : > { %v2685_v22 = vadd.f32 %v2032_v20, %v2031_v17  ;;  %v1961_v23 = vadd.f32 %v1960_v21, %v1959_v19  ;;  %v1120_v6 = vadd.f32 %v1958_v18, %v2694_v38 }
 0x110   : > { %v1123_v11 = vadd.f32 %v1961_v23, %v2694_v38 }
 0x112   : > { %v2034_v24 = vpop.f32.mrb[12].mxu1  ;;  %v1962_v25 = vpop.f32.mrb[12].mxu0 }
 0x113   : > { %v2035_v26 = vpop.f32.mrb[13].mxu1  ;;  %v1963_v27 = vpop.f32.mrb[13].mxu0 }
 0x114   : > { %v2687_v28 = vadd.f32 %v2035_v26, %v2034_v24  ;;  %v2037_v29 = vpop.f32.mrb[14].mxu1  ;;  %v1964_v30 = vadd.f32 %v1963_v27, %v1962_v25  ;;  %v1965_v31 = vpop.f32.mrb[14].mxu0 }
 0x115   : > { %v2038_v32 = vpop.f32.mrb[15].mxu1  ;;  %v1966_v33 = vpop.f32.mrb[15].mxu0 }
 0x116   : > { %v2689_v34 = vadd.f32 %v2038_v32, %v2037_v29  ;;  %v1967_v35 = vadd.f32 %v1966_v33, %v1965_v31  ;;  %v1128_v18 = vadd.f32 %v1964_v30, %v2694_v38 }
 0x118   : > { %v1131_v23 = vadd.f32 %v1967_v35, %v2694_v38 }
 0x11a   : > { %v2056_v36 = vpop.f32.mrb[16].mxu1  ;;  %v1968_v37 = vpop.f32.mrb[16].mxu0 }
 0x11b   : > { %v2057_v39 = vpop.f32.mrb[17].mxu1  ;;  %v1969_v40 = vpop.f32.mrb[17].mxu0 }
 0x11c   : > { %v2058_v42 = vadd.f32 %v2057_v39, %v2056_v36  ;;  %v2059_v43 = vpop.f32.mrb[18].mxu1  ;;  %v1970_v44 = vadd.f32 %v1969_v40, %v1968_v37  ;;  %v1971_v45 = vpop.f32.mrb[18].mxu0 }
 0x11d   : > { %v2060_v46 = vpop.f32.mrb[19].mxu1  ;;  %v1972_v47 = vpop.f32.mrb[19].mxu0 }
 0x11e   : > { %v2061_v49 = vadd.f32 %v2060_v46, %v2059_v43  ;;  %v1973_v50 = vadd.f32 %v1972_v47, %v1971_v45  ;;  %v2698_v51 = vadd.f32 %v2058_v42, %v1104_v41  ;;  %v1136_v30 = vadd.f32 %v1970_v44, %v2694_v38 }
 0x120   : > { %v2700_v52 = vadd.f32 %v2061_v49, %v1107_v48  ;;  %v1139_v35 = vadd.f32 %v1973_v50, %v2694_v38 }
 0x122   : > { %v2062_v53 = vpop.f32.mrb[20].mxu1  ;;  %v1974_v54 = vpop.f32.mrb[20].mxu0 }
 0x123   : > { %v2063_v55 = vpop.f32.mrb[21].mxu1  ;;  %v1975_v57 = vpop.f32.mrb[21].mxu0 }
 0x124   : > { %v2064_v59 = vadd.f32 %v2063_v55, %v2062_v53  ;;  %v2065_v60 = vpop.f32.mrb[22].mxu1  ;;  %v1976_v61 = vadd.f32 %v1975_v57, %v1974_v54  ;;  %v1977_v0 = vpop.f32.mrb[22].mxu0 }
 0x125   : > { %v2066_v1 = vpop.f32.mrb[23].mxu1  ;;  %v1978_v2 = vpop.f32.mrb[23].mxu0 }
 0x126   : > { %v2067_v3 = vadd.f32 %v2066_v1, %v2065_v60  ;;  %v1979_v5 = vadd.f32 %v1978_v2, %v1977_v0  ;;  %v2704_v7 = vadd.f32 %v2064_v59, %v1112_v58  ;;  %v1144_v44 = vadd.f32 %v1976_v61, %v2694_v38 }
 0x128   : > { %v2706_v8 = vadd.f32 %v2067_v3, %v1115_v63  ;;  %v1147_v50 = vadd.f32 %v1979_v5, %v2694_v38 }
 0x12a   : > { %v2068_v9 = vpop.f32.mrb[24].mxu1  ;;  %v1980_v12 = vpop.f32.mrb[24].mxu0 }
 0x12b   : > { %v2069_v13 = vpop.f32.mrb[25].mxu1  ;;  %v1981_v14 = vpop.f32.mrb[25].mxu0 }
 0x12c   : > { %v2070_v15 = vadd.f32 %v2069_v13, %v2068_v9  ;;  %v2071_v17 = vpop.f32.mrb[26].mxu1  ;;  %v1982_v19 = vadd.f32 %v1981_v14, %v1980_v12  ;;  %v1983_v20 = vpop.f32.mrb[26].mxu0 }
 0x12d   : > { %v2072_v21 = vpop.f32.mrb[27].mxu1  ;;  %v1984_v24 = vpop.f32.mrb[27].mxu0 }
 0x12e   : > { %v2073_v25 = vadd.f32 %v2072_v21, %v2071_v17  ;;  %v1985_v26 = vadd.f32 %v1984_v24, %v1983_v20  ;;  %v2710_v27 = vadd.f32 %v2070_v15, %v1120_v6 }
 0x130   : > { %v2712_v29 = vadd.f32 %v2073_v25, %v1123_v11 }
 0x132   : > { %v2074_v31 = vpop.f32.mrb[28].mxu1  ;;  %v1986_v32 = vpop.f32.mrb[28].mxu0 }
 0x133   : > { %v2075_v33 = vpop.f32.mrb[29].mxu1  ;;  %v1987_v36 = vpop.f32.mrb[29].mxu0 }
 0x134   : > { %v2076_v37 = vadd.f32 %v2075_v33, %v2074_v31  ;;  %v2077_v39 = vpop.f32.mrb[30].mxu1  ;;  %v1988_v40 = vadd.f32 %v1987_v36, %v1986_v32  ;;  %v1989_v41 = vpop.f32.mrb[30].mxu0 }
 0x135   : > { %v2078_v42 = vpop.f32.mrb[31].mxu1  ;;  %v1990_v43 = vpop.f32.mrb[31].mxu0 }
 0x136   : > { %v2079_v45 = vadd.f32 %v2078_v42, %v2077_v39  ;;  %v1991_v46 = vadd.f32 %v1990_v43, %v1989_v41  ;;  %v2716_v47 = vadd.f32 %v2076_v37, %v1128_v18  ;;  %v1152_v39 = vadd.f32 %v1982_v19, %v2694_v38 }
 0x138   : > { %v2718_v48 = vadd.f32 %v2079_v45, %v1131_v23 }
 0x13a   : > { %v2080_v49 = vpop.f32.mrb[32].mxu1  ;;  %v1992_v53 = vpop.f32.mrb[32].mxu0 }
 0x13b   : > { %v2081_v54 = vpop.f32.mrb[33].mxu1  ;;  %v1993_v55 = vpop.f32.mrb[33].mxu0 }
 0x13c   : > { %v2082_v57 = vadd.f32 %v2081_v54, %v2080_v49  ;;  %v2083_v58 = vpop.f32.mrb[34].mxu1  ;;  %v2721_v59 = vadd.f32 %v1993_v55, %v1992_v53  ;;  %v1995_v60 = vpop.f32.mrb[34].mxu0  ;;  %v1155_v49 = vadd.f32 %v1985_v26, %v2694_v38 }
 0x13d   : > { %v2084_v0 = vpop.f32.mrb[35].mxu1  ;;  %v1996_v1 = vpop.f32.mrb[35].mxu0 }
 0x13e   : > { %v2085_v2 = vadd.f32 %v2084_v0, %v2083_v58  ;;  %v1997_v63 = vadd.f32 %v1996_v1, %v1995_v60  ;;  %v2724_v3 = vadd.f32 %v2082_v57, %v1136_v30  ;;  %v1160_v0 = vadd.f32 %v1988_v40, %v2694_v38 }
 0x140   : > { %v2726_v9 = vadd.f32 %v2085_v2, %v1139_v35 }
 0x142   : > { %v2086_v12 = vpop.f32.mrb[36].mxu1  ;;  %v1998_v13 = vpop.f32.mrb[36].mxu0 }
 0x143   : > { %v2087_v14 = vpop.f32.mrb[37].mxu1  ;;  %v1999_v6 = vpop.f32.mrb[37].mxu0 }
 0x144   : > { %v2088_v15 = vadd.f32 %v2087_v14, %v2086_v12  ;;  %v2089_v17 = vpop.f32.mrb[38].mxu1  ;;  %v2729_v20 = vadd.f32 %v1999_v6, %v1998_v13  ;;  %v2001_v21 = vpop.f32.mrb[38].mxu0  ;;  %v1163_v14 = vadd.f32 %v1991_v46, %v2694_v38 }
 0x145   : > { %v2090_v24 = vpop.f32.mrb[39].mxu1  ;;  %v2002_v11 = vpop.f32.mrb[39].mxu0 }
 0x146   : > { %v2091_v25 = vadd.f32 %v2090_v24, %v2089_v17  ;;  %v2732_v31 = vadd.f32 %v2002_v11, %v2001_v21  ;;  %v2734_v32 = vadd.f32 %v2088_v15, %v1144_v44 }
 0x148   : > { %v2736_v33 = vadd.f32 %v2091_v25, %v1147_v50  ;;  %v1168_v25 = vadd.f32 %v2721_v59, %v2694_v38 }
 0x14a   : > { %v2092_v36 = vpop.f32.mrb[40].mxu1  ;;  %v2004_v18 = vpop.f32.mrb[40].mxu0 }
 0x14b   : > { %v2093_v37 = vpop.f32.mrb[41].mxu1  ;;  %v2005_v61 = vpop.f32.mrb[41].mxu0 }
 0x14c   : > { %v2094_v41 = vadd.f32 %v2093_v37, %v2092_v36  ;;  %v2095_v42 = vpop.f32.mrb[42].mxu1  ;;  %v2739_v43 = vadd.f32 %v2005_v61, %v2004_v18  ;;  %v2007_v23 = vpop.f32.mrb[42].mxu0  ;;  %v1171_v61 = vadd.f32 %v1997_v63, %v2694_v38 }
 0x14d   : > { %v2096_v45 = vpop.f32.mrb[43].mxu1  ;;  %v2008_v5 = vpop.f32.mrb[43].mxu0 }
 0x14e   : > { %v2097_v53 = vadd.f32 %v2096_v45, %v2095_v42  ;;  %v2742_v54 = vadd.f32 %v2008_v5, %v2007_v23  ;;  %v2744_v55 = vadd.f32 %v2094_v41, %v1152_v39 }
 0x150   : > { %v2746_v30 = vadd.f32 %v2097_v53, %v1155_v49 }
 0x152   : > { %v2098_v57 = vpop.f32.mrb[44].mxu1  ;;  %v2010_v58 = vpop.f32.mrb[44].mxu0 }
 0x153   : > { %v2099_v19 = vpop.f32.mrb[45].mxu1  ;;  %v2011_v60 = vpop.f32.mrb[45].mxu0 }
 0x154   : > { %v2100_v1 = vadd.f32 %v2099_v19, %v2098_v57  ;;  %v2101_v35 = vpop.f32.mrb[46].mxu1  ;;  %v2749_v2 = vadd.f32 %v2011_v60, %v2010_v58  ;;  %v2013_v12 = vpop.f32.mrb[46].mxu0 }
 0x155   : > { %v2102_v26 = vpop.f32.mrb[47].mxu1  ;;  %v2014_v13 = vpop.f32.mrb[47].mxu0 }
 0x156   : > { %v2103_v6 = vadd.f32 %v2102_v26, %v2101_v35  ;;  %v2752_v44 = vadd.f32 %v2014_v13, %v2013_v12  ;;  %v2754_v15 = vadd.f32 %v2100_v1, %v1160_v0  ;;  %v1176_v35 = vadd.f32 %v2729_v20, %v2694_v38 }
 0x158   : > { %v2756_v17 = vadd.f32 %v2103_v6, %v1163_v14  ;;  %v1179_v6 = vadd.f32 %v2732_v31, %v2694_v38 }
 0x15a   : > { %v2104_v21 = vpop.f32.mrb[48].mxu1  ;;  %v2182_v24 = vpop.f32.mrb[48].mxu0 }
 0x15b   : > { %v1434_v40 = vadd.f32 %v2182_v24, %v2704_v7  ;;  %v2105_v11 = vpop.f32.mrb[49].mxu1  ;;  %v1425_v50 = vpop.f32.mrb[49].mxu0 }
 0x15c   : > { %v2106_v36 = vadd.f32 %v2105_v11, %v2104_v21  ;;  %v1426_v46 = vadd.f32 %v1425_v50, %v2698_v51  ;;  %v2107_v18 = vpop.f32.mrb[50].mxu1  ;;  %v2183_v37 = vpop.f32.mrb[50].mxu0 }
 0x15d   : > { %vm1554_vm1 = vcmp.gt.f32.partialorder %v1434_v40, 0.0  ;;  %v1586_v7 = vmul.f32 0.2, %v1434_v40  ;;  %v1437_v39 = vadd.f32 %v2183_v37, %v2706_v8  ;;  %v2108_v41 = vpop.f32.mrb[51].mxu1  ;;  %v1428_v59 = vpop.f32.mrb[51].mxu0 }
 0x15e   : > { %vm1552_vm2 = vcmp.gt.f32.partialorder %v1426_v46, 0.0  ;;  %v1584_v51 = vmul.f32 0.2, %v1426_v46  ;;  %v2109_v42 = vadd.f32 %v2108_v41, %v2107_v18  ;;  %v1429_v23 = vadd.f32 %v1428_v59, %v2700_v52 }
 0x15f   : > { %v1618_v63 = vsel %vm1554_vm1, %v1434_v40, %v1586_v7  ;;  %vm1555_vm3 = vcmp.gt.f32.partialorder %v1437_v39, 0.0  ;;  %v1587_v45 = vmul.f32 0.2, %v1437_v39  ;;  %v2771_v5 = vadd.f32 %v2106_v36, %v1168_v25 }
 0x160   : > { %1650 = vst [vmem:[%s2767_s30 + $0x10] sm:$0xff] %v1618_v63  ;;  %v1616_v49 = vsel %vm1552_vm2, %v1426_v46, %v1584_v51  ;;  %vm1553_vm4 = vcmp.gt.f32.partialorder %v1429_v23, 0.0  ;;  %v1585_v53 = vmul.f32 0.2, %v1429_v23  ;;  %v2774_v8 = vadd.f32 %v2109_v42, %v1171_v61 }
 0x161   : > { %1648 = vst [vmem:[%s2767_s30] sm:$0xff] %v1616_v49  ;;  %v1619_v57 = vsel %vm1555_vm3, %v1437_v39, %v1587_v45  ;;  %v1184_v59 = vadd.f32 %v2739_v43, %v2694_v38  ;;  %v1187_v45 = vadd.f32 %v2742_v54, %v2694_v38 }
 0x162   : > { %1651 = vst [vmem:[%s2767_s30 + $0x18] sm:$0xff] %v1619_v57  ;;  %v1617_v58 = vsel %vm1553_vm4, %v1429_v23, %v1585_v53  ;;  %v2110_v19 = vpop.f32.mrb[52].mxu1  ;;  %v2186_v60 = vpop.f32.mrb[52].mxu0 }
 0x163   : > { %1649 = vst [vmem:[%s2767_s30 + $0x8] sm:$0xff] %v1617_v58  ;;  %v1450_v52 = vadd.f32 %v2186_v60, %v2716_v47  ;;  %v2111_v0 = vpop.f32.mrb[53].mxu1  ;;  %v1441_v1 = vpop.f32.mrb[53].mxu0 }
 0x164   : > { %v2112_v12 = vadd.f32 %v2111_v0, %v2110_v19  ;;  %v1442_v26 = vadd.f32 %v1441_v1, %v2710_v27  ;;  %v2113_v13 = vpop.f32.mrb[54].mxu1  ;;  %v2187_v14 = vpop.f32.mrb[54].mxu0 }
 0x165   : > { %vm1558_vm5 = vcmp.gt.f32.partialorder %v1450_v52, 0.0  ;;  %v1590_v21 = vmul.f32 0.2, %v1450_v52  ;;  %v1453_v24 = vadd.f32 %v2187_v14, %v2718_v48  ;;  %v2114_v47 = vpop.f32.mrb[55].mxu1  ;;  %v1444_v40 = vpop.f32.mrb[55].mxu0 }
 0x166   : > { %vm1556_vm6 = vcmp.gt.f32.partialorder %v1442_v26, 0.0  ;;  %v1588_v11 = vmul.f32 0.2, %v1442_v26  ;;  %v2115_v20 = vadd.f32 %v2114_v47, %v2113_v13  ;;  %v1445_v50 = vadd.f32 %v1444_v40, %v2712_v29 }
 0x167   : > { %v1622_v27 = vsel %vm1558_vm5, %v1450_v52, %v1590_v21  ;;  %vm1559_vm7 = vcmp.gt.f32.partialorder %v1453_v24, 0.0  ;;  %v1591_v25 = vmul.f32 0.2, %v1453_v24  ;;  %v2787_v36 = vadd.f32 %v2112_v12, %v1176_v35 }
 0x168   : > { %1654 = vst [vmem:[%s2767_s30 + $0x30] sm:$0xff] %v1622_v27  ;;  %v1620_v31 = vsel %vm1556_vm6, %v1442_v26, %v1588_v11  ;;  %vm1557_vm8 = vcmp.gt.f32.partialorder %v1445_v50, 0.0  ;;  %v1589_v46 = vmul.f32 0.2, %v1445_v50  ;;  %v2790_v48 = vadd.f32 %v2115_v20, %v1179_v6 }
 0x169   : > { %1652 = vst [vmem:[%s2767_s30 + $0x20] sm:$0xff] %v1620_v31  ;;  %v1623_v18 = vsel %vm1559_vm7, %v1453_v24, %v1591_v25  ;;  %v1192_v6 = vadd.f32 %v2749_v2, %v2694_v38  ;;  %v1195_v11 = vadd.f32 %v2752_v44, %v2694_v38 }
 0x16a   : > { %1655 = vst [vmem:[%s2767_s30 + $0x38] sm:$0xff] %v1623_v18  ;;  %v1621_v37 = vsel %vm1557_vm8, %v1445_v50, %v1589_v46  ;;  %v2116_v61 = vpop.f32.mrb[56].mxu1  ;;  %v2190_v7 = vpop.f32.mrb[56].mxu0 }
 0x16b   : > { %1653 = vst [vmem:[%s2767_s30 + $0x28] sm:$0xff] %v1621_v37  ;;  %v1466_v29 = vadd.f32 %v2190_v7, %v2734_v32  ;;  %v2117_v39 = vpop.f32.mrb[57].mxu1  ;;  %v1457_v41 = vpop.f32.mrb[57].mxu0 }
 0x16c   : > { %v2118_v51 = vadd.f32 %v2117_v39, %v2116_v61  ;;  %v1458_v42 = vadd.f32 %v1457_v41, %v2724_v3  ;;  %v2119_v23 = vpop.f32.mrb[58].mxu1  ;;  %v2191_v63 = vpop.f32.mrb[58].mxu0 }
 0x16d   : > { %vm1562_vm9 = vcmp.gt.f32.partialorder %v1466_v29, 0.0  ;;  %v1594_v49 = vmul.f32 0.2, %v1466_v29  ;;  %v1469_v53 = vadd.f32 %v2191_v63, %v2736_v33  ;;  %v2120_v32 = vpop.f32.mrb[59].mxu1  ;;  %v1460_v57 = vpop.f32.mrb[59].mxu0 }
 0x16e   : > { %vm1560_vm10 = vcmp.gt.f32.partialorder %v1458_v42, 0.0  ;;  %v1592_v58 = vmul.f32 0.2, %v1458_v42  ;;  %v2121_v43 = vadd.f32 %v2120_v32, %v2119_v23  ;;  %v1461_v19 = vadd.f32 %v1460_v57, %v2726_v9 }
 0x16f   : > { %v1626_v3 = vsel %vm1562_vm9, %v1466_v29, %v1594_v49  ;;  %vm1563_vm11 = vcmp.gt.f32.partialorder %v1469_v53, 0.0  ;;  %v1595_v60 = vmul.f32 0.2, %v1469_v53  ;;  %v2803_v52 = vadd.f32 %v2118_v51, %v1184_v59 }
 0x170   : > { %1658 = vst [vmem:[%s2767_s30 + $0x50] sm:$0xff] %v1626_v3  ;;  %v1624_v54 = vsel %vm1560_vm10, %v1458_v42, %v1592_v58  ;;  %vm1561_vm12 = vcmp.gt.f32.partialorder %v1461_v19, 0.0  ;;  %v1593_v0 = vmul.f32 0.2, %v1461_v19  ;;  %v2806_v33 = vadd.f32 %v2121_v43, %v1187_v45 }
 0x171   : > { %1656 = vst [vmem:[%s2767_s30 + $0x40] sm:$0xff] %v1624_v54  ;;  %v1627_v1 = vsel %vm1563_vm11, %v1469_v53, %v1595_v60  ;;  %v1200_v51 = vadd.f32 %v2675_v56, %v2694_v38  ;;  %v1203_v49 = vadd.f32 %v2677_v62, %v2694_v38 }
 0x172   : > { %1659 = vst [vmem:[%s2767_s30 + $0x58] sm:$0xff] %v1627_v1  ;;  %v1625_v35 = vsel %vm1561_vm12, %v1461_v19, %v1593_v0  ;;  %v2122_v12 = vpop.f32.mrb[60].mxu1  ;;  %v2194_v26 = vpop.f32.mrb[60].mxu0 }
 0x173   : > { %1657 = vst [vmem:[%s2767_s30 + $0x48] sm:$0xff] %v1625_v35  ;;  %v1482_v9 = vadd.f32 %v2194_v26, %v2754_v15  ;;  %v2123_v13 = vpop.f32.mrb[61].mxu1  ;;  %v1473_v14 = vpop.f32.mrb[61].mxu0 }
 0x174   : > { %v2124_v21 = vadd.f32 %v2123_v13, %v2122_v12  ;;  %v1474_v24 = vadd.f32 %v1473_v14, %v2744_v55  ;;  %v2125_v47 = vpop.f32.mrb[62].mxu1  ;;  %v2195_v40 = vpop.f32.mrb[62].mxu0 }
 0x175   : > { %vm1566_vm13 = vcmp.gt.f32.partialorder %v1482_v9, 0.0  ;;  %v1598_v20 = vmul.f32 0.2, %v1482_v9  ;;  %v1485_v50 = vadd.f32 %v2195_v40, %v2756_v17  ;;  %v2126_v15 = vpop.f32.mrb[63].mxu1  ;;  %v1476_v27 = vpop.f32.mrb[63].mxu0 }
 0x176   : > { %vm1564_vm14 = vcmp.gt.f32.partialorder %v1474_v24, 0.0  ;;  %v1596_v25 = vmul.f32 0.2, %v1474_v24  ;;  %v2127_v2 = vadd.f32 %v2126_v15, %v2125_v47  ;;  %v1477_v31 = vadd.f32 %v1476_v27, %v2746_v30 }
 0x177   : > { %v1630_v55 = vsel %vm1566_vm13, %v1482_v9, %v1598_v20  ;;  %vm1567_vm15 = vcmp.gt.f32.partialorder %v1485_v50, 0.0  ;;  %v1599_v46 = vmul.f32 0.2, %v1485_v50  ;;  %v1353_v18 = vadd.f32 %v2124_v21, %v1192_v6 }
 0x178   : > { %1662 = vst [vmem:[%s2767_s30 + $0x70] sm:$0xff] %v1630_v55  ;;  %v1628_v44 = vsel %vm1564_vm14, %v1474_v24, %v1596_v25  ;;  %vm1565_vm0 = vcmp.gt.f32.partialorder %v1477_v31, 0.0  ;;  %v1597_v37 = vmul.f32 0.2, %v1477_v31  ;;  %v1356_v61 = vadd.f32 %v2127_v2, %v1195_v11 }
 0x179   : > { %1660 = vst [vmem:[%s2767_s30 + $0x60] sm:$0xff] %v1628_v44  ;;  %v1631_v17 = vsel %vm1567_vm15, %v1485_v50, %v1599_v46  ;;  %v1208_v9 = vadd.f32 %v2679_v4, %v2694_v38  ;;  %v1211_v24 = vadd.f32 %v2681_v10, %v2694_v38 }
 0x17a   : > { %1663 = vst [vmem:[%s2767_s30 + $0x78] sm:$0xff] %v1631_v17  ;;  %v1629_v7 = vsel %vm1565_vm0, %v1477_v31, %v1597_v37  ;;  %v2128_v29 = vpop.f32.mrb[64].mxu1  ;;  %v2198_v39 = vpop.f32.mrb[64].mxu0  ;;  %v1216_v17 = vadd.f32 %v2683_v16, %v2694_v38 }
 0x17b   : > { %1661 = vst [vmem:[%s2767_s30 + $0x68] sm:$0xff] %v1629_v7  ;;  %v1498_v41 = vadd.f32 %v2198_v39, %v2787_v36  ;;  %v2129_v30 = vpop.f32.mrb[65].mxu1  ;;  %v1489_v59 = vpop.f32.mrb[65].mxu0 }
 0x17c   : > { %v2130_v42 = vadd.f32 %v2129_v30, %v2128_v29  ;;  %v1490_v23 = vadd.f32 %v1489_v59, %v2771_v5  ;;  %v2131_v63 = vpop.f32.mrb[66].mxu1  ;;  %v2199_v45 = vpop.f32.mrb[66].mxu0  ;;  %v1219_v30 = vadd.f32 %v2685_v22, %v2694_v38 }
 0x17d   : > { %vm1570_vm1 = vcmp.gt.f32.partialorder %v1498_v41, 0.0  ;;  %v1602_v53 = vmul.f32 0.2, %v1498_v41  ;;  %v1501_v32 = vadd.f32 %v2199_v45, %v2790_v48  ;;  %v2132_v36 = vpop.f32.mrb[67].mxu1  ;;  %v1492_v57 = vpop.f32.mrb[67].mxu0 }
 0x17e   : > { %vm1568_vm2 = vcmp.gt.f32.partialorder %v1490_v23, 0.0  ;;  %v1600_v58 = vmul.f32 0.2, %v1490_v23  ;;  %v2133_v56 = vadd.f32 %v2132_v36, %v2131_v63  ;;  %v1493_v43 = vadd.f32 %v1492_v57, %v2774_v8 }
 0x17f   : > { %v1634_v5 = vsel %vm1570_vm1, %v1498_v41, %v1602_v53  ;;  %vm1571_vm3 = vcmp.gt.f32.partialorder %v1501_v32, 0.0  ;;  %v1603_v19 = vmul.f32 0.2, %v1501_v32  ;;  %v1361_v3 = vadd.f32 %v2130_v42, %v1200_v51 }
 0x180   : > { %1666 = vst [vmem:[%s2767_s30 + $0x90] sm:$0xff] %v1634_v5  ;;  %v1632_v62 = vsel %vm1568_vm2, %v1490_v23, %v1600_v58  ;;  %vm1569_vm4 = vcmp.gt.f32.partialorder %v1493_v43, 0.0  ;;  %v1601_v60 = vmul.f32 0.2, %v1493_v43  ;;  %v1364_v54 = vadd.f32 %v2133_v56, %v1203_v49 }
 0x181   : > { %1664 = vst [vmem:[%s2767_s30 + $0x80] sm:$0xff] %v1632_v62  ;;  %v1635_v48 = vsel %vm1571_vm3, %v1501_v32, %v1603_v19  ;;  %v1224_v62 = vadd.f32 %v2687_v28, %v2694_v38 }
 0x182   : > { %1667 = vst [vmem:[%s2767_s30 + $0x98] sm:$0xff] %v1635_v48  ;;  %v1633_v0 = vsel %vm1569_vm4, %v1493_v43, %v1601_v60  ;;  %v2134_v1 = vpop.f32.mrb[68].mxu1  ;;  %v2202_v35 = vpop.f32.mrb[68].mxu0 }
 0x183   : > { %1665 = vst [vmem:[%s2767_s30 + $0x88] sm:$0xff] %v1633_v0  ;;  %v1514_v12 = vadd.f32 %v2202_v35, %v1353_v18  ;;  %v2135_v26 = vpop.f32.mrb[69].mxu1  ;;  %v1505_v8 = vpop.f32.mrb[69].mxu0 }
 0x184   : > { %v2136_v13 = vadd.f32 %v2135_v26, %v2134_v1  ;;  %v1506_v14 = vadd.f32 %v1505_v8, %v2803_v52  ;;  %v2137_v6 = vpop.f32.mrb[70].mxu1  ;;  %v2203_v21 = vpop.f32.mrb[70].mxu0  ;;  %v1227_v1 = vadd.f32 %v2689_v34, %v2694_v38 }
 0x185   : > { %vm1574_vm5 = vcmp.gt.f32.partialorder %v1514_v12, 0.0  ;;  %v1606_v47 = vmul.f32 0.2, %v1514_v12  ;;  %v1517_v40 = vadd.f32 %v2203_v21, %v1356_v61  ;;  %v2138_v11 = vpop.f32.mrb[71].mxu1  ;;  %v1508_v20 = vpop.f32.mrb[71].mxu0 }
 0x186   : > { %vm1572_vm6 = vcmp.gt.f32.partialorder %v1506_v14, 0.0  ;;  %v1604_v50 = vmul.f32 0.2, %v1506_v14  ;;  %v2139_v15 = vadd.f32 %v2138_v11, %v2137_v6  ;;  %v1509_v4 = vadd.f32 %v1508_v20, %v2806_v33 }
 0x187   : > { %v1638_v52 = vsel %vm1574_vm5, %v1514_v12, %v1606_v47  ;;  %vm1575_vm7 = vcmp.gt.f32.partialorder %v1517_v40, 0.0  ;;  %v1607_v27 = vmul.f32 0.2, %v1517_v40  ;;  %v1369_v25 = vadd.f32 %v2136_v13, %v1208_v9 }
 0x188   : > { %1670 = vst [vmem:[%s2767_s30 + $0xb0] sm:$0xff] %v1638_v52  ;;  %v1636_v2 = vsel %vm1572_vm6, %v1506_v14, %v1604_v50  ;;  %vm1573_vm8 = vcmp.gt.f32.partialorder %v1509_v4, 0.0  ;;  %v1605_v10 = vmul.f32 0.2, %v1509_v4  ;;  %v1372_v31 = vadd.f32 %v2139_v15, %v1211_v24 }
 0x189   : > { %1668 = vst [vmem:[%s2767_s30 + $0xa0] sm:$0xff] %v1636_v2  ;;  %v1639_v55 = vsel %vm1575_vm7, %v1517_v40, %v1607_v27 }
 0x18a   : > { %1671 = vst [vmem:[%s2767_s30 + $0xb8] sm:$0xff] %v1639_v55  ;;  %v1637_v46 = vsel %vm1573_vm8, %v1509_v4, %v1605_v10  ;;  %v2140_v18 = vpop.f32.mrb[72].mxu1  ;;  %v2206_v44 = vpop.f32.mrb[72].mxu0 }
 0x18b   : > { %1669 = vst [vmem:[%s2767_s30 + $0xa8] sm:$0xff] %v1637_v46  ;;  %v1530_v37 = vadd.f32 %v2206_v44, %v1369_v25  ;;  %v2141_v61 = vpop.f32.mrb[73].mxu1  ;;  %v1521_v33 = vpop.f32.mrb[73].mxu0 }
 0x18c   : > { %v2142_v7 = vadd.f32 %v2141_v61, %v2140_v18  ;;  %v1522_v29 = vadd.f32 %v1521_v33, %v1361_v3  ;;  %v2143_v39 = vpop.f32.mrb[74].mxu1  ;;  %v2207_v41 = vpop.f32.mrb[74].mxu0 }
 0x18d   : > { %vm1578_vm9 = vcmp.gt.f32.partialorder %v1530_v37, 0.0  ;;  %v1610_v59 = vmul.f32 0.2, %v1530_v37  ;;  %v1533_v51 = vadd.f32 %v2207_v41, %v1372_v31  ;;  %v2144_v42 = vpop.f32.mrb[75].mxu1  ;;  %v1524_v23 = vpop.f32.mrb[75].mxu0 }
 0x18e   : > { %vm1576_vm10 = vcmp.gt.f32.partialorder %v1522_v29, 0.0  ;;  %v1608_v63 = vmul.f32 0.2, %v1522_v29  ;;  %v2145_v45 = vadd.f32 %v2144_v42, %v2143_v39  ;;  %v1525_v49 = vadd.f32 %v1524_v23, %v1364_v54 }
 0x18f   : > { %v1642_v16 = vsel %vm1578_vm9, %v1530_v37, %v1610_v59  ;;  %vm1579_vm11 = vcmp.gt.f32.partialorder %v1533_v51, 0.0  ;;  %v1611_v53 = vmul.f32 0.2, %v1533_v51  ;;  %v1377_v32 = vadd.f32 %v2142_v7, %v1216_v17 }
 0x190   : > { %1674 = vst [vmem:[%s2767_s30 + $0xd0] sm:$0xff] %v1642_v16  ;;  %v1640_v36 = vsel %vm1576_vm10, %v1522_v29, %v1608_v63  ;;  %vm1577_vm12 = vcmp.gt.f32.partialorder %v1525_v49, 0.0  ;;  %v1609_v22 = vmul.f32 0.2, %v1525_v49  ;;  %v1380_v57 = vadd.f32 %v2145_v45, %v1219_v30 }
 0x191   : > { %1672 = vst [vmem:[%s2767_s30 + $0xc0] sm:$0xff] %v1640_v36  ;;  %v1643_v58 = vsel %vm1579_vm11, %v1533_v51, %v1611_v53 }
 0x192   : > { %1675 = vst [vmem:[%s2767_s30 + $0xd8] sm:$0xff] %v1643_v58  ;;  %v1641_v56 = vsel %vm1577_vm12, %v1525_v49, %v1609_v22  ;;  %v2146_v43 = vpop.f32.mrb[76].mxu1  ;;  %v2210_v5 = vpop.f32.mrb[76].mxu0 }
 0x193   : > { %1673 = vst [vmem:[%s2767_s30 + $0xc8] sm:$0xff] %v1641_v56  ;;  %v2147_v19 = vpop.f32.mrb[77].mxu1  ;;  %v1537_v3 = vpop.f32.mrb[77].mxu0 }
 0x194   : > { %v2148_v60 = vadd.f32 %v2147_v19, %v2146_v43  ;;  %v1538_v54 = vadd.f32 %v1537_v3, %v1377_v32  ;;  %v2149_v48 = vpop.f32.mrb[78].mxu1  ;;  %v2211_v0 = vpop.f32.mrb[78].mxu0 }
 0x195   : > { %v2150_v35 = vpop.f32.mrb[79].mxu1  ;;  %v1540_v12 = vpop.f32.mrb[79].mxu0 }
 0x196   : > { %v1385_v26 = vadd.f32 %v2148_v60, %v1224_v62  ;;  %vm1580_vm13 = vcmp.gt.f32.partialorder %v1538_v54, 0.0  ;;  %v1612_v8 = vmul.f32 0.2, %v1538_v54  ;;  %v2151_v9 = vadd.f32 %v2150_v35, %v2149_v48 }
 0x197   : > { %v1541_v13 = vadd.f32 %v1540_v12, %v1380_v57 }
 0x198   : > { %v1546_v14 = vadd.f32 %v2210_v5, %v1385_v26  ;;  %v1644_v28 = vsel %vm1580_vm13, %v1538_v54, %v1612_v8  ;;  %v1388_v6 = vadd.f32 %v2151_v9, %v1227_v1 }
 0x199   : > { %1676 = vst [vmem:[%s2767_s30 + $0xe0] sm:$0xff] %v1644_v28  ;;  %vm1581_vm14 = vcmp.gt.f32.partialorder %v1541_v13, 0.0  ;;  %v1613_v21 = vmul.f32 0.2, %v1541_v13 }
 0x19a   : > { %vm1582_vm15 = vcmp.gt.f32.partialorder %v1546_v14, 0.0  ;;  %v1614_v24 = vmul.f32 0.2, %v1546_v14  ;;  %v1549_v47 = vadd.f32 %v2211_v0, %v1388_v6 }
 0x19b   : > { %v1645_v34 = vsel %vm1581_vm14, %v1541_v13, %v1613_v21 }
 0x19c   : > { %v1646_v38 = vsel %vm1582_vm15, %v1546_v14, %v1614_v24  ;;  %vm1583_vm0 = vcmp.gt.f32.partialorder %v1549_v47, 0.0  ;;  %v1615_v40 = vmul.f32 0.2, %v1549_v47  ;;  %1677 = vst [vmem:[%s2767_s30 + $0xe8] sm:$0xff] %v1645_v34 }
 0x19d   : > { %1678 = vst [vmem:[%s2767_s30 + $0xf0] sm:$0xff] %v1646_v38 }
 0x19e   : > { %v1647_v11 = vsel %vm1583_vm0, %v1549_v47, %v1615_v40 }
 0x19f   : > { %1679 = vst [vmem:[%s2767_s30 + $0xf8] sm:$0xff] %v1647_v11 }
 0x1a0 PF: > { %s13_s14 = sadd.s32 1, %s2423_s14   ;;  %s2874_s12 = smov %s2419_s13 }
 0x1a1   : > { %p10_p5 = scmp.ge.s32.totalorder %s13_s14, 4   ;;  %s2875_s13 = smov %s2877_s15 }
 0x1a3   :  { %12 = sbr.rel (!%p10_p5) target bundleno = 2 (0x2), region = 68 }

// kernel: discriminator_forward.11
= control target key start
LH: loop header
LB: loop body
LE: loop exit
PB: predicated region body
PF: predicated region fallthrough
CT: control target
= control target key end

     0   :  { %s3363_s12 = smov 0   ;;  %s3365_s13 = smov 0   ;;  %s4162_s0 = inlined_call_operand.vmem [shape: bf16[128,1152], index: 0, kind: input, shape index: {}]   ;;  %s4163_s1 = inlined_call_operand.vmem [shape: bf16[1152,256], index: 1, kind: input, shape index: {}]   ;;  %s4164_s2 = inlined_call_operand.vmem [shape: f32[1,256], index: 2, kind: input, shape index: {}]   ;;  %s4165_s3 = inlined_call_operand.vmem [shape: f32[128,256], index: 3, kind: output, shape index: {}]  }
   0x1   :  { %s3367_s14 = smov 0   ;;  %s3369_s15 = smov 0  }
   0x2   :  { %s3371_s16 = smov 0  }
   0x3 LB: > { %s22_s17 = sadd.s32 1, %s3337_s15  ;;  %s2608_s18 = sadd.s32 4294967295, %s3341_s16   ;;  %s3341_s16 = sphi %s3371_s16, %s13_s16   ;;  %s3337_s15 = sphi %s3369_s15, %s4170_s15   ;;  %s3333_s14 = sphi %s3367_s14, %s4169_s14   ;;  %s3329_s13 = sphi %s3365_s13, %s4168_s13   ;;  %s3325_s12 = sphi %s3363_s12, %s4167_s12  }
   0x4   : > { %p23_p0 = scmp.ge.s32.totalorder %s22_s17, 2  ;;  %p65_p1 = scmp.ne.s32.totalorder %s3329_s13, %s3325_s12 }
   0x5   : > { %p66_p2 = scmp.eq.s32.totalorder %s3341_s16, 0  ;;  %p123_p4 = scmp.eq.s32.totalorder %s2608_s18, 1 }
   0x6   : > { %s4172_s17 = smov (%p23_p0, %s22_s17), 0  ;;  %s58_s20 = sadd.s32 1, %s3329_s13 }
   0x7   : > { %p67_p3 = por %p66_p2, %p65_p1  ;;  %s55_s19 = ssub.s32 %s3337_s15, %s4172_s17 }
   0x8   : > { %p56_p5 = scmp.eq.s32.totalorder %s55_s19, 0  ;;  %p3398_p6 = por %p123_p4, %p65_p1 }
   0x9   : > { %p2612_p7 = scmp.ge.s32.totalorder %s3341_s16, 2 }
   0xa   : > { %s3403_s22 = scalar_select %p56_p5, %s3329_s13, %s58_s20  }
   0xb   : > { %155 = sbr.rel (%p2612_p7) target bundleno = 118 (0x76), region = 20 }
  0x12   : > { %158 = sbr.rel (!%p67_p3) target bundleno = 118 (0x76), region = 24  ;;  %s160_s23 = sand.u32 (%p67_p3), 1, %s3329_s13  }
  0x13   : > { %s2613_s24 = sshll.u32 (%p67_p3), %s3337_s15, 2  ;;  %s3085_s25 = smul.u32 (%p67_p3), 576, %s160_s23 }
  0x14   : > { %s3411_s28 = scalar_lea.vmem (%p67_p3), %s4163_s1, %s2613_s24 }
  0x15   : > { %v180_v0 = vld [vmem:[%s3411_s28] sm:$0xf] (%p67_p3)  ;;  %v182_v1 = vld [vmem:[%s3411_s28 + $0x8] sm:$0xf] (%p67_p3)  ;;  %v184_v2 = vld [vmem:[%s3411_s28 + $0x10] sm:$0xf] (%p67_p3) }
  0x16   : > { %v186_v3 = vld [vmem:[%s3411_s28 + $0x18] sm:$0xf] (%p67_p3)  ;;  %v188_v4 = vld [vmem:[%s3411_s28 + $0x20] sm:$0xf] (%p67_p3)  ;;  %s3418_s29 = scalar_lea.vmem (%p67_p3), [#allocation2], %s3085_s25 }
  0x17   : > { %181 = vst [vmem:[%s3418_s29] sm:$0xf] (%p67_p3), %v180_v0  ;;  %183 = vst [vmem:[%s3418_s29 + $0x4] sm:$0xf] (%p67_p3), %v182_v1  ;;  %v190_v5 = vld [vmem:[%s3411_s28 + $0x28] sm:$0xf] (%p67_p3) }
  0x18   : > { %185 = vst [vmem:[%s3418_s29 + $0x8] sm:$0xf] (%p67_p3), %v184_v2  ;;  %187 = vst [vmem:[%s3418_s29 + $0xc] sm:$0xf] (%p67_p3), %v186_v3  ;;  %v192_v6 = vld [vmem:[%s3411_s28 + $0x30] sm:$0xf] (%p67_p3) }
  0x19   : > { %189 = vst [vmem:[%s3418_s29 + $0x10] sm:$0xf] %v188_v4  ;;  %v194_v7 = vld [vmem:[%s3411_s28 + $0x38] sm:$0xf]  ;;  %191 = vst [vmem:[%s3418_s29 + $0x14] sm:$0xf] %v190_v5 }
  0x1a   : > { %193 = vst [vmem:[%s3418_s29 + $0x18] sm:$0xf] %v192_v6  ;;  %195 = vst [vmem:[%s3418_s29 + $0x1c] sm:$0xf] %v194_v7  ;;  %v196_v8 = vld [vmem:[%s3411_s28 + $0x40] sm:$0xf] }
  0x1b   : > { %v198_v9 = vld [vmem:[%s3411_s28 + $0x48] sm:$0xf]  ;;  %v200_v10 = vld [vmem:[%s3411_s28 + $0x50] sm:$0xf]  ;;  %197 = vst [vmem:[%s3418_s29 + $0x20] sm:$0xf] %v196_v8 }
  0x1c   : > { %199 = vst [vmem:[%s3418_s29 + $0x24] sm:$0xf] %v198_v9  ;;  %201 = vst [vmem:[%s3418_s29 + $0x28] sm:$0xf] %v200_v10  ;;  %v202_v11 = vld [vmem:[%s3411_s28 + $0x58] sm:$0xf] }
  0x1d   : > { %v204_v12 = vld [vmem:[%s3411_s28 + $0x60] sm:$0xf]  ;;  %v206_v13 = vld [vmem:[%s3411_s28 + $0x68] sm:$0xf]  ;;  %203 = vst [vmem:[%s3418_s29 + $0x2c] sm:$0xf] %v202_v11 }
  0x1e   : > { %205 = vst [vmem:[%s3418_s29 + $0x30] sm:$0xf] %v204_v12  ;;  %207 = vst [vmem:[%s3418_s29 + $0x34] sm:$0xf] %v206_v13  ;;  %v208_v14 = vld [vmem:[%s3411_s28 + $0x70] sm:$0xf] }
  0x1f   : > { %v210_v15 = vld [vmem:[%s3411_s28 + $0x78] sm:$0xf]  ;;  %v212_v16 = vld [vmem:[%s3411_s28 + $0x80] sm:$0xf]  ;;  %209 = vst [vmem:[%s3418_s29 + $0x38] sm:$0xf] %v208_v14 }
  0x20   : > { %211 = vst [vmem:[%s3418_s29 + $0x3c] sm:$0xf] %v210_v15  ;;  %213 = vst [vmem:[%s3418_s29 + $0x40] sm:$0xf] %v212_v16  ;;  %v214_v17 = vld [vmem:[%s3411_s28 + $0x88] sm:$0xf] }
  0x21   : > { %v216_v18 = vld [vmem:[%s3411_s28 + $0x90] sm:$0xf]  ;;  %v218_v19 = vld [vmem:[%s3411_s28 + $0x98] sm:$0xf]  ;;  %215 = vst [vmem:[%s3418_s29 + $0x44] sm:$0xf] %v214_v17 }
  0x22   : > { %217 = vst [vmem:[%s3418_s29 + $0x48] sm:$0xf] %v216_v18  ;;  %219 = vst [vmem:[%s3418_s29 + $0x4c] sm:$0xf] %v218_v19  ;;  %v220_v20 = vld [vmem:[%s3411_s28 + $0xa0] sm:$0xf] }
  0x23   : > { %v222_v21 = vld [vmem:[%s3411_s28 + $0xa8] sm:$0xf]  ;;  %v224_v22 = vld [vmem:[%s3411_s28 + $0xb0] sm:$0xf]  ;;  %221 = vst [vmem:[%s3418_s29 + $0x50] sm:$0xf] %v220_v20 }
  0x24   : > { %223 = vst [vmem:[%s3418_s29 + $0x54] sm:$0xf] %v222_v21  ;;  %225 = vst [vmem:[%s3418_s29 + $0x58] sm:$0xf] %v224_v22  ;;  %v226_v23 = vld [vmem:[%s3411_s28 + $0xb8] sm:$0xf] }
  0x25   : > { %v228_v24 = vld [vmem:[%s3411_s28 + $0xc0] sm:$0xf]  ;;  %v230_v25 = vld [vmem:[%s3411_s28 + $0xc8] sm:$0xf]  ;;  %227 = vst [vmem:[%s3418_s29 + $0x5c] sm:$0xf] %v226_v23 }
  0x26   : > { %229 = vst [vmem:[%s3418_s29 + $0x60] sm:$0xf] %v228_v24  ;;  %231 = vst [vmem:[%s3418_s29 + $0x64] sm:$0xf] %v230_v25  ;;  %v232_v26 = vld [vmem:[%s3411_s28 + $0xd0] sm:$0xf] }
  0x27   : > { %v234_v27 = vld [vmem:[%s3411_s28 + $0xd8] sm:$0xf]  ;;  %v236_v28 = vld [vmem:[%s3411_s28 + $0xe0] sm:$0xf]  ;;  %233 = vst [vmem:[%s3418_s29 + $0x68] sm:$0xf] %v232_v26 }
  0x28   : > { %235 = vst [vmem:[%s3418_s29 + $0x6c] sm:$0xf] %v234_v27  ;;  %237 = vst [vmem:[%s3418_s29 + $0x70] sm:$0xf] %v236_v28  ;;  %v238_v29 = vld [vmem:[%s3411_s28 + $0xe8] sm:$0xf] }
  0x29   : > { %v240_v30 = vld [vmem:[%s3411_s28 + $0xf0] sm:$0xf]  ;;  %v242_v31 = vld [vmem:[%s3411_s28 + $0xf8] sm:$0xf]  ;;  %239 = vst [vmem:[%s3418_s29 + $0x74] sm:$0xf] %v238_v29 }
  0x2a   : > { %241 = vst [vmem:[%s3418_s29 + $0x78] sm:$0xf] %v240_v30  ;;  %243 = vst [vmem:[%s3418_s29 + $0x7c] sm:$0xf] %v242_v31  ;;  %v244_v32 = vld [vmem:[%s3411_s28 + $0x100] sm:$0xf] }
  0x2b   : > { %v246_v33 = vld [vmem:[%s3411_s28 + $0x108] sm:$0xf]  ;;  %v248_v34 = vld [vmem:[%s3411_s28 + $0x110] sm:$0xf]  ;;  %245 = vst [vmem:[%s3418_s29 + $0x80] sm:$0xf] %v244_v32 }
  0x2c   : > { %247 = vst [vmem:[%s3418_s29 + $0x84] sm:$0xf] %v246_v33  ;;  %249 = vst [vmem:[%s3418_s29 + $0x88] sm:$0xf] %v248_v34  ;;  %v250_v35 = vld [vmem:[%s3411_s28 + $0x118] sm:$0xf] }
  0x2d   : > { %v252_v36 = vld [vmem:[%s3411_s28 + $0x120] sm:$0xf]  ;;  %v254_v37 = vld [vmem:[%s3411_s28 + $0x128] sm:$0xf]  ;;  %251 = vst [vmem:[%s3418_s29 + $0x8c] sm:$0xf] %v250_v35 }
  0x2e   : > { %253 = vst [vmem:[%s3418_s29 + $0x90] sm:$0xf] %v252_v36  ;;  %255 = vst [vmem:[%s3418_s29 + $0x94] sm:$0xf] %v254_v37  ;;  %v256_v38 = vld [vmem:[%s3411_s28 + $0x130] sm:$0xf] }
  0x2f   : > { %v258_v39 = vld [vmem:[%s3411_s28 + $0x138] sm:$0xf]  ;;  %v260_v40 = vld [vmem:[%s3411_s28 + $0x140] sm:$0xf]  ;;  %257 = vst [vmem:[%s3418_s29 + $0x98] sm:$0xf] %v256_v38 }
  0x30   : > { %259 = vst [vmem:[%s3418_s29 + $0x9c] sm:$0xf] %v258_v39  ;;  %261 = vst [vmem:[%s3418_s29 + $0xa0] sm:$0xf] %v260_v40  ;;  %v262_v41 = vld [vmem:[%s3411_s28 + $0x148] sm:$0xf] }
  0x31   : > { %v264_v42 = vld [vmem:[%s3411_s28 + $0x150] sm:$0xf]  ;;  %v266_v43 = vld [vmem:[%s3411_s28 + $0x158] sm:$0xf]  ;;  %263 = vst [vmem:[%s3418_s29 + $0xa4] sm:$0xf] %v262_v41 }
  0x32   : > { %265 = vst [vmem:[%s3418_s29 + $0xa8] sm:$0xf] %v264_v42  ;;  %267 = vst [vmem:[%s3418_s29 + $0xac] sm:$0xf] %v266_v43  ;;  %v268_v44 = vld [vmem:[%s3411_s28 + $0x160] sm:$0xf] }
  0x33   : > { %v270_v45 = vld [vmem:[%s3411_s28 + $0x168] sm:$0xf]  ;;  %v272_v46 = vld [vmem:[%s3411_s28 + $0x170] sm:$0xf]  ;;  %269 = vst [vmem:[%s3418_s29 + $0xb0] sm:$0xf] %v268_v44 }
  0x34   : > { %271 = vst [vmem:[%s3418_s29 + $0xb4] sm:$0xf] %v270_v45  ;;  %273 = vst [vmem:[%s3418_s29 + $0xb8] sm:$0xf] %v272_v46  ;;  %v274_v47 = vld [vmem:[%s3411_s28 + $0x178] sm:$0xf] }
  0x35   : > { %v276_v48 = vld [vmem:[%s3411_s28 + $0x180] sm:$0xf]  ;;  %v278_v49 = vld [vmem:[%s3411_s28 + $0x188] sm:$0xf]  ;;  %275 = vst [vmem:[%s3418_s29 + $0xbc] sm:$0xf] %v274_v47 }
  0x36   : > { %277 = vst [vmem:[%s3418_s29 + $0xc0] sm:$0xf] %v276_v48  ;;  %279 = vst [vmem:[%s3418_s29 + $0xc4] sm:$0xf] %v278_v49  ;;  %v280_v50 = vld [vmem:[%s3411_s28 + $0x190] sm:$0xf] }
  0x37   : > { %v282_v51 = vld [vmem:[%s3411_s28 + $0x198] sm:$0xf]  ;;  %v284_v52 = vld [vmem:[%s3411_s28 + $0x1a0] sm:$0xf]  ;;  %281 = vst [vmem:[%s3418_s29 + $0xc8] sm:$0xf] %v280_v50 }
  0x38   : > { %283 = vst [vmem:[%s3418_s29 + $0xcc] sm:$0xf] %v282_v51  ;;  %285 = vst [vmem:[%s3418_s29 + $0xd0] sm:$0xf] %v284_v52  ;;  %v286_v53 = vld [vmem:[%s3411_s28 + $0x1a8] sm:$0xf] }
  0x39   : > { %v288_v54 = vld [vmem:[%s3411_s28 + $0x1b0] sm:$0xf]  ;;  %v290_v55 = vld [vmem:[%s3411_s28 + $0x1b8] sm:$0xf]  ;;  %287 = vst [vmem:[%s3418_s29 + $0xd4] sm:$0xf] %v286_v53 }
  0x3a   : > { %289 = vst [vmem:[%s3418_s29 + $0xd8] sm:$0xf] %v288_v54  ;;  %291 = vst [vmem:[%s3418_s29 + $0xdc] sm:$0xf] %v290_v55  ;;  %v292_v56 = vld [vmem:[%s3411_s28 + $0x1c0] sm:$0xf] }
  0x3b   : > { %v294_v57 = vld [vmem:[%s3411_s28 + $0x1c8] sm:$0xf]  ;;  %v296_v58 = vld [vmem:[%s3411_s28 + $0x1d0] sm:$0xf]  ;;  %293 = vst [vmem:[%s3418_s29 + $0xe0] sm:$0xf] %v292_v56 }
  0x3c   : > { %295 = vst [vmem:[%s3418_s29 + $0xe4] sm:$0xf] %v294_v57  ;;  %297 = vst [vmem:[%s3418_s29 + $0xe8] sm:$0xf] %v296_v58  ;;  %v298_v59 = vld [vmem:[%s3411_s28 + $0x1d8] sm:$0xf] }
  0x3d   : > { %v300_v60 = vld [vmem:[%s3411_s28 + $0x1e0] sm:$0xf]  ;;  %v302_v61 = vld [vmem:[%s3411_s28 + $0x1e8] sm:$0xf]  ;;  %299 = vst [vmem:[%s3418_s29 + $0xec] sm:$0xf] %v298_v59 }
  0x3e   : > { %301 = vst [vmem:[%s3418_s29 + $0xf0] sm:$0xf] %v300_v60  ;;  %303 = vst [vmem:[%s3418_s29 + $0xf4] sm:$0xf] %v302_v61  ;;  %v304_v62 = vld [vmem:[%s3411_s28 + $0x1f0] sm:$0xf] }
  0x3f   : > { %v306_v63 = vld [vmem:[%s3411_s28 + $0x1f8] sm:$0xf]  ;;  %v308_v0 = vld [vmem:[%s3411_s28 + $0x200] sm:$0xf]  ;;  %305 = vst [vmem:[%s3418_s29 + $0xf8] sm:$0xf] %v304_v62 }
  0x40   : > { %307 = vst [vmem:[%s3418_s29 + $0xfc] sm:$0xf] %v306_v63  ;;  %309 = vst [vmem:[%s3418_s29 + $0x100] sm:$0xf] %v308_v0  ;;  %v310_v1 = vld [vmem:[%s3411_s28 + $0x208] sm:$0xf] }
  0x41   : > { %v312_v2 = vld [vmem:[%s3411_s28 + $0x210] sm:$0xf]  ;;  %v314_v3 = vld [vmem:[%s3411_s28 + $0x218] sm:$0xf]  ;;  %311 = vst [vmem:[%s3418_s29 + $0x104] sm:$0xf] %v310_v1 }
  0x42   : > { %313 = vst [vmem:[%s3418_s29 + $0x108] sm:$0xf] %v312_v2  ;;  %315 = vst [vmem:[%s3418_s29 + $0x10c] sm:$0xf] %v314_v3  ;;  %v316_v4 = vld [vmem:[%s3411_s28 + $0x220] sm:$0xf] }
  0x43   : > { %v318_v5 = vld [vmem:[%s3411_s28 + $0x228] sm:$0xf]  ;;  %v320_v6 = vld [vmem:[%s3411_s28 + $0x230] sm:$0xf]  ;;  %317 = vst [vmem:[%s3418_s29 + $0x110] sm:$0xf] %v316_v4 }
  0x44   : > { %319 = vst [vmem:[%s3418_s29 + $0x114] sm:$0xf] %v318_v5  ;;  %321 = vst [vmem:[%s3418_s29 + $0x118] sm:$0xf] %v320_v6  ;;  %v322_v7 = vld [vmem:[%s3411_s28 + $0x238] sm:$0xf] }
  0x45   : > { %v324_v8 = vld [vmem:[%s3411_s28 + $0x240] sm:$0xf]  ;;  %v326_v9 = vld [vmem:[%s3411_s28 + $0x248] sm:$0xf]  ;;  %323 = vst [vmem:[%s3418_s29 + $0x11c] sm:$0xf] %v322_v7 }
  0x46   : > { %325 = vst [vmem:[%s3418_s29 + $0x120] sm:$0xf] %v324_v8  ;;  %327 = vst [vmem:[%s3418_s29 + $0x124] sm:$0xf] %v326_v9  ;;  %v328_v10 = vld [vmem:[%s3411_s28 + $0x250] sm:$0xf] }
  0x47   : > { %v330_v11 = vld [vmem:[%s3411_s28 + $0x258] sm:$0xf]  ;;  %v332_v12 = vld [vmem:[%s3411_s28 + $0x260] sm:$0xf]  ;;  %329 = vst [vmem:[%s3418_s29 + $0x128] sm:$0xf] %v328_v10 }
  0x48   : > { %331 = vst [vmem:[%s3418_s29 + $0x12c] sm:$0xf] %v330_v11  ;;  %333 = vst [vmem:[%s3418_s29 + $0x130] sm:$0xf] %v332_v12  ;;  %v334_v13 = vld [vmem:[%s3411_s28 + $0x268] sm:$0xf] }
  0x49   : > { %v336_v14 = vld [vmem:[%s3411_s28 + $0x270] sm:$0xf]  ;;  %v338_v15 = vld [vmem:[%s3411_s28 + $0x278] sm:$0xf]  ;;  %335 = vst [vmem:[%s3418_s29 + $0x134] sm:$0xf] %v334_v13 }
  0x4a   : > { %337 = vst [vmem:[%s3418_s29 + $0x138] sm:$0xf] %v336_v14  ;;  %339 = vst [vmem:[%s3418_s29 + $0x13c] sm:$0xf] %v338_v15  ;;  %v340_v16 = vld [vmem:[%s3411_s28 + $0x280] sm:$0xf] }
  0x4b   : > { %v342_v17 = vld [vmem:[%s3411_s28 + $0x288] sm:$0xf]  ;;  %v344_v18 = vld [vmem:[%s3411_s28 + $0x290] sm:$0xf]  ;;  %341 = vst [vmem:[%s3418_s29 + $0x140] sm:$0xf] %v340_v16 }
  0x4c   : > { %343 = vst [vmem:[%s3418_s29 + $0x144] sm:$0xf] %v342_v17  ;;  %345 = vst [vmem:[%s3418_s29 + $0x148] sm:$0xf] %v344_v18  ;;  %v346_v19 = vld [vmem:[%s3411_s28 + $0x298] sm:$0xf] }
  0x4d   : > { %v348_v20 = vld [vmem:[%s3411_s28 + $0x2a0] sm:$0xf]  ;;  %v350_v21 = vld [vmem:[%s3411_s28 + $0x2a8] sm:$0xf]  ;;  %347 = vst [vmem:[%s3418_s29 + $0x14c] sm:$0xf] %v346_v19 }
  0x4e   : > { %349 = vst [vmem:[%s3418_s29 + $0x150] sm:$0xf] %v348_v20  ;;  %351 = vst [vmem:[%s3418_s29 + $0x154] sm:$0xf] %v350_v21  ;;  %v352_v22 = vld [vmem:[%s3411_s28 + $0x2b0] sm:$0xf] }
  0x4f   : > { %v354_v23 = vld [vmem:[%s3411_s28 + $0x2b8] sm:$0xf]  ;;  %v356_v24 = vld [vmem:[%s3411_s28 + $0x2c0] sm:$0xf]  ;;  %353 = vst [vmem:[%s3418_s29 + $0x158] sm:$0xf] %v352_v22 }
  0x50   : > { %355 = vst [vmem:[%s3418_s29 + $0x15c] sm:$0xf] %v354_v23  ;;  %357 = vst [vmem:[%s3418_s29 + $0x160] sm:$0xf] %v356_v24  ;;  %v358_v25 = vld [vmem:[%s3411_s28 + $0x2c8] sm:$0xf] }
  0x51   : > { %v360_v26 = vld [vmem:[%s3411_s28 + $0x2d0] sm:$0xf]  ;;  %v362_v27 = vld [vmem:[%s3411_s28 + $0x2d8] sm:$0xf]  ;;  %359 = vst [vmem:[%s3418_s29 + $0x164] sm:$0xf] %v358_v25 }
  0x52   : > { %361 = vst [vmem:[%s3418_s29 + $0x168] sm:$0xf] %v360_v26  ;;  %363 = vst [vmem:[%s3418_s29 + $0x16c] sm:$0xf] %v362_v27  ;;  %v364_v28 = vld [vmem:[%s3411_s28 + $0x2e0] sm:$0xf] }
  0x53   : > { %v366_v29 = vld [vmem:[%s3411_s28 + $0x2e8] sm:$0xf]  ;;  %v368_v30 = vld [vmem:[%s3411_s28 + $0x2f0] sm:$0xf]  ;;  %365 = vst [vmem:[%s3418_s29 + $0x170] sm:$0xf] %v364_v28 }
  0x54   : > { %367 = vst [vmem:[%s3418_s29 + $0x174] sm:$0xf] %v366_v29  ;;  %369 = vst [vmem:[%s3418_s29 + $0x178] sm:$0xf] %v368_v30  ;;  %v370_v31 = vld [vmem:[%s3411_s28 + $0x2f8] sm:$0xf] }
  0x55   : > { %v372_v32 = vld [vmem:[%s3411_s28 + $0x300] sm:$0xf]  ;;  %v374_v33 = vld [vmem:[%s3411_s28 + $0x308] sm:$0xf]  ;;  %371 = vst [vmem:[%s3418_s29 + $0x17c] sm:$0xf] %v370_v31 }
  0x56   : > { %373 = vst [vmem:[%s3418_s29 + $0x180] sm:$0xf] %v372_v32  ;;  %375 = vst [vmem:[%s3418_s29 + $0x184] sm:$0xf] %v374_v33  ;;  %v376_v34 = vld [vmem:[%s3411_s28 + $0x310] sm:$0xf] }
  0x57   : > { %v378_v35 = vld [vmem:[%s3411_s28 + $0x318] sm:$0xf]  ;;  %v380_v36 = vld [vmem:[%s3411_s28 + $0x320] sm:$0xf]  ;;  %377 = vst [vmem:[%s3418_s29 + $0x188] sm:$0xf] %v376_v34 }
  0x58   : > { %379 = vst [vmem:[%s3418_s29 + $0x18c] sm:$0xf] %v378_v35  ;;  %381 = vst [vmem:[%s3418_s29 + $0x190] sm:$0xf] %v380_v36  ;;  %v382_v37 = vld [vmem:[%s3411_s28 + $0x328] sm:$0xf] }
  0x59   : > { %v384_v38 = vld [vmem:[%s3411_s28 + $0x330] sm:$0xf]  ;;  %v386_v39 = vld [vmem:[%s3411_s28 + $0x338] sm:$0xf]  ;;  %383 = vst [vmem:[%s3418_s29 + $0x194] sm:$0xf] %v382_v37 }
  0x5a   : > { %385 = vst [vmem:[%s3418_s29 + $0x198] sm:$0xf] %v384_v38  ;;  %387 = vst [vmem:[%s3418_s29 + $0x19c] sm:$0xf] %v386_v39  ;;  %v388_v40 = vld [vmem:[%s3411_s28 + $0x340] sm:$0xf] }
  0x5b   : > { %v390_v41 = vld [vmem:[%s3411_s28 + $0x348] sm:$0xf]  ;;  %v392_v42 = vld [vmem:[%s3411_s28 + $0x350] sm:$0xf]  ;;  %389 = vst [vmem:[%s3418_s29 + $0x1a0] sm:$0xf] %v388_v40 }
  0x5c   : > { %391 = vst [vmem:[%s3418_s29 + $0x1a4] sm:$0xf] %v390_v41  ;;  %393 = vst [vmem:[%s3418_s29 + $0x1a8] sm:$0xf] %v392_v42  ;;  %v394_v43 = vld [vmem:[%s3411_s28 + $0x358] sm:$0xf] }
  0x5d   : > { %v396_v44 = vld [vmem:[%s3411_s28 + $0x360] sm:$0xf]  ;;  %v398_v45 = vld [vmem:[%s3411_s28 + $0x368] sm:$0xf]  ;;  %395 = vst [vmem:[%s3418_s29 + $0x1ac] sm:$0xf] %v394_v43 }
  0x5e   : > { %397 = vst [vmem:[%s3418_s29 + $0x1b0] sm:$0xf] %v396_v44  ;;  %399 = vst [vmem:[%s3418_s29 + $0x1b4] sm:$0xf] %v398_v45  ;;  %v400_v46 = vld [vmem:[%s3411_s28 + $0x370] sm:$0xf] }
  0x5f   : > { %v402_v47 = vld [vmem:[%s3411_s28 + $0x378] sm:$0xf]  ;;  %v404_v48 = vld [vmem:[%s3411_s28 + $0x380] sm:$0xf]  ;;  %401 = vst [vmem:[%s3418_s29 + $0x1b8] sm:$0xf] %v400_v46 }
  0x60   : > { %403 = vst [vmem:[%s3418_s29 + $0x1bc] sm:$0xf] %v402_v47  ;;  %405 = vst [vmem:[%s3418_s29 + $0x1c0] sm:$0xf] %v404_v48  ;;  %v406_v49 = vld [vmem:[%s3411_s28 + $0x388] sm:$0xf] }
  0x61   : > { %v408_v50 = vld [vmem:[%s3411_s28 + $0x390] sm:$0xf]  ;;  %v410_v51 = vld [vmem:[%s3411_s28 + $0x398] sm:$0xf]  ;;  %407 = vst [vmem:[%s3418_s29 + $0x1c4] sm:$0xf] %v406_v49 }
  0x62   : > { %409 = vst [vmem:[%s3418_s29 + $0x1c8] sm:$0xf] %v408_v50  ;;  %411 = vst [vmem:[%s3418_s29 + $0x1cc] sm:$0xf] %v410_v51  ;;  %v412_v52 = vld [vmem:[%s3411_s28 + $0x3a0] sm:$0xf] }
  0x63   : > { %v414_v53 = vld [vmem:[%s3411_s28 + $0x3a8] sm:$0xf]  ;;  %v416_v54 = vld [vmem:[%s3411_s28 + $0x3b0] sm:$0xf]  ;;  %413 = vst [vmem:[%s3418_s29 + $0x1d0] sm:$0xf] %v412_v52 }
  0x64   : > { %415 = vst [vmem:[%s3418_s29 + $0x1d4] sm:$0xf] %v414_v53  ;;  %417 = vst [vmem:[%s3418_s29 + $0x1d8] sm:$0xf] %v416_v54  ;;  %v418_v55 = vld [vmem:[%s3411_s28 + $0x3b8] sm:$0xf] }
  0x65   : > { %v420_v56 = vld [vmem:[%s3411_s28 + $0x3c0] sm:$0xf]  ;;  %v422_v57 = vld [vmem:[%s3411_s28 + $0x3c8] sm:$0xf]  ;;  %419 = vst [vmem:[%s3418_s29 + $0x1dc] sm:$0xf] %v418_v55 }
  0x66   : > { %421 = vst [vmem:[%s3418_s29 + $0x1e0] sm:$0xf] %v420_v56  ;;  %423 = vst [vmem:[%s3418_s29 + $0x1e4] sm:$0xf] %v422_v57  ;;  %v424_v58 = vld [vmem:[%s3411_s28 + $0x3d0] sm:$0xf] }
  0x67   : > { %v426_v59 = vld [vmem:[%s3411_s28 + $0x3d8] sm:$0xf]  ;;  %v428_v60 = vld [vmem:[%s3411_s28 + $0x3e0] sm:$0xf]  ;;  %425 = vst [vmem:[%s3418_s29 + $0x1e8] sm:$0xf] %v424_v58 }
  0x68   : > { %427 = vst [vmem:[%s3418_s29 + $0x1ec] sm:$0xf] %v426_v59  ;;  %429 = vst [vmem:[%s3418_s29 + $0x1f0] sm:$0xf] %v428_v60  ;;  %v430_v61 = vld [vmem:[%s3411_s28 + $0x3e8] sm:$0xf] }
  0x69   : > { %v432_v62 = vld [vmem:[%s3411_s28 + $0x3f0] sm:$0xf]  ;;  %v434_v63 = vld [vmem:[%s3411_s28 + $0x3f8] sm:$0xf]  ;;  %431 = vst [vmem:[%s3418_s29 + $0x1f4] sm:$0xf] %v430_v61 }
  0x6a   : > { %433 = vst [vmem:[%s3418_s29 + $0x1f8] sm:$0xf] %v432_v62  ;;  %435 = vst [vmem:[%s3418_s29 + $0x1fc] sm:$0xf] %v434_v63  ;;  %v436_v0 = vld [vmem:[%s3411_s28 + $0x400] sm:$0xf] }
  0x6b   : > { %v438_v1 = vld [vmem:[%s3411_s28 + $0x408] sm:$0xf]  ;;  %v440_v2 = vld [vmem:[%s3411_s28 + $0x410] sm:$0xf]  ;;  %437 = vst [vmem:[%s3418_s29 + $0x200] sm:$0xf] %v436_v0 }
  0x6c   : > { %439 = vst [vmem:[%s3418_s29 + $0x204] sm:$0xf] %v438_v1  ;;  %441 = vst [vmem:[%s3418_s29 + $0x208] sm:$0xf] %v440_v2  ;;  %v442_v3 = vld [vmem:[%s3411_s28 + $0x418] sm:$0xf] }
  0x6d   : > { %v444_v4 = vld [vmem:[%s3411_s28 + $0x420] sm:$0xf]  ;;  %v446_v5 = vld [vmem:[%s3411_s28 + $0x428] sm:$0xf]  ;;  %443 = vst [vmem:[%s3418_s29 + $0x20c] sm:$0xf] %v442_v3 }
  0x6e   : > { %445 = vst [vmem:[%s3418_s29 + $0x210] sm:$0xf] %v444_v4  ;;  %447 = vst [vmem:[%s3418_s29 + $0x214] sm:$0xf] %v446_v5  ;;  %v448_v6 = vld [vmem:[%s3411_s28 + $0x430] sm:$0xf] }
  0x6f   : > { %v450_v7 = vld [vmem:[%s3411_s28 + $0x438] sm:$0xf]  ;;  %v452_v8 = vld [vmem:[%s3411_s28 + $0x440] sm:$0xf]  ;;  %449 = vst [vmem:[%s3418_s29 + $0x218] sm:$0xf] %v448_v6 }
  0x70   : > { %451 = vst [vmem:[%s3418_s29 + $0x21c] sm:$0xf] %v450_v7  ;;  %453 = vst [vmem:[%s3418_s29 + $0x220] sm:$0xf] %v452_v8  ;;  %v454_v9 = vld [vmem:[%s3411_s28 + $0x448] sm:$0xf] }
  0x71   : > { %v456_v10 = vld [vmem:[%s3411_s28 + $0x450] sm:$0xf]  ;;  %v458_v11 = vld [vmem:[%s3411_s28 + $0x458] sm:$0xf]  ;;  %455 = vst [vmem:[%s3418_s29 + $0x224] sm:$0xf] %v454_v9 }
  0x72   : > { %457 = vst [vmem:[%s3418_s29 + $0x228] sm:$0xf] %v456_v10  ;;  %459 = vst [vmem:[%s3418_s29 + $0x22c] sm:$0xf] %v458_v11  ;;  %v460_v12 = vld [vmem:[%s3411_s28 + $0x460] sm:$0xf] }
  0x73   : > { %v462_v13 = vld [vmem:[%s3411_s28 + $0x468] sm:$0xf]  ;;  %v464_v14 = vld [vmem:[%s3411_s28 + $0x470] sm:$0xf]  ;;  %461 = vst [vmem:[%s3418_s29 + $0x230] sm:$0xf] %v460_v12 }
  0x74   : > { %463 = vst [vmem:[%s3418_s29 + $0x234] sm:$0xf] %v462_v13  ;;  %465 = vst [vmem:[%s3418_s29 + $0x238] sm:$0xf] %v464_v14  ;;  %v466_v15 = vld [vmem:[%s3411_s28 + $0x478] sm:$0xf] }
  0x75   : > { %467 = vst [vmem:[%s3418_s29 + $0x23c] sm:$0xf] %v466_v15 }
  0x76 PF: > { %p2614_p8 = scmp.ge.s32.totalorder %s3341_s16, 1  ;;  %p783_p9 = scmp.lt.s32.totalorder %s3341_s16, 3 }
  0x78   : > { %p784_p10 = pnand %p2614_p8, %p783_p9 }
  0x79   : > { %s790_s30 = sand.u32 (!%p784_p10), 1, %s3325_s12   ;;  %v3161_v16 = vld [vmem:[%s4162_s0 + $0x4] ss:$36 sps:$4 sm:$0xff] (!%p784_p10)   ;;  %v3164_v17 = vld [vmem:[%s4162_s0 + $0xc] ss:$36 sps:$4 sm:$0xff] (!%p784_p10)   ;;  %p828_p11 = scmp.lt.s32.totalorder (!%p784_p10), %s3333_s14, 1 }
  0x7a   : > { %787 = sbr.rel (%p784_p10) target bundleno = 529 (0x211), region = 69  ;;  %1896 = vmatprep.mubr.bf16.mxu0 (!%p784_p10), %v3161_v16  ;;  %1993 = vmatprep.mubr.bf16.mxu1 (!%p784_p10), %v3164_v17  ;;  %v3159_v48 = vld [vmem:[%s4162_s0] ss:$36 sps:$4 sm:$0xff] (!%p784_p10)   ;;  %v3162_v50 = vld [vmem:[%s4162_s0 + $0x8] ss:$36 sps:$4 sm:$0xff] (!%p784_p10)   ;;  %s2615_s23 = sshll.u32 (!%p784_p10), %s790_s30, 7 }
  0x7b   : > { %s3086_s4 = smul.u32 (!%p784_p10), 576, %s790_s30  ;;  %v3169_v52 = vld [vmem:[%s4162_s0 + $0x4c] ss:$36 sps:$4 sm:$0xff] (!%p784_p10)   ;;  %v3171_v57 = vld [vmem:[%s4162_s0 + $0x54] ss:$36 sps:$4 sm:$0xff] (!%p784_p10)   ;;  %s4098_s12 = scalar_lea.vmem (!%p784_p10), [#allocation3], %s2615_s23 }
  0x7c   : > { %v3173_v58 = vld [vmem:[%s4162_s0 + $0x48] ss:$36 sps:$4 sm:$0xff] (!%p784_p10)   ;;  %v3174_v59 = vld [vmem:[%s4162_s0 + $0x50] ss:$36 sps:$4 sm:$0xff] (!%p784_p10)   ;;  %v3181_v1 = vld [vmem:[%s4162_s0 + $0x9c] ss:$36 sps:$4 sm:$0xff] (!%p784_p10)  }
  0x7d   : > { %s3714_s9 = scalar_lea.vmem (!%p784_p10), [#allocation2], %s3086_s4  ;;  %v3179_v0 = vld [vmem:[%s4162_s0 + $0x94] ss:$36 sps:$4 sm:$0xff] (!%p784_p10)   ;;  %v3189_v8 = vld [vmem:[%s4162_s0 + $0xdc] ss:$36 sps:$4 sm:$0xff] (!%p784_p10)  }
  0x7e   : > { %v3127_v18 = vld [vmem:[%s3714_s9 + $0x40] sm:$0xff] (!%p784_p10)   ;;  %v3131_v22 = vld [vmem:[%s3714_s9 + $0x48] sm:$0xff] (!%p784_p10)   ;;  %v3135_v26 = vld [vmem:[%s3714_s9 + $0x50] sm:$0xff] (!%p784_p10)  }
  0x7f   : > { %v3128_v19 = vld [vmem:[%s3714_s9 + $0xc0] sm:$0xff] (!%p784_p10)   ;;  %2765 = vmatprep.subr.bf16.mxu0 (!%p784_p10), %v3127_v18  ;;  %v3132_v23 = vld [vmem:[%s3714_s9 + $0xc8] sm:$0xff] (!%p784_p10)   ;;  %v3136_v27 = vld [vmem:[%s3714_s9 + $0xd0] sm:$0xff] (!%p784_p10)  }
  0x80   : > { %v3129_v20 = vld [vmem:[%s3714_s9] sm:$0xff] (!%p784_p10)   ;;  %2829 = vmatprep.subr.bf16.mxu1 (!%p784_p10), %v3128_v19  ;;  %v3133_v24 = vld [vmem:[%s3714_s9 + $0x8] sm:$0xff] (!%p784_p10)   ;;  %v3137_v28 = vld [vmem:[%s3714_s9 + $0x10] sm:$0xff] (!%p784_p10)  }
  0x81   : > { %v3130_v21 = vld [vmem:[%s3714_s9 + $0x80] sm:$0xff]   ;;  %2766 = vmatpush3.bf16.msra.mxu0 %v3129_v20  ;;  %v3134_v25 = vld [vmem:[%s3714_s9 + $0x88] sm:$0xff]   ;;  %v3138_v29 = vld [vmem:[%s3714_s9 + $0x90] sm:$0xff]   ;;  %s829_s11 = scalar_select %p828_p11, %s3333_s14, 1 }
  0x82   : > { %2830 = vmatpush3.bf16.msra.mxu1 %v3130_v21  ;;  %2767 = vmatprep.subr.bf16.mxu0 %v3131_v22  ;;  %v3139_v30 = vld [vmem:[%s3714_s9 + $0x58] sm:$0xff]   ;;  %v3143_v34 = vld [vmem:[%s3714_s9 + $0x60] sm:$0xff]   ;;  %v3147_v38 = vld [vmem:[%s3714_s9 + $0x68] sm:$0xff]   ;;  %s2762_s30 = sshll.u32 (%p3398_p6), %s3333_s14, 3 }
  0x83   : > { %2831 = vmatprep.subr.bf16.mxu1 %v3132_v23  ;;  %v3140_v31 = vld [vmem:[%s3714_s9 + $0xd8] sm:$0xff]   ;;  %v3144_v35 = vld [vmem:[%s3714_s9 + $0xe0] sm:$0xff]   ;;  %v3148_v39 = vld [vmem:[%s3714_s9 + $0xe8] sm:$0xff]   ;;  %s830_s20 = scalar_lea.vmem %s4164_s2, %s829_s11  ;;  %s2424_s26 = scalar_lea.vmem (%p3398_p6), %s4165_s3, %s2762_s30 }
  0x84   : > { %v3141_v32 = vld [vmem:[%s3714_s9 + $0x18] sm:$0xff]   ;;  %v3145_v36 = vld [vmem:[%s3714_s9 + $0x20] sm:$0xff]   ;;  %v3149_v40 = vld [vmem:[%s3714_s9 + $0x28] sm:$0xff]  }
  0x85   : > { %2768 = vmatpush3.bf16.msra.mxu0 %v3133_v24  ;;  %v3142_v33 = vld [vmem:[%s3714_s9 + $0x98] sm:$0xff]   ;;  %v3146_v37 = vld [vmem:[%s3714_s9 + $0xa0] sm:$0xff]   ;;  %v3150_v41 = vld [vmem:[%s3714_s9 + $0xa8] sm:$0xff]  }
  0x86   : > { %2832 = vmatpush3.bf16.msra.mxu1 %v3134_v25  ;;  %2769 = vmatprep.subr.bf16.mxu0 %v3135_v26  ;;  %v3151_v42 = vld [vmem:[%s3714_s9 + $0x70] sm:$0xff]   ;;  %v3155_v46 = vld [vmem:[%s3714_s9 + $0x78] sm:$0xff]   ;;  %v3165_v53 = vld [vmem:[%s3714_s9 + $0x140] sm:$0xff]  }
  0x87   : > { %2833 = vmatprep.subr.bf16.mxu1 %v3136_v27  ;;  %v3152_v43 = vld [vmem:[%s3714_s9 + $0xf0] sm:$0xff]   ;;  %v3156_v47 = vld [vmem:[%s3714_s9 + $0xf8] sm:$0xff]   ;;  %v3166_v54 = vld [vmem:[%s3714_s9 + $0x1c0] sm:$0xff]  }
  0x88   : > { %v3153_v44 = vld [vmem:[%s3714_s9 + $0x30] sm:$0xff]   ;;  %v3157_v49 = vld [vmem:[%s3714_s9 + $0x38] sm:$0xff]   ;;  %v3167_v55 = vld [vmem:[%s3714_s9 + $0x100] sm:$0xff]  }
  0x89   : > { %2770 = vmatpush3.bf16.msra.mxu0 %v3137_v28  ;;  %v3154_v45 = vld [vmem:[%s3714_s9 + $0xb0] sm:$0xff]   ;;  %v3158_v51 = vld [vmem:[%s3714_s9 + $0xb8] sm:$0xff]   ;;  %v3168_v56 = vld [vmem:[%s3714_s9 + $0x180] sm:$0xff]  }
  0x8a   : > { %2834 = vmatpush3.bf16.msra.mxu1 %v3138_v29  ;;  %2771 = vmatprep.subr.bf16.mxu0 %v3139_v30  ;;  %v3175_v60 = vld [vmem:[%s3714_s9 + $0x148] sm:$0xff]   ;;  %v3185_v2 = vld [vmem:[%s3714_s9 + $0x150] sm:$0xff]   ;;  %v3184_v5 = vld [vmem:[%s4162_s0 + $0x98] ss:$36 sps:$4 sm:$0xff]  }
  0x8b   : > { %2835 = vmatprep.subr.bf16.mxu1 %v3140_v31  ;;  %v3176_v61 = vld [vmem:[%s3714_s9 + $0x1c8] sm:$0xff]   ;;  %v3183_v3 = vld [vmem:[%s4162_s0 + $0x90] ss:$36 sps:$4 sm:$0xff]   ;;  %v3195_v10 = vld [vmem:[%s3714_s9 + $0x158] sm:$0xff]  }
  0x8c   : > { %v3177_v62 = vld [vmem:[%s3714_s9 + $0x108] sm:$0xff]   ;;  %v3186_v4 = vld [vmem:[%s3714_s9 + $0x1d0] sm:$0xff]   ;;  %v3196_v11 = vld [vmem:[%s3714_s9 + $0x1d8] sm:$0xff]  }
  0x8d   : > { %2772 = vmatpush3.bf16.msra.mxu0 %v3141_v32  ;;  %v3178_v63 = vld [vmem:[%s3714_s9 + $0x188] sm:$0xff]   ;;  %v3187_v6 = vld [vmem:[%s3714_s9 + $0x110] sm:$0xff]   ;;  %v3197_v12 = vld [vmem:[%s3714_s9 + $0x118] sm:$0xff]  }
  0x8e   : > { %2836 = vmatpush3.bf16.msra.mxu1 %v3142_v33  ;;  %2773 = vmatprep.subr.bf16.mxu0 %v3143_v34  ;;  %v3188_v7 = vld [vmem:[%s3714_s9 + $0x190] sm:$0xff]   ;;  %v3191_v9 = vld [vmem:[%s4162_s0 + $0xe4] ss:$36 sps:$4 sm:$0xff]   ;;  %v3198_v13 = vld [vmem:[%s3714_s9 + $0x198] sm:$0xff]  }
  0x8f   : > { %2837 = vmatprep.subr.bf16.mxu1 %v3144_v35  ;;  %v3193_v14 = vld [vmem:[%s4162_s0 + $0xd8] ss:$36 sps:$4 sm:$0xff]   ;;  %v3194_v15 = vld [vmem:[%s4162_s0 + $0xe0] ss:$36 sps:$4 sm:$0xff]   ;;  %v3201_v17 = vld [vmem:[%s4162_s0 + $0x12c] ss:$36 sps:$4 sm:$0xff]  }
  0x90   : > { %v3199_v16 = vld [vmem:[%s4162_s0 + $0x124] ss:$36 sps:$4 sm:$0xff]   ;;  %v3209_v24 = vld [vmem:[%s4162_s0 + $0x16c] ss:$36 sps:$4 sm:$0xff]   ;;  %v3211_v25 = vld [vmem:[%s4162_s0 + $0x174] ss:$36 sps:$4 sm:$0xff]  }
  0x91   : > { %2774 = vmatpush3.bf16.msra.mxu0 %v3145_v36  ;;  %v3205_v18 = vld [vmem:[%s3714_s9 + $0x160] sm:$0xff]   ;;  %v3204_v23 = vld [vmem:[%s4162_s0 + $0x128] ss:$36 sps:$4 sm:$0xff]   ;;  %v3214_v31 = vld [vmem:[%s4162_s0 + $0x170] ss:$36 sps:$4 sm:$0xff]  }
  0x92   : > { %2838 = vmatpush3.bf16.msra.mxu1 %v3146_v37  ;;  %2775 = vmatprep.subr.bf16.mxu0 %v3147_v38  ;;  %v3206_v19 = vld [vmem:[%s3714_s9 + $0x1e0] sm:$0xff]   ;;  %v3215_v26 = vld [vmem:[%s3714_s9 + $0x168] sm:$0xff]   ;;  %v3219_v32 = vld [vmem:[%s4162_s0 + $0x1b4] ss:$36 sps:$4 sm:$0xff]  }
  0x93   : > { %2839 = vmatprep.subr.bf16.mxu1 %v3148_v39  ;;  %v3207_v20 = vld [vmem:[%s3714_s9 + $0x120] sm:$0xff]   ;;  %v3216_v27 = vld [vmem:[%s3714_s9 + $0x1e8] sm:$0xff]   ;;  %v3225_v34 = vld [vmem:[%s3714_s9 + $0x170] sm:$0xff]  }
  0x94   : > { %v3208_v21 = vld [vmem:[%s3714_s9 + $0x1a0] sm:$0xff]   ;;  %v3217_v28 = vld [vmem:[%s3714_s9 + $0x128] sm:$0xff]   ;;  %v3226_v35 = vld [vmem:[%s3714_s9 + $0x1f0] sm:$0xff]  }
  0x95   : > { %2776 = vmatpush3.bf16.msra.mxu0 %v3149_v40  ;;  %v3203_v22 = vld [vmem:[%s4162_s0 + $0x120] ss:$36 sps:$4 sm:$0xff]   ;;  %v3218_v29 = vld [vmem:[%s3714_s9 + $0x1a8] sm:$0xff]   ;;  %v3227_v36 = vld [vmem:[%s3714_s9 + $0x130] sm:$0xff]  }
  0x96   : > { %2840 = vmatpush3.bf16.msra.mxu1 %v3150_v41  ;;  %2777 = vmatprep.subr.bf16.mxu0 %v3151_v42  ;;  %v3213_v30 = vld [vmem:[%s4162_s0 + $0x168] ss:$36 sps:$4 sm:$0xff]   ;;  %v3221_v33 = vld [vmem:[%s4162_s0 + $0x1bc] ss:$36 sps:$4 sm:$0xff]   ;;  %v3228_v37 = vld [vmem:[%s3714_s9 + $0x1b0] sm:$0xff]  }
  0x97   : > { %2841 = vmatprep.subr.bf16.mxu1 %v3152_v43  ;;  %v3223_v38 = vld [vmem:[%s4162_s0 + $0x1b0] ss:$36 sps:$4 sm:$0xff]   ;;  %v3224_v39 = vld [vmem:[%s4162_s0 + $0x1b8] ss:$36 sps:$4 sm:$0xff]   ;;  %v3231_v42 = vld [vmem:[%s4162_s0 + $0x204] ss:$36 sps:$4 sm:$0xff]  }
  0x98   : > { %v3229_v40 = vld [vmem:[%s4162_s0 + $0x1fc] ss:$36 sps:$4 sm:$0xff]  }
  0x99   : > { %2778 = vmatpush3.bf16.msra.mxu0 %v3153_v44  ;;  %v3235_v41 = vld [vmem:[%s3714_s9 + $0x178] sm:$0xff]  }
  0x9a   : > { %2842 = vmatpush3.bf16.msra.mxu1 %v3154_v45  ;;  %2779 = vmatprep.subr.bf16.mxu0 %v3155_v46  ;;  %v3236_v43 = vld [vmem:[%s3714_s9 + $0x1f8] sm:$0xff]   ;;  %v3245_v46 = vld [vmem:[%s3714_s9 + $0x200] sm:$0xff]  }
  0x9b   : > { %2843 = vmatprep.subr.bf16.mxu1 %v3156_v47  ;;  %v3237_v44 = vld [vmem:[%s3714_s9 + $0x138] sm:$0xff]  }
  0x9c   : > { %v3238_v45 = vld [vmem:[%s3714_s9 + $0x1b8] sm:$0xff]  }
  0x9d   : > { %2780 = vmatpush3.bf16.msra.mxu0 %v3157_v49  ;;  %v3233_v47 = vld [vmem:[%s4162_s0 + $0x1f8] ss:$36 sps:$4 sm:$0xff]  }
  0x9e   : > { %2844 = vmatpush3.bf16.msra.mxu1 %v3158_v51  ;;  %2893 = vmatprep.subr.bf16.mxu0 %v3165_v53  ;;  %v3241_v49 = vld [vmem:[%s4162_s0 + $0x14] ss:$36 sps:$4 sm:$0xff]   ;;  %v3246_v53 = vld [vmem:[%s4162_s0 + $0x5c] ss:$36 sps:$4 sm:$0xff]  }
  0x9f   : > { %2957 = vmatprep.subr.bf16.mxu1 %v3166_v54  ;;  %v3239_v51 = vld [vmem:[%s4162_s0 + $0x10] ss:$36 sps:$4 sm:$0xff]   ;;  %v3248_v54 = vld [vmem:[%s4162_s0 + $0x64] ss:$36 sps:$4 sm:$0xff]  }
  0xa0   : > { %1897 = vmatmul.mubr.bf16.vlgmr.msra.gmra.mrb[0].mxu0 %v3159_v48  ;;  %v3234_v48 = vld [vmem:[%s4162_s0 + $0x200] ss:$36 sps:$4 sm:$0xff]  }
  0xa1   : > { %1994 = vmatmul.mubr.bf16.vlgmr.msra.gmra.mrb[0].mxu1 %v3162_v50  ;;  %2894 = vmatpush3.bf16.msra.mxu0 %v3167_v55  ;;  %v3244_v50 = vld [vmem:[%s4162_s0 + $0x1c] ss:$36 sps:$4 sm:$0xff]   ;;  %v3252_v55 = vld [vmem:[%s3714_s9 + $0x208] sm:$0xff]  }
  0xa2   : > { %2958 = vmatpush3.bf16.msra.mxu1 %v3168_v56  ;;  %1904 = vmatprep.mubr.bf16.mxu0 %v3169_v52  ;;  %v3242_v52 = vld [vmem:[%s4162_s0 + $0x18] ss:$36 sps:$4 sm:$0xff]   ;;  %v3259_v56 = vld [vmem:[%s3714_s9 + $0x210] sm:$0xff]  }
  0xa3   : > { %2001 = vmatprep.mubr.bf16.mxu1 %v3171_v57  ;;  %2895 = vmatprep.subr.bf16.mxu0 %v3175_v60  ;;  %v3250_v57 = vld [vmem:[%s4162_s0 + $0x58] ss:$36 sps:$4 sm:$0xff]   ;;  %v3255_v60 = vld [vmem:[%s4162_s0 + $0xac] ss:$36 sps:$4 sm:$0xff]  }
  0xa4   : > { %2959 = vmatprep.subr.bf16.mxu1 %v3176_v61  ;;  %v3266_v61 = vld [vmem:[%s3714_s9 + $0x218] sm:$0xff]  }
  0xa5   : > { %2896 = vmatpush3.bf16.msra.mxu0 %v3177_v62  ;;  %v3257_v62 = vld [vmem:[%s4162_s0 + $0xa0] ss:$36 sps:$4 sm:$0xff]  }
  0xa6   : > { %2960 = vmatpush3.bf16.msra.mxu1 %v3178_v63  ;;  %2897 = vmatprep.subr.bf16.mxu0 %v3185_v2  ;;  %v3273_v63 = vld [vmem:[%s3714_s9 + $0x220] sm:$0xff]   ;;  %v3262_v2 = vld [vmem:[%s4162_s0 + $0xf4] ss:$36 sps:$4 sm:$0xff]  }
  0xa7   : > { %2961 = vmatprep.subr.bf16.mxu1 %v3186_v4  ;;  %v3287_v4 = vld [vmem:[%s3714_s9 + $0x230] sm:$0xff]  }
  0xa8   : > { %1905 = vmatmul.mubr.bf16.gmra.mrb[4].mxu0 %v3173_v58  ;;  %v3251_v58 = vld [vmem:[%s4162_s0 + $0x60] ss:$36 sps:$4 sm:$0xff]  }
  0xa9   : > { %2002 = vmatmul.mubr.bf16.gmra.mrb[4].mxu1 %v3174_v59  ;;  %1912 = vmatprep.mubr.bf16.mxu0 %v3179_v0  ;;  %v3253_v59 = vld [vmem:[%s4162_s0 + $0xa4] ss:$36 sps:$4 sm:$0xff]  }
  0xaa   : > { %2009 = vmatprep.mubr.bf16.mxu1 %v3181_v1  ;;  %2898 = vmatpush3.bf16.msra.mxu0 %v3187_v6  ;;  %v3258_v0 = vld [vmem:[%s4162_s0 + $0xa8] ss:$36 sps:$4 sm:$0xff]   ;;  %v3265_v6 = vld [vmem:[%s4162_s0 + $0xf0] ss:$36 sps:$4 sm:$0xff]  }
  0xab   : > { %2962 = vmatpush3.bf16.msra.mxu1 %v3188_v7  ;;  %2899 = vmatprep.subr.bf16.mxu0 %v3195_v10  ;;  %v3260_v1 = vld [vmem:[%s4162_s0 + $0xec] ss:$36 sps:$4 sm:$0xff]   ;;  %v3267_v7 = vld [vmem:[%s4162_s0 + $0x134] ss:$36 sps:$4 sm:$0xff]  }
  0xac   : > { %2963 = vmatprep.subr.bf16.mxu1 %v3196_v11  ;;  %v3271_v10 = vld [vmem:[%s4162_s0 + $0x130] ss:$36 sps:$4 sm:$0xff]   ;;  %v3272_v11 = vld [vmem:[%s4162_s0 + $0x138] ss:$36 sps:$4 sm:$0xff]  }
  0xae   : > { %2900 = vmatpush3.bf16.msra.mxu0 %v3197_v12  ;;  %v3274_v12 = vld [vmem:[%s4162_s0 + $0x17c] ss:$36 sps:$4 sm:$0xff]  }
  0xaf   : > { %2964 = vmatpush3.bf16.msra.mxu1 %v3198_v13  ;;  %2901 = vmatprep.subr.bf16.mxu0 %v3205_v18  ;;  %v3276_v13 = vld [vmem:[%s4162_s0 + $0x184] ss:$36 sps:$4 sm:$0xff]  }
  0xb0   : > { %1913 = vmatmul.mubr.bf16.gmra.mrb[8].mxu0 %v3183_v3  ;;  %2965 = vmatprep.subr.bf16.mxu1 %v3206_v19  ;;  %v3280_v3 = vld [vmem:[%s3714_s9 + $0x228] sm:$0xff]   ;;  %v3285_v18 = vld [vmem:[%s4162_s0 + $0x1c0] ss:$36 sps:$4 sm:$0xff]  }
  0xb1   : > { %2010 = vmatmul.mubr.bf16.gmra.mrb[8].mxu1 %v3184_v5  ;;  %1920 = vmatprep.mubr.bf16.mxu0 %v3189_v8  ;;  %v3264_v5 = vld [vmem:[%s4162_s0 + $0xe8] ss:$36 sps:$4 sm:$0xff]   ;;  %v3269_v8 = vld [vmem:[%s4162_s0 + $0x13c] ss:$36 sps:$4 sm:$0xff]  }
  0xb2   : > { %2017 = vmatprep.mubr.bf16.mxu1 %v3191_v9  ;;  %2902 = vmatpush3.bf16.msra.mxu0 %v3207_v20  ;;  %v3294_v9 = vld [vmem:[%s3714_s9 + $0x238] sm:$0xff]   ;;  %v3286_v19 = vld [vmem:[%s4162_s0 + $0x1c8] ss:$36 sps:$4 sm:$0xff]  }
  0xb3   : > { %2966 = vmatpush3.bf16.msra.mxu1 %v3208_v21  ;;  %2903 = vmatprep.subr.bf16.mxu0 %v3215_v26  ;;  %v3288_v20 = vld [vmem:[%s4162_s0 + $0x20c] ss:$36 sps:$4 sm:$0xff]   ;;  %v3290_v21 = vld [vmem:[%s4162_s0 + $0x214] ss:$36 sps:$4 sm:$0xff]  }
  0xb4   : > { %2967 = vmatprep.subr.bf16.mxu1 %v3216_v27  ;;  %v3297_v26 = vld [vmem:[%s4162_s0 + $0x68] ss:$36 sps:$4 sm:$0xff]  }
  0xb5   : > { %v3298_v27 = vld [vmem:[%s4162_s0 + $0x188] ss:$36 sps:$4 sm:$0xff]  }
  0xb6   : > { %2904 = vmatpush3.bf16.msra.mxu0 %v3217_v28  ;;  %v3299_v28 = vld [vmem:[%s4162_s0 + $0xb0] ss:$36 sps:$4 sm:$0xff]  }
  0xb7   : > { %2968 = vmatpush3.bf16.msra.mxu1 %v3218_v29  ;;  %2905 = vmatprep.subr.bf16.mxu0 %v3225_v34  ;;  %v3300_v29 = vld [vmem:[%s4162_s0 + $0x1d0] ss:$36 sps:$4 sm:$0xff]   ;;  %v4003_v34 = vld [vmem:[%s830_s20] ss:$0 sm:$0xff] }
  0xb8   : > { %1921 = vmatmul.mubr.bf16.gmra.mrb[12].mxu0 %v3193_v14  ;;  %2969 = vmatprep.subr.bf16.mxu1 %v3226_v35  ;;  %v3278_v14 = vld [vmem:[%s4162_s0 + $0x178] ss:$36 sps:$4 sm:$0xff]  }
  0xb9   : > { %2018 = vmatmul.mubr.bf16.gmra.mrb[12].mxu1 %v3194_v15  ;;  %1928 = vmatprep.mubr.bf16.mxu0 %v3199_v16  ;;  %v3279_v15 = vld [vmem:[%s4162_s0 + $0x180] ss:$36 sps:$4 sm:$0xff]  }
  0xba   : > { %2025 = vmatprep.mubr.bf16.mxu1 %v3201_v17  ;;  %2906 = vmatpush3.bf16.msra.mxu0 %v3227_v36  ;;  %v3281_v16 = vld [vmem:[%s4162_s0 + $0x1c4] ss:$36 sps:$4 sm:$0xff]   ;;  %v3283_v17 = vld [vmem:[%s4162_s0 + $0x1cc] ss:$36 sps:$4 sm:$0xff]  }
  0xbb   : > { %2970 = vmatpush3.bf16.msra.mxu1 %v3228_v37  ;;  %2907 = vmatprep.subr.bf16.mxu0 %v3235_v41 }
  0xbc   : > { %2971 = vmatprep.subr.bf16.mxu1 %v3236_v43 }
  0xbe   : > { %2908 = vmatpush3.bf16.msra.mxu0 %v3237_v44 }
  0xbf   : > { %2972 = vmatpush3.bf16.msra.mxu1 %v3238_v45  ;;  %3037 = vmatprep.subr.bf16.mxu0 %v3245_v46 }
  0xc0   : > { %1929 = vmatmul.mubr.bf16.gmra.mrb[16].mxu0 %v3203_v22  ;;  %3069 = vmatprep.subr.bf16.mxu1 %v3245_v46  ;;  %v3292_v22 = vld [vmem:[%s4162_s0 + $0x208] ss:$36 sps:$4 sm:$0xff]  }
  0xc1   : > { %2026 = vmatmul.mubr.bf16.gmra.mrb[16].mxu1 %v3204_v23  ;;  %1936 = vmatprep.mubr.bf16.mxu0 %v3209_v24  ;;  %v3293_v23 = vld [vmem:[%s4162_s0 + $0x210] ss:$36 sps:$4 sm:$0xff]   ;;  %v3295_v24 = vld [vmem:[%s4162_s0 + $0x20] ss:$36 sps:$4 sm:$0xff]  }
  0xc2   : > { %2033 = vmatprep.mubr.bf16.mxu1 %v3211_v25  ;;  %v3296_v25 = vld [vmem:[%s4162_s0 + $0x140] ss:$36 sps:$4 sm:$0xff]  }
  0xc8   : > { %1937 = vmatmul.mubr.bf16.gmra.mrb[20].mxu0 %v3213_v30  ;;  %v3301_v30 = vld [vmem:[%s4162_s0 + $0xf8] ss:$36 sps:$4 sm:$0xff]  }
  0xc9   : > { %2034 = vmatmul.mubr.bf16.gmra.mrb[20].mxu1 %v3214_v31  ;;  %1944 = vmatprep.mubr.bf16.mxu0 %v3219_v32  ;;  %v3302_v31 = vld [vmem:[%s4162_s0 + $0x218] ss:$36 sps:$4 sm:$0xff]  }
  0xca   : > { %2041 = vmatprep.mubr.bf16.mxu1 %v3221_v33 }
  0xd0   : > { %1945 = vmatmul.mubr.bf16.gmra.mrb[24].mxu0 %v3223_v38 }
  0xd1   : > { %2042 = vmatmul.mubr.bf16.gmra.mrb[24].mxu1 %v3224_v39  ;;  %1952 = vmatprep.mubr.bf16.mxu0 %v3229_v40 }
  0xd2   : > { %2049 = vmatprep.mubr.bf16.mxu1 %v3231_v42 }
  0xd8   : > { %1953 = vmatmul.mubr.bf16.gmra.mrb[28].mxu0 %v3233_v47 }
  0xd9   : > { %2050 = vmatmul.mubr.bf16.gmra.mrb[28].mxu1 %v3234_v48  ;;  %2090 = vmatprep.mubr.bf16.mxu0 %v3241_v49 }
  0xda   : > { %2187 = vmatprep.mubr.bf16.mxu1 %v3244_v50 }
  0xe0   : > { %2091 = vmatmul.mubr.bf16.vlgmr.msra.gmra.mrb[32].mxu0 %v3239_v51 }
  0xe1   : > { %2188 = vmatmul.mubr.bf16.vlgmr.msra.gmra.mrb[32].mxu1 %v3242_v52  ;;  %3038 = vmatpush3.bf16.msra.mxu0 %v3245_v46 }
  0xe2   : > { %3077 = vmatpush3.bf16.msra.mxu1 %v3245_v46  ;;  %2098 = vmatprep.mubr.bf16.mxu0 %v3246_v53 }
  0xe3   : > { %2195 = vmatprep.mubr.bf16.mxu1 %v3248_v54  ;;  %3039 = vmatprep.subr.bf16.mxu0 %v3252_v55 }
  0xe4   : > { %3070 = vmatprep.subr.bf16.mxu1 %v3252_v55 }
  0xe5   : > { %3040 = vmatpush3.bf16.msra.mxu0 %v3252_v55 }
  0xe6   : > { %3078 = vmatpush3.bf16.msra.mxu1 %v3252_v55  ;;  %3041 = vmatprep.subr.bf16.mxu0 %v3259_v56 }
  0xe7   : > { %3071 = vmatprep.subr.bf16.mxu1 %v3259_v56 }
  0xe8   : > { %2099 = vmatmul.mubr.bf16.gmra.mrb[36].mxu0 %v3250_v57 }
  0xe9   : > { %2196 = vmatmul.mubr.bf16.gmra.mrb[36].mxu1 %v3251_v58  ;;  %2106 = vmatprep.mubr.bf16.mxu0 %v3253_v59 }
  0xea   : > { %2203 = vmatprep.mubr.bf16.mxu1 %v3255_v60  ;;  %3042 = vmatpush3.bf16.msra.mxu0 %v3259_v56 }
  0xeb   : > { %3079 = vmatpush3.bf16.msra.mxu1 %v3259_v56  ;;  %3043 = vmatprep.subr.bf16.mxu0 %v3266_v61 }
  0xec   : > { %3072 = vmatprep.subr.bf16.mxu1 %v3266_v61 }
  0xee   : > { %3044 = vmatpush3.bf16.msra.mxu0 %v3266_v61 }
  0xef   : > { %3080 = vmatpush3.bf16.msra.mxu1 %v3266_v61  ;;  %3045 = vmatprep.subr.bf16.mxu0 %v3273_v63 }
  0xf0   : > { %2107 = vmatmul.mubr.bf16.gmra.mrb[40].mxu0 %v3257_v62  ;;  %3073 = vmatprep.subr.bf16.mxu1 %v3273_v63 }
  0xf1   : > { %2204 = vmatmul.mubr.bf16.gmra.mrb[40].mxu1 %v3258_v0  ;;  %2114 = vmatprep.mubr.bf16.mxu0 %v3260_v1 }
  0xf2   : > { %2211 = vmatprep.mubr.bf16.mxu1 %v3262_v2  ;;  %3046 = vmatpush3.bf16.msra.mxu0 %v3273_v63 }
  0xf3   : > { %3081 = vmatpush3.bf16.msra.mxu1 %v3273_v63  ;;  %3047 = vmatprep.subr.bf16.mxu0 %v3280_v3 }
  0xf4   : > { %3074 = vmatprep.subr.bf16.mxu1 %v3280_v3 }
  0xf6   : > { %3048 = vmatpush3.bf16.msra.mxu0 %v3280_v3 }
  0xf7   : > { %3082 = vmatpush3.bf16.msra.mxu1 %v3280_v3  ;;  %3049 = vmatprep.subr.bf16.mxu0 %v3287_v4 }
  0xf8   : > { %2115 = vmatmul.mubr.bf16.gmra.mrb[44].mxu0 %v3264_v5  ;;  %3075 = vmatprep.subr.bf16.mxu1 %v3287_v4 }
  0xf9   : > { %2212 = vmatmul.mubr.bf16.gmra.mrb[44].mxu1 %v3265_v6  ;;  %2122 = vmatprep.mubr.bf16.mxu0 %v3267_v7 }
  0xfa   : > { %2219 = vmatprep.mubr.bf16.mxu1 %v3269_v8  ;;  %3050 = vmatpush3.bf16.msra.mxu0 %v3287_v4 }
  0xfb   : > { %3083 = vmatpush3.bf16.msra.mxu1 %v3287_v4  ;;  %3051 = vmatprep.subr.bf16.mxu0 %v3294_v9 }
  0xfc   : > { %3076 = vmatprep.subr.bf16.mxu1 %v3294_v9 }
  0xfe   : > { %3052 = vmatpush3.bf16.msra.mxu0 %v3294_v9 }
  0xff   : > { %3084 = vmatpush3.bf16.msra.mxu1 %v3294_v9 }
 0x100   : > { %2123 = vmatmul.mubr.bf16.gmra.mrb[48].mxu0 %v3271_v10 }
 0x101   : > { %2220 = vmatmul.mubr.bf16.gmra.mrb[48].mxu1 %v3272_v11  ;;  %2130 = vmatprep.mubr.bf16.mxu0 %v3274_v12 }
 0x102   : > { %2227 = vmatprep.mubr.bf16.mxu1 %v3276_v13 }
 0x108   : > { %2131 = vmatmul.mubr.bf16.gmra.mrb[52].mxu0 %v3278_v14 }
 0x109   : > { %2228 = vmatmul.mubr.bf16.gmra.mrb[52].mxu1 %v3279_v15  ;;  %2138 = vmatprep.mubr.bf16.mxu0 %v3281_v16 }
 0x10a   : > { %2235 = vmatprep.mubr.bf16.mxu1 %v3283_v17 }
 0x110   : > { %2139 = vmatmul.mubr.bf16.gmra.mrb[56].mxu0 %v3285_v18 }
 0x111   : > { %2236 = vmatmul.mubr.bf16.gmra.mrb[56].mxu1 %v3286_v19  ;;  %2146 = vmatprep.mubr.bf16.mxu0 %v3288_v20 }
 0x112   : > { %2243 = vmatprep.mubr.bf16.mxu1 %v3290_v21 }
 0x118   : > { %2147 = vmatmul.mubr.bf16.gmra.mrb[60].mxu0 %v3292_v22 }
 0x119   : > { %2244 = vmatmul.mubr.bf16.gmra.mrb[60].mxu1 %v3293_v23  ;;  %3053 = vmatprep.mubr.bf16.mxu0 %v3295_v24 }
 0x11a   : > { %3061 = vmatprep.mubr.bf16.mxu1 %v3296_v25 }
 0x120   : > { %3054 = vmatmul.mubr.bf16.vlgmr.msra.gmra.mrb[64].mxu0 %v3297_v26 }
 0x121   : > { %3062 = vmatmul.mubr.bf16.vlgmr.msra.gmra.mrb[64].mxu1 %v3298_v27  ;;  %3057 = vmatprep.mubr.bf16.mxu0 %v3299_v28 }
 0x122   : > { %3065 = vmatprep.mubr.bf16.mxu1 %v3300_v29 }
 0x128   : > { %3058 = vmatmul.mubr.bf16.gmra.mrb[68].mxu0 %v3301_v30 }
 0x129   : > { %3066 = vmatmul.mubr.bf16.gmra.mrb[68].mxu1 %v3302_v31 }
 0x173   : > { %v2781_v32 = vpop.f32.mrb[0].mxu0 }
 0x174   : > { %v2845_v33 = vpop.f32.mrb[0].mxu1  ;;  %v2782_v35 = vpop.f32.mrb[1].mxu0 }
 0x175   : > { %v2783_v36 = vadd.f32 %v2782_v35, %v2781_v32  ;;  %v2846_v37 = vpop.f32.mrb[1].mxu1  ;;  %v2784_v38 = vpop.f32.mrb[2].mxu0 }
 0x176   : > { %v2847_v39 = vadd.f32 %v2846_v37, %v2845_v33  ;;  %v2848_v40 = vpop.f32.mrb[2].mxu1  ;;  %v2785_v41 = vpop.f32.mrb[3].mxu0 }
 0x177   : > { %v1899_v42 = vadd.f32 %v2783_v36, %v4003_v34  ;;  %v2786_v43 = vadd.f32 %v2785_v41, %v2784_v38  ;;  %v2849_v44 = vpop.f32.mrb[3].mxu1 }
 0x178   : > { %v2850_v45 = vadd.f32 %v2849_v44, %v2848_v40 }
 0x179   : > { %v4006_v46 = vadd.f32 %v2847_v39, %v1899_v42  ;;  %v1902_v47 = vadd.f32 %v2786_v43, %v4003_v34 }
 0x17b   : > { %v4009_v48 = vadd.f32 %v2850_v45, %v1902_v47  ;;  %v2787_v49 = vpop.f32.mrb[4].mxu0 }
 0x17c   : > { %v2851_v50 = vpop.f32.mrb[4].mxu1  ;;  %v2788_v51 = vpop.f32.mrb[5].mxu0 }
 0x17d   : > { %v2789_v52 = vadd.f32 %v2788_v51, %v2787_v49  ;;  %v2852_v53 = vpop.f32.mrb[5].mxu1  ;;  %v2790_v54 = vpop.f32.mrb[6].mxu0 }
 0x17e   : > { %v2853_v55 = vadd.f32 %v2852_v53, %v2851_v50  ;;  %v2854_v56 = vpop.f32.mrb[6].mxu1  ;;  %v2791_v57 = vpop.f32.mrb[7].mxu0 }
 0x17f   : > { %v1907_v58 = vadd.f32 %v2789_v52, %v4003_v34  ;;  %v2792_v59 = vadd.f32 %v2791_v57, %v2790_v54  ;;  %v2855_v60 = vpop.f32.mrb[7].mxu1 }
 0x180   : > { %v2856_v61 = vadd.f32 %v2855_v60, %v2854_v56 }
 0x181   : > { %v4012_v62 = vadd.f32 %v2853_v55, %v1907_v58  ;;  %v1910_v63 = vadd.f32 %v2792_v59, %v4003_v34 }
 0x183   : > { %v4015_v0 = vadd.f32 %v2856_v61, %v1910_v63  ;;  %v2793_v1 = vpop.f32.mrb[8].mxu0 }
 0x184   : > { %v2857_v2 = vpop.f32.mrb[8].mxu1  ;;  %v2794_v3 = vpop.f32.mrb[9].mxu0 }
 0x185   : > { %v2795_v4 = vadd.f32 %v2794_v3, %v2793_v1  ;;  %v2858_v5 = vpop.f32.mrb[9].mxu1  ;;  %v2796_v6 = vpop.f32.mrb[10].mxu0 }
 0x186   : > { %v2859_v7 = vadd.f32 %v2858_v5, %v2857_v2  ;;  %v2860_v8 = vpop.f32.mrb[10].mxu1  ;;  %v2797_v9 = vpop.f32.mrb[11].mxu0 }
 0x187   : > { %v1915_v10 = vadd.f32 %v2795_v4, %v4003_v34  ;;  %v2798_v11 = vadd.f32 %v2797_v9, %v2796_v6  ;;  %v2861_v12 = vpop.f32.mrb[11].mxu1 }
 0x188   : > { %v2862_v13 = vadd.f32 %v2861_v12, %v2860_v8 }
 0x189   : > { %v4018_v14 = vadd.f32 %v2859_v7, %v1915_v10  ;;  %v1918_v15 = vadd.f32 %v2798_v11, %v4003_v34 }
 0x18b   : > { %v4021_v16 = vadd.f32 %v2862_v13, %v1918_v15  ;;  %v2799_v17 = vpop.f32.mrb[12].mxu0 }
 0x18c   : > { %v2863_v18 = vpop.f32.mrb[12].mxu1  ;;  %v2800_v19 = vpop.f32.mrb[13].mxu0 }
 0x18d   : > { %v2801_v20 = vadd.f32 %v2800_v19, %v2799_v17  ;;  %v2864_v21 = vpop.f32.mrb[13].mxu1  ;;  %v2802_v22 = vpop.f32.mrb[14].mxu0 }
 0x18e   : > { %v2865_v23 = vadd.f32 %v2864_v21, %v2863_v18  ;;  %v2866_v24 = vpop.f32.mrb[14].mxu1  ;;  %v2803_v25 = vpop.f32.mrb[15].mxu0 }
 0x18f   : > { %v1923_v26 = vadd.f32 %v2801_v20, %v4003_v34  ;;  %v2804_v27 = vadd.f32 %v2803_v25, %v2802_v22  ;;  %v2867_v28 = vpop.f32.mrb[15].mxu1 }
 0x190   : > { %v2868_v29 = vadd.f32 %v2867_v28, %v2866_v24 }
 0x191   : > { %v4024_v30 = vadd.f32 %v2865_v23, %v1923_v26  ;;  %v1926_v31 = vadd.f32 %v2804_v27, %v4003_v34 }
 0x193   : > { %v4027_v32 = vadd.f32 %v2868_v29, %v1926_v31  ;;  %v2805_v33 = vpop.f32.mrb[16].mxu0 }
 0x194   : > { %v2869_v35 = vpop.f32.mrb[16].mxu1  ;;  %v2806_v36 = vpop.f32.mrb[17].mxu0 }
 0x195   : > { %v2807_v37 = vadd.f32 %v2806_v36, %v2805_v33  ;;  %v2870_v38 = vpop.f32.mrb[17].mxu1  ;;  %v2808_v39 = vpop.f32.mrb[18].mxu0 }
 0x196   : > { %v2871_v40 = vadd.f32 %v2870_v38, %v2869_v35  ;;  %v2872_v41 = vpop.f32.mrb[18].mxu1  ;;  %v2809_v42 = vpop.f32.mrb[19].mxu0 }
 0x197   : > { %v1931_v43 = vadd.f32 %v2807_v37, %v4003_v34  ;;  %v2810_v44 = vadd.f32 %v2809_v42, %v2808_v39  ;;  %v2873_v45 = vpop.f32.mrb[19].mxu1 }
 0x198   : > { %v2874_v47 = vadd.f32 %v2873_v45, %v2872_v41 }
 0x199   : > { %v4030_v49 = vadd.f32 %v2871_v40, %v1931_v43  ;;  %v1934_v50 = vadd.f32 %v2810_v44, %v4003_v34 }
 0x19b   : > { %v4033_v51 = vadd.f32 %v2874_v47, %v1934_v50  ;;  %v2811_v52 = vpop.f32.mrb[20].mxu0 }
 0x19c   : > { %v2875_v53 = vpop.f32.mrb[20].mxu1  ;;  %v2812_v54 = vpop.f32.mrb[21].mxu0 }
 0x19d   : > { %v2813_v55 = vadd.f32 %v2812_v54, %v2811_v52  ;;  %v2876_v56 = vpop.f32.mrb[21].mxu1  ;;  %v2814_v57 = vpop.f32.mrb[22].mxu0 }
 0x19e   : > { %v2877_v58 = vadd.f32 %v2876_v56, %v2875_v53  ;;  %v2878_v59 = vpop.f32.mrb[22].mxu1  ;;  %v2815_v60 = vpop.f32.mrb[23].mxu0 }
 0x19f   : > { %v1939_v61 = vadd.f32 %v2813_v55, %v4003_v34  ;;  %v2816_v63 = vadd.f32 %v2815_v60, %v2814_v57  ;;  %v2879_v1 = vpop.f32.mrb[23].mxu1 }
 0x1a0   : > { %v2880_v2 = vadd.f32 %v2879_v1, %v2878_v59 }
 0x1a1   : > { %v4036_v3 = vadd.f32 %v2877_v58, %v1939_v61  ;;  %v1942_v4 = vadd.f32 %v2816_v63, %v4003_v34 }
 0x1a3   : > { %v4039_v5 = vadd.f32 %v2880_v2, %v1942_v4  ;;  %v2817_v6 = vpop.f32.mrb[24].mxu0 }
 0x1a4   : > { %v2881_v7 = vpop.f32.mrb[24].mxu1  ;;  %v2818_v8 = vpop.f32.mrb[25].mxu0 }
 0x1a5   : > { %v2819_v9 = vadd.f32 %v2818_v8, %v2817_v6  ;;  %v2882_v10 = vpop.f32.mrb[25].mxu1  ;;  %v2820_v11 = vpop.f32.mrb[26].mxu0 }
 0x1a6   : > { %v2883_v12 = vadd.f32 %v2882_v10, %v2881_v7  ;;  %v2884_v13 = vpop.f32.mrb[26].mxu1  ;;  %v2821_v15 = vpop.f32.mrb[27].mxu0 }
 0x1a7   : > { %v1947_v17 = vadd.f32 %v2819_v9, %v4003_v34  ;;  %v2822_v18 = vadd.f32 %v2821_v15, %v2820_v11  ;;  %v2885_v19 = vpop.f32.mrb[27].mxu1 }
 0x1a8   : > { %v2886_v20 = vadd.f32 %v2885_v19, %v2884_v13 }
 0x1a9   : > { %v4042_v21 = vadd.f32 %v2883_v12, %v1947_v17  ;;  %v1950_v22 = vadd.f32 %v2822_v18, %v4003_v34 }
 0x1ab   : > { %v4045_v23 = vadd.f32 %v2886_v20, %v1950_v22  ;;  %v2823_v24 = vpop.f32.mrb[28].mxu0 }
 0x1ac   : > { %v2887_v25 = vpop.f32.mrb[28].mxu1  ;;  %v2824_v26 = vpop.f32.mrb[29].mxu0 }
 0x1ad   : > { %v2825_v27 = vadd.f32 %v2824_v26, %v2823_v24  ;;  %v2888_v28 = vpop.f32.mrb[29].mxu1  ;;  %v2826_v29 = vpop.f32.mrb[30].mxu0 }
 0x1ae   : > { %v2889_v31 = vadd.f32 %v2888_v28, %v2887_v25  ;;  %v2890_v33 = vpop.f32.mrb[30].mxu1  ;;  %v2827_v35 = vpop.f32.mrb[31].mxu0 }
 0x1af   : > { %v1955_v36 = vadd.f32 %v2825_v27, %v4003_v34  ;;  %v2828_v37 = vadd.f32 %v2827_v35, %v2826_v29  ;;  %v2891_v38 = vpop.f32.mrb[31].mxu1 }
 0x1b0   : > { %v2892_v39 = vadd.f32 %v2891_v38, %v2890_v33 }
 0x1b1   : > { %v4048_v40 = vadd.f32 %v2889_v31, %v1955_v36  ;;  %v1958_v41 = vadd.f32 %v2828_v37, %v4003_v34 }
 0x1b3   : > { %v4051_v42 = vadd.f32 %v2892_v39, %v1958_v41  ;;  %v2909_v43 = vpop.f32.mrb[32].mxu0 }
 0x1b4   : > { %v2973_v44 = vpop.f32.mrb[32].mxu1  ;;  %v2910_v45 = vpop.f32.mrb[33].mxu0 }
 0x1b5   : > { %v2911_v47 = vadd.f32 %v2910_v45, %v2909_v43  ;;  %v2974_v50 = vpop.f32.mrb[33].mxu1  ;;  %v2912_v52 = vpop.f32.mrb[34].mxu0 }
 0x1b6   : > { %v2975_v53 = vadd.f32 %v2974_v50, %v2973_v44  ;;  %v2976_v54 = vpop.f32.mrb[34].mxu1  ;;  %v2913_v55 = vpop.f32.mrb[35].mxu0 }
 0x1b7   : > { %v2093_v56 = vadd.f32 %v2911_v47, %v4006_v46  ;;  %v2914_v57 = vadd.f32 %v2913_v55, %v2912_v52  ;;  %v2977_v58 = vpop.f32.mrb[35].mxu1 }
 0x1b8   : > { %v2978_v59 = vadd.f32 %v2977_v58, %v2976_v54 }
 0x1b9   : > { %v2096_v60 = vadd.f32 %v2914_v57, %v4009_v48  ;;  %v4055_v61 = vadd.f32 %v2975_v53, %v2093_v56 }
 0x1bb   : > { %v2915_v34 = vpop.f32.mrb[36].mxu0  ;;  %v4057_v63 = vadd.f32 %v2978_v59, %v2096_v60 }
 0x1bc   : > { %v2979_v1 = vpop.f32.mrb[36].mxu1  ;;  %v2916_v2 = vpop.f32.mrb[37].mxu0 }
 0x1bd   : > { %v2917_v4 = vadd.f32 %v2916_v2, %v2915_v34  ;;  %v2980_v6 = vpop.f32.mrb[37].mxu1  ;;  %v2918_v7 = vpop.f32.mrb[38].mxu0 }
 0x1be   : > { %v2981_v8 = vadd.f32 %v2980_v6, %v2979_v1  ;;  %v2982_v9 = vpop.f32.mrb[38].mxu1  ;;  %v2919_v10 = vpop.f32.mrb[39].mxu0 }
 0x1bf   : > { %v2101_v46 = vadd.f32 %v2917_v4, %v4012_v62  ;;  %v2920_v11 = vadd.f32 %v2919_v10, %v2918_v7  ;;  %v2983_v12 = vpop.f32.mrb[39].mxu1 }
 0x1c0   : > { %v2984_v13 = vadd.f32 %v2983_v12, %v2982_v9 }
 0x1c1   : > { %v2104_v48 = vadd.f32 %v2920_v11, %v4015_v0  ;;  %v4061_v15 = vadd.f32 %v2981_v8, %v2101_v46 }
 0x1c3   : > { %v2921_v17 = vpop.f32.mrb[40].mxu0  ;;  %v4063_v18 = vadd.f32 %v2984_v13, %v2104_v48 }
 0x1c4   : > { %v2985_v19 = vpop.f32.mrb[40].mxu1  ;;  %v2922_v20 = vpop.f32.mrb[41].mxu0 }
 0x1c5   : > { %v2923_v22 = vadd.f32 %v2922_v20, %v2921_v17  ;;  %v2986_v24 = vpop.f32.mrb[41].mxu1  ;;  %v2924_v25 = vpop.f32.mrb[42].mxu0 }
 0x1c6   : > { %v2987_v26 = vadd.f32 %v2986_v24, %v2985_v19  ;;  %v2988_v27 = vpop.f32.mrb[42].mxu1  ;;  %v2925_v28 = vpop.f32.mrb[43].mxu0 }
 0x1c7   : > { %v2109_v62 = vadd.f32 %v2923_v22, %v4018_v14  ;;  %v2926_v29 = vadd.f32 %v2925_v28, %v2924_v25  ;;  %v2989_v31 = vpop.f32.mrb[43].mxu1 }
 0x1c8   : > { %v2990_v33 = vadd.f32 %v2989_v31, %v2988_v27 }
 0x1c9   : > { %v2112_v0 = vadd.f32 %v2926_v29, %v4021_v16  ;;  %v4067_v35 = vadd.f32 %v2987_v26, %v2109_v62 }
 0x1cb   : > { %v2927_v36 = vpop.f32.mrb[44].mxu0  ;;  %v4069_v37 = vadd.f32 %v2990_v33, %v2112_v0 }
 0x1cc   : > { %v2991_v38 = vpop.f32.mrb[44].mxu1  ;;  %v2928_v39 = vpop.f32.mrb[45].mxu0 }
 0x1cd   : > { %v2929_v41 = vadd.f32 %v2928_v39, %v2927_v36  ;;  %v2992_v43 = vpop.f32.mrb[45].mxu1  ;;  %v2930_v44 = vpop.f32.mrb[46].mxu0 }
 0x1ce   : > { %v2993_v45 = vadd.f32 %v2992_v43, %v2991_v38  ;;  %v2994_v47 = vpop.f32.mrb[46].mxu1  ;;  %v2931_v50 = vpop.f32.mrb[47].mxu0 }
 0x1cf   : > { %v2117_v14 = vadd.f32 %v2929_v41, %v4024_v30  ;;  %v2932_v52 = vadd.f32 %v2931_v50, %v2930_v44  ;;  %v2995_v53 = vpop.f32.mrb[47].mxu1 }
 0x1d0   : > { %v2996_v54 = vadd.f32 %v2995_v53, %v2994_v47 }
 0x1d1   : > { %v2120_v16 = vadd.f32 %v2932_v52, %v4027_v32  ;;  %v4073_v55 = vadd.f32 %v2993_v45, %v2117_v14 }
 0x1d3   : > { %v2933_v56 = vpop.f32.mrb[48].mxu0  ;;  %v4075_v57 = vadd.f32 %v2996_v54, %v2120_v16 }
 0x1d4   : > { %v2997_v58 = vpop.f32.mrb[48].mxu1  ;;  %v2934_v59 = vpop.f32.mrb[49].mxu0 }
 0x1d5   : > { %v2935_v60 = vadd.f32 %v2934_v59, %v2933_v56  ;;  %v2998_v34 = vpop.f32.mrb[49].mxu1  ;;  %v2936_v1 = vpop.f32.mrb[50].mxu0 }
 0x1d6   : > { %v2999_v2 = vadd.f32 %v2998_v34, %v2997_v58  ;;  %v3000_v4 = vpop.f32.mrb[50].mxu1  ;;  %v2937_v6 = vpop.f32.mrb[51].mxu0 }
 0x1d7   : > { %v2125_v30 = vadd.f32 %v2935_v60, %v4030_v49  ;;  %v2938_v7 = vadd.f32 %v2937_v6, %v2936_v1  ;;  %v3001_v8 = vpop.f32.mrb[51].mxu1 }
 0x1d8   : > { %v3002_v9 = vadd.f32 %v3001_v8, %v3000_v4 }
 0x1d9   : > { %v2128_v32 = vadd.f32 %v2938_v7, %v4033_v51  ;;  %v2222_v10 = vadd.f32 %v2999_v2, %v2125_v30 }
 0x1db   : > { %v2939_v46 = vpop.f32.mrb[52].mxu0  ;;  %v4079_v11 = vadd.f32 %v3002_v9, %v2128_v32 }
 0x1dc   : > { %v3003_v12 = vpop.f32.mrb[52].mxu1  ;;  %v2940_v13 = vpop.f32.mrb[53].mxu0 }
 0x1dd   : > { %v2941_v48 = vadd.f32 %v2940_v13, %v2939_v46  ;;  %v3004_v17 = vpop.f32.mrb[53].mxu1  ;;  %v2942_v19 = vpop.f32.mrb[54].mxu0 }
 0x1de   : > { %v3005_v20 = vadd.f32 %v3004_v17, %v3003_v12  ;;  %v3006_v22 = vpop.f32.mrb[54].mxu1  ;;  %v2943_v24 = vpop.f32.mrb[55].mxu0 }
 0x1df   : > { %v2133_v25 = vadd.f32 %v2941_v48, %v4036_v3  ;;  %v2944_v49 = vadd.f32 %v2943_v24, %v2942_v19  ;;  %v3007_v26 = vpop.f32.mrb[55].mxu1 }
 0x1e0   : > { %v3008_v27 = vadd.f32 %v3007_v26, %v3006_v22 }
 0x1e1   : > { %v2136_v28 = vadd.f32 %v2944_v49, %v4039_v5  ;;  %v2230_v51 = vadd.f32 %v3005_v20, %v2133_v25 }
 0x1e3   : > { %v2945_v62 = vpop.f32.mrb[56].mxu0  ;;  %v2233_v29 = vadd.f32 %v3008_v27, %v2136_v28 }
 0x1e4   : > { %v3009_v31 = vpop.f32.mrb[56].mxu1  ;;  %v2946_v33 = vpop.f32.mrb[57].mxu0 }
 0x1e5   : > { %v2947_v0 = vadd.f32 %v2946_v33, %v2945_v62  ;;  %v3010_v36 = vpop.f32.mrb[57].mxu1  ;;  %v2948_v38 = vpop.f32.mrb[58].mxu0 }
 0x1e6   : > { %v3011_v39 = vadd.f32 %v3010_v36, %v3009_v31  ;;  %v3012_v41 = vpop.f32.mrb[58].mxu1  ;;  %v2949_v43 = vpop.f32.mrb[59].mxu0 }
 0x1e7   : > { %v2141_v44 = vadd.f32 %v2947_v0, %v4042_v21  ;;  %v2950_v45 = vadd.f32 %v2949_v43, %v2948_v38  ;;  %v3013_v3 = vpop.f32.mrb[59].mxu1 }
 0x1e8   : > { %v3014_v47 = vadd.f32 %v3013_v3, %v3012_v41 }
 0x1e9   : > { %v2144_v50 = vadd.f32 %v2950_v45, %v4045_v23  ;;  %v4085_v14 = vadd.f32 %v3011_v39, %v2141_v44 }
 0x1eb   : > { %v2951_v5 = vpop.f32.mrb[60].mxu0  ;;  %v4087_v52 = vadd.f32 %v3014_v47, %v2144_v50 }
 0x1ec   : > { %v3015_v53 = vpop.f32.mrb[60].mxu1  ;;  %v2952_v54 = vpop.f32.mrb[61].mxu0 }
 0x1ed   : > { %v2953_v16 = vadd.f32 %v2952_v54, %v2951_v5  ;;  %v3016_v56 = vpop.f32.mrb[61].mxu1  ;;  %v2954_v58 = vpop.f32.mrb[62].mxu0 }
 0x1ee   : > { %v3017_v59 = vadd.f32 %v3016_v56, %v3015_v53  ;;  %v3018_v60 = vpop.f32.mrb[62].mxu1  ;;  %v2955_v34 = vpop.f32.mrb[63].mxu0 }
 0x1ef   : > { %v2149_v21 = vadd.f32 %v2953_v16, %v4048_v40  ;;  %v2956_v1 = vadd.f32 %v2955_v34, %v2954_v58  ;;  %v3019_v2 = vpop.f32.mrb[63].mxu1 }
 0x1f0   : > { %v3020_v4 = vadd.f32 %v3019_v2, %v3018_v60 }
 0x1f1   : > { %v2152_v23 = vadd.f32 %v2956_v1, %v4051_v42  ;;  %v2246_v6 = vadd.f32 %v3017_v59, %v2149_v21 }
 0x1f3   : > { %v3055_v30 = vpop.f32.mrb[64].mxu0  ;;  %v4093_v7 = vadd.f32 %v3020_v4, %v2152_v23 }
 0x1f4   : > { %v2295_v8 = vadd.f32 %v3055_v30, %v4061_v15  ;;  %v3063_v9 = vpop.f32.mrb[64].mxu1  ;;  %v2286_v32 = vpop.f32.mrb[65].mxu0 }
 0x1f5   : > { %v2327_v46 = vadd.f32 %v3063_v9, %v2230_v51  ;;  %v2287_v12 = vadd.f32 %v2286_v32, %v4055_v61  ;;  %v2318_v13 = vpop.f32.mrb[65].mxu1  ;;  %v3056_v40 = vpop.f32.mrb[66].mxu0 }
 0x1f6   : > { %vm2351_vm0 = vcmp.gt.f32.partialorder %v2295_v8, 0.0  ;;  %v2367_v48 = vmul.f32 0.2, %v2295_v8  ;;  %v2319_v17 = vadd.f32 %v2318_v13, %v2222_v10  ;;  %v2298_v42 = vadd.f32 %v3056_v40, %v4063_v18  ;;  %v3064_v19 = vpop.f32.mrb[66].mxu1  ;;  %v2289_v20 = vpop.f32.mrb[67].mxu0 }
 0x1f7   : > { %vm2359_vm1 = vcmp.gt.f32.partialorder %v2327_v46, 0.0  ;;  %v2375_v22 = vmul.f32 0.2, %v2327_v46  ;;  %vm2349_vm2 = vcmp.gt.f32.partialorder %v2287_v12, 0.0  ;;  %v2365_v24 = vmul.f32 0.2, %v2287_v12 }
 0x1f8   : > { %v2383_v25 = vsel %vm2351_vm0, %v2295_v8, %v2367_v48  ;;  %vm2357_vm3 = vcmp.gt.f32.partialorder %v2319_v17, 0.0  ;;  %v2373_v15 = vmul.f32 0.2, %v2319_v17  ;;  %vm2352_vm4 = vcmp.gt.f32.partialorder %v2298_v42, 0.0  ;;  %v2321_v49 = vpop.f32.mrb[67].mxu1 }
 0x1f9   : > { %2399 = vst [vmem:[%s4098_s12 + $0x10] sm:$0xff] %v2383_v25  ;;  %v2391_v61 = vsel %vm2359_vm1, %v2327_v46, %v2375_v22  ;;  %v2381_v18 = vsel %vm2349_vm2, %v2287_v12, %v2365_v24  ;;  %v2368_v10 = vmul.f32 0.2, %v2298_v42  ;;  %v2330_v26 = vadd.f32 %v3064_v19, %v2233_v29 }
 0x1fa   : > { %2407 = vst [vmem:[%s4098_s12 + $0x50] sm:$0xff] %v2391_v61  ;;  %2397 = vst [vmem:[%s4098_s12] sm:$0xff] %v2381_v18  ;;  %v2389_v27 = vsel %vm2357_vm3, %v2319_v17, %v2373_v15  ;;  %v2290_v28 = vadd.f32 %v2289_v20, %v4057_v63  ;;  %v2322_v51 = vadd.f32 %v2321_v49, %v4079_v11 }
 0x1fb   : > { %2405 = vst [vmem:[%s4098_s12 + $0x40] sm:$0xff] %v2389_v27  ;;  %v2384_v62 = vsel %vm2352_vm4, %v2298_v42, %v2368_v10  ;;  %vm2360_vm5 = vcmp.gt.f32.partialorder %v2330_v26, 0.0  ;;  %v2376_v31 = vmul.f32 0.2, %v2330_v26  ;;  %v3059_v33 = vpop.f32.mrb[68].mxu0 }
 0x1fc   : > { %2400 = vst [vmem:[%s4098_s12 + $0x18] sm:$0xff] %v2384_v62  ;;  %vm2350_vm6 = vcmp.gt.f32.partialorder %v2290_v28, 0.0  ;;  %v2366_v0 = vmul.f32 0.2, %v2290_v28  ;;  %vm2358_vm7 = vcmp.gt.f32.partialorder %v2322_v51, 0.0  ;;  %v2311_v38 = vadd.f32 %v3059_v33, %v4073_v55  ;;  %v3067_v39 = vpop.f32.mrb[68].mxu1 }
 0x1fd   : > { %v2374_v29 = vmul.f32 0.2, %v2322_v51  ;;  %v2392_v36 = vsel %vm2360_vm5, %v2330_v26, %v2376_v31  ;;  %v2302_v63 = vpop.f32.mrb[69].mxu0  ;;  %v2343_v43 = vadd.f32 %v3067_v39, %v2246_v6  ;;  %v2334_v45 = vpop.f32.mrb[69].mxu1 }
 0x1fe   : > { %2408 = vst [vmem:[%s4098_s12 + $0x58] sm:$0xff] %v2392_v36  ;;  %v2382_v41 = vsel %vm2350_vm6, %v2290_v28, %v2366_v0  ;;  %v2303_v44 = vadd.f32 %v2302_v63, %v4067_v35  ;;  %v3060_v3 = vpop.f32.mrb[70].mxu0  ;;  %vm2355_vm8 = vcmp.gt.f32.partialorder %v2311_v38, 0.0  ;;  %v2371_v47 = vmul.f32 0.2, %v2311_v38  ;;  %v3068_v55 = vpop.f32.mrb[70].mxu1 }
 0x1ff   : > { %v2390_v11 = vsel %vm2358_vm7, %v2322_v51, %v2374_v29  ;;  %2398 = vst [vmem:[%s4098_s12 + $0x8] sm:$0xff] %v2382_v41  ;;  %v2335_v50 = vadd.f32 %v2334_v45, %v4085_v14  ;;  %v2314_v5 = vadd.f32 %v3060_v3, %v4075_v57  ;;  %v2305_v53 = vpop.f32.mrb[71].mxu0  ;;  %vm2363_vm9 = vcmp.gt.f32.partialorder %v2343_v43, 0.0  ;;  %v2337_v58 = vpop.f32.mrb[71].mxu1 }
 0x200   : > { %2406 = vst [vmem:[%s4098_s12 + $0x48] sm:$0xff] %v2390_v11  ;;  %v2379_v54 = vmul.f32 0.2, %v2343_v43  ;;  %vm2353_vm10 = vcmp.gt.f32.partialorder %v2303_v44, 0.0  ;;  %v2369_v16 = vmul.f32 0.2, %v2303_v44  ;;  %v2387_v35 = vsel %vm2355_vm8, %v2311_v38, %v2371_v47 }
 0x201   : > { %vm2361_vm11 = vcmp.gt.f32.partialorder %v2335_v50, 0.0  ;;  %v2377_v56 = vmul.f32 0.2, %v2335_v50  ;;  %vm2356_vm12 = vcmp.gt.f32.partialorder %v2314_v5, 0.0  ;;  %2403 = vst [vmem:[%s4098_s12 + $0x30] sm:$0xff] %v2387_v35  ;;  %v2346_v57 = vadd.f32 %v3068_v55, %v4093_v7  ;;  %v2486_v9 = vld [vmem:[%s4098_s12 + $0x10] sm:$0xff] (%p3398_p6) }
 0x202   : > { %v2395_v59 = vsel %vm2363_vm9, %v2343_v43, %v2379_v54  ;;  %v2385_v14 = vsel %vm2353_vm10, %v2303_v44, %v2369_v16  ;;  %v2372_v60 = vmul.f32 0.2, %v2314_v5  ;;  %v2306_v21 = vadd.f32 %v2305_v53, %v4069_v37  ;;  %2419 = sbr.rel (!%p3398_p6) target bundleno = 529 (0x211), region = 77  ;;  %v2482_v37 = vld [vmem:[%s4098_s12] sm:$0xff] (%p3398_p6)  ;;  %2487 = vst [vmem:[%s2424_s26 + $0x20] sm:$0xff] (%p3398_p6), %v2486_v9  ;;  %v2502_v42 = vld [vmem:[%s4098_s12 + $0x50] sm:$0xff] (%p3398_p6) }
 0x203   : > { %2411 = vst [vmem:[%s4098_s12 + $0x70] sm:$0xff] %v2395_v59  ;;  %2401 = vst [vmem:[%s4098_s12 + $0x20] sm:$0xff] %v2385_v14  ;;  %v2393_v34 = vsel %vm2361_vm11, %v2335_v50, %v2377_v56  ;;  %v2338_v1 = vadd.f32 %v2337_v58, %v4087_v52  ;;  %vm2364_vm13 = vcmp.gt.f32.partialorder %v2346_v57, 0.0  ;;  %v2380_v4 = vmul.f32 0.2, %v2346_v57  ;;  %v2488_v32 = vld [vmem:[%s4098_s12 + $0x18] sm:$0xff] (%p3398_p6) }
 0x204   : > { %2409 = vst [vmem:[%s4098_s12 + $0x60] sm:$0xff] %v2393_v34  ;;  %v2388_v2 = vsel %vm2356_vm12, %v2314_v5, %v2372_v60  ;;  %vm2354_vm14 = vcmp.gt.f32.partialorder %v2306_v21, 0.0  ;;  %v2370_v23 = vmul.f32 0.2, %v2306_v21  ;;  %2483 = vst [vmem:[%s2424_s26] sm:$0xff] (%p3398_p6), %v2482_v37  ;;  %v2498_v48 = vld [vmem:[%s4098_s12 + $0x40] sm:$0xff] (%p3398_p6) }
 0x205   : > { %2404 = vst [vmem:[%s4098_s12 + $0x38] sm:$0xff] %v2388_v2  ;;  %vm2362_vm15 = vcmp.gt.f32.partialorder %v2338_v1, 0.0  ;;  %v2378_v6 = vmul.f32 0.2, %v2338_v1  ;;  %v2396_v30 = vsel %vm2364_vm13, %v2346_v57, %v2380_v4  ;;  %2489 = vst [vmem:[%s2424_s26 + $0x30] sm:$0xff] (%p3398_p6), %v2488_v32  ;;  %v2504_v19 = vld [vmem:[%s4098_s12 + $0x58] sm:$0xff] (%p3398_p6) }
 0x206   : > { %2412 = vst [vmem:[%s4098_s12 + $0x78] sm:$0xff] %v2396_v30  ;;  %v2386_v7 = vsel %vm2354_vm14, %v2306_v21, %v2370_v23  ;;  %v2484_v52 = vld [vmem:[%s4098_s12 + $0x8] sm:$0xff] (%p3398_p6)  ;;  %2499 = vst [vmem:[%s2424_s26 + $0x80] sm:$0xff] (%p3398_p6), %v2498_v48 }
 0x207   : > { %v2394_v8 = vsel %vm2362_vm15, %v2338_v1, %v2378_v6  ;;  %2402 = vst [vmem:[%s4098_s12 + $0x28] sm:$0xff] %v2386_v7  ;;  %2485 = vst [vmem:[%s2424_s26 + $0x10] sm:$0xff] (%p3398_p6), %v2484_v52  ;;  %v2500_v17 = vld [vmem:[%s4098_s12 + $0x48] sm:$0xff] (%p3398_p6) }
 0x208   : > { %2410 = vst [vmem:[%s4098_s12 + $0x68] sm:$0xff] %v2394_v8  ;;  %v2494_v13 = vld [vmem:[%s4098_s12 + $0x30] sm:$0xff] (%p3398_p6)  ;;  %2501 = vst [vmem:[%s2424_s26 + $0x90] sm:$0xff] (%p3398_p6), %v2500_v17 }
 0x209   : > { %2495 = vst [vmem:[%s2424_s26 + $0x60] sm:$0xff] %v2494_v13  ;;  %2503 = vst [vmem:[%s2424_s26 + $0xa0] sm:$0xff] %v2502_v42 }
 0x20a   : > { %v2490_v46 = vld [vmem:[%s4098_s12 + $0x20] sm:$0xff]  ;;  %2505 = vst [vmem:[%s2424_s26 + $0xb0] sm:$0xff] %v2504_v19  ;;  %v2510_v24 = vld [vmem:[%s4098_s12 + $0x70] sm:$0xff] }
 0x20b   : > { %2491 = vst [vmem:[%s2424_s26 + $0x40] sm:$0xff] %v2490_v46  ;;  %v2506_v20 = vld [vmem:[%s4098_s12 + $0x60] sm:$0xff]  ;;  %2511 = vst [vmem:[%s2424_s26 + $0xe0] sm:$0xff] %v2510_v24 }
 0x20c   : > { %v2496_v40 = vld [vmem:[%s4098_s12 + $0x38] sm:$0xff]  ;;  %2507 = vst [vmem:[%s2424_s26 + $0xc0] sm:$0xff] %v2506_v20 }
 0x20d   : > { %2497 = vst [vmem:[%s2424_s26 + $0x70] sm:$0xff] %v2496_v40  ;;  %v2512_v25 = vld [vmem:[%s4098_s12 + $0x78] sm:$0xff] }
 0x20e   : > { %v2492_v12 = vld [vmem:[%s4098_s12 + $0x28] sm:$0xff]  ;;  %2513 = vst [vmem:[%s2424_s26 + $0xf0] sm:$0xff] %v2512_v25 }
 0x20f   : > { %2493 = vst [vmem:[%s2424_s26 + $0x50] sm:$0xff] %v2492_v12  ;;  %v2508_v22 = vld [vmem:[%s4098_s12 + $0x68] sm:$0xff] }
 0x210   : > { %2509 = vst [vmem:[%s2424_s26 + $0xd0] sm:$0xff] %v2508_v22 }
 0x211 PF: > { %s13_s16 = sadd.s32 1, %s3341_s16   ;;  %s4167_s12 = smov %s3329_s13 }
 0x212   : > { %p10_p12 = scmp.ge.s32.totalorder %s13_s16, 4   ;;  %s4168_s13 = smov %s3403_s22 }
 0x213   : > { %s4169_s14 = smov %s3337_s15  ;;  %s4170_s15 = smov %s4172_s17 }
 0x214   :  { %12 = sbr.rel (!%p10_p12) target bundleno = 3 (0x3), region = 152 }

// kernel: discriminator_forward.12
= control target key start
LH: loop header
LB: loop body
LE: loop exit
PB: predicated region body
PF: predicated region fallthrough
CT: control target
= control target key end

     0   :  { %s5919_s12 = smov 0   ;;  %s5921_s13 = smov 0   ;;  %s7402_s0 = inlined_call_operand.vmem [shape: bf16[128,2304], index: 0, kind: input, shape index: {}]   ;;  %s7403_s1 = inlined_call_operand.vmem [shape: bf16[2304,512], index: 1, kind: input, shape index: {}]   ;;  %s7404_s2 = inlined_call_operand.vmem [shape: f32[1,512], index: 2, kind: input, shape index: {}]   ;;  %s7405_s3 = inlined_call_operand.vmem [shape: f32[128,512], index: 3, kind: output, shape index: {}]  }
   0x1   :  { %s5923_s14 = smov 0   ;;  %s5925_s15 = smov 0  }
   0x2   :  { %s5927_s16 = smov 0  }
   0x3 LB: > { %s22_s17 = sadd.s32 1, %s5893_s15  ;;  %s4564_s18 = sadd.s32 4294967295, %s5897_s16   ;;  %s5897_s16 = sphi %s5927_s16, %s13_s16   ;;  %s5893_s15 = sphi %s5925_s15, %s7410_s15   ;;  %s5889_s14 = sphi %s5923_s14, %s7409_s14   ;;  %s5885_s13 = sphi %s5921_s13, %s7408_s13   ;;  %s5881_s12 = sphi %s5919_s12, %s7407_s12  }
   0x4   : > { %p23_p0 = scmp.ge.s32.totalorder %s22_s17, 4  ;;  %p65_p1 = scmp.ne.s32.totalorder %s5885_s13, %s5881_s12 }
   0x5   : > { %p66_p2 = scmp.eq.s32.totalorder %s5897_s16, 0  ;;  %p123_p4 = scmp.eq.s32.totalorder %s4564_s18, 3 }
   0x6   : > { %s7412_s17 = smov (%p23_p0, %s22_s17), 0  ;;  %s58_s20 = sadd.s32 1, %s5885_s13 }
   0x7   : > { %p67_p3 = por %p66_p2, %p65_p1  ;;  %s55_s19 = ssub.s32 %s5893_s15, %s7412_s17 }
   0x8   : > { %p56_p5 = scmp.eq.s32.totalorder %s55_s19, 0  ;;  %p5954_p6 = por %p123_p4, %p65_p1 }
   0x9   : > { %p4568_p7 = scmp.ge.s32.totalorder %s5897_s16, 4 }
   0xa   : > { %s5959_s22 = scalar_select %p56_p5, %s5885_s13, %s58_s20  }
   0xb   : > { %155 = sbr.rel (%p4568_p7) target bundleno = 214 (0xd6), region = 20 }
  0x12   : > { %158 = sbr.rel (!%p67_p3) target bundleno = 214 (0xd6), region = 24  ;;  %s160_s23 = sand.u32 (%p67_p3), 1, %s5885_s13  }
  0x13   : > { %s4569_s24 = sshll.u32 (%p67_p3), %s5893_s15, 2  ;;  %s5457_s25 = smul.u32 (%p67_p3), 1152, %s160_s23 }
  0x14   : > { %s5967_s28 = scalar_lea.vmem (%p67_p3), %s7403_s1, %s4569_s24 }
  0x15   : > { %v180_v0 = vld [vmem:[%s5967_s28] sm:$0xf] (%p67_p3)  ;;  %v182_v1 = vld [vmem:[%s5967_s28 + $0x10] sm:$0xf] (%p67_p3)  ;;  %s5974_s29 = scalar_lea.vmem (%p67_p3), [#allocation2], %s5457_s25 }
  0x16   : > { %v184_v2 = vld [vmem:[%s5967_s28 + $0x20] sm:$0xf] (%p67_p3)  ;;  %v186_v3 = vld [vmem:[%s5967_s28 + $0x30] sm:$0xf] (%p67_p3)  ;;  %181 = vst [vmem:[%s5974_s29] sm:$0xf] (%p67_p3), %v180_v0 }
  0x17   : > { %v188_v4 = vld [vmem:[%s5967_s28 + $0x40] sm:$0xf] (%p67_p3)  ;;  %183 = vst [vmem:[%s5974_s29 + $0x4] sm:$0xf] (%p67_p3), %v182_v1  ;;  %185 = vst [vmem:[%s5974_s29 + $0x8] sm:$0xf] (%p67_p3), %v184_v2 }
  0x18   : > { %187 = vst [vmem:[%s5974_s29 + $0xc] sm:$0xf] (%p67_p3), %v186_v3  ;;  %189 = vst [vmem:[%s5974_s29 + $0x10] sm:$0xf] (%p67_p3), %v188_v4  ;;  %v190_v5 = vld [vmem:[%s5967_s28 + $0x50] sm:$0xf] (%p67_p3) }
  0x19   : > { %v192_v6 = vld [vmem:[%s5967_s28 + $0x60] sm:$0xf]  ;;  %v194_v7 = vld [vmem:[%s5967_s28 + $0x70] sm:$0xf]  ;;  %191 = vst [vmem:[%s5974_s29 + $0x14] sm:$0xf] %v190_v5 }
  0x1a   : > { %193 = vst [vmem:[%s5974_s29 + $0x18] sm:$0xf] %v192_v6  ;;  %195 = vst [vmem:[%s5974_s29 + $0x1c] sm:$0xf] %v194_v7  ;;  %v196_v8 = vld [vmem:[%s5967_s28 + $0x80] sm:$0xf] }
  0x1b   : > { %v198_v9 = vld [vmem:[%s5967_s28 + $0x90] sm:$0xf]  ;;  %v200_v10 = vld [vmem:[%s5967_s28 + $0xa0] sm:$0xf]  ;;  %197 = vst [vmem:[%s5974_s29 + $0x20] sm:$0xf] %v196_v8 }
  0x1c   : > { %199 = vst [vmem:[%s5974_s29 + $0x24] sm:$0xf] %v198_v9  ;;  %201 = vst [vmem:[%s5974_s29 + $0x28] sm:$0xf] %v200_v10  ;;  %v202_v11 = vld [vmem:[%s5967_s28 + $0xb0] sm:$0xf] }
  0x1d   : > { %v204_v12 = vld [vmem:[%s5967_s28 + $0xc0] sm:$0xf]  ;;  %v206_v13 = vld [vmem:[%s5967_s28 + $0xd0] sm:$0xf]  ;;  %203 = vst [vmem:[%s5974_s29 + $0x2c] sm:$0xf] %v202_v11 }
  0x1e   : > { %205 = vst [vmem:[%s5974_s29 + $0x30] sm:$0xf] %v204_v12  ;;  %207 = vst [vmem:[%s5974_s29 + $0x34] sm:$0xf] %v206_v13  ;;  %v208_v14 = vld [vmem:[%s5967_s28 + $0xe0] sm:$0xf] }
  0x1f   : > { %v210_v15 = vld [vmem:[%s5967_s28 + $0xf0] sm:$0xf]  ;;  %v212_v16 = vld [vmem:[%s5967_s28 + $0x100] sm:$0xf]  ;;  %209 = vst [vmem:[%s5974_s29 + $0x38] sm:$0xf] %v208_v14 }
  0x20   : > { %211 = vst [vmem:[%s5974_s29 + $0x3c] sm:$0xf] %v210_v15  ;;  %213 = vst [vmem:[%s5974_s29 + $0x40] sm:$0xf] %v212_v16  ;;  %v214_v17 = vld [vmem:[%s5967_s28 + $0x110] sm:$0xf] }
  0x21   : > { %v216_v18 = vld [vmem:[%s5967_s28 + $0x120] sm:$0xf]  ;;  %v218_v19 = vld [vmem:[%s5967_s28 + $0x130] sm:$0xf]  ;;  %215 = vst [vmem:[%s5974_s29 + $0x44] sm:$0xf] %v214_v17 }
  0x22   : > { %217 = vst [vmem:[%s5974_s29 + $0x48] sm:$0xf] %v216_v18  ;;  %219 = vst [vmem:[%s5974_s29 + $0x4c] sm:$0xf] %v218_v19  ;;  %v220_v20 = vld [vmem:[%s5967_s28 + $0x140] sm:$0xf] }
  0x23   : > { %v222_v21 = vld [vmem:[%s5967_s28 + $0x150] sm:$0xf]  ;;  %v224_v22 = vld [vmem:[%s5967_s28 + $0x160] sm:$0xf]  ;;  %221 = vst [vmem:[%s5974_s29 + $0x50] sm:$0xf] %v220_v20 }
  0x24   : > { %223 = vst [vmem:[%s5974_s29 + $0x54] sm:$0xf] %v222_v21  ;;  %225 = vst [vmem:[%s5974_s29 + $0x58] sm:$0xf] %v224_v22  ;;  %v226_v23 = vld [vmem:[%s5967_s28 + $0x170] sm:$0xf] }
  0x25   : > { %v228_v24 = vld [vmem:[%s5967_s28 + $0x180] sm:$0xf]  ;;  %v230_v25 = vld [vmem:[%s5967_s28 + $0x190] sm:$0xf]  ;;  %227 = vst [vmem:[%s5974_s29 + $0x5c] sm:$0xf] %v226_v23 }
  0x26   : > { %229 = vst [vmem:[%s5974_s29 + $0x60] sm:$0xf] %v228_v24  ;;  %231 = vst [vmem:[%s5974_s29 + $0x64] sm:$0xf] %v230_v25  ;;  %v232_v26 = vld [vmem:[%s5967_s28 + $0x1a0] sm:$0xf] }
  0x27   : > { %v234_v27 = vld [vmem:[%s5967_s28 + $0x1b0] sm:$0xf]  ;;  %v236_v28 = vld [vmem:[%s5967_s28 + $0x1c0] sm:$0xf]  ;;  %233 = vst [vmem:[%s5974_s29 + $0x68] sm:$0xf] %v232_v26 }
  0x28   : > { %235 = vst [vmem:[%s5974_s29 + $0x6c] sm:$0xf] %v234_v27  ;;  %237 = vst [vmem:[%s5974_s29 + $0x70] sm:$0xf] %v236_v28  ;;  %v238_v29 = vld [vmem:[%s5967_s28 + $0x1d0] sm:$0xf] }
  0x29   : > { %v240_v30 = vld [vmem:[%s5967_s28 + $0x1e0] sm:$0xf]  ;;  %v242_v31 = vld [vmem:[%s5967_s28 + $0x1f0] sm:$0xf]  ;;  %239 = vst [vmem:[%s5974_s29 + $0x74] sm:$0xf] %v238_v29 }
  0x2a   : > { %241 = vst [vmem:[%s5974_s29 + $0x78] sm:$0xf] %v240_v30  ;;  %243 = vst [vmem:[%s5974_s29 + $0x7c] sm:$0xf] %v242_v31  ;;  %v244_v32 = vld [vmem:[%s5967_s28 + $0x200] sm:$0xf] }
  0x2b   : > { %v246_v33 = vld [vmem:[%s5967_s28 + $0x210] sm:$0xf]  ;;  %v248_v34 = vld [vmem:[%s5967_s28 + $0x220] sm:$0xf]  ;;  %245 = vst [vmem:[%s5974_s29 + $0x80] sm:$0xf] %v244_v32 }
  0x2c   : > { %247 = vst [vmem:[%s5974_s29 + $0x84] sm:$0xf] %v246_v33  ;;  %249 = vst [vmem:[%s5974_s29 + $0x88] sm:$0xf] %v248_v34  ;;  %v250_v35 = vld [vmem:[%s5967_s28 + $0x230] sm:$0xf] }
  0x2d   : > { %v252_v36 = vld [vmem:[%s5967_s28 + $0x240] sm:$0xf]  ;;  %v254_v37 = vld [vmem:[%s5967_s28 + $0x250] sm:$0xf]  ;;  %251 = vst [vmem:[%s5974_s29 + $0x8c] sm:$0xf] %v250_v35 }
  0x2e   : > { %253 = vst [vmem:[%s5974_s29 + $0x90] sm:$0xf] %v252_v36  ;;  %255 = vst [vmem:[%s5974_s29 + $0x94] sm:$0xf] %v254_v37  ;;  %v256_v38 = vld [vmem:[%s5967_s28 + $0x260] sm:$0xf] }
  0x2f   : > { %v258_v39 = vld [vmem:[%s5967_s28 + $0x270] sm:$0xf]  ;;  %v260_v40 = vld [vmem:[%s5967_s28 + $0x280] sm:$0xf]  ;;  %257 = vst [vmem:[%s5974_s29 + $0x98] sm:$0xf] %v256_v38 }
  0x30   : > { %259 = vst [vmem:[%s5974_s29 + $0x9c] sm:$0xf] %v258_v39  ;;  %261 = vst [vmem:[%s5974_s29 + $0xa0] sm:$0xf] %v260_v40  ;;  %v262_v41 = vld [vmem:[%s5967_s28 + $0x290] sm:$0xf] }
  0x31   : > { %v264_v42 = vld [vmem:[%s5967_s28 + $0x2a0] sm:$0xf]  ;;  %v266_v43 = vld [vmem:[%s5967_s28 + $0x2b0] sm:$0xf]  ;;  %263 = vst [vmem:[%s5974_s29 + $0xa4] sm:$0xf] %v262_v41 }
  0x32   : > { %265 = vst [vmem:[%s5974_s29 + $0xa8] sm:$0xf] %v264_v42  ;;  %267 = vst [vmem:[%s5974_s29 + $0xac] sm:$0xf] %v266_v43  ;;  %v268_v44 = vld [vmem:[%s5967_s28 + $0x2c0] sm:$0xf] }
  0x33   : > { %v270_v45 = vld [vmem:[%s5967_s28 + $0x2d0] sm:$0xf]  ;;  %v272_v46 = vld [vmem:[%s5967_s28 + $0x2e0] sm:$0xf]  ;;  %269 = vst [vmem:[%s5974_s29 + $0xb0] sm:$0xf] %v268_v44 }
  0x34   : > { %271 = vst [vmem:[%s5974_s29 + $0xb4] sm:$0xf] %v270_v45  ;;  %273 = vst [vmem:[%s5974_s29 + $0xb8] sm:$0xf] %v272_v46  ;;  %v274_v47 = vld [vmem:[%s5967_s28 + $0x2f0] sm:$0xf] }
  0x35   : > { %v276_v48 = vld [vmem:[%s5967_s28 + $0x300] sm:$0xf]  ;;  %v278_v49 = vld [vmem:[%s5967_s28 + $0x310] sm:$0xf]  ;;  %275 = vst [vmem:[%s5974_s29 + $0xbc] sm:$0xf] %v274_v47 }
  0x36   : > { %277 = vst [vmem:[%s5974_s29 + $0xc0] sm:$0xf] %v276_v48  ;;  %279 = vst [vmem:[%s5974_s29 + $0xc4] sm:$0xf] %v278_v49  ;;  %v280_v50 = vld [vmem:[%s5967_s28 + $0x320] sm:$0xf] }
  0x37   : > { %v282_v51 = vld [vmem:[%s5967_s28 + $0x330] sm:$0xf]  ;;  %v284_v52 = vld [vmem:[%s5967_s28 + $0x340] sm:$0xf]  ;;  %281 = vst [vmem:[%s5974_s29 + $0xc8] sm:$0xf] %v280_v50 }
  0x38   : > { %283 = vst [vmem:[%s5974_s29 + $0xcc] sm:$0xf] %v282_v51  ;;  %285 = vst [vmem:[%s5974_s29 + $0xd0] sm:$0xf] %v284_v52  ;;  %v286_v53 = vld [vmem:[%s5967_s28 + $0x350] sm:$0xf] }
  0x39   : > { %v288_v54 = vld [vmem:[%s5967_s28 + $0x360] sm:$0xf]  ;;  %v290_v55 = vld [vmem:[%s5967_s28 + $0x370] sm:$0xf]  ;;  %287 = vst [vmem:[%s5974_s29 + $0xd4] sm:$0xf] %v286_v53 }
  0x3a   : > { %289 = vst [vmem:[%s5974_s29 + $0xd8] sm:$0xf] %v288_v54  ;;  %291 = vst [vmem:[%s5974_s29 + $0xdc] sm:$0xf] %v290_v55  ;;  %v292_v56 = vld [vmem:[%s5967_s28 + $0x380] sm:$0xf] }
  0x3b   : > { %v294_v57 = vld [vmem:[%s5967_s28 + $0x390] sm:$0xf]  ;;  %v296_v58 = vld [vmem:[%s5967_s28 + $0x3a0] sm:$0xf]  ;;  %293 = vst [vmem:[%s5974_s29 + $0xe0] sm:$0xf] %v292_v56 }
  0x3c   : > { %295 = vst [vmem:[%s5974_s29 + $0xe4] sm:$0xf] %v294_v57  ;;  %297 = vst [vmem:[%s5974_s29 + $0xe8] sm:$0xf] %v296_v58  ;;  %v298_v59 = vld [vmem:[%s5967_s28 + $0x3b0] sm:$0xf] }
  0x3d   : > { %v300_v60 = vld [vmem:[%s5967_s28 + $0x3c0] sm:$0xf]  ;;  %v302_v61 = vld [vmem:[%s5967_s28 + $0x3d0] sm:$0xf]  ;;  %299 = vst [vmem:[%s5974_s29 + $0xec] sm:$0xf] %v298_v59 }
  0x3e   : > { %301 = vst [vmem:[%s5974_s29 + $0xf0] sm:$0xf] %v300_v60  ;;  %303 = vst [vmem:[%s5974_s29 + $0xf4] sm:$0xf] %v302_v61  ;;  %v304_v62 = vld [vmem:[%s5967_s28 + $0x3e0] sm:$0xf] }
  0x3f   : > { %v306_v63 = vld [vmem:[%s5967_s28 + $0x3f0] sm:$0xf]  ;;  %v308_v0 = vld [vmem:[%s5967_s28 + $0x400] sm:$0xf]  ;;  %305 = vst [vmem:[%s5974_s29 + $0xf8] sm:$0xf] %v304_v62 }
  0x40   : > { %307 = vst [vmem:[%s5974_s29 + $0xfc] sm:$0xf] %v306_v63  ;;  %309 = vst [vmem:[%s5974_s29 + $0x100] sm:$0xf] %v308_v0  ;;  %v310_v1 = vld [vmem:[%s5967_s28 + $0x410] sm:$0xf] }
  0x41   : > { %v312_v2 = vld [vmem:[%s5967_s28 + $0x420] sm:$0xf]  ;;  %v314_v3 = vld [vmem:[%s5967_s28 + $0x430] sm:$0xf]  ;;  %311 = vst [vmem:[%s5974_s29 + $0x104] sm:$0xf] %v310_v1 }
  0x42   : > { %313 = vst [vmem:[%s5974_s29 + $0x108] sm:$0xf] %v312_v2  ;;  %315 = vst [vmem:[%s5974_s29 + $0x10c] sm:$0xf] %v314_v3  ;;  %v316_v4 = vld [vmem:[%s5967_s28 + $0x440] sm:$0xf] }
  0x43   : > { %v318_v5 = vld [vmem:[%s5967_s28 + $0x450] sm:$0xf]  ;;  %v320_v6 = vld [vmem:[%s5967_s28 + $0x460] sm:$0xf]  ;;  %317 = vst [vmem:[%s5974_s29 + $0x110] sm:$0xf] %v316_v4 }
  0x44   : > { %319 = vst [vmem:[%s5974_s29 + $0x114] sm:$0xf] %v318_v5  ;;  %321 = vst [vmem:[%s5974_s29 + $0x118] sm:$0xf] %v320_v6  ;;  %v322_v7 = vld [vmem:[%s5967_s28 + $0x470] sm:$0xf] }
  0x45   : > { %v324_v8 = vld [vmem:[%s5967_s28 + $0x480] sm:$0xf]  ;;  %v326_v9 = vld [vmem:[%s5967_s28 + $0x490] sm:$0xf]  ;;  %323 = vst [vmem:[%s5974_s29 + $0x11c] sm:$0xf] %v322_v7 }
  0x46   : > { %325 = vst [vmem:[%s5974_s29 + $0x120] sm:$0xf] %v324_v8  ;;  %327 = vst [vmem:[%s5974_s29 + $0x124] sm:$0xf] %v326_v9  ;;  %v328_v10 = vld [vmem:[%s5967_s28 + $0x4a0] sm:$0xf] }
  0x47   : > { %v330_v11 = vld [vmem:[%s5967_s28 + $0x4b0] sm:$0xf]  ;;  %v332_v12 = vld [vmem:[%s5967_s28 + $0x4c0] sm:$0xf]  ;;  %329 = vst [vmem:[%s5974_s29 + $0x128] sm:$0xf] %v328_v10 }
  0x48   : > { %331 = vst [vmem:[%s5974_s29 + $0x12c] sm:$0xf] %v330_v11  ;;  %333 = vst [vmem:[%s5974_s29 + $0x130] sm:$0xf] %v332_v12  ;;  %v334_v13 = vld [vmem:[%s5967_s28 + $0x4d0] sm:$0xf] }
  0x49   : > { %v336_v14 = vld [vmem:[%s5967_s28 + $0x4e0] sm:$0xf]  ;;  %v338_v15 = vld [vmem:[%s5967_s28 + $0x4f0] sm:$0xf]  ;;  %335 = vst [vmem:[%s5974_s29 + $0x134] sm:$0xf] %v334_v13 }
  0x4a   : > { %337 = vst [vmem:[%s5974_s29 + $0x138] sm:$0xf] %v336_v14  ;;  %339 = vst [vmem:[%s5974_s29 + $0x13c] sm:$0xf] %v338_v15  ;;  %v340_v16 = vld [vmem:[%s5967_s28 + $0x500] sm:$0xf] }
  0x4b   : > { %v342_v17 = vld [vmem:[%s5967_s28 + $0x510] sm:$0xf]  ;;  %v344_v18 = vld [vmem:[%s5967_s28 + $0x520] sm:$0xf]  ;;  %341 = vst [vmem:[%s5974_s29 + $0x140] sm:$0xf] %v340_v16 }
  0x4c   : > { %343 = vst [vmem:[%s5974_s29 + $0x144] sm:$0xf] %v342_v17  ;;  %345 = vst [vmem:[%s5974_s29 + $0x148] sm:$0xf] %v344_v18  ;;  %v346_v19 = vld [vmem:[%s5967_s28 + $0x530] sm:$0xf] }
  0x4d   : > { %v348_v20 = vld [vmem:[%s5967_s28 + $0x540] sm:$0xf]  ;;  %v350_v21 = vld [vmem:[%s5967_s28 + $0x550] sm:$0xf]  ;;  %347 = vst [vmem:[%s5974_s29 + $0x14c] sm:$0xf] %v346_v19 }
  0x4e   : > { %349 = vst [vmem:[%s5974_s29 + $0x150] sm:$0xf] %v348_v20  ;;  %351 = vst [vmem:[%s5974_s29 + $0x154] sm:$0xf] %v350_v21  ;;  %v352_v22 = vld [vmem:[%s5967_s28 + $0x560] sm:$0xf] }
  0x4f   : > { %v354_v23 = vld [vmem:[%s5967_s28 + $0x570] sm:$0xf]  ;;  %v356_v24 = vld [vmem:[%s5967_s28 + $0x580] sm:$0xf]  ;;  %353 = vst [vmem:[%s5974_s29 + $0x158] sm:$0xf] %v352_v22 }
  0x50   : > { %355 = vst [vmem:[%s5974_s29 + $0x15c] sm:$0xf] %v354_v23  ;;  %357 = vst [vmem:[%s5974_s29 + $0x160] sm:$0xf] %v356_v24  ;;  %v358_v25 = vld [vmem:[%s5967_s28 + $0x590] sm:$0xf] }
  0x51   : > { %v360_v26 = vld [vmem:[%s5967_s28 + $0x5a0] sm:$0xf]  ;;  %v362_v27 = vld [vmem:[%s5967_s28 + $0x5b0] sm:$0xf]  ;;  %359 = vst [vmem:[%s5974_s29 + $0x164] sm:$0xf] %v358_v25 }
  0x52   : > { %361 = vst [vmem:[%s5974_s29 + $0x168] sm:$0xf] %v360_v26  ;;  %363 = vst [vmem:[%s5974_s29 + $0x16c] sm:$0xf] %v362_v27  ;;  %v364_v28 = vld [vmem:[%s5967_s28 + $0x5c0] sm:$0xf] }
  0x53   : > { %v366_v29 = vld [vmem:[%s5967_s28 + $0x5d0] sm:$0xf]  ;;  %v368_v30 = vld [vmem:[%s5967_s28 + $0x5e0] sm:$0xf]  ;;  %365 = vst [vmem:[%s5974_s29 + $0x170] sm:$0xf] %v364_v28 }
  0x54   : > { %367 = vst [vmem:[%s5974_s29 + $0x174] sm:$0xf] %v366_v29  ;;  %369 = vst [vmem:[%s5974_s29 + $0x178] sm:$0xf] %v368_v30  ;;  %v370_v31 = vld [vmem:[%s5967_s28 + $0x5f0] sm:$0xf] }
  0x55   : > { %v372_v32 = vld [vmem:[%s5967_s28 + $0x600] sm:$0xf]  ;;  %v374_v33 = vld [vmem:[%s5967_s28 + $0x610] sm:$0xf]  ;;  %371 = vst [vmem:[%s5974_s29 + $0x17c] sm:$0xf] %v370_v31 }
  0x56   : > { %373 = vst [vmem:[%s5974_s29 + $0x180] sm:$0xf] %v372_v32  ;;  %375 = vst [vmem:[%s5974_s29 + $0x184] sm:$0xf] %v374_v33  ;;  %v376_v34 = vld [vmem:[%s5967_s28 + $0x620] sm:$0xf] }
  0x57   : > { %v378_v35 = vld [vmem:[%s5967_s28 + $0x630] sm:$0xf]  ;;  %v380_v36 = vld [vmem:[%s5967_s28 + $0x640] sm:$0xf]  ;;  %377 = vst [vmem:[%s5974_s29 + $0x188] sm:$0xf] %v376_v34 }
  0x58   : > { %379 = vst [vmem:[%s5974_s29 + $0x18c] sm:$0xf] %v378_v35  ;;  %381 = vst [vmem:[%s5974_s29 + $0x190] sm:$0xf] %v380_v36  ;;  %v382_v37 = vld [vmem:[%s5967_s28 + $0x650] sm:$0xf] }
  0x59   : > { %v384_v38 = vld [vmem:[%s5967_s28 + $0x660] sm:$0xf]  ;;  %v386_v39 = vld [vmem:[%s5967_s28 + $0x670] sm:$0xf]  ;;  %383 = vst [vmem:[%s5974_s29 + $0x194] sm:$0xf] %v382_v37 }
  0x5a   : > { %385 = vst [vmem:[%s5974_s29 + $0x198] sm:$0xf] %v384_v38  ;;  %387 = vst [vmem:[%s5974_s29 + $0x19c] sm:$0xf] %v386_v39  ;;  %v388_v40 = vld [vmem:[%s5967_s28 + $0x680] sm:$0xf] }
  0x5b   : > { %v390_v41 = vld [vmem:[%s5967_s28 + $0x690] sm:$0xf]  ;;  %v392_v42 = vld [vmem:[%s5967_s28 + $0x6a0] sm:$0xf]  ;;  %389 = vst [vmem:[%s5974_s29 + $0x1a0] sm:$0xf] %v388_v40 }
  0x5c   : > { %391 = vst [vmem:[%s5974_s29 + $0x1a4] sm:$0xf] %v390_v41  ;;  %393 = vst [vmem:[%s5974_s29 + $0x1a8] sm:$0xf] %v392_v42  ;;  %v394_v43 = vld [vmem:[%s5967_s28 + $0x6b0] sm:$0xf] }
  0x5d   : > { %v396_v44 = vld [vmem:[%s5967_s28 + $0x6c0] sm:$0xf]  ;;  %v398_v45 = vld [vmem:[%s5967_s28 + $0x6d0] sm:$0xf]  ;;  %395 = vst [vmem:[%s5974_s29 + $0x1ac] sm:$0xf] %v394_v43 }
  0x5e   : > { %397 = vst [vmem:[%s5974_s29 + $0x1b0] sm:$0xf] %v396_v44  ;;  %399 = vst [vmem:[%s5974_s29 + $0x1b4] sm:$0xf] %v398_v45  ;;  %v400_v46 = vld [vmem:[%s5967_s28 + $0x6e0] sm:$0xf] }
  0x5f   : > { %v402_v47 = vld [vmem:[%s5967_s28 + $0x6f0] sm:$0xf]  ;;  %v404_v48 = vld [vmem:[%s5967_s28 + $0x700] sm:$0xf]  ;;  %401 = vst [vmem:[%s5974_s29 + $0x1b8] sm:$0xf] %v400_v46 }
  0x60   : > { %403 = vst [vmem:[%s5974_s29 + $0x1bc] sm:$0xf] %v402_v47  ;;  %405 = vst [vmem:[%s5974_s29 + $0x1c0] sm:$0xf] %v404_v48  ;;  %v406_v49 = vld [vmem:[%s5967_s28 + $0x710] sm:$0xf] }
  0x61   : > { %v408_v50 = vld [vmem:[%s5967_s28 + $0x720] sm:$0xf]  ;;  %v410_v51 = vld [vmem:[%s5967_s28 + $0x730] sm:$0xf]  ;;  %407 = vst [vmem:[%s5974_s29 + $0x1c4] sm:$0xf] %v406_v49 }
  0x62   : > { %409 = vst [vmem:[%s5974_s29 + $0x1c8] sm:$0xf] %v408_v50  ;;  %411 = vst [vmem:[%s5974_s29 + $0x1cc] sm:$0xf] %v410_v51  ;;  %v412_v52 = vld [vmem:[%s5967_s28 + $0x740] sm:$0xf] }
  0x63   : > { %v414_v53 = vld [vmem:[%s5967_s28 + $0x750] sm:$0xf]  ;;  %v416_v54 = vld [vmem:[%s5967_s28 + $0x760] sm:$0xf]  ;;  %413 = vst [vmem:[%s5974_s29 + $0x1d0] sm:$0xf] %v412_v52 }
  0x64   : > { %415 = vst [vmem:[%s5974_s29 + $0x1d4] sm:$0xf] %v414_v53  ;;  %417 = vst [vmem:[%s5974_s29 + $0x1d8] sm:$0xf] %v416_v54  ;;  %v418_v55 = vld [vmem:[%s5967_s28 + $0x770] sm:$0xf] }
  0x65   : > { %v420_v56 = vld [vmem:[%s5967_s28 + $0x780] sm:$0xf]  ;;  %v422_v57 = vld [vmem:[%s5967_s28 + $0x790] sm:$0xf]  ;;  %419 = vst [vmem:[%s5974_s29 + $0x1dc] sm:$0xf] %v418_v55 }
  0x66   : > { %421 = vst [vmem:[%s5974_s29 + $0x1e0] sm:$0xf] %v420_v56  ;;  %423 = vst [vmem:[%s5974_s29 + $0x1e4] sm:$0xf] %v422_v57  ;;  %v424_v58 = vld [vmem:[%s5967_s28 + $0x7a0] sm:$0xf] }
  0x67   : > { %v426_v59 = vld [vmem:[%s5967_s28 + $0x7b0] sm:$0xf]  ;;  %v428_v60 = vld [vmem:[%s5967_s28 + $0x7c0] sm:$0xf]  ;;  %425 = vst [vmem:[%s5974_s29 + $0x1e8] sm:$0xf] %v424_v58 }
  0x68   : > { %427 = vst [vmem:[%s5974_s29 + $0x1ec] sm:$0xf] %v426_v59  ;;  %429 = vst [vmem:[%s5974_s29 + $0x1f0] sm:$0xf] %v428_v60  ;;  %v430_v61 = vld [vmem:[%s5967_s28 + $0x7d0] sm:$0xf] }
  0x69   : > { %v432_v62 = vld [vmem:[%s5967_s28 + $0x7e0] sm:$0xf]  ;;  %v434_v63 = vld [vmem:[%s5967_s28 + $0x7f0] sm:$0xf]  ;;  %431 = vst [vmem:[%s5974_s29 + $0x1f4] sm:$0xf] %v430_v61 }
  0x6a   : > { %433 = vst [vmem:[%s5974_s29 + $0x1f8] sm:$0xf] %v432_v62  ;;  %435 = vst [vmem:[%s5974_s29 + $0x1fc] sm:$0xf] %v434_v63  ;;  %v436_v0 = vld [vmem:[%s5967_s28 + $0x800] sm:$0xf] }
  0x6b   : > { %v438_v1 = vld [vmem:[%s5967_s28 + $0x810] sm:$0xf]  ;;  %v440_v2 = vld [vmem:[%s5967_s28 + $0x820] sm:$0xf]  ;;  %437 = vst [vmem:[%s5974_s29 + $0x200] sm:$0xf] %v436_v0 }
  0x6c   : > { %439 = vst [vmem:[%s5974_s29 + $0x204] sm:$0xf] %v438_v1  ;;  %441 = vst [vmem:[%s5974_s29 + $0x208] sm:$0xf] %v440_v2  ;;  %v442_v3 = vld [vmem:[%s5967_s28 + $0x830] sm:$0xf] }
  0x6d   : > { %v444_v4 = vld [vmem:[%s5967_s28 + $0x840] sm:$0xf]  ;;  %v446_v5 = vld [vmem:[%s5967_s28 + $0x850] sm:$0xf]  ;;  %443 = vst [vmem:[%s5974_s29 + $0x20c] sm:$0xf] %v442_v3 }
  0x6e   : > { %445 = vst [vmem:[%s5974_s29 + $0x210] sm:$0xf] %v444_v4  ;;  %447 = vst [vmem:[%s5974_s29 + $0x214] sm:$0xf] %v446_v5  ;;  %v448_v6 = vld [vmem:[%s5967_s28 + $0x860] sm:$0xf] }
  0x6f   : > { %v450_v7 = vld [vmem:[%s5967_s28 + $0x870] sm:$0xf]  ;;  %v452_v8 = vld [vmem:[%s5967_s28 + $0x880] sm:$0xf]  ;;  %449 = vst [vmem:[%s5974_s29 + $0x218] sm:$0xf] %v448_v6 }
  0x70   : > { %451 = vst [vmem:[%s5974_s29 + $0x21c] sm:$0xf] %v450_v7  ;;  %453 = vst [vmem:[%s5974_s29 + $0x220] sm:$0xf] %v452_v8  ;;  %v454_v9 = vld [vmem:[%s5967_s28 + $0x890] sm:$0xf] }
  0x71   : > { %v456_v10 = vld [vmem:[%s5967_s28 + $0x8a0] sm:$0xf]  ;;  %v458_v11 = vld [vmem:[%s5967_s28 + $0x8b0] sm:$0xf]  ;;  %455 = vst [vmem:[%s5974_s29 + $0x224] sm:$0xf] %v454_v9 }
  0x72   : > { %457 = vst [vmem:[%s5974_s29 + $0x228] sm:$0xf] %v456_v10  ;;  %459 = vst [vmem:[%s5974_s29 + $0x22c] sm:$0xf] %v458_v11  ;;  %v460_v12 = vld [vmem:[%s5967_s28 + $0x8c0] sm:$0xf] }
  0x73   : > { %v462_v13 = vld [vmem:[%s5967_s28 + $0x8d0] sm:$0xf]  ;;  %v464_v14 = vld [vmem:[%s5967_s28 + $0x8e0] sm:$0xf]  ;;  %461 = vst [vmem:[%s5974_s29 + $0x230] sm:$0xf] %v460_v12 }
  0x74   : > { %463 = vst [vmem:[%s5974_s29 + $0x234] sm:$0xf] %v462_v13  ;;  %465 = vst [vmem:[%s5974_s29 + $0x238] sm:$0xf] %v464_v14  ;;  %v466_v15 = vld [vmem:[%s5967_s28 + $0x8f0] sm:$0xf] }
  0x75   : > { %v468_v16 = vld [vmem:[%s5967_s28 + $0x900] sm:$0xf]  ;;  %v470_v17 = vld [vmem:[%s5967_s28 + $0x910] sm:$0xf]  ;;  %467 = vst [vmem:[%s5974_s29 + $0x23c] sm:$0xf] %v466_v15 }
  0x76   : > { %469 = vst [vmem:[%s5974_s29 + $0x240] sm:$0xf] %v468_v16  ;;  %471 = vst [vmem:[%s5974_s29 + $0x244] sm:$0xf] %v470_v17  ;;  %v472_v18 = vld [vmem:[%s5967_s28 + $0x920] sm:$0xf] }
  0x77   : > { %v474_v19 = vld [vmem:[%s5967_s28 + $0x930] sm:$0xf]  ;;  %v476_v20 = vld [vmem:[%s5967_s28 + $0x940] sm:$0xf]  ;;  %473 = vst [vmem:[%s5974_s29 + $0x248] sm:$0xf] %v472_v18 }
  0x78   : > { %475 = vst [vmem:[%s5974_s29 + $0x24c] sm:$0xf] %v474_v19  ;;  %477 = vst [vmem:[%s5974_s29 + $0x250] sm:$0xf] %v476_v20  ;;  %v478_v21 = vld [vmem:[%s5967_s28 + $0x950] sm:$0xf] }
  0x79   : > { %v480_v22 = vld [vmem:[%s5967_s28 + $0x960] sm:$0xf]  ;;  %v482_v23 = vld [vmem:[%s5967_s28 + $0x970] sm:$0xf]  ;;  %479 = vst [vmem:[%s5974_s29 + $0x254] sm:$0xf] %v478_v21 }
  0x7a   : > { %481 = vst [vmem:[%s5974_s29 + $0x258] sm:$0xf] %v480_v22  ;;  %483 = vst [vmem:[%s5974_s29 + $0x25c] sm:$0xf] %v482_v23  ;;  %v484_v24 = vld [vmem:[%s5967_s28 + $0x980] sm:$0xf] }
  0x7b   : > { %v486_v25 = vld [vmem:[%s5967_s28 + $0x990] sm:$0xf]  ;;  %v488_v26 = vld [vmem:[%s5967_s28 + $0x9a0] sm:$0xf]  ;;  %485 = vst [vmem:[%s5974_s29 + $0x260] sm:$0xf] %v484_v24 }
  0x7c   : > { %487 = vst [vmem:[%s5974_s29 + $0x264] sm:$0xf] %v486_v25  ;;  %489 = vst [vmem:[%s5974_s29 + $0x268] sm:$0xf] %v488_v26  ;;  %v490_v27 = vld [vmem:[%s5967_s28 + $0x9b0] sm:$0xf] }
  0x7d   : > { %v492_v28 = vld [vmem:[%s5967_s28 + $0x9c0] sm:$0xf]  ;;  %v494_v29 = vld [vmem:[%s5967_s28 + $0x9d0] sm:$0xf]  ;;  %491 = vst [vmem:[%s5974_s29 + $0x26c] sm:$0xf] %v490_v27 }
  0x7e   : > { %493 = vst [vmem:[%s5974_s29 + $0x270] sm:$0xf] %v492_v28  ;;  %495 = vst [vmem:[%s5974_s29 + $0x274] sm:$0xf] %v494_v29  ;;  %v496_v30 = vld [vmem:[%s5967_s28 + $0x9e0] sm:$0xf] }
  0x7f   : > { %v498_v31 = vld [vmem:[%s5967_s28 + $0x9f0] sm:$0xf]  ;;  %v500_v32 = vld [vmem:[%s5967_s28 + $0xa00] sm:$0xf]  ;;  %497 = vst [vmem:[%s5974_s29 + $0x278] sm:$0xf] %v496_v30 }
  0x80   : > { %499 = vst [vmem:[%s5974_s29 + $0x27c] sm:$0xf] %v498_v31  ;;  %501 = vst [vmem:[%s5974_s29 + $0x280] sm:$0xf] %v500_v32  ;;  %v502_v33 = vld [vmem:[%s5967_s28 + $0xa10] sm:$0xf] }
  0x81   : > { %v504_v34 = vld [vmem:[%s5967_s28 + $0xa20] sm:$0xf]  ;;  %v506_v35 = vld [vmem:[%s5967_s28 + $0xa30] sm:$0xf]  ;;  %503 = vst [vmem:[%s5974_s29 + $0x284] sm:$0xf] %v502_v33 }
  0x82   : > { %505 = vst [vmem:[%s5974_s29 + $0x288] sm:$0xf] %v504_v34  ;;  %507 = vst [vmem:[%s5974_s29 + $0x28c] sm:$0xf] %v506_v35  ;;  %v508_v36 = vld [vmem:[%s5967_s28 + $0xa40] sm:$0xf] }
  0x83   : > { %v510_v37 = vld [vmem:[%s5967_s28 + $0xa50] sm:$0xf]  ;;  %v512_v38 = vld [vmem:[%s5967_s28 + $0xa60] sm:$0xf]  ;;  %509 = vst [vmem:[%s5974_s29 + $0x290] sm:$0xf] %v508_v36 }
  0x84   : > { %511 = vst [vmem:[%s5974_s29 + $0x294] sm:$0xf] %v510_v37  ;;  %513 = vst [vmem:[%s5974_s29 + $0x298] sm:$0xf] %v512_v38  ;;  %v514_v39 = vld [vmem:[%s5967_s28 + $0xa70] sm:$0xf] }
  0x85   : > { %v516_v40 = vld [vmem:[%s5967_s28 + $0xa80] sm:$0xf]  ;;  %v518_v41 = vld [vmem:[%s5967_s28 + $0xa90] sm:$0xf]  ;;  %515 = vst [vmem:[%s5974_s29 + $0x29c] sm:$0xf] %v514_v39 }
  0x86   : > { %517 = vst [vmem:[%s5974_s29 + $0x2a0] sm:$0xf] %v516_v40  ;;  %519 = vst [vmem:[%s5974_s29 + $0x2a4] sm:$0xf] %v518_v41  ;;  %v520_v42 = vld [vmem:[%s5967_s28 + $0xaa0] sm:$0xf] }
  0x87   : > { %v522_v43 = vld [vmem:[%s5967_s28 + $0xab0] sm:$0xf]  ;;  %v524_v44 = vld [vmem:[%s5967_s28 + $0xac0] sm:$0xf]  ;;  %521 = vst [vmem:[%s5974_s29 + $0x2a8] sm:$0xf] %v520_v42 }
  0x88   : > { %523 = vst [vmem:[%s5974_s29 + $0x2ac] sm:$0xf] %v522_v43  ;;  %525 = vst [vmem:[%s5974_s29 + $0x2b0] sm:$0xf] %v524_v44  ;;  %v526_v45 = vld [vmem:[%s5967_s28 + $0xad0] sm:$0xf] }
  0x89   : > { %v528_v46 = vld [vmem:[%s5967_s28 + $0xae0] sm:$0xf]  ;;  %v530_v47 = vld [vmem:[%s5967_s28 + $0xaf0] sm:$0xf]  ;;  %527 = vst [vmem:[%s5974_s29 + $0x2b4] sm:$0xf] %v526_v45 }
  0x8a   : > { %529 = vst [vmem:[%s5974_s29 + $0x2b8] sm:$0xf] %v528_v46  ;;  %531 = vst [vmem:[%s5974_s29 + $0x2bc] sm:$0xf] %v530_v47  ;;  %v532_v48 = vld [vmem:[%s5967_s28 + $0xb00] sm:$0xf] }
  0x8b   : > { %v534_v49 = vld [vmem:[%s5967_s28 + $0xb10] sm:$0xf]  ;;  %v536_v50 = vld [vmem:[%s5967_s28 + $0xb20] sm:$0xf]  ;;  %533 = vst [vmem:[%s5974_s29 + $0x2c0] sm:$0xf] %v532_v48 }
  0x8c   : > { %535 = vst [vmem:[%s5974_s29 + $0x2c4] sm:$0xf] %v534_v49  ;;  %537 = vst [vmem:[%s5974_s29 + $0x2c8] sm:$0xf] %v536_v50  ;;  %v538_v51 = vld [vmem:[%s5967_s28 + $0xb30] sm:$0xf] }
  0x8d   : > { %v540_v52 = vld [vmem:[%s5967_s28 + $0xb40] sm:$0xf]  ;;  %v542_v53 = vld [vmem:[%s5967_s28 + $0xb50] sm:$0xf]  ;;  %539 = vst [vmem:[%s5974_s29 + $0x2cc] sm:$0xf] %v538_v51 }
  0x8e   : > { %541 = vst [vmem:[%s5974_s29 + $0x2d0] sm:$0xf] %v540_v52  ;;  %543 = vst [vmem:[%s5974_s29 + $0x2d4] sm:$0xf] %v542_v53  ;;  %v544_v54 = vld [vmem:[%s5967_s28 + $0xb60] sm:$0xf] }
  0x8f   : > { %v546_v55 = vld [vmem:[%s5967_s28 + $0xb70] sm:$0xf]  ;;  %v548_v56 = vld [vmem:[%s5967_s28 + $0xb80] sm:$0xf]  ;;  %545 = vst [vmem:[%s5974_s29 + $0x2d8] sm:$0xf] %v544_v54 }
  0x90   : > { %547 = vst [vmem:[%s5974_s29 + $0x2dc] sm:$0xf] %v546_v55  ;;  %549 = vst [vmem:[%s5974_s29 + $0x2e0] sm:$0xf] %v548_v56  ;;  %v550_v57 = vld [vmem:[%s5967_s28 + $0xb90] sm:$0xf] }
  0x91   : > { %v552_v58 = vld [vmem:[%s5967_s28 + $0xba0] sm:$0xf]  ;;  %v554_v59 = vld [vmem:[%s5967_s28 + $0xbb0] sm:$0xf]  ;;  %551 = vst [vmem:[%s5974_s29 + $0x2e4] sm:$0xf] %v550_v57 }
  0x92   : > { %553 = vst [vmem:[%s5974_s29 + $0x2e8] sm:$0xf] %v552_v58  ;;  %555 = vst [vmem:[%s5974_s29 + $0x2ec] sm:$0xf] %v554_v59  ;;  %v556_v60 = vld [vmem:[%s5967_s28 + $0xbc0] sm:$0xf] }
  0x93   : > { %v558_v61 = vld [vmem:[%s5967_s28 + $0xbd0] sm:$0xf]  ;;  %v560_v62 = vld [vmem:[%s5967_s28 + $0xbe0] sm:$0xf]  ;;  %557 = vst [vmem:[%s5974_s29 + $0x2f0] sm:$0xf] %v556_v60 }
  0x94   : > { %559 = vst [vmem:[%s5974_s29 + $0x2f4] sm:$0xf] %v558_v61  ;;  %561 = vst [vmem:[%s5974_s29 + $0x2f8] sm:$0xf] %v560_v62  ;;  %v562_v63 = vld [vmem:[%s5967_s28 + $0xbf0] sm:$0xf] }
  0x95   : > { %v564_v0 = vld [vmem:[%s5967_s28 + $0xc00] sm:$0xf]  ;;  %v566_v1 = vld [vmem:[%s5967_s28 + $0xc10] sm:$0xf]  ;;  %563 = vst [vmem:[%s5974_s29 + $0x2fc] sm:$0xf] %v562_v63 }
  0x96   : > { %565 = vst [vmem:[%s5974_s29 + $0x300] sm:$0xf] %v564_v0  ;;  %567 = vst [vmem:[%s5974_s29 + $0x304] sm:$0xf] %v566_v1  ;;  %v568_v2 = vld [vmem:[%s5967_s28 + $0xc20] sm:$0xf] }
  0x97   : > { %v570_v3 = vld [vmem:[%s5967_s28 + $0xc30] sm:$0xf]  ;;  %v572_v4 = vld [vmem:[%s5967_s28 + $0xc40] sm:$0xf]  ;;  %569 = vst [vmem:[%s5974_s29 + $0x308] sm:$0xf] %v568_v2 }
  0x98   : > { %571 = vst [vmem:[%s5974_s29 + $0x30c] sm:$0xf] %v570_v3  ;;  %573 = vst [vmem:[%s5974_s29 + $0x310] sm:$0xf] %v572_v4  ;;  %v574_v5 = vld [vmem:[%s5967_s28 + $0xc50] sm:$0xf] }
  0x99   : > { %v576_v6 = vld [vmem:[%s5967_s28 + $0xc60] sm:$0xf]  ;;  %v578_v7 = vld [vmem:[%s5967_s28 + $0xc70] sm:$0xf]  ;;  %575 = vst [vmem:[%s5974_s29 + $0x314] sm:$0xf] %v574_v5 }
  0x9a   : > { %577 = vst [vmem:[%s5974_s29 + $0x318] sm:$0xf] %v576_v6  ;;  %579 = vst [vmem:[%s5974_s29 + $0x31c] sm:$0xf] %v578_v7  ;;  %v580_v8 = vld [vmem:[%s5967_s28 + $0xc80] sm:$0xf] }
  0x9b   : > { %v582_v9 = vld [vmem:[%s5967_s28 + $0xc90] sm:$0xf]  ;;  %v584_v10 = vld [vmem:[%s5967_s28 + $0xca0] sm:$0xf]  ;;  %581 = vst [vmem:[%s5974_s29 + $0x320] sm:$0xf] %v580_v8 }
  0x9c   : > { %583 = vst [vmem:[%s5974_s29 + $0x324] sm:$0xf] %v582_v9  ;;  %585 = vst [vmem:[%s5974_s29 + $0x328] sm:$0xf] %v584_v10  ;;  %v586_v11 = vld [vmem:[%s5967_s28 + $0xcb0] sm:$0xf] }
  0x9d   : > { %v588_v12 = vld [vmem:[%s5967_s28 + $0xcc0] sm:$0xf]  ;;  %v590_v13 = vld [vmem:[%s5967_s28 + $0xcd0] sm:$0xf]  ;;  %587 = vst [vmem:[%s5974_s29 + $0x32c] sm:$0xf] %v586_v11 }
  0x9e   : > { %589 = vst [vmem:[%s5974_s29 + $0x330] sm:$0xf] %v588_v12  ;;  %591 = vst [vmem:[%s5974_s29 + $0x334] sm:$0xf] %v590_v13  ;;  %v592_v14 = vld [vmem:[%s5967_s28 + $0xce0] sm:$0xf] }
  0x9f   : > { %v594_v15 = vld [vmem:[%s5967_s28 + $0xcf0] sm:$0xf]  ;;  %v596_v16 = vld [vmem:[%s5967_s28 + $0xd00] sm:$0xf]  ;;  %593 = vst [vmem:[%s5974_s29 + $0x338] sm:$0xf] %v592_v14 }
  0xa0   : > { %595 = vst [vmem:[%s5974_s29 + $0x33c] sm:$0xf] %v594_v15  ;;  %597 = vst [vmem:[%s5974_s29 + $0x340] sm:$0xf] %v596_v16  ;;  %v598_v17 = vld [vmem:[%s5967_s28 + $0xd10] sm:$0xf] }
  0xa1   : > { %v600_v18 = vld [vmem:[%s5967_s28 + $0xd20] sm:$0xf]  ;;  %v602_v19 = vld [vmem:[%s5967_s28 + $0xd30] sm:$0xf]  ;;  %599 = vst [vmem:[%s5974_s29 + $0x344] sm:$0xf] %v598_v17 }
  0xa2   : > { %601 = vst [vmem:[%s5974_s29 + $0x348] sm:$0xf] %v600_v18  ;;  %603 = vst [vmem:[%s5974_s29 + $0x34c] sm:$0xf] %v602_v19  ;;  %v604_v20 = vld [vmem:[%s5967_s28 + $0xd40] sm:$0xf] }
  0xa3   : > { %v606_v21 = vld [vmem:[%s5967_s28 + $0xd50] sm:$0xf]  ;;  %v608_v22 = vld [vmem:[%s5967_s28 + $0xd60] sm:$0xf]  ;;  %605 = vst [vmem:[%s5974_s29 + $0x350] sm:$0xf] %v604_v20 }
  0xa4   : > { %607 = vst [vmem:[%s5974_s29 + $0x354] sm:$0xf] %v606_v21  ;;  %609 = vst [vmem:[%s5974_s29 + $0x358] sm:$0xf] %v608_v22  ;;  %v610_v23 = vld [vmem:[%s5967_s28 + $0xd70] sm:$0xf] }
  0xa5   : > { %v612_v24 = vld [vmem:[%s5967_s28 + $0xd80] sm:$0xf]  ;;  %v614_v25 = vld [vmem:[%s5967_s28 + $0xd90] sm:$0xf]  ;;  %611 = vst [vmem:[%s5974_s29 + $0x35c] sm:$0xf] %v610_v23 }
  0xa6   : > { %613 = vst [vmem:[%s5974_s29 + $0x360] sm:$0xf] %v612_v24  ;;  %615 = vst [vmem:[%s5974_s29 + $0x364] sm:$0xf] %v614_v25  ;;  %v616_v26 = vld [vmem:[%s5967_s28 + $0xda0] sm:$0xf] }
  0xa7   : > { %v618_v27 = vld [vmem:[%s5967_s28 + $0xdb0] sm:$0xf]  ;;  %v620_v28 = vld [vmem:[%s5967_s28 + $0xdc0] sm:$0xf]  ;;  %617 = vst [vmem:[%s5974_s29 + $0x368] sm:$0xf] %v616_v26 }
  0xa8   : > { %619 = vst [vmem:[%s5974_s29 + $0x36c] sm:$0xf] %v618_v27  ;;  %621 = vst [vmem:[%s5974_s29 + $0x370] sm:$0xf] %v620_v28  ;;  %v622_v29 = vld [vmem:[%s5967_s28 + $0xdd0] sm:$0xf] }
  0xa9   : > { %v624_v30 = vld [vmem:[%s5967_s28 + $0xde0] sm:$0xf]  ;;  %v626_v31 = vld [vmem:[%s5967_s28 + $0xdf0] sm:$0xf]  ;;  %623 = vst [vmem:[%s5974_s29 + $0x374] sm:$0xf] %v622_v29 }
  0xaa   : > { %625 = vst [vmem:[%s5974_s29 + $0x378] sm:$0xf] %v624_v30  ;;  %627 = vst [vmem:[%s5974_s29 + $0x37c] sm:$0xf] %v626_v31  ;;  %v628_v32 = vld [vmem:[%s5967_s28 + $0xe00] sm:$0xf] }
  0xab   : > { %v630_v33 = vld [vmem:[%s5967_s28 + $0xe10] sm:$0xf]  ;;  %v632_v34 = vld [vmem:[%s5967_s28 + $0xe20] sm:$0xf]  ;;  %629 = vst [vmem:[%s5974_s29 + $0x380] sm:$0xf] %v628_v32 }
  0xac   : > { %631 = vst [vmem:[%s5974_s29 + $0x384] sm:$0xf] %v630_v33  ;;  %633 = vst [vmem:[%s5974_s29 + $0x388] sm:$0xf] %v632_v34  ;;  %v634_v35 = vld [vmem:[%s5967_s28 + $0xe30] sm:$0xf] }
  0xad   : > { %v636_v36 = vld [vmem:[%s5967_s28 + $0xe40] sm:$0xf]  ;;  %v638_v37 = vld [vmem:[%s5967_s28 + $0xe50] sm:$0xf]  ;;  %635 = vst [vmem:[%s5974_s29 + $0x38c] sm:$0xf] %v634_v35 }
  0xae   : > { %637 = vst [vmem:[%s5974_s29 + $0x390] sm:$0xf] %v636_v36  ;;  %639 = vst [vmem:[%s5974_s29 + $0x394] sm:$0xf] %v638_v37  ;;  %v640_v38 = vld [vmem:[%s5967_s28 + $0xe60] sm:$0xf] }
  0xaf   : > { %v642_v39 = vld [vmem:[%s5967_s28 + $0xe70] sm:$0xf]  ;;  %v644_v40 = vld [vmem:[%s5967_s28 + $0xe80] sm:$0xf]  ;;  %641 = vst [vmem:[%s5974_s29 + $0x398] sm:$0xf] %v640_v38 }
  0xb0   : > { %643 = vst [vmem:[%s5974_s29 + $0x39c] sm:$0xf] %v642_v39  ;;  %645 = vst [vmem:[%s5974_s29 + $0x3a0] sm:$0xf] %v644_v40  ;;  %v646_v41 = vld [vmem:[%s5967_s28 + $0xe90] sm:$0xf] }
  0xb1   : > { %v648_v42 = vld [vmem:[%s5967_s28 + $0xea0] sm:$0xf]  ;;  %v650_v43 = vld [vmem:[%s5967_s28 + $0xeb0] sm:$0xf]  ;;  %647 = vst [vmem:[%s5974_s29 + $0x3a4] sm:$0xf] %v646_v41 }
  0xb2   : > { %649 = vst [vmem:[%s5974_s29 + $0x3a8] sm:$0xf] %v648_v42  ;;  %651 = vst [vmem:[%s5974_s29 + $0x3ac] sm:$0xf] %v650_v43  ;;  %v652_v44 = vld [vmem:[%s5967_s28 + $0xec0] sm:$0xf] }
  0xb3   : > { %v654_v45 = vld [vmem:[%s5967_s28 + $0xed0] sm:$0xf]  ;;  %v656_v46 = vld [vmem:[%s5967_s28 + $0xee0] sm:$0xf]  ;;  %653 = vst [vmem:[%s5974_s29 + $0x3b0] sm:$0xf] %v652_v44 }
  0xb4   : > { %655 = vst [vmem:[%s5974_s29 + $0x3b4] sm:$0xf] %v654_v45  ;;  %657 = vst [vmem:[%s5974_s29 + $0x3b8] sm:$0xf] %v656_v46  ;;  %v658_v47 = vld [vmem:[%s5967_s28 + $0xef0] sm:$0xf] }
  0xb5   : > { %v660_v48 = vld [vmem:[%s5967_s28 + $0xf00] sm:$0xf]  ;;  %v662_v49 = vld [vmem:[%s5967_s28 + $0xf10] sm:$0xf]  ;;  %659 = vst [vmem:[%s5974_s29 + $0x3bc] sm:$0xf] %v658_v47 }
  0xb6   : > { %661 = vst [vmem:[%s5974_s29 + $0x3c0] sm:$0xf] %v660_v48  ;;  %663 = vst [vmem:[%s5974_s29 + $0x3c4] sm:$0xf] %v662_v49  ;;  %v664_v50 = vld [vmem:[%s5967_s28 + $0xf20] sm:$0xf] }
  0xb7   : > { %v666_v51 = vld [vmem:[%s5967_s28 + $0xf30] sm:$0xf]  ;;  %v668_v52 = vld [vmem:[%s5967_s28 + $0xf40] sm:$0xf]  ;;  %665 = vst [vmem:[%s5974_s29 + $0x3c8] sm:$0xf] %v664_v50 }
  0xb8   : > { %667 = vst [vmem:[%s5974_s29 + $0x3cc] sm:$0xf] %v666_v51  ;;  %669 = vst [vmem:[%s5974_s29 + $0x3d0] sm:$0xf] %v668_v52  ;;  %v670_v53 = vld [vmem:[%s5967_s28 + $0xf50] sm:$0xf] }
  0xb9   : > { %v672_v54 = vld [vmem:[%s5967_s28 + $0xf60] sm:$0xf]  ;;  %v674_v55 = vld [vmem:[%s5967_s28 + $0xf70] sm:$0xf]  ;;  %671 = vst [vmem:[%s5974_s29 + $0x3d4] sm:$0xf] %v670_v53 }
  0xba   : > { %673 = vst [vmem:[%s5974_s29 + $0x3d8] sm:$0xf] %v672_v54  ;;  %675 = vst [vmem:[%s5974_s29 + $0x3dc] sm:$0xf] %v674_v55  ;;  %v676_v56 = vld [vmem:[%s5967_s28 + $0xf80] sm:$0xf] }
  0xbb   : > { %v678_v57 = vld [vmem:[%s5967_s28 + $0xf90] sm:$0xf]  ;;  %v680_v58 = vld [vmem:[%s5967_s28 + $0xfa0] sm:$0xf]  ;;  %677 = vst [vmem:[%s5974_s29 + $0x3e0] sm:$0xf] %v676_v56 }
  0xbc   : > { %679 = vst [vmem:[%s5974_s29 + $0x3e4] sm:$0xf] %v678_v57  ;;  %681 = vst [vmem:[%s5974_s29 + $0x3e8] sm:$0xf] %v680_v58  ;;  %v682_v59 = vld [vmem:[%s5967_s28 + $0xfb0] sm:$0xf] }
  0xbd   : > { %v684_v60 = vld [vmem:[%s5967_s28 + $0xfc0] sm:$0xf]  ;;  %v686_v61 = vld [vmem:[%s5967_s28 + $0xfd0] sm:$0xf]  ;;  %683 = vst [vmem:[%s5974_s29 + $0x3ec] sm:$0xf] %v682_v59 }
  0xbe   : > { %685 = vst [vmem:[%s5974_s29 + $0x3f0] sm:$0xf] %v684_v60  ;;  %687 = vst [vmem:[%s5974_s29 + $0x3f4] sm:$0xf] %v686_v61  ;;  %v688_v62 = vld [vmem:[%s5967_s28 + $0xfe0] sm:$0xf] }
  0xbf   : > { %v690_v63 = vld [vmem:[%s5967_s28 + $0xff0] sm:$0xf]  ;;  %v692_v0 = vld [vmem:[%s5967_s28 + $0x1000] sm:$0xf]  ;;  %689 = vst [vmem:[%s5974_s29 + $0x3f8] sm:$0xf] %v688_v62 }
  0xc0   : > { %691 = vst [vmem:[%s5974_s29 + $0x3fc] sm:$0xf] %v690_v63  ;;  %693 = vst [vmem:[%s5974_s29 + $0x400] sm:$0xf] %v692_v0  ;;  %v694_v1 = vld [vmem:[%s5967_s28 + $0x1010] sm:$0xf] }
  0xc1   : > { %v696_v2 = vld [vmem:[%s5967_s28 + $0x1020] sm:$0xf]  ;;  %v698_v3 = vld [vmem:[%s5967_s28 + $0x1030] sm:$0xf]  ;;  %695 = vst [vmem:[%s5974_s29 + $0x404] sm:$0xf] %v694_v1 }
  0xc2   : > { %697 = vst [vmem:[%s5974_s29 + $0x408] sm:$0xf] %v696_v2  ;;  %699 = vst [vmem:[%s5974_s29 + $0x40c] sm:$0xf] %v698_v3  ;;  %v700_v4 = vld [vmem:[%s5967_s28 + $0x1040] sm:$0xf] }
  0xc3   : > { %v702_v5 = vld [vmem:[%s5967_s28 + $0x1050] sm:$0xf]  ;;  %v704_v6 = vld [vmem:[%s5967_s28 + $0x1060] sm:$0xf]  ;;  %701 = vst [vmem:[%s5974_s29 + $0x410] sm:$0xf] %v700_v4 }
  0xc4   : > { %703 = vst [vmem:[%s5974_s29 + $0x414] sm:$0xf] %v702_v5  ;;  %705 = vst [vmem:[%s5974_s29 + $0x418] sm:$0xf] %v704_v6  ;;  %v706_v7 = vld [vmem:[%s5967_s28 + $0x1070] sm:$0xf] }
  0xc5   : > { %v708_v8 = vld [vmem:[%s5967_s28 + $0x1080] sm:$0xf]  ;;  %v710_v9 = vld [vmem:[%s5967_s28 + $0x1090] sm:$0xf]  ;;  %707 = vst [vmem:[%s5974_s29 + $0x41c] sm:$0xf] %v706_v7 }
  0xc6   : > { %709 = vst [vmem:[%s5974_s29 + $0x420] sm:$0xf] %v708_v8  ;;  %711 = vst [vmem:[%s5974_s29 + $0x424] sm:$0xf] %v710_v9  ;;  %v712_v10 = vld [vmem:[%s5967_s28 + $0x10a0] sm:$0xf] }
  0xc7   : > { %v714_v11 = vld [vmem:[%s5967_s28 + $0x10b0] sm:$0xf]  ;;  %v716_v12 = vld [vmem:[%s5967_s28 + $0x10c0] sm:$0xf]  ;;  %713 = vst [vmem:[%s5974_s29 + $0x428] sm:$0xf] %v712_v10 }
  0xc8   : > { %715 = vst [vmem:[%s5974_s29 + $0x42c] sm:$0xf] %v714_v11  ;;  %717 = vst [vmem:[%s5974_s29 + $0x430] sm:$0xf] %v716_v12  ;;  %v718_v13 = vld [vmem:[%s5967_s28 + $0x10d0] sm:$0xf] }
  0xc9   : > { %v720_v14 = vld [vmem:[%s5967_s28 + $0x10e0] sm:$0xf]  ;;  %v722_v15 = vld [vmem:[%s5967_s28 + $0x10f0] sm:$0xf]  ;;  %719 = vst [vmem:[%s5974_s29 + $0x434] sm:$0xf] %v718_v13 }
  0xca   : > { %721 = vst [vmem:[%s5974_s29 + $0x438] sm:$0xf] %v720_v14  ;;  %723 = vst [vmem:[%s5974_s29 + $0x43c] sm:$0xf] %v722_v15  ;;  %v724_v16 = vld [vmem:[%s5967_s28 + $0x1100] sm:$0xf] }
  0xcb   : > { %v726_v17 = vld [vmem:[%s5967_s28 + $0x1110] sm:$0xf]  ;;  %v728_v18 = vld [vmem:[%s5967_s28 + $0x1120] sm:$0xf]  ;;  %725 = vst [vmem:[%s5974_s29 + $0x440] sm:$0xf] %v724_v16 }
  0xcc   : > { %727 = vst [vmem:[%s5974_s29 + $0x444] sm:$0xf] %v726_v17  ;;  %729 = vst [vmem:[%s5974_s29 + $0x448] sm:$0xf] %v728_v18  ;;  %v730_v19 = vld [vmem:[%s5967_s28 + $0x1130] sm:$0xf] }
  0xcd   : > { %v732_v20 = vld [vmem:[%s5967_s28 + $0x1140] sm:$0xf]  ;;  %v734_v21 = vld [vmem:[%s5967_s28 + $0x1150] sm:$0xf]  ;;  %731 = vst [vmem:[%s5974_s29 + $0x44c] sm:$0xf] %v730_v19 }
  0xce   : > { %733 = vst [vmem:[%s5974_s29 + $0x450] sm:$0xf] %v732_v20  ;;  %735 = vst [vmem:[%s5974_s29 + $0x454] sm:$0xf] %v734_v21  ;;  %v736_v22 = vld [vmem:[%s5967_s28 + $0x1160] sm:$0xf] }
  0xcf   : > { %v738_v23 = vld [vmem:[%s5967_s28 + $0x1170] sm:$0xf]  ;;  %v740_v24 = vld [vmem:[%s5967_s28 + $0x1180] sm:$0xf]  ;;  %737 = vst [vmem:[%s5974_s29 + $0x458] sm:$0xf] %v736_v22 }
  0xd0   : > { %739 = vst [vmem:[%s5974_s29 + $0x45c] sm:$0xf] %v738_v23  ;;  %741 = vst [vmem:[%s5974_s29 + $0x460] sm:$0xf] %v740_v24  ;;  %v742_v25 = vld [vmem:[%s5967_s28 + $0x1190] sm:$0xf] }
  0xd1   : > { %v744_v26 = vld [vmem:[%s5967_s28 + $0x11a0] sm:$0xf]  ;;  %v746_v27 = vld [vmem:[%s5967_s28 + $0x11b0] sm:$0xf]  ;;  %743 = vst [vmem:[%s5974_s29 + $0x464] sm:$0xf] %v742_v25 }
  0xd2   : > { %745 = vst [vmem:[%s5974_s29 + $0x468] sm:$0xf] %v744_v26  ;;  %747 = vst [vmem:[%s5974_s29 + $0x46c] sm:$0xf] %v746_v27  ;;  %v748_v28 = vld [vmem:[%s5967_s28 + $0x11c0] sm:$0xf] }
  0xd3   : > { %v750_v29 = vld [vmem:[%s5967_s28 + $0x11d0] sm:$0xf]  ;;  %v752_v30 = vld [vmem:[%s5967_s28 + $0x11e0] sm:$0xf]  ;;  %749 = vst [vmem:[%s5974_s29 + $0x470] sm:$0xf] %v748_v28 }
  0xd4   : > { %751 = vst [vmem:[%s5974_s29 + $0x474] sm:$0xf] %v750_v29  ;;  %753 = vst [vmem:[%s5974_s29 + $0x478] sm:$0xf] %v752_v30  ;;  %v754_v31 = vld [vmem:[%s5967_s28 + $0x11f0] sm:$0xf] }
  0xd5   : > { %755 = vst [vmem:[%s5974_s29 + $0x47c] sm:$0xf] %v754_v31 }
  0xd6 PF: > { %p4570_p8 = scmp.ge.s32.totalorder %s5897_s16, 1  ;;  %p1359_p9 = scmp.lt.s32.totalorder %s5897_s16, 5 }
  0xd8   : > { %p1360_p10 = pnand %p4570_p8, %p1359_p9 }
  0xd9   : > { %s1366_s30 = sand.u32 (!%p1360_p10), 1, %s5881_s12   ;;  %v5517_v32 = vld [vmem:[%s7402_s0 + $0x4] ss:$72 sps:$4 sm:$0xff] (!%p1360_p10)   ;;  %v5515_v51 = vld [vmem:[%s7402_s0] ss:$72 sps:$4 sm:$0xff] (!%p1360_p10)   ;;  %p1404_p11 = scmp.lt.s32.totalorder (!%p1360_p10), %s5889_s14, 3 }
  0xda   : > { %1363 = sbr.rel (%p1360_p10) target bundleno = 768 (0x300), region = 69  ;;  %v5520_v33 = vld [vmem:[%s7402_s0 + $0x244] ss:$72 sps:$4 sm:$0xff] (!%p1360_p10)   ;;  %3464 = vmatprep.mubr.bf16.mxu0 (!%p1360_p10), %v5517_v32  ;;  %v5518_v52 = vld [vmem:[%s7402_s0 + $0x240] ss:$72 sps:$4 sm:$0xff] (!%p1360_p10)   ;;  %s4571_s29 = sshll.u32 (!%p1360_p10), %s1366_s30, 7 }
  0xdb   : > { %s5458_s4 = smul.u32 (!%p1360_p10), 1152, %s1366_s30  ;;  %3496 = vmatprep.mubr.bf16.mxu1 (!%p1360_p10), %v5520_v33  ;;  %v5529_v57 = vld [vmem:[%s7402_s0 + $0x94] ss:$72 sps:$4 sm:$0xff] (!%p1360_p10)   ;;  %v5533_v63 = vld [vmem:[%s7402_s0 + $0x90] ss:$72 sps:$4 sm:$0xff] (!%p1360_p10)  }
  0xdc   : > { %v5531_v59 = vld [vmem:[%s7402_s0 + $0x2d4] ss:$72 sps:$4 sm:$0xff] (!%p1360_p10)   ;;  %v5534_v0 = vld [vmem:[%s7402_s0 + $0x2d0] ss:$72 sps:$4 sm:$0xff] (!%p1360_p10)   ;;  %v5543_v6 = vld [vmem:[%s7402_s0 + $0x124] ss:$72 sps:$4 sm:$0xff] (!%p1360_p10)  }
  0xdd   : > { %s6558_s9 = scalar_lea.vmem (!%p1360_p10), [#allocation2], %s5458_s4  ;;  %v5545_v8 = vld [vmem:[%s7402_s0 + $0x364] ss:$72 sps:$4 sm:$0xff] (!%p1360_p10)   ;;  %v5547_v11 = vld [vmem:[%s7402_s0 + $0x120] ss:$72 sps:$4 sm:$0xff] (!%p1360_p10)   ;;  %s7333_s4 = scalar_lea.vmem (!%p1360_p10), [#allocation3], %s4571_s29 }
  0xde   : > { %v5499_v34 = vld [vmem:[%s6558_s9 + $0x40] sm:$0xff] (!%p1360_p10)   ;;  %v5501_v36 = vld [vmem:[%s6558_s9 + $0x48] sm:$0xff] (!%p1360_p10)   ;;  %v5503_v38 = vld [vmem:[%s6558_s9 + $0x50] sm:$0xff] (!%p1360_p10)  }
  0xdf   : > { %v5500_v35 = vld [vmem:[%s6558_s9] sm:$0xff] (!%p1360_p10)   ;;  %4865 = vmatprep.subr.bf16.mxu0 (!%p1360_p10), %v5499_v34  ;;  %5441 = vmatprep.subr.bf16.mxu1 (!%p1360_p10), %v5499_v34  ;;  %v5502_v37 = vld [vmem:[%s6558_s9 + $0x8] sm:$0xff] (!%p1360_p10)   ;;  %v5504_v39 = vld [vmem:[%s6558_s9 + $0x10] sm:$0xff] (!%p1360_p10)  }
  0xe0   : > { %4866 = vmatpush3.bf16.msra.mxu0 (!%p1360_p10), %v5500_v35  ;;  %5449 = vmatpush3.bf16.msra.mxu1 (!%p1360_p10), %v5500_v35  ;;  %v5505_v40 = vld [vmem:[%s6558_s9 + $0x58] sm:$0xff] (!%p1360_p10)   ;;  %v5507_v42 = vld [vmem:[%s6558_s9 + $0x60] sm:$0xff] (!%p1360_p10)   ;;  %v5509_v44 = vld [vmem:[%s6558_s9 + $0x68] sm:$0xff] (!%p1360_p10)  }
  0xe1   : > { %4867 = vmatprep.subr.bf16.mxu0 %v5501_v36  ;;  %5442 = vmatprep.subr.bf16.mxu1 %v5501_v36  ;;  %v5506_v41 = vld [vmem:[%s6558_s9 + $0x18] sm:$0xff]   ;;  %v5508_v43 = vld [vmem:[%s6558_s9 + $0x20] sm:$0xff]   ;;  %v5510_v45 = vld [vmem:[%s6558_s9 + $0x28] sm:$0xff]   ;;  %s1405_s8 = scalar_select %p1404_p11, %s5889_s14, 3 }
  0xe2   : > { %v5511_v46 = vld [vmem:[%s6558_s9 + $0x70] sm:$0xff]   ;;  %v5513_v48 = vld [vmem:[%s6558_s9 + $0x78] sm:$0xff]   ;;  %v5521_v50 = vld [vmem:[%s6558_s9 + $0xc0] sm:$0xff]   ;;  %s4862_s12 = sshll.u32 (%p5954_p6), %s5889_s14, 3 }
  0xe3   : > { %v5512_v47 = vld [vmem:[%s6558_s9 + $0x30] sm:$0xff]   ;;  %v5514_v49 = vld [vmem:[%s6558_s9 + $0x38] sm:$0xff]   ;;  %v5522_v53 = vld [vmem:[%s6558_s9 + $0x140] sm:$0xff]   ;;  %s1406_s28 = scalar_lea.vmem %s7404_s2, %s1405_s8  ;;  %s4380_s5 = scalar_lea.vmem (%p5954_p6), %s7405_s3, %s4862_s12 }
  0xe4   : > { %4868 = vmatpush3.bf16.msra.mxu0 %v5502_v37  ;;  %5450 = vmatpush3.bf16.msra.mxu1 %v5502_v37  ;;  %v5523_v54 = vld [vmem:[%s6558_s9 + $0x80] sm:$0xff]   ;;  %v5525_v56 = vld [vmem:[%s6558_s9 + $0xc8] sm:$0xff]   ;;  %v5535_v62 = vld [vmem:[%s6558_s9 + $0xd0] sm:$0xff]  }
  0xe5   : > { %4869 = vmatprep.subr.bf16.mxu0 %v5503_v38  ;;  %5443 = vmatprep.subr.bf16.mxu1 %v5503_v38  ;;  %v5524_v55 = vld [vmem:[%s6558_s9 + $0x100] sm:$0xff]   ;;  %v5526_v58 = vld [vmem:[%s6558_s9 + $0x148] sm:$0xff]   ;;  %v5536_v1 = vld [vmem:[%s6558_s9 + $0x150] sm:$0xff]  }
  0xe6   : > { %v5527_v60 = vld [vmem:[%s6558_s9 + $0x88] sm:$0xff]   ;;  %v5537_v2 = vld [vmem:[%s6558_s9 + $0x90] sm:$0xff]   ;;  %v5539_v4 = vld [vmem:[%s6558_s9 + $0xd8] sm:$0xff]  }
  0xe7   : > { %v5528_v61 = vld [vmem:[%s6558_s9 + $0x108] sm:$0xff]   ;;  %v5538_v3 = vld [vmem:[%s6558_s9 + $0x110] sm:$0xff]   ;;  %v5540_v5 = vld [vmem:[%s6558_s9 + $0x158] sm:$0xff]  }
  0xe8   : > { %4870 = vmatpush3.bf16.msra.mxu0 %v5504_v39  ;;  %5451 = vmatpush3.bf16.msra.mxu1 %v5504_v39  ;;  %v5541_v7 = vld [vmem:[%s6558_s9 + $0x98] sm:$0xff]   ;;  %v5549_v10 = vld [vmem:[%s6558_s9 + $0xe0] sm:$0xff]   ;;  %v5553_v16 = vld [vmem:[%s6558_s9 + $0xe8] sm:$0xff]  }
  0xe9   : > { %4871 = vmatprep.subr.bf16.mxu0 %v5505_v40  ;;  %5444 = vmatprep.subr.bf16.mxu1 %v5505_v40  ;;  %v5542_v9 = vld [vmem:[%s6558_s9 + $0x118] sm:$0xff]   ;;  %v5548_v12 = vld [vmem:[%s7402_s0 + $0x360] ss:$72 sps:$4 sm:$0xff]   ;;  %v5563_v22 = vld [vmem:[%s6558_s9 + $0xf0] sm:$0xff]  }
  0xea   : > { %v5550_v13 = vld [vmem:[%s6558_s9 + $0x160] sm:$0xff]   ;;  %v5554_v17 = vld [vmem:[%s6558_s9 + $0x168] sm:$0xff]   ;;  %v5557_v18 = vld [vmem:[%s7402_s0 + $0x1b4] ss:$72 sps:$4 sm:$0xff]  }
  0xeb   : > { %v5551_v14 = vld [vmem:[%s6558_s9 + $0xa0] sm:$0xff]   ;;  %v5555_v19 = vld [vmem:[%s6558_s9 + $0xa8] sm:$0xff]   ;;  %v5559_v20 = vld [vmem:[%s7402_s0 + $0x3f4] ss:$72 sps:$4 sm:$0xff]  }
  0xec   : > { %4872 = vmatpush3.bf16.msra.mxu0 %v5506_v41  ;;  %5452 = vmatpush3.bf16.msra.mxu1 %v5506_v41  ;;  %v5552_v15 = vld [vmem:[%s6558_s9 + $0x120] sm:$0xff]   ;;  %v5556_v21 = vld [vmem:[%s6558_s9 + $0x128] sm:$0xff]   ;;  %v5561_v23 = vld [vmem:[%s7402_s0 + $0x1b0] ss:$72 sps:$4 sm:$0xff]  }
  0xed   : > { %4873 = vmatprep.subr.bf16.mxu0 %v5507_v42  ;;  %5445 = vmatprep.subr.bf16.mxu1 %v5507_v42  ;;  %v5562_v24 = vld [vmem:[%s7402_s0 + $0x3f0] ss:$72 sps:$4 sm:$0xff]   ;;  %v5573_v30 = vld [vmem:[%s7402_s0 + $0xc] ss:$72 sps:$4 sm:$0xff]   ;;  %v5577_v34 = vld [vmem:[%s6558_s9 + $0x1c0] sm:$0xff]  }
  0xee   : > { %v5564_v25 = vld [vmem:[%s6558_s9 + $0x170] sm:$0xff]   ;;  %v5567_v28 = vld [vmem:[%s6558_s9 + $0xf8] sm:$0xff]   ;;  %v5579_v36 = vld [vmem:[%s6558_s9 + $0x240] sm:$0xff]  }
  0xef   : > { %v5565_v26 = vld [vmem:[%s6558_s9 + $0xb0] sm:$0xff]   ;;  %v5568_v29 = vld [vmem:[%s6558_s9 + $0x178] sm:$0xff]   ;;  %v5578_v38 = vld [vmem:[%s6558_s9 + $0x180] sm:$0xff]  }
  0xf0   : > { %4874 = vmatpush3.bf16.msra.mxu0 %v5508_v43  ;;  %5453 = vmatpush3.bf16.msra.mxu1 %v5508_v43  ;;  %v5566_v27 = vld [vmem:[%s6558_s9 + $0x130] sm:$0xff]   ;;  %v5569_v31 = vld [vmem:[%s6558_s9 + $0xb8] sm:$0xff]   ;;  %v5580_v39 = vld [vmem:[%s6558_s9 + $0x200] sm:$0xff]  }
  0xf1   : > { %4875 = vmatprep.subr.bf16.mxu0 %v5509_v44  ;;  %5446 = vmatprep.subr.bf16.mxu1 %v5509_v44  ;;  %v5576_v32 = vld [vmem:[%s7402_s0 + $0x14] ss:$72 sps:$4 sm:$0xff]   ;;  %v5571_v35 = vld [vmem:[%s7402_s0 + $0x8] ss:$72 sps:$4 sm:$0xff]   ;;  %v5583_v41 = vld [vmem:[%s7402_s0 + $0xa4] ss:$72 sps:$4 sm:$0xff]  }
  0xf2   : > { %v5570_v33 = vld [vmem:[%s6558_s9 + $0x138] sm:$0xff]   ;;  %v5587_v42 = vld [vmem:[%s6558_s9 + $0x1c8] sm:$0xff]  }
  0xf3   : > { %v5574_v37 = vld [vmem:[%s7402_s0 + $0x10] ss:$72 sps:$4 sm:$0xff]   ;;  %v5581_v40 = vld [vmem:[%s7402_s0 + $0x9c] ss:$72 sps:$4 sm:$0xff]   ;;  %v5588_v43 = vld [vmem:[%s6558_s9 + $0x188] sm:$0xff]  }
  0xf4   : > { %4876 = vmatpush3.bf16.msra.mxu0 %v5510_v45  ;;  %5454 = vmatpush3.bf16.msra.mxu1 %v5510_v45  ;;  %v5589_v44 = vld [vmem:[%s6558_s9 + $0x248] sm:$0xff]  }
  0xf5   : > { %4877 = vmatprep.subr.bf16.mxu0 %v5511_v46  ;;  %5447 = vmatprep.subr.bf16.mxu1 %v5511_v46  ;;  %v5590_v45 = vld [vmem:[%s6558_s9 + $0x208] sm:$0xff]   ;;  %v5585_v46 = vld [vmem:[%s7402_s0 + $0x98] ss:$72 sps:$4 sm:$0xff]  }
  0xf8   : > { %4878 = vmatpush3.bf16.msra.mxu0 %v5512_v47  ;;  %5455 = vmatpush3.bf16.msra.mxu1 %v5512_v47  ;;  %v5586_v47 = vld [vmem:[%s7402_s0 + $0xa0] ss:$72 sps:$4 sm:$0xff]  }
  0xf9   : > { %4879 = vmatprep.subr.bf16.mxu0 %v5513_v48  ;;  %5448 = vmatprep.subr.bf16.mxu1 %v5513_v48  ;;  %v5591_v48 = vld [vmem:[%s7402_s0 + $0x12c] ss:$72 sps:$4 sm:$0xff]  }
  0xfc   : > { %4880 = vmatpush3.bf16.msra.mxu0 %v5514_v49  ;;  %5456 = vmatpush3.bf16.msra.mxu1 %v5514_v49  ;;  %v5593_v49 = vld [vmem:[%s7402_s0 + $0x134] ss:$72 sps:$4 sm:$0xff]  }
  0xfd   : > { %4929 = vmatprep.subr.bf16.mxu1 %v5521_v50  ;;  %4993 = vmatprep.subr.bf16.mxu0 %v5522_v53  ;;  %v5597_v50 = vld [vmem:[%s6558_s9 + $0x1d0] sm:$0xff]  }
  0xfe   : > { %v5600_v53 = vld [vmem:[%s6558_s9 + $0x210] sm:$0xff]  }
  0xff   : > { %3465 = vmatmul.mubr.bf16.vlgmr.msra.gmra.mrb[0].mxu0 %v5515_v51  ;;  %3497 = vmatmul.mubr.bf16.vlgmr.msra.gmra.mrb[0].mxu1 %v5518_v52  ;;  %v5598_v51 = vld [vmem:[%s6558_s9 + $0x190] sm:$0xff]  }
 0x100   : > { %4930 = vmatpush3.bf16.msra.mxu1 %v5523_v54  ;;  %4994 = vmatpush3.bf16.msra.mxu0 %v5524_v55  ;;  %v5599_v52 = vld [vmem:[%s6558_s9 + $0x250] sm:$0xff]  }
 0x101   : > { %4931 = vmatprep.subr.bf16.mxu1 %v5525_v56  ;;  %4995 = vmatprep.subr.bf16.mxu0 %v5526_v58  ;;  %v5595_v54 = vld [vmem:[%s7402_s0 + $0x128] ss:$72 sps:$4 sm:$0xff]   ;;  %v5601_v56 = vld [vmem:[%s7402_s0 + $0x1bc] ss:$72 sps:$4 sm:$0xff]  }
 0x102   : > { %3472 = vmatprep.mubr.bf16.mxu0 %v5529_v57  ;;  %3504 = vmatprep.mubr.bf16.mxu1 %v5531_v59  ;;  %v5596_v55 = vld [vmem:[%s7402_s0 + $0x130] ss:$72 sps:$4 sm:$0xff]   ;;  %v5603_v57 = vld [vmem:[%s7402_s0 + $0x1c4] ss:$72 sps:$4 sm:$0xff]  }
 0x103   : > { %v5607_v58 = vld [vmem:[%s6558_s9 + $0x1d8] sm:$0xff]  }
 0x104   : > { %4932 = vmatpush3.bf16.msra.mxu1 %v5527_v60  ;;  %4996 = vmatpush3.bf16.msra.mxu0 %v5528_v61  ;;  %v5608_v59 = vld [vmem:[%s6558_s9 + $0x198] sm:$0xff]  }
 0x105   : > { %4933 = vmatprep.subr.bf16.mxu1 %v5535_v62  ;;  %4997 = vmatprep.subr.bf16.mxu0 %v5536_v1  ;;  %v5609_v60 = vld [vmem:[%s6558_s9 + $0x258] sm:$0xff]   ;;  %v5611_v1 = vld [vmem:[%s7402_s0 + $0x24c] ss:$72 sps:$4 sm:$0xff]  }
 0x106   : > { %v5610_v61 = vld [vmem:[%s6558_s9 + $0x218] sm:$0xff]  }
 0x107   : > { %3473 = vmatmul.mubr.bf16.gmra.mrb[4].mxu0 %v5533_v63  ;;  %3505 = vmatmul.mubr.bf16.gmra.mrb[4].mxu1 %v5534_v0  ;;  %v5605_v62 = vld [vmem:[%s7402_s0 + $0x1b8] ss:$72 sps:$4 sm:$0xff]  }
 0x108   : > { %4934 = vmatpush3.bf16.msra.mxu1 %v5537_v2  ;;  %4998 = vmatpush3.bf16.msra.mxu0 %v5538_v3  ;;  %v5606_v63 = vld [vmem:[%s7402_s0 + $0x1c0] ss:$72 sps:$4 sm:$0xff]   ;;  %v5613_v2 = vld [vmem:[%s7402_s0 + $0x254] ss:$72 sps:$4 sm:$0xff]  }
 0x109   : > { %4935 = vmatprep.subr.bf16.mxu1 %v5539_v4  ;;  %4999 = vmatprep.subr.bf16.mxu0 %v5540_v5  ;;  %v5617_v0 = vld [vmem:[%s6558_s9 + $0x1e0] sm:$0xff]  }
 0x10a   : > { %3480 = vmatprep.mubr.bf16.mxu0 %v5543_v6  ;;  %3512 = vmatprep.mubr.bf16.mxu1 %v5545_v8  ;;  %v5618_v3 = vld [vmem:[%s6558_s9 + $0x1a0] sm:$0xff]   ;;  %v5627_v6 = vld [vmem:[%s6558_s9 + $0x1e8] sm:$0xff]   ;;  %v5616_v8 = vld [vmem:[%s7402_s0 + $0x250] ss:$72 sps:$4 sm:$0xff]  }
 0x10b   : > { %v5619_v4 = vld [vmem:[%s6558_s9 + $0x260] sm:$0xff]  }
 0x10c   : > { %4936 = vmatpush3.bf16.msra.mxu1 %v5541_v7  ;;  %5000 = vmatpush3.bf16.msra.mxu0 %v5542_v9  ;;  %v5620_v5 = vld [vmem:[%s6558_s9 + $0x220] sm:$0xff]   ;;  %v5615_v7 = vld [vmem:[%s7402_s0 + $0x248] ss:$72 sps:$4 sm:$0xff]  }
 0x10d   : > { %4937 = vmatprep.subr.bf16.mxu1 %v5549_v10  ;;  %5001 = vmatprep.subr.bf16.mxu0 %v5550_v13  ;;  %v5628_v9 = vld [vmem:[%s6558_s9 + $0x1a8] sm:$0xff]   ;;  %v5621_v10 = vld [vmem:[%s7402_s0 + $0x2dc] ss:$72 sps:$4 sm:$0xff]  }
 0x10e   : > { %v5623_v13 = vld [vmem:[%s7402_s0 + $0x2e4] ss:$72 sps:$4 sm:$0xff]  }
 0x10f   : > { %3481 = vmatmul.mubr.bf16.gmra.mrb[8].mxu0 %v5547_v11  ;;  %3513 = vmatmul.mubr.bf16.gmra.mrb[8].mxu1 %v5548_v12  ;;  %v5629_v11 = vld [vmem:[%s6558_s9 + $0x268] sm:$0xff]  }
 0x110   : > { %4938 = vmatpush3.bf16.msra.mxu1 %v5551_v14  ;;  %5002 = vmatpush3.bf16.msra.mxu0 %v5552_v15  ;;  %v5630_v12 = vld [vmem:[%s6558_s9 + $0x228] sm:$0xff]   ;;  %v5637_v14 = vld [vmem:[%s6558_s9 + $0x1f0] sm:$0xff]  }
 0x111   : > { %4939 = vmatprep.subr.bf16.mxu1 %v5553_v16  ;;  %5003 = vmatprep.subr.bf16.mxu0 %v5554_v17  ;;  %v5638_v15 = vld [vmem:[%s6558_s9 + $0x1b0] sm:$0xff]   ;;  %v5625_v16 = vld [vmem:[%s7402_s0 + $0x2d8] ss:$72 sps:$4 sm:$0xff]  }
 0x112   : > { %3488 = vmatprep.mubr.bf16.mxu0 %v5557_v18  ;;  %3520 = vmatprep.mubr.bf16.mxu1 %v5559_v20  ;;  %v5639_v17 = vld [vmem:[%s6558_s9 + $0x270] sm:$0xff]  }
 0x113   : > { %v5640_v18 = vld [vmem:[%s6558_s9 + $0x230] sm:$0xff]  }
 0x114   : > { %4940 = vmatpush3.bf16.msra.mxu1 %v5555_v19  ;;  %5004 = vmatpush3.bf16.msra.mxu0 %v5556_v21  ;;  %v5626_v19 = vld [vmem:[%s7402_s0 + $0x2e0] ss:$72 sps:$4 sm:$0xff]   ;;  %v5631_v20 = vld [vmem:[%s7402_s0 + $0x36c] ss:$72 sps:$4 sm:$0xff]  }
 0x115   : > { %4941 = vmatprep.subr.bf16.mxu1 %v5563_v22  ;;  %5005 = vmatprep.subr.bf16.mxu0 %v5564_v25  ;;  %v5633_v21 = vld [vmem:[%s7402_s0 + $0x374] ss:$72 sps:$4 sm:$0xff]  }
 0x116   : > { %v5647_v22 = vld [vmem:[%s6558_s9 + $0x1f8] sm:$0xff]  }
 0x117   : > { %3489 = vmatmul.mubr.bf16.gmra.mrb[12].mxu0 %v5561_v23  ;;  %3521 = vmatmul.mubr.bf16.gmra.mrb[12].mxu1 %v5562_v24  ;;  %v5648_v23 = vld [vmem:[%s6558_s9 + $0x1b8] sm:$0xff]  }
 0x118   : > { %4942 = vmatpush3.bf16.msra.mxu1 %v5565_v26  ;;  %5006 = vmatpush3.bf16.msra.mxu0 %v5566_v27  ;;  %v5649_v24 = vld [vmem:[%s6558_s9 + $0x278] sm:$0xff]   ;;  %v5635_v26 = vld [vmem:[%s7402_s0 + $0x368] ss:$72 sps:$4 sm:$0xff]  }
 0x119   : > { %4943 = vmatprep.subr.bf16.mxu1 %v5567_v28  ;;  %5007 = vmatprep.subr.bf16.mxu0 %v5568_v29  ;;  %v5650_v25 = vld [vmem:[%s6558_s9 + $0x238] sm:$0xff]   ;;  %v5643_v29 = vld [vmem:[%s7402_s0 + $0x404] ss:$72 sps:$4 sm:$0xff]  }
 0x11a   : > { %3561 = vmatprep.mubr.bf16.mxu1 %v5573_v30  ;;  %3658 = vmatprep.mubr.bf16.mxu0 %v5576_v32  ;;  %v5636_v27 = vld [vmem:[%s7402_s0 + $0x370] ss:$72 sps:$4 sm:$0xff]   ;;  %v5641_v28 = vld [vmem:[%s7402_s0 + $0x3fc] ss:$72 sps:$4 sm:$0xff]  }
 0x11b   : > { %v5657_v30 = vld [vmem:[%s6558_s9 + $0x2c0] sm:$0xff]  }
 0x11c   : > { %4944 = vmatpush3.bf16.msra.mxu1 %v5569_v31  ;;  %5008 = vmatpush3.bf16.msra.mxu0 %v5570_v33  ;;  %v5659_v31 = vld [vmem:[%s6558_s9 + $0x340] sm:$0xff]  }
 0x11d   : > { %5057 = vmatprep.subr.bf16.mxu1 %v5577_v34  ;;  %5121 = vmatprep.subr.bf16.mxu0 %v5579_v36  ;;  %v5645_v32 = vld [vmem:[%s7402_s0 + $0x3f8] ss:$72 sps:$4 sm:$0xff]   ;;  %v5653_v34 = vld [vmem:[%s7402_s0 + $0x1c] ss:$72 sps:$4 sm:$0xff]  }
 0x11e   : > { %v5646_v33 = vld [vmem:[%s7402_s0 + $0x400] ss:$72 sps:$4 sm:$0xff]  }
 0x11f   : > { %3562 = vmatmul.mubr.bf16.vlgmr.msra.gmra.mrb[16].mxu1 %v5571_v35  ;;  %3659 = vmatmul.mubr.bf16.vlgmr.msra.gmra.mrb[16].mxu0 %v5574_v37  ;;  %v5656_v35 = vld [vmem:[%s7402_s0 + $0x24] ss:$72 sps:$4 sm:$0xff]   ;;  %v5651_v36 = vld [vmem:[%s7402_s0 + $0x18] ss:$72 sps:$4 sm:$0xff]  }
 0x120   : > { %5058 = vmatpush3.bf16.msra.mxu1 %v5578_v38  ;;  %5122 = vmatpush3.bf16.msra.mxu0 %v5580_v39  ;;  %v5654_v37 = vld [vmem:[%s7402_s0 + $0x20] ss:$72 sps:$4 sm:$0xff]  }
 0x121   : > { %3569 = vmatprep.mubr.bf16.mxu1 %v5581_v40  ;;  %3666 = vmatprep.mubr.bf16.mxu0 %v5583_v41  ;;  %v5658_v38 = vld [vmem:[%s6558_s9 + $0x280] sm:$0xff]   ;;  %v5661_v40 = vld [vmem:[%s7402_s0 + $0xac] ss:$72 sps:$4 sm:$0xff]  }
 0x122   : > { %5059 = vmatprep.subr.bf16.mxu1 %v5587_v42  ;;  %5123 = vmatprep.subr.bf16.mxu0 %v5589_v44  ;;  %v5660_v39 = vld [vmem:[%s6558_s9 + $0x300] sm:$0xff]   ;;  %v5663_v41 = vld [vmem:[%s7402_s0 + $0xb4] ss:$72 sps:$4 sm:$0xff]   ;;  %v5667_v42 = vld [vmem:[%s6558_s9 + $0x2c8] sm:$0xff]  }
 0x123   : > { %v5668_v44 = vld [vmem:[%s6558_s9 + $0x288] sm:$0xff]  }
 0x124   : > { %5060 = vmatpush3.bf16.msra.mxu1 %v5588_v43  ;;  %5124 = vmatpush3.bf16.msra.mxu0 %v5590_v45  ;;  %v5669_v43 = vld [vmem:[%s6558_s9 + $0x348] sm:$0xff]  }
 0x125   : > { %5061 = vmatprep.subr.bf16.mxu1 %v5597_v50  ;;  %5125 = vmatprep.subr.bf16.mxu0 %v5599_v52  ;;  %v5670_v45 = vld [vmem:[%s6558_s9 + $0x308] sm:$0xff]   ;;  %v5671_v50 = vld [vmem:[%s7402_s0 + $0x13c] ss:$72 sps:$4 sm:$0xff]   ;;  %v5678_v52 = vld [vmem:[%s6558_s9 + $0x290] sm:$0xff]  }
 0x127   : > { %3570 = vmatmul.mubr.bf16.gmra.mrb[20].mxu1 %v5585_v46  ;;  %3667 = vmatmul.mubr.bf16.gmra.mrb[20].mxu0 %v5586_v47  ;;  %v5677_v46 = vld [vmem:[%s6558_s9 + $0x2d0] sm:$0xff]  }
 0x128   : > { %3577 = vmatprep.mubr.bf16.mxu1 %v5591_v48  ;;  %3674 = vmatprep.mubr.bf16.mxu0 %v5593_v49  ;;  %v5665_v47 = vld [vmem:[%s7402_s0 + $0xa8] ss:$72 sps:$4 sm:$0xff]  }
 0x129   : > { %5062 = vmatpush3.bf16.msra.mxu1 %v5598_v51  ;;  %5126 = vmatpush3.bf16.msra.mxu0 %v5600_v53  ;;  %v5666_v48 = vld [vmem:[%s7402_s0 + $0xb0] ss:$72 sps:$4 sm:$0xff]   ;;  %v5673_v51 = vld [vmem:[%s7402_s0 + $0x144] ss:$72 sps:$4 sm:$0xff]  }
 0x12a   : > { %5063 = vmatprep.subr.bf16.mxu1 %v5607_v58  ;;  %5127 = vmatprep.subr.bf16.mxu0 %v5609_v60  ;;  %v5679_v49 = vld [vmem:[%s6558_s9 + $0x350] sm:$0xff]   ;;  %v5675_v58 = vld [vmem:[%s7402_s0 + $0x138] ss:$72 sps:$4 sm:$0xff]  }
 0x12b   : > { %v5680_v53 = vld [vmem:[%s6558_s9 + $0x310] sm:$0xff]   ;;  %v5699_v60 = vld [vmem:[%s6558_s9 + $0x360] sm:$0xff]  }
 0x12d   : > { %5064 = vmatpush3.bf16.msra.mxu1 %v5608_v59  ;;  %5128 = vmatpush3.bf16.msra.mxu0 %v5610_v61  ;;  %v5697_v59 = vld [vmem:[%s6558_s9 + $0x2e0] sm:$0xff]  }
 0x12e   : > { %5065 = vmatprep.subr.bf16.mxu1 %v5617_v0  ;;  %5129 = vmatprep.subr.bf16.mxu0 %v5619_v4  ;;  %v5676_v61 = vld [vmem:[%s7402_s0 + $0x140] ss:$72 sps:$4 sm:$0xff]  }
 0x12f   : > { %3578 = vmatmul.mubr.bf16.gmra.mrb[24].mxu1 %v5595_v54  ;;  %3675 = vmatmul.mubr.bf16.gmra.mrb[24].mxu0 %v5596_v55  ;;  %v5687_v54 = vld [vmem:[%s6558_s9 + $0x2d8] sm:$0xff]   ;;  %v5698_v0 = vld [vmem:[%s6558_s9 + $0x2a0] sm:$0xff]   ;;  %v5708_v4 = vld [vmem:[%s6558_s9 + $0x2a8] sm:$0xff]  }
 0x130   : > { %3585 = vmatprep.mubr.bf16.mxu1 %v5601_v56  ;;  %3682 = vmatprep.mubr.bf16.mxu0 %v5603_v57  ;;  %v5689_v55 = vld [vmem:[%s6558_s9 + $0x358] sm:$0xff]  }
 0x131   : > { %5066 = vmatpush3.bf16.msra.mxu1 %v5618_v3  ;;  %5130 = vmatpush3.bf16.msra.mxu0 %v5620_v5  ;;  %v5688_v56 = vld [vmem:[%s6558_s9 + $0x298] sm:$0xff]   ;;  %v5709_v3 = vld [vmem:[%s6558_s9 + $0x368] sm:$0xff]  }
 0x132   : > { %5067 = vmatprep.subr.bf16.mxu1 %v5627_v6  ;;  %5131 = vmatprep.subr.bf16.mxu0 %v5629_v11  ;;  %v5690_v57 = vld [vmem:[%s6558_s9 + $0x318] sm:$0xff]   ;;  %v5685_v5 = vld [vmem:[%s7402_s0 + $0x1c8] ss:$72 sps:$4 sm:$0xff]  }
 0x133   : > { %v5710_v6 = vld [vmem:[%s6558_s9 + $0x328] sm:$0xff]   ;;  %v5718_v11 = vld [vmem:[%s6558_s9 + $0x2b0] sm:$0xff]  }
 0x135   : > { %5068 = vmatpush3.bf16.msra.mxu1 %v5628_v9  ;;  %5132 = vmatpush3.bf16.msra.mxu0 %v5630_v12  ;;  %v5693_v9 = vld [vmem:[%s7402_s0 + $0x264] ss:$72 sps:$4 sm:$0xff]   ;;  %v5719_v12 = vld [vmem:[%s6558_s9 + $0x370] sm:$0xff]  }
 0x136   : > { %5069 = vmatprep.subr.bf16.mxu1 %v5637_v14  ;;  %5133 = vmatprep.subr.bf16.mxu0 %v5639_v17  ;;  %v5695_v14 = vld [vmem:[%s7402_s0 + $0x258] ss:$72 sps:$4 sm:$0xff]   ;;  %v5703_v17 = vld [vmem:[%s7402_s0 + $0x2f4] ss:$72 sps:$4 sm:$0xff]  }
 0x137   : > { %3586 = vmatmul.mubr.bf16.gmra.mrb[28].mxu1 %v5605_v62  ;;  %3683 = vmatmul.mubr.bf16.gmra.mrb[28].mxu0 %v5606_v63  ;;  %v5681_v62 = vld [vmem:[%s7402_s0 + $0x1cc] ss:$72 sps:$4 sm:$0xff]  }
 0x138   : > { %3593 = vmatprep.mubr.bf16.mxu1 %v5611_v1  ;;  %3690 = vmatprep.mubr.bf16.mxu0 %v5613_v2  ;;  %v5683_v63 = vld [vmem:[%s7402_s0 + $0x1d4] ss:$72 sps:$4 sm:$0xff]   ;;  %v5700_v1 = vld [vmem:[%s6558_s9 + $0x320] sm:$0xff]   ;;  %v5707_v2 = vld [vmem:[%s6558_s9 + $0x2e8] sm:$0xff]  }
 0x139   : > { %5070 = vmatpush3.bf16.msra.mxu1 %v5638_v15  ;;  %5134 = vmatpush3.bf16.msra.mxu0 %v5640_v18  ;;  %v5696_v15 = vld [vmem:[%s7402_s0 + $0x260] ss:$72 sps:$4 sm:$0xff]   ;;  %v5727_v18 = vld [vmem:[%s6558_s9 + $0x2f8] sm:$0xff]  }
 0x13a   : > { %5071 = vmatprep.subr.bf16.mxu1 %v5647_v22  ;;  %5135 = vmatprep.subr.bf16.mxu0 %v5649_v24  ;;  %v5705_v22 = vld [vmem:[%s7402_s0 + $0x2e8] ss:$72 sps:$4 sm:$0xff]   ;;  %v5737_v24 = vld [vmem:[%s6558_s9 + $0x3c0] sm:$0xff]  }
 0x13d   : > { %5072 = vmatpush3.bf16.msra.mxu1 %v5648_v23  ;;  %5136 = vmatpush3.bf16.msra.mxu0 %v5650_v25  ;;  %v5706_v23 = vld [vmem:[%s7402_s0 + $0x2f0] ss:$72 sps:$4 sm:$0xff]   ;;  %v5711_v25 = vld [vmem:[%s7402_s0 + $0x37c] ss:$72 sps:$4 sm:$0xff]  }
 0x13e   : > { %5185 = vmatprep.subr.bf16.mxu1 %v5657_v30  ;;  %5249 = vmatprep.subr.bf16.mxu0 %v5659_v31  ;;  %v5721_v30 = vld [vmem:[%s7402_s0 + $0x40c] ss:$72 sps:$4 sm:$0xff]  }
 0x13f   : > { %3594 = vmatmul.mubr.bf16.gmra.mrb[32].mxu1 %v5615_v7  ;;  %3691 = vmatmul.mubr.bf16.gmra.mrb[32].mxu0 %v5616_v8  ;;  %v5686_v7 = vld [vmem:[%s7402_s0 + $0x1d0] ss:$72 sps:$4 sm:$0xff]   ;;  %v5691_v8 = vld [vmem:[%s7402_s0 + $0x25c] ss:$72 sps:$4 sm:$0xff]  }
 0x140   : > { %3601 = vmatprep.mubr.bf16.mxu1 %v5621_v10  ;;  %3698 = vmatprep.mubr.bf16.mxu0 %v5623_v13  ;;  %v5717_v10 = vld [vmem:[%s6558_s9 + $0x2f0] sm:$0xff]  }
 0x141   : > { %v5720_v13 = vld [vmem:[%s6558_s9 + $0x330] sm:$0xff]  }
 0x142   : > { %v5723_v31 = vld [vmem:[%s7402_s0 + $0x414] ss:$72 sps:$4 sm:$0xff]  }
 0x147   : > { %3602 = vmatmul.mubr.bf16.gmra.mrb[36].mxu1 %v5625_v16  ;;  %3699 = vmatmul.mubr.bf16.gmra.mrb[36].mxu0 %v5626_v19  ;;  %v5701_v16 = vld [vmem:[%s7402_s0 + $0x2ec] ss:$72 sps:$4 sm:$0xff]   ;;  %v5728_v19 = vld [vmem:[%s6558_s9 + $0x2b8] sm:$0xff]  }
 0x148   : > { %3609 = vmatprep.mubr.bf16.mxu1 %v5631_v20  ;;  %3706 = vmatprep.mubr.bf16.mxu0 %v5633_v21  ;;  %v5729_v20 = vld [vmem:[%s6558_s9 + $0x378] sm:$0xff]  }
 0x149   : > { %v5730_v21 = vld [vmem:[%s6558_s9 + $0x338] sm:$0xff]  }
 0x14f   : > { %3610 = vmatmul.mubr.bf16.gmra.mrb[40].mxu1 %v5635_v26  ;;  %3707 = vmatmul.mubr.bf16.gmra.mrb[40].mxu0 %v5636_v27  ;;  %v5739_v26 = vld [vmem:[%s6558_s9 + $0x440] sm:$0xff]  }
 0x150   : > { %3617 = vmatprep.mubr.bf16.mxu1 %v5641_v28  ;;  %3714 = vmatprep.mubr.bf16.mxu0 %v5643_v29  ;;  %v5713_v27 = vld [vmem:[%s7402_s0 + $0x384] ss:$72 sps:$4 sm:$0xff]   ;;  %v5715_v28 = vld [vmem:[%s7402_s0 + $0x378] ss:$72 sps:$4 sm:$0xff]  }
 0x151   : > { %v5716_v29 = vld [vmem:[%s7402_s0 + $0x380] ss:$72 sps:$4 sm:$0xff]  }
 0x157   : > { %3618 = vmatmul.mubr.bf16.gmra.mrb[44].mxu1 %v5645_v32  ;;  %3715 = vmatmul.mubr.bf16.gmra.mrb[44].mxu0 %v5646_v33  ;;  %v5725_v32 = vld [vmem:[%s7402_s0 + $0x408] ss:$72 sps:$4 sm:$0xff]  }
 0x158   : > { %3755 = vmatprep.mubr.bf16.mxu1 %v5653_v34  ;;  %3852 = vmatprep.mubr.bf16.mxu0 %v5656_v35  ;;  %v5726_v33 = vld [vmem:[%s7402_s0 + $0x410] ss:$72 sps:$4 sm:$0xff]   ;;  %v5733_v34 = vld [vmem:[%s7402_s0 + $0x2c] ss:$72 sps:$4 sm:$0xff]  }
 0x159   : > { %v5736_v35 = vld [vmem:[%s7402_s0 + $0x34] ss:$72 sps:$4 sm:$0xff]  }
 0x15f   : > { %3756 = vmatmul.mubr.bf16.vlgmr.msra.gmra.mrb[48].mxu1 %v5651_v36  ;;  %3853 = vmatmul.mubr.bf16.vlgmr.msra.gmra.mrb[48].mxu0 %v5654_v37  ;;  %v5731_v36 = vld [vmem:[%s7402_s0 + $0x28] ss:$72 sps:$4 sm:$0xff]  }
 0x160   : > { %5186 = vmatpush3.bf16.msra.mxu1 %v5658_v38  ;;  %5250 = vmatpush3.bf16.msra.mxu0 %v5660_v39  ;;  %v5734_v37 = vld [vmem:[%s7402_s0 + $0x30] ss:$72 sps:$4 sm:$0xff]   ;;  %v5738_v38 = vld [vmem:[%s6558_s9 + $0x380] sm:$0xff]  }
 0x161   : > { %3763 = vmatprep.mubr.bf16.mxu1 %v5661_v40  ;;  %3860 = vmatprep.mubr.bf16.mxu0 %v5663_v41  ;;  %v5740_v39 = vld [vmem:[%s6558_s9 + $0x400] sm:$0xff]  }
 0x162   : > { %5187 = vmatprep.subr.bf16.mxu1 %v5667_v42  ;;  %5251 = vmatprep.subr.bf16.mxu0 %v5669_v43  ;;  %v5741_v40 = vld [vmem:[%s7402_s0 + $0xbc] ss:$72 sps:$4 sm:$0xff]   ;;  %v5747_v42 = vld [vmem:[%s6558_s9 + $0x3c8] sm:$0xff]  }
 0x163   : > { %v5743_v41 = vld [vmem:[%s7402_s0 + $0xc4] ss:$72 sps:$4 sm:$0xff]  }
 0x164   : > { %5188 = vmatpush3.bf16.msra.mxu1 %v5668_v44  ;;  %5252 = vmatpush3.bf16.msra.mxu0 %v5670_v45  ;;  %v5749_v43 = vld [vmem:[%s6558_s9 + $0x448] sm:$0xff]  }
 0x165   : > { %5189 = vmatprep.subr.bf16.mxu1 %v5677_v46  ;;  %5253 = vmatprep.subr.bf16.mxu0 %v5679_v49  ;;  %v5748_v44 = vld [vmem:[%s6558_s9 + $0x388] sm:$0xff]   ;;  %v5745_v46 = vld [vmem:[%s7402_s0 + $0xb8] ss:$72 sps:$4 sm:$0xff]   ;;  %v5759_v49 = vld [vmem:[%s6558_s9 + $0x450] sm:$0xff]  }
 0x166   : > { %v5750_v45 = vld [vmem:[%s6558_s9 + $0x408] sm:$0xff]  }
 0x167   : > { %3764 = vmatmul.mubr.bf16.gmra.mrb[52].mxu1 %v5665_v47  ;;  %3861 = vmatmul.mubr.bf16.gmra.mrb[52].mxu0 %v5666_v48  ;;  %v5746_v47 = vld [vmem:[%s7402_s0 + $0xc0] ss:$72 sps:$4 sm:$0xff]   ;;  %v5757_v48 = vld [vmem:[%s6558_s9 + $0x3d0] sm:$0xff]  }
 0x168   : > { %3771 = vmatprep.mubr.bf16.mxu1 %v5671_v50  ;;  %3868 = vmatprep.mubr.bf16.mxu0 %v5673_v51  ;;  %v5751_v50 = vld [vmem:[%s7402_s0 + $0x14c] ss:$72 sps:$4 sm:$0xff]  }
 0x169   : > { %5190 = vmatpush3.bf16.msra.mxu1 %v5678_v52  ;;  %5254 = vmatpush3.bf16.msra.mxu0 %v5680_v53  ;;  %v5753_v51 = vld [vmem:[%s7402_s0 + $0x154] ss:$72 sps:$4 sm:$0xff]  }
 0x16a   : > { %5191 = vmatprep.subr.bf16.mxu1 %v5687_v54  ;;  %5255 = vmatprep.subr.bf16.mxu0 %v5689_v55  ;;  %v5758_v52 = vld [vmem:[%s6558_s9 + $0x390] sm:$0xff]   ;;  %v5767_v54 = vld [vmem:[%s6558_s9 + $0x3d8] sm:$0xff]  }
 0x16b   : > { %v5760_v53 = vld [vmem:[%s6558_s9 + $0x410] sm:$0xff]   ;;  %v5769_v55 = vld [vmem:[%s6558_s9 + $0x458] sm:$0xff]  }
 0x16d   : > { %5192 = vmatpush3.bf16.msra.mxu1 %v5688_v56  ;;  %5256 = vmatpush3.bf16.msra.mxu0 %v5690_v57  ;;  %v5768_v56 = vld [vmem:[%s6558_s9 + $0x398] sm:$0xff]  }
 0x16e   : > { %5193 = vmatprep.subr.bf16.mxu1 %v5697_v59  ;;  %5257 = vmatprep.subr.bf16.mxu0 %v5699_v60  ;;  %v5770_v57 = vld [vmem:[%s6558_s9 + $0x418] sm:$0xff]   ;;  %v5777_v60 = vld [vmem:[%s6558_s9 + $0x3e0] sm:$0xff]  }
 0x16f   : > { %3772 = vmatmul.mubr.bf16.gmra.mrb[56].mxu1 %v5675_v58  ;;  %3869 = vmatmul.mubr.bf16.gmra.mrb[56].mxu0 %v5676_v61  ;;  %v5755_v58 = vld [vmem:[%s7402_s0 + $0x148] ss:$72 sps:$4 sm:$0xff]   ;;  %v5761_v61 = vld [vmem:[%s7402_s0 + $0x1dc] ss:$72 sps:$4 sm:$0xff]  }
 0x170   : > { %3779 = vmatprep.mubr.bf16.mxu1 %v5681_v62  ;;  %3876 = vmatprep.mubr.bf16.mxu0 %v5683_v63  ;;  %v5756_v59 = vld [vmem:[%s7402_s0 + $0x150] ss:$72 sps:$4 sm:$0xff]   ;;  %v5763_v62 = vld [vmem:[%s7402_s0 + $0x1e4] ss:$72 sps:$4 sm:$0xff]  }
 0x171   : > { %5194 = vmatpush3.bf16.msra.mxu1 %v5698_v0  ;;  %5258 = vmatpush3.bf16.msra.mxu0 %v5700_v1  ;;  %v5779_v63 = vld [vmem:[%s6558_s9 + $0x460] sm:$0xff]  }
 0x172   : > { %5195 = vmatprep.subr.bf16.mxu1 %v5707_v2  ;;  %5259 = vmatprep.subr.bf16.mxu0 %v5709_v3  ;;  %v5778_v0 = vld [vmem:[%s6558_s9 + $0x3a0] sm:$0xff]   ;;  %v5787_v2 = vld [vmem:[%s6558_s9 + $0x3e8] sm:$0xff]  }
 0x173   : > { %v5780_v1 = vld [vmem:[%s6558_s9 + $0x420] sm:$0xff]   ;;  %v5789_v3 = vld [vmem:[%s6558_s9 + $0x468] sm:$0xff]  }
 0x175   : > { %5196 = vmatpush3.bf16.msra.mxu1 %v5708_v4  ;;  %5260 = vmatpush3.bf16.msra.mxu0 %v5710_v6  ;;  %v5788_v4 = vld [vmem:[%s6558_s9 + $0x3a8] sm:$0xff]   ;;  %v5765_v6 = vld [vmem:[%s7402_s0 + $0x1d8] ss:$72 sps:$4 sm:$0xff]  }
 0x176   : > { %5197 = vmatprep.subr.bf16.mxu1 %v5717_v10  ;;  %5261 = vmatprep.subr.bf16.mxu0 %v5719_v12  ;;  %v5799_v10 = vld [vmem:[%s6558_s9 + $0x470] sm:$0xff]  }
 0x177   : > { %3780 = vmatmul.mubr.bf16.gmra.mrb[60].mxu1 %v5685_v5  ;;  %3877 = vmatmul.mubr.bf16.gmra.mrb[60].mxu0 %v5686_v7  ;;  %v5790_v5 = vld [vmem:[%s6558_s9 + $0x428] sm:$0xff]   ;;  %v5798_v12 = vld [vmem:[%s6558_s9 + $0x3b0] sm:$0xff]  }
 0x178   : > { %3787 = vmatprep.mubr.bf16.mxu1 %v5691_v8  ;;  %3884 = vmatprep.mubr.bf16.mxu0 %v5693_v9  ;;  %v5766_v7 = vld [vmem:[%s7402_s0 + $0x1e0] ss:$72 sps:$4 sm:$0xff]   ;;  %v5797_v8 = vld [vmem:[%s6558_s9 + $0x3f0] sm:$0xff]  }
 0x179   : > { %5198 = vmatpush3.bf16.msra.mxu1 %v5718_v11  ;;  %5262 = vmatpush3.bf16.msra.mxu0 %v5720_v13  ;;  %v5771_v9 = vld [vmem:[%s7402_s0 + $0x26c] ss:$72 sps:$4 sm:$0xff]  }
 0x17a   : > { %5199 = vmatprep.subr.bf16.mxu1 %v5727_v18  ;;  %5263 = vmatprep.subr.bf16.mxu0 %v5729_v20  ;;  %v5773_v11 = vld [vmem:[%s7402_s0 + $0x274] ss:$72 sps:$4 sm:$0xff]   ;;  %v5775_v18 = vld [vmem:[%s7402_s0 + $0x268] ss:$72 sps:$4 sm:$0xff]  }
 0x17b   : > { %v5800_v13 = vld [vmem:[%s6558_s9 + $0x430] sm:$0xff]   ;;  %v5781_v20 = vld [vmem:[%s7402_s0 + $0x2fc] ss:$72 sps:$4 sm:$0xff]  }
 0x17d   : > { %5200 = vmatpush3.bf16.msra.mxu1 %v5728_v19  ;;  %5264 = vmatpush3.bf16.msra.mxu0 %v5730_v21  ;;  %v5776_v19 = vld [vmem:[%s7402_s0 + $0x270] ss:$72 sps:$4 sm:$0xff]   ;;  %v5783_v21 = vld [vmem:[%s7402_s0 + $0x304] ss:$72 sps:$4 sm:$0xff]  }
 0x17e   : > { %5313 = vmatprep.subr.bf16.mxu1 %v5737_v24  ;;  %5377 = vmatprep.subr.bf16.mxu0 %v5739_v26  ;;  %v5791_v24 = vld [vmem:[%s7402_s0 + $0x38c] ss:$72 sps:$4 sm:$0xff]   ;;  %v5795_v26 = vld [vmem:[%s7402_s0 + $0x388] ss:$72 sps:$4 sm:$0xff]  }
 0x17f   : > { %3788 = vmatmul.mubr.bf16.gmra.mrb[64].mxu1 %v5695_v14  ;;  %3885 = vmatmul.mubr.bf16.gmra.mrb[64].mxu0 %v5696_v15  ;;  %v5807_v14 = vld [vmem:[%s6558_s9 + $0x3f8] sm:$0xff]  }
 0x180   : > { %3795 = vmatprep.mubr.bf16.mxu1 %v5701_v16  ;;  %3892 = vmatprep.mubr.bf16.mxu0 %v5703_v17  ;;  %v5809_v15 = vld [vmem:[%s6558_s9 + $0x478] sm:$0xff]  }
 0x181   : > { %v5808_v16 = vld [vmem:[%s6558_s9 + $0x3b8] sm:$0xff]  }
 0x182   : > { %v5810_v17 = vld [vmem:[%s6558_s9 + $0x438] sm:$0xff]  }
 0x187   : > { %3796 = vmatmul.mubr.bf16.gmra.mrb[68].mxu1 %v5705_v22  ;;  %3893 = vmatmul.mubr.bf16.gmra.mrb[68].mxu0 %v5706_v23  ;;  %v5785_v22 = vld [vmem:[%s7402_s0 + $0x2f8] ss:$72 sps:$4 sm:$0xff]  }
 0x188   : > { %3803 = vmatprep.mubr.bf16.mxu1 %v5711_v25  ;;  %3900 = vmatprep.mubr.bf16.mxu0 %v5713_v27  ;;  %v5786_v23 = vld [vmem:[%s7402_s0 + $0x300] ss:$72 sps:$4 sm:$0xff]   ;;  %v5793_v25 = vld [vmem:[%s7402_s0 + $0x394] ss:$72 sps:$4 sm:$0xff]   ;;  %v5796_v27 = vld [vmem:[%s7402_s0 + $0x390] ss:$72 sps:$4 sm:$0xff]  }
 0x18f   : > { %3804 = vmatmul.mubr.bf16.gmra.mrb[72].mxu1 %v5715_v28  ;;  %3901 = vmatmul.mubr.bf16.gmra.mrb[72].mxu0 %v5716_v29  ;;  %v5801_v28 = vld [vmem:[%s7402_s0 + $0x41c] ss:$72 sps:$4 sm:$0xff]  }
 0x190   : > { %3811 = vmatprep.mubr.bf16.mxu1 %v5721_v30  ;;  %3908 = vmatprep.mubr.bf16.mxu0 %v5723_v31  ;;  %v5803_v29 = vld [vmem:[%s7402_s0 + $0x424] ss:$72 sps:$4 sm:$0xff]  }
 0x197   : > { %3812 = vmatmul.mubr.bf16.gmra.mrb[76].mxu1 %v5725_v32  ;;  %3909 = vmatmul.mubr.bf16.gmra.mrb[76].mxu0 %v5726_v33 }
 0x198   : > { %3949 = vmatprep.mubr.bf16.mxu1 %v5733_v34  ;;  %4046 = vmatprep.mubr.bf16.mxu0 %v5736_v35  ;;  %v5805_v34 = vld [vmem:[%s7402_s0 + $0x418] ss:$72 sps:$4 sm:$0xff]  }
 0x199   : > { %v5806_v35 = vld [vmem:[%s7402_s0 + $0x420] ss:$72 sps:$4 sm:$0xff]  }
 0x19f   : > { %3950 = vmatmul.mubr.bf16.vlgmr.msra.gmra.mrb[80].mxu1 %v5731_v36  ;;  %4047 = vmatmul.mubr.bf16.vlgmr.msra.gmra.mrb[80].mxu0 %v5734_v37 }
 0x1a0   : > { %5314 = vmatpush3.bf16.msra.mxu1 %v5738_v38  ;;  %5378 = vmatpush3.bf16.msra.mxu0 %v5740_v39 }
 0x1a1   : > { %3957 = vmatprep.mubr.bf16.mxu1 %v5741_v40  ;;  %4054 = vmatprep.mubr.bf16.mxu0 %v5743_v41  ;;  %v5813_v40 = vld [vmem:[%s7402_s0 + $0x3c] ss:$72 sps:$4 sm:$0xff]  }
 0x1a2   : > { %5315 = vmatprep.subr.bf16.mxu1 %v5747_v42  ;;  %5379 = vmatprep.subr.bf16.mxu0 %v5749_v43  ;;  %v5816_v41 = vld [vmem:[%s7402_s0 + $0x44] ss:$72 sps:$4 sm:$0xff]  }
 0x1a4   : > { %5316 = vmatpush3.bf16.msra.mxu1 %v5748_v44  ;;  %5380 = vmatpush3.bf16.msra.mxu0 %v5750_v45 }
 0x1a5   : > { %5317 = vmatprep.subr.bf16.mxu1 %v5757_v48  ;;  %5381 = vmatprep.subr.bf16.mxu0 %v5759_v49 }
 0x1a7   : > { %3958 = vmatmul.mubr.bf16.gmra.mrb[84].mxu1 %v5745_v46  ;;  %4055 = vmatmul.mubr.bf16.gmra.mrb[84].mxu0 %v5746_v47 }
 0x1a8   : > { %3965 = vmatprep.mubr.bf16.mxu1 %v5751_v50  ;;  %4062 = vmatprep.mubr.bf16.mxu0 %v5753_v51  ;;  %v5811_v50 = vld [vmem:[%s7402_s0 + $0x38] ss:$72 sps:$4 sm:$0xff]  }
 0x1a9   : > { %5318 = vmatpush3.bf16.msra.mxu1 %v5758_v52  ;;  %5382 = vmatpush3.bf16.msra.mxu0 %v5760_v53  ;;  %v5814_v51 = vld [vmem:[%s7402_s0 + $0x40] ss:$72 sps:$4 sm:$0xff]  }
 0x1aa   : > { %5319 = vmatprep.subr.bf16.mxu1 %v5767_v54  ;;  %5383 = vmatprep.subr.bf16.mxu0 %v5769_v55 }
 0x1ad   : > { %5320 = vmatpush3.bf16.msra.mxu1 %v5768_v56  ;;  %5384 = vmatpush3.bf16.msra.mxu0 %v5770_v57  ;;  %v5817_v56 = vld [vmem:[%s7402_s0 + $0xcc] ss:$72 sps:$4 sm:$0xff]  }
 0x1ae   : > { %5321 = vmatprep.subr.bf16.mxu1 %v5777_v60  ;;  %5385 = vmatprep.subr.bf16.mxu0 %v5779_v63  ;;  %v5819_v57 = vld [vmem:[%s7402_s0 + $0xd4] ss:$72 sps:$4 sm:$0xff]  }
 0x1af   : > { %3966 = vmatmul.mubr.bf16.gmra.mrb[88].mxu1 %v5755_v58  ;;  %4063 = vmatmul.mubr.bf16.gmra.mrb[88].mxu0 %v5756_v59 }
 0x1b0   : > { %3973 = vmatprep.mubr.bf16.mxu1 %v5761_v61  ;;  %4070 = vmatprep.mubr.bf16.mxu0 %v5763_v62 }
 0x1b1   : > { %5322 = vmatpush3.bf16.msra.mxu1 %v5778_v0  ;;  %5386 = vmatpush3.bf16.msra.mxu0 %v5780_v1 }
 0x1b2   : > { %5323 = vmatprep.subr.bf16.mxu1 %v5787_v2  ;;  %5387 = vmatprep.subr.bf16.mxu0 %v5789_v3  ;;  %v5821_v2 = vld [vmem:[%s7402_s0 + $0xc8] ss:$72 sps:$4 sm:$0xff]  }
 0x1b3   : > { %v5822_v3 = vld [vmem:[%s7402_s0 + $0xd0] ss:$72 sps:$4 sm:$0xff]  }
 0x1b5   : > { %5324 = vmatpush3.bf16.msra.mxu1 %v5788_v4  ;;  %5388 = vmatpush3.bf16.msra.mxu0 %v5790_v5 }
 0x1b6   : > { %5325 = vmatprep.subr.bf16.mxu1 %v5797_v8  ;;  %5389 = vmatprep.subr.bf16.mxu0 %v5799_v10  ;;  %v5823_v8 = vld [vmem:[%s7402_s0 + $0x15c] ss:$72 sps:$4 sm:$0xff]  }
 0x1b7   : > { %3974 = vmatmul.mubr.bf16.gmra.mrb[92].mxu1 %v5765_v6  ;;  %4071 = vmatmul.mubr.bf16.gmra.mrb[92].mxu0 %v5766_v7 }
 0x1b8   : > { %3981 = vmatprep.mubr.bf16.mxu1 %v5771_v9  ;;  %4078 = vmatprep.mubr.bf16.mxu0 %v5773_v11  ;;  %v5825_v9 = vld [vmem:[%s7402_s0 + $0x164] ss:$72 sps:$4 sm:$0xff]  }
 0x1b9   : > { %5326 = vmatpush3.bf16.msra.mxu1 %v5798_v12  ;;  %5390 = vmatpush3.bf16.msra.mxu0 %v5800_v13 }
 0x1ba   : > { %5327 = vmatprep.subr.bf16.mxu1 %v5807_v14  ;;  %5391 = vmatprep.subr.bf16.mxu0 %v5809_v15 }
 0x1bd   : > { %5328 = vmatpush3.bf16.msra.mxu1 %v5808_v16  ;;  %5392 = vmatpush3.bf16.msra.mxu0 %v5810_v17 }
 0x1bf   : > { %3982 = vmatmul.mubr.bf16.gmra.mrb[96].mxu1 %v5775_v18  ;;  %4079 = vmatmul.mubr.bf16.gmra.mrb[96].mxu0 %v5776_v19  ;;  %v5827_v18 = vld [vmem:[%s7402_s0 + $0x158] ss:$72 sps:$4 sm:$0xff]  }
 0x1c0   : > { %3989 = vmatprep.mubr.bf16.mxu1 %v5781_v20  ;;  %4086 = vmatprep.mubr.bf16.mxu0 %v5783_v21  ;;  %v5828_v19 = vld [vmem:[%s7402_s0 + $0x160] ss:$72 sps:$4 sm:$0xff]  }
 0x1c7   : > { %3990 = vmatmul.mubr.bf16.gmra.mrb[100].mxu1 %v5785_v22  ;;  %4087 = vmatmul.mubr.bf16.gmra.mrb[100].mxu0 %v5786_v23 }
 0x1c8   : > { %3997 = vmatprep.mubr.bf16.mxu1 %v5791_v24  ;;  %4094 = vmatprep.mubr.bf16.mxu0 %v5793_v25  ;;  %v5829_v24 = vld [vmem:[%s7402_s0 + $0x1ec] ss:$72 sps:$4 sm:$0xff]  }
 0x1c9   : > { %v5831_v25 = vld [vmem:[%s7402_s0 + $0x1f4] ss:$72 sps:$4 sm:$0xff]  }
 0x1cf   : > { %3998 = vmatmul.mubr.bf16.gmra.mrb[104].mxu1 %v5795_v26  ;;  %4095 = vmatmul.mubr.bf16.gmra.mrb[104].mxu0 %v5796_v27 }
 0x1d0   : > { %4005 = vmatprep.mubr.bf16.mxu1 %v5801_v28  ;;  %4102 = vmatprep.mubr.bf16.mxu0 %v5803_v29 }
 0x1d2   : > { %v4881_v30 = vpop.f32.mrb[0].mxu0  ;;  %v4905_v31 = vpop.f32.mrb[0].mxu1 }
 0x1d3   : > { %v4882_v32 = vpop.f32.mrb[1].mxu0  ;;  %v4906_v33 = vpop.f32.mrb[1].mxu1 }
 0x1d4   : > { %v7034_v36 = vadd.f32 %v4882_v32, %v4881_v30  ;;  %v7036_v37 = vadd.f32 %v4906_v33, %v4905_v31  ;;  %v4884_v38 = vpop.f32.mrb[2].mxu0  ;;  %v4908_v39 = vpop.f32.mrb[2].mxu1  ;;  %v7113_v30 = vld [vmem:[%s1406_s28] ss:$0 sm:$0xff] }
 0x1d5   : > { %v4885_v42 = vpop.f32.mrb[3].mxu0  ;;  %v4909_v43 = vpop.f32.mrb[3].mxu1 }
 0x1d6   : > { %v7044_v44 = vadd.f32 %v4885_v42, %v4884_v38  ;;  %v7046_v45 = vadd.f32 %v4909_v43, %v4908_v39  ;;  %v5834_v38 = vld [vmem:[%s7402_s0 + $0x1f0] ss:$72 sps:$4 sm:$0xff]   ;;  %v3467_v39 = vadd.f32 %v7034_v36, %v7113_v30 }
 0x1d7   : > { %4006 = vmatmul.mubr.bf16.gmra.mrb[108].mxu1 %v5805_v34  ;;  %4103 = vmatmul.mubr.bf16.gmra.mrb[108].mxu0 %v5806_v35  ;;  %v5833_v35 = vld [vmem:[%s7402_s0 + $0x1e8] ss:$72 sps:$4 sm:$0xff]  }
 0x1d8   : > { %4143 = vmatprep.mubr.bf16.mxu1 %v5813_v40  ;;  %4240 = vmatprep.mubr.bf16.mxu0 %v5816_v41 }
 0x1da   : > { %v4887_v46 = vpop.f32.mrb[4].mxu0  ;;  %v4911_v47 = vpop.f32.mrb[4].mxu1 }
 0x1db   : > { %v4888_v48 = vpop.f32.mrb[5].mxu0  ;;  %v4912_v49 = vpop.f32.mrb[5].mxu1 }
 0x1dc   : > { %v7054_v52 = vadd.f32 %v4888_v48, %v4887_v46  ;;  %v7056_v53 = vadd.f32 %v4912_v49, %v4911_v47  ;;  %v4890_v54 = vpop.f32.mrb[6].mxu0  ;;  %v4914_v55 = vpop.f32.mrb[6].mxu1  ;;  %v5835_v46 = vld [vmem:[%s7402_s0 + $0x27c] ss:$72 sps:$4 sm:$0xff]  }
 0x1dd   : > { %v4891_v58 = vpop.f32.mrb[7].mxu0  ;;  %v4915_v59 = vpop.f32.mrb[7].mxu1  ;;  %v5837_v47 = vld [vmem:[%s7402_s0 + $0x284] ss:$72 sps:$4 sm:$0xff]  }
 0x1de   : > { %v7064_v60 = vadd.f32 %v4891_v58, %v4890_v54  ;;  %v7066_v61 = vadd.f32 %v4915_v59, %v4914_v55 }
 0x1df   : > { %4144 = vmatmul.mubr.bf16.vlgmr.msra.gmra.mrb[112].mxu1 %v5811_v50  ;;  %4241 = vmatmul.mubr.bf16.vlgmr.msra.gmra.mrb[112].mxu0 %v5814_v51  ;;  %v3470_v50 = vadd.f32 %v7044_v44, %v7113_v30  ;;  %v5839_v44 = vld [vmem:[%s7402_s0 + $0x278] ss:$72 sps:$4 sm:$0xff]  }
 0x1e0   : > { %4151 = vmatprep.mubr.bf16.mxu1 %v5817_v56  ;;  %4248 = vmatprep.mubr.bf16.mxu0 %v5819_v57 }
 0x1e2   : > { %v4893_v62 = vpop.f32.mrb[8].mxu0  ;;  %v4917_v63 = vpop.f32.mrb[8].mxu1 }
 0x1e3   : > { %v4894_v0 = vpop.f32.mrb[9].mxu0  ;;  %v4918_v1 = vpop.f32.mrb[9].mxu1 }
 0x1e4   : > { %v7074_v4 = vadd.f32 %v4894_v0, %v4893_v62  ;;  %v7076_v5 = vadd.f32 %v4918_v1, %v4917_v63  ;;  %v4896_v6 = vpop.f32.mrb[10].mxu0  ;;  %v4920_v7 = vpop.f32.mrb[10].mxu1  ;;  %v5840_v0 = vld [vmem:[%s7402_s0 + $0x280] ss:$72 sps:$4 sm:$0xff]   ;;  %v3475_v1 = vadd.f32 %v7054_v52, %v7113_v30 }
 0x1e5   : > { %v4897_v10 = vpop.f32.mrb[11].mxu0  ;;  %v4921_v11 = vpop.f32.mrb[11].mxu1 }
 0x1e6   : > { %v7085_v12 = vadd.f32 %v4897_v10, %v4896_v6  ;;  %v7087_v13 = vadd.f32 %v4921_v11, %v4920_v7 }
 0x1e7   : > { %4152 = vmatmul.mubr.bf16.gmra.mrb[116].mxu1 %v5821_v2  ;;  %4249 = vmatmul.mubr.bf16.gmra.mrb[116].mxu0 %v5822_v3 }
 0x1e8   : > { %4159 = vmatprep.mubr.bf16.mxu1 %v5823_v8  ;;  %4256 = vmatprep.mubr.bf16.mxu0 %v5825_v9  ;;  %v5841_v8 = vld [vmem:[%s7402_s0 + $0x30c] ss:$72 sps:$4 sm:$0xff]  }
 0x1e9   : > { %v5843_v9 = vld [vmem:[%s7402_s0 + $0x314] ss:$72 sps:$4 sm:$0xff]  }
 0x1ea   : > { %v4899_v14 = vpop.f32.mrb[12].mxu0  ;;  %v4923_v15 = vpop.f32.mrb[12].mxu1 }
 0x1eb   : > { %v4900_v16 = vpop.f32.mrb[13].mxu0  ;;  %v4924_v17 = vpop.f32.mrb[13].mxu1 }
 0x1ec   : > { %v7096_v20 = vadd.f32 %v4900_v16, %v4899_v14  ;;  %v7098_v21 = vadd.f32 %v4924_v17, %v4923_v15  ;;  %v4902_v22 = vpop.f32.mrb[14].mxu0  ;;  %v4926_v23 = vpop.f32.mrb[14].mxu1  ;;  %v3478_v14 = vadd.f32 %v7064_v60, %v7113_v30  ;;  %v5845_v60 = vld [vmem:[%s7402_s0 + $0x308] ss:$72 sps:$4 sm:$0xff]  }
 0x1ed   : > { %v4903_v26 = vpop.f32.mrb[15].mxu0  ;;  %v4927_v27 = vpop.f32.mrb[15].mxu1 }
 0x1ee   : > { %v7109_v28 = vadd.f32 %v4903_v26, %v4902_v22  ;;  %v7111_v29 = vadd.f32 %v4927_v27, %v4926_v23  ;;  %v5846_v26 = vld [vmem:[%s7402_s0 + $0x310] ss:$72 sps:$4 sm:$0xff]   ;;  %v3483_v27 = vadd.f32 %v7074_v4, %v7113_v30 }
 0x1ef   : > { %4160 = vmatmul.mubr.bf16.gmra.mrb[120].mxu1 %v5827_v18  ;;  %4257 = vmatmul.mubr.bf16.gmra.mrb[120].mxu0 %v5828_v19 }
 0x1f0   : > { %4167 = vmatprep.mubr.bf16.mxu1 %v5829_v24  ;;  %4264 = vmatprep.mubr.bf16.mxu0 %v5831_v25 }
 0x1f2   : > { %v4945_v31 = vpop.f32.mrb[16].mxu1  ;;  %v5009_v32 = vpop.f32.mrb[16].mxu0 }
 0x1f3   : > { %v4946_v33 = vpop.f32.mrb[17].mxu1  ;;  %v5010_v34 = vpop.f32.mrb[17].mxu0 }
 0x1f4   : > { %v4947_v40 = vadd.f32 %v4946_v33, %v4945_v31  ;;  %v5011_v41 = vadd.f32 %v5010_v34, %v5009_v32  ;;  %v4948_v42 = vpop.f32.mrb[18].mxu1  ;;  %v5012_v43 = vpop.f32.mrb[18].mxu0 }
 0x1f5   : > { %v4949_v48 = vpop.f32.mrb[19].mxu1  ;;  %v5013_v49 = vpop.f32.mrb[19].mxu0 }
 0x1f6   : > { %v3564_v51 = vadd.f32 %v4947_v40, %v3467_v39  ;;  %v4950_v54 = vadd.f32 %v4949_v48, %v4948_v42  ;;  %v5014_v36 = vadd.f32 %v5013_v49, %v5012_v43 }
 0x1f7   : > { %4168 = vmatmul.mubr.bf16.gmra.mrb[124].mxu1 %v5833_v35  ;;  %4265 = vmatmul.mubr.bf16.gmra.mrb[124].mxu0 %v5834_v38  ;;  %v5847_v35 = vld [vmem:[%s7402_s0 + $0x39c] ss:$72 sps:$4 sm:$0xff]  }
 0x1f8   : > { %v7131_v55 = vadd.f32 %v5011_v41, %v3564_v51  ;;  %v3567_v56 = vadd.f32 %v4950_v54, %v3470_v50  ;;  %4175 = vmatprep.mubr.bf16.mxu1 %v5835_v46  ;;  %4272 = vmatprep.mubr.bf16.mxu0 %v5837_v47  ;;  %v5849_v38 = vld [vmem:[%s7402_s0 + $0x3a4] ss:$72 sps:$4 sm:$0xff]   ;;  %v3486_v41 = vadd.f32 %v7085_v12, %v7113_v30  ;;  %v5851_v12 = vld [vmem:[%s7402_s0 + $0x398] ss:$72 sps:$4 sm:$0xff]  }
 0x1fa   : > { %v7133_v57 = vadd.f32 %v5014_v36, %v3567_v56  ;;  %v4951_v58 = vpop.f32.mrb[20].mxu1  ;;  %v5015_v59 = vpop.f32.mrb[20].mxu0  ;;  %v5852_v36 = vld [vmem:[%s7402_s0 + $0x3a0] ss:$72 sps:$4 sm:$0xff]   ;;  %v3491_v56 = vadd.f32 %v7096_v20, %v7113_v30 }
 0x1fb   : > { %v4952_v62 = vpop.f32.mrb[21].mxu1  ;;  %v5016_v63 = vpop.f32.mrb[21].mxu0 }
 0x1fc   : > { %v4953_v2 = vadd.f32 %v4952_v62, %v4951_v58  ;;  %v5017_v3 = vadd.f32 %v5016_v63, %v5015_v59  ;;  %v4954_v6 = vpop.f32.mrb[22].mxu1  ;;  %v5018_v7 = vpop.f32.mrb[22].mxu0 }
 0x1fd   : > { %v4955_v10 = vpop.f32.mrb[23].mxu1  ;;  %v5019_v11 = vpop.f32.mrb[23].mxu0 }
 0x1fe   : > { %v3572_v15 = vadd.f32 %v4953_v2, %v3475_v1  ;;  %v4956_v16 = vadd.f32 %v4955_v10, %v4954_v6  ;;  %v5020_v52 = vadd.f32 %v5019_v11, %v5018_v7 }
 0x1ff   : > { %4176 = vmatmul.mubr.bf16.gmra.mrb[128].mxu1 %v5839_v44  ;;  %4273 = vmatmul.mubr.bf16.gmra.mrb[128].mxu0 %v5840_v0  ;;  %v5853_v44 = vld [vmem:[%s7402_s0 + $0x42c] ss:$72 sps:$4 sm:$0xff]  }
 0x200   : > { %v7151_v17 = vadd.f32 %v5017_v3, %v3572_v15  ;;  %v3575_v18 = vadd.f32 %v4956_v16, %v3478_v14  ;;  %4183 = vmatprep.mubr.bf16.mxu1 %v5841_v8  ;;  %4280 = vmatprep.mubr.bf16.mxu0 %v5843_v9  ;;  %v5855_v0 = vld [vmem:[%s7402_s0 + $0x434] ss:$72 sps:$4 sm:$0xff]   ;;  %v3494_v3 = vadd.f32 %v7109_v28, %v7113_v30  ;;  %v5857_v28 = vld [vmem:[%s7402_s0 + $0x428] ss:$72 sps:$4 sm:$0xff]  }
 0x202   : > { %v7153_v19 = vadd.f32 %v5020_v52, %v3575_v18  ;;  %v4957_v22 = vpop.f32.mrb[24].mxu1  ;;  %v5021_v23 = vpop.f32.mrb[24].mxu0  ;;  %v5858_v52 = vld [vmem:[%s7402_s0 + $0x430] ss:$72 sps:$4 sm:$0xff]   ;;  %v3499_v18 = vadd.f32 %v7036_v37, %v7113_v30 }
 0x203   : > { %v4958_v24 = vpop.f32.mrb[25].mxu1  ;;  %v5022_v25 = vpop.f32.mrb[25].mxu0 }
 0x204   : > { %v4959_v31 = vadd.f32 %v4958_v24, %v4957_v22  ;;  %v5023_v32 = vadd.f32 %v5022_v25, %v5021_v23  ;;  %v4960_v33 = vpop.f32.mrb[26].mxu1  ;;  %v5024_v34 = vpop.f32.mrb[26].mxu0 }
 0x205   : > { %v4961_v39 = vpop.f32.mrb[27].mxu1  ;;  %v5025_v40 = vpop.f32.mrb[27].mxu0 }
 0x206   : > { %v3580_v42 = vadd.f32 %v4959_v31, %v3483_v27  ;;  %v4962_v43 = vadd.f32 %v4961_v39, %v4960_v33  ;;  %v5026_v4 = vadd.f32 %v5025_v40, %v5024_v34  ;;  %v3502_v27 = vadd.f32 %v7046_v45, %v7113_v30 }
 0x207   : > { %4184 = vmatmul.mubr.bf16.gmra.mrb[132].mxu1 %v5845_v60  ;;  %4281 = vmatmul.mubr.bf16.gmra.mrb[132].mxu0 %v5846_v26 }
 0x208   : > { %v7171_v46 = vadd.f32 %v5023_v32, %v3580_v42  ;;  %v3583_v47 = vadd.f32 %v4962_v43, %v3486_v41  ;;  %4191 = vmatprep.mubr.bf16.mxu1 %v5847_v35  ;;  %4288 = vmatprep.mubr.bf16.mxu0 %v5849_v38  ;;  %v3507_v42 = vadd.f32 %v7056_v53, %v7113_v30 }
 0x20a   : > { %v7173_v48 = vadd.f32 %v5026_v4, %v3583_v47  ;;  %v4963_v49 = vpop.f32.mrb[28].mxu1  ;;  %v5027_v50 = vpop.f32.mrb[28].mxu0 }
 0x20b   : > { %v4964_v51 = vpop.f32.mrb[29].mxu1  ;;  %v5028_v54 = vpop.f32.mrb[29].mxu0 }
 0x20c   : > { %v4965_v58 = vadd.f32 %v4964_v51, %v4963_v49  ;;  %v5029_v59 = vadd.f32 %v5028_v54, %v5027_v50  ;;  %v4966_v62 = vpop.f32.mrb[30].mxu1  ;;  %v5030_v63 = vpop.f32.mrb[30].mxu0  ;;  %v3510_v51 = vadd.f32 %v7066_v61, %v7113_v30 }
 0x20d   : > { %v4967_v1 = vpop.f32.mrb[31].mxu1  ;;  %v5031_v2 = vpop.f32.mrb[31].mxu0 }
 0x20e   : > { %v3588_v6 = vadd.f32 %v4965_v58, %v3491_v56  ;;  %v4968_v7 = vadd.f32 %v4967_v1, %v4966_v62  ;;  %v5032_v20 = vadd.f32 %v5031_v2, %v5030_v63 }
 0x20f   : > { %4192 = vmatmul.mubr.bf16.gmra.mrb[136].mxu1 %v5851_v12  ;;  %4289 = vmatmul.mubr.bf16.gmra.mrb[136].mxu0 %v5852_v36 }
 0x210   : > { %v7191_v8 = vadd.f32 %v5029_v59, %v3588_v6  ;;  %v3591_v9 = vadd.f32 %v4968_v7, %v3494_v3  ;;  %4199 = vmatprep.mubr.bf16.mxu1 %v5853_v44  ;;  %4296 = vmatprep.mubr.bf16.mxu0 %v5855_v0  ;;  %v3515_v0 = vadd.f32 %v7076_v5, %v7113_v30 }
 0x212   : > { %v7193_v10 = vadd.f32 %v5032_v20, %v3591_v9  ;;  %v4969_v11 = vpop.f32.mrb[32].mxu1  ;;  %v5033_v14 = vpop.f32.mrb[32].mxu0  ;;  %v3518_v20 = vadd.f32 %v7087_v13, %v7113_v30 }
 0x213   : > { %v4970_v15 = vpop.f32.mrb[33].mxu1  ;;  %v5034_v16 = vpop.f32.mrb[33].mxu0 }
 0x214   : > { %v4971_v22 = vadd.f32 %v4970_v15, %v4969_v11  ;;  %v5035_v23 = vadd.f32 %v5034_v16, %v5033_v14  ;;  %v4972_v24 = vpop.f32.mrb[34].mxu1  ;;  %v5036_v25 = vpop.f32.mrb[34].mxu0 }
 0x215   : > { %v4973_v60 = vpop.f32.mrb[35].mxu1  ;;  %v5037_v26 = vpop.f32.mrb[35].mxu0 }
 0x216   : > { %v3596_v31 = vadd.f32 %v4971_v22, %v3499_v18  ;;  %v4974_v32 = vadd.f32 %v4973_v60, %v4972_v24  ;;  %v5038_v33 = vadd.f32 %v5037_v26, %v5036_v25 }
 0x217   : > { %4200 = vmatmul.mubr.bf16.gmra.mrb[140].mxu1 %v5857_v28  ;;  %4297 = vmatmul.mubr.bf16.gmra.mrb[140].mxu0 %v5858_v52 }
 0x218   : > { %v7205_v34 = vadd.f32 %v5035_v23, %v3596_v31  ;;  %v3599_v35 = vadd.f32 %v4974_v32, %v3502_v27  ;;  %v3523_v23 = vadd.f32 %v7098_v21, %v7113_v30  ;;  %v3526_v31 = vadd.f32 %v7111_v29, %v7113_v30 }
 0x21a   : > { %v7207_v38 = vadd.f32 %v5038_v33, %v3599_v35  ;;  %v4975_v37 = vpop.f32.mrb[36].mxu1  ;;  %v5039_v39 = vpop.f32.mrb[36].mxu0 }
 0x21b   : > { %v4976_v40 = vpop.f32.mrb[37].mxu1  ;;  %v5040_v41 = vpop.f32.mrb[37].mxu0 }
 0x21c   : > { %v4977_v43 = vadd.f32 %v4976_v40, %v4975_v37  ;;  %v5041_v4 = vadd.f32 %v5040_v41, %v5039_v39  ;;  %v4978_v45 = vpop.f32.mrb[38].mxu1  ;;  %v5042_v47 = vpop.f32.mrb[38].mxu0 }
 0x21d   : > { %v4979_v49 = vpop.f32.mrb[39].mxu1  ;;  %v5043_v50 = vpop.f32.mrb[39].mxu0 }
 0x21e   : > { %v3604_v54 = vadd.f32 %v4977_v43, %v3507_v42  ;;  %v4980_v12 = vadd.f32 %v4979_v49, %v4978_v45  ;;  %v5044_v36 = vadd.f32 %v5043_v50, %v5042_v47 }
 0x220   : > { %v7213_v56 = vadd.f32 %v5041_v4, %v3604_v54  ;;  %v3607_v58 = vadd.f32 %v4980_v12, %v3510_v51 }
 0x222   : > { %v7215_v59 = vadd.f32 %v5044_v36, %v3607_v58  ;;  %v4981_v62 = vpop.f32.mrb[40].mxu1  ;;  %v5045_v63 = vpop.f32.mrb[40].mxu0 }
 0x223   : > { %v4982_v53 = vpop.f32.mrb[41].mxu1  ;;  %v5046_v44 = vpop.f32.mrb[41].mxu0 }
 0x224   : > { %v4983_v1 = vadd.f32 %v4982_v53, %v4981_v62  ;;  %v5047_v2 = vadd.f32 %v5046_v44, %v5045_v63  ;;  %v4984_v3 = vpop.f32.mrb[42].mxu1  ;;  %v5048_v6 = vpop.f32.mrb[42].mxu0 }
 0x225   : > { %v4985_v61 = vpop.f32.mrb[43].mxu1  ;;  %v5049_v7 = vpop.f32.mrb[43].mxu0 }
 0x226   : > { %v3612_v9 = vadd.f32 %v4983_v1, %v3515_v0  ;;  %v4986_v11 = vadd.f32 %v4985_v61, %v4984_v3  ;;  %v5050_v14 = vadd.f32 %v5049_v7, %v5048_v6 }
 0x228   : > { %v7221_v15 = vadd.f32 %v5047_v2, %v3612_v9  ;;  %v3615_v16 = vadd.f32 %v4986_v11, %v3518_v20 }
 0x22a   : > { %v7223_v28 = vadd.f32 %v5050_v14, %v3615_v16  ;;  %v4987_v52 = vpop.f32.mrb[44].mxu1  ;;  %v5051_v18 = vpop.f32.mrb[44].mxu0 }
 0x22b   : > { %v4988_v5 = vpop.f32.mrb[45].mxu1  ;;  %v5052_v22 = vpop.f32.mrb[45].mxu0 }
 0x22c   : > { %v4989_v24 = vadd.f32 %v4988_v5, %v4987_v52  ;;  %v5053_v25 = vadd.f32 %v5052_v22, %v5051_v18  ;;  %v4990_v60 = vpop.f32.mrb[46].mxu1  ;;  %v5054_v26 = vpop.f32.mrb[46].mxu0 }
 0x22d   : > { %v4991_v13 = vpop.f32.mrb[47].mxu1  ;;  %v5055_v27 = vpop.f32.mrb[47].mxu0 }
 0x22e   : > { %v3620_v32 = vadd.f32 %v4989_v24, %v3523_v23  ;;  %v4992_v33 = vadd.f32 %v4991_v13, %v4990_v60  ;;  %v5056_v35 = vadd.f32 %v5055_v27, %v5054_v26 }
 0x230   : > { %v7229_v37 = vadd.f32 %v5053_v25, %v3620_v32  ;;  %v3623_v39 = vadd.f32 %v4992_v33, %v3526_v31 }
 0x232   : > { %v7231_v40 = vadd.f32 %v5056_v35, %v3623_v39  ;;  %v5073_v41 = vpop.f32.mrb[48].mxu1  ;;  %v5137_v42 = vpop.f32.mrb[48].mxu0 }
 0x233   : > { %v5074_v21 = vpop.f32.mrb[49].mxu1  ;;  %v5138_v43 = vpop.f32.mrb[49].mxu0 }
 0x234   : > { %v5075_v4 = vadd.f32 %v5074_v21, %v5073_v41  ;;  %v5139_v45 = vadd.f32 %v5138_v43, %v5137_v42  ;;  %v5076_v47 = vpop.f32.mrb[50].mxu1  ;;  %v5140_v49 = vpop.f32.mrb[50].mxu0 }
 0x235   : > { %v5077_v50 = vpop.f32.mrb[51].mxu1  ;;  %v5141_v51 = vpop.f32.mrb[51].mxu0 }
 0x236   : > { %v3758_v29 = vadd.f32 %v5075_v4, %v7131_v55  ;;  %v5078_v30 = vadd.f32 %v5077_v50, %v5076_v47  ;;  %v5142_v54 = vadd.f32 %v5141_v51, %v5140_v49 }
 0x238   : > { %v7234_v12 = vadd.f32 %v5139_v45, %v3758_v29  ;;  %v3761_v36 = vadd.f32 %v5078_v30, %v7133_v57 }
 0x23a   : > { %v7237_v58 = vadd.f32 %v5142_v54, %v3761_v36  ;;  %v5079_v62 = vpop.f32.mrb[52].mxu1  ;;  %v5143_v63 = vpop.f32.mrb[52].mxu0 }
 0x23b   : > { %v5080_v53 = vpop.f32.mrb[53].mxu1  ;;  %v5144_v44 = vpop.f32.mrb[53].mxu0 }
 0x23c   : > { %v5081_v0 = vadd.f32 %v5080_v53, %v5079_v62  ;;  %v5145_v1 = vadd.f32 %v5144_v44, %v5143_v63  ;;  %v5082_v2 = vpop.f32.mrb[54].mxu1  ;;  %v5146_v3 = vpop.f32.mrb[54].mxu0 }
 0x23d   : > { %v5083_v6 = vpop.f32.mrb[55].mxu1  ;;  %v5147_v61 = vpop.f32.mrb[55].mxu0 }
 0x23e   : > { %v3766_v55 = vadd.f32 %v5081_v0, %v7151_v17  ;;  %v5084_v7 = vadd.f32 %v5083_v6, %v5082_v2  ;;  %v5148_v20 = vadd.f32 %v5147_v61, %v5146_v3 }
 0x240   : > { %v7240_v9 = vadd.f32 %v5145_v1, %v3766_v55  ;;  %v3769_v57 = vadd.f32 %v5084_v7, %v7153_v19 }
 0x242   : > { %v7243_v11 = vadd.f32 %v5148_v20, %v3769_v57  ;;  %v5085_v14 = vpop.f32.mrb[56].mxu1  ;;  %v5149_v16 = vpop.f32.mrb[56].mxu0 }
 0x243   : > { %v5086_v52 = vpop.f32.mrb[57].mxu1  ;;  %v5150_v18 = vpop.f32.mrb[57].mxu0 }
 0x244   : > { %v5087_v5 = vadd.f32 %v5086_v52, %v5085_v14  ;;  %v5151_v22 = vadd.f32 %v5150_v18, %v5149_v16  ;;  %v5088_v23 = vpop.f32.mrb[58].mxu1  ;;  %v5152_v24 = vpop.f32.mrb[58].mxu0 }
 0x245   : > { %v5089_v25 = vpop.f32.mrb[59].mxu1  ;;  %v5153_v60 = vpop.f32.mrb[59].mxu0 }
 0x246   : > { %v3774_v17 = vadd.f32 %v5087_v5, %v7171_v46  ;;  %v5090_v26 = vadd.f32 %v5089_v25, %v5088_v23  ;;  %v5154_v13 = vadd.f32 %v5153_v60, %v5152_v24 }
 0x248   : > { %v7246_v27 = vadd.f32 %v5151_v22, %v3774_v17  ;;  %v3777_v19 = vadd.f32 %v5090_v26, %v7173_v48 }
 0x24a   : > { %v7249_v31 = vadd.f32 %v5154_v13, %v3777_v19  ;;  %v5091_v32 = vpop.f32.mrb[60].mxu1  ;;  %v5155_v33 = vpop.f32.mrb[60].mxu0 }
 0x24b   : > { %v5092_v35 = vpop.f32.mrb[61].mxu1  ;;  %v5156_v39 = vpop.f32.mrb[61].mxu0 }
 0x24c   : > { %v5093_v41 = vadd.f32 %v5092_v35, %v5091_v32  ;;  %v5157_v42 = vadd.f32 %v5156_v39, %v5155_v33  ;;  %v5094_v21 = vpop.f32.mrb[62].mxu1  ;;  %v5158_v43 = vpop.f32.mrb[62].mxu0 }
 0x24d   : > { %v5095_v4 = vpop.f32.mrb[63].mxu1  ;;  %v5159_v45 = vpop.f32.mrb[63].mxu0 }
 0x24e   : > { %v3782_v46 = vadd.f32 %v5093_v41, %v7191_v8  ;;  %v5096_v47 = vadd.f32 %v5095_v4, %v5094_v21  ;;  %v5160_v49 = vadd.f32 %v5159_v45, %v5158_v43 }
 0x250   : > { %v7252_v50 = vadd.f32 %v5157_v42, %v3782_v46  ;;  %v3785_v48 = vadd.f32 %v5096_v47, %v7193_v10 }
 0x252   : > { %v7255_v51 = vadd.f32 %v5160_v49, %v3785_v48  ;;  %v5097_v29 = vpop.f32.mrb[64].mxu1  ;;  %v5161_v30 = vpop.f32.mrb[64].mxu0 }
 0x253   : > { %v5098_v54 = vpop.f32.mrb[65].mxu1  ;;  %v5162_v36 = vpop.f32.mrb[65].mxu0 }
 0x254   : > { %v5099_v62 = vadd.f32 %v5098_v54, %v5097_v29  ;;  %v5163_v63 = vadd.f32 %v5162_v36, %v5161_v30  ;;  %v5100_v53 = vpop.f32.mrb[66].mxu1  ;;  %v5164_v44 = vpop.f32.mrb[66].mxu0 }
 0x255   : > { %v5101_v0 = vpop.f32.mrb[67].mxu1  ;;  %v5165_v1 = vpop.f32.mrb[67].mxu0 }
 0x256   : > { %v3790_v8 = vadd.f32 %v5099_v62, %v7205_v34  ;;  %v5102_v2 = vadd.f32 %v5101_v0, %v5100_v53  ;;  %v5166_v3 = vadd.f32 %v5165_v1, %v5164_v44 }
 0x258   : > { %v7258_v6 = vadd.f32 %v5163_v63, %v3790_v8  ;;  %v3793_v10 = vadd.f32 %v5102_v2, %v7207_v38 }
 0x25a   : > { %v7261_v61 = vadd.f32 %v5166_v3, %v3793_v10  ;;  %v5103_v55 = vpop.f32.mrb[68].mxu1  ;;  %v5167_v7 = vpop.f32.mrb[68].mxu0 }
 0x25b   : > { %v5104_v20 = vpop.f32.mrb[69].mxu1  ;;  %v5168_v57 = vpop.f32.mrb[69].mxu0 }
 0x25c   : > { %v5105_v14 = vadd.f32 %v5104_v20, %v5103_v55  ;;  %v5169_v16 = vadd.f32 %v5168_v57, %v5167_v7  ;;  %v5106_v52 = vpop.f32.mrb[70].mxu1  ;;  %v5170_v18 = vpop.f32.mrb[70].mxu0 }
 0x25d   : > { %v5107_v5 = vpop.f32.mrb[71].mxu1  ;;  %v5171_v22 = vpop.f32.mrb[71].mxu0 }
 0x25e   : > { %v3798_v34 = vadd.f32 %v5105_v14, %v7213_v56  ;;  %v5108_v23 = vadd.f32 %v5107_v5, %v5106_v52  ;;  %v5172_v24 = vadd.f32 %v5171_v22, %v5170_v18 }
 0x260   : > { %v7264_v25 = vadd.f32 %v5169_v16, %v3798_v34  ;;  %v3801_v38 = vadd.f32 %v5108_v23, %v7215_v59 }
 0x262   : > { %v7267_v60 = vadd.f32 %v5172_v24, %v3801_v38  ;;  %v5109_v17 = vpop.f32.mrb[72].mxu1  ;;  %v5173_v26 = vpop.f32.mrb[72].mxu0 }
 0x263   : > { %v5110_v13 = vpop.f32.mrb[73].mxu1  ;;  %v5174_v19 = vpop.f32.mrb[73].mxu0 }
 0x264   : > { %v5111_v32 = vadd.f32 %v5110_v13, %v5109_v17  ;;  %v5175_v33 = vadd.f32 %v5174_v19, %v5173_v26  ;;  %v5112_v35 = vpop.f32.mrb[74].mxu1  ;;  %v5176_v39 = vpop.f32.mrb[74].mxu0 }
 0x265   : > { %v5113_v41 = vpop.f32.mrb[75].mxu1  ;;  %v5177_v42 = vpop.f32.mrb[75].mxu0 }
 0x266   : > { %v3806_v56 = vadd.f32 %v5111_v32, %v7221_v15  ;;  %v5114_v21 = vadd.f32 %v5113_v41, %v5112_v35  ;;  %v5178_v43 = vadd.f32 %v5177_v42, %v5176_v39 }
 0x268   : > { %v7270_v4 = vadd.f32 %v5175_v33, %v3806_v56  ;;  %v3809_v59 = vadd.f32 %v5114_v21, %v7223_v28 }
 0x26a   : > { %v7273_v45 = vadd.f32 %v5178_v43, %v3809_v59  ;;  %v5115_v46 = vpop.f32.mrb[76].mxu1  ;;  %v5179_v47 = vpop.f32.mrb[76].mxu0 }
 0x26b   : > { %v5116_v49 = vpop.f32.mrb[77].mxu1  ;;  %v5180_v48 = vpop.f32.mrb[77].mxu0 }
 0x26c   : > { %v5117_v29 = vadd.f32 %v5116_v49, %v5115_v46  ;;  %v5181_v30 = vadd.f32 %v5180_v48, %v5179_v47  ;;  %v5118_v54 = vpop.f32.mrb[78].mxu1  ;;  %v5182_v36 = vpop.f32.mrb[78].mxu0 }
 0x26d   : > { %v5119_v62 = vpop.f32.mrb[79].mxu1  ;;  %v5183_v63 = vpop.f32.mrb[79].mxu0 }
 0x26e   : > { %v3814_v15 = vadd.f32 %v5117_v29, %v7229_v37  ;;  %v5120_v53 = vadd.f32 %v5119_v62, %v5118_v54  ;;  %v5184_v44 = vadd.f32 %v5183_v63, %v5182_v36 }
 0x270   : > { %v7276_v0 = vadd.f32 %v5181_v30, %v3814_v15  ;;  %v3817_v28 = vadd.f32 %v5120_v53, %v7231_v40 }
 0x272   : > { %v7279_v1 = vadd.f32 %v5184_v44, %v3817_v28  ;;  %v5201_v8 = vpop.f32.mrb[80].mxu1  ;;  %v5265_v2 = vpop.f32.mrb[80].mxu0 }
 0x273   : > { %v5202_v3 = vpop.f32.mrb[81].mxu1  ;;  %v5266_v10 = vpop.f32.mrb[81].mxu0 }
 0x274   : > { %v5203_v55 = vadd.f32 %v5202_v3, %v5201_v8  ;;  %v5267_v7 = vadd.f32 %v5266_v10, %v5265_v2  ;;  %v5204_v20 = vpop.f32.mrb[82].mxu1  ;;  %v5268_v57 = vpop.f32.mrb[82].mxu0 }
 0x275   : > { %v5205_v14 = vpop.f32.mrb[83].mxu1  ;;  %v5269_v16 = vpop.f32.mrb[83].mxu0 }
 0x276   : > { %v3952_v37 = vadd.f32 %v5203_v55, %v7234_v12  ;;  %v5206_v52 = vadd.f32 %v5205_v14, %v5204_v20  ;;  %v5270_v18 = vadd.f32 %v5269_v16, %v5268_v57 }
 0x278   : > { %v7282_v5 = vadd.f32 %v5267_v7, %v3952_v37  ;;  %v3955_v40 = vadd.f32 %v5206_v52, %v7237_v58 }
 0x27a   : > { %v7285_v22 = vadd.f32 %v5270_v18, %v3955_v40  ;;  %v5207_v34 = vpop.f32.mrb[84].mxu1  ;;  %v5271_v23 = vpop.f32.mrb[84].mxu0 }
 0x27b   : > { %v5208_v24 = vpop.f32.mrb[85].mxu1  ;;  %v5272_v38 = vpop.f32.mrb[85].mxu0 }
 0x27c   : > { %v5209_v17 = vadd.f32 %v5208_v24, %v5207_v34  ;;  %v5273_v26 = vadd.f32 %v5272_v38, %v5271_v23  ;;  %v5210_v13 = vpop.f32.mrb[86].mxu1  ;;  %v5274_v19 = vpop.f32.mrb[86].mxu0 }
 0x27d   : > { %v5211_v32 = vpop.f32.mrb[87].mxu1  ;;  %v5275_v33 = vpop.f32.mrb[87].mxu0 }
 0x27e   : > { %v3960_v12 = vadd.f32 %v5209_v17, %v7240_v9  ;;  %v5212_v35 = vadd.f32 %v5211_v32, %v5210_v13  ;;  %v5276_v39 = vadd.f32 %v5275_v33, %v5274_v19 }
 0x280   : > { %v7288_v41 = vadd.f32 %v5273_v26, %v3960_v12  ;;  %v3963_v58 = vadd.f32 %v5212_v35, %v7243_v11 }
 0x282   : > { %v7291_v42 = vadd.f32 %v5276_v39, %v3963_v58  ;;  %v5213_v56 = vpop.f32.mrb[88].mxu1  ;;  %v5277_v21 = vpop.f32.mrb[88].mxu0 }
 0x283   : > { %v5214_v43 = vpop.f32.mrb[89].mxu1  ;;  %v5278_v59 = vpop.f32.mrb[89].mxu0 }
 0x284   : > { %v5215_v46 = vadd.f32 %v5214_v43, %v5213_v56  ;;  %v5279_v47 = vadd.f32 %v5278_v59, %v5277_v21  ;;  %v5216_v49 = vpop.f32.mrb[90].mxu1  ;;  %v5280_v48 = vpop.f32.mrb[90].mxu0 }
 0x285   : > { %v5217_v29 = vpop.f32.mrb[91].mxu1  ;;  %v5281_v30 = vpop.f32.mrb[91].mxu0 }
 0x286   : > { %v3968_v9 = vadd.f32 %v5215_v46, %v7246_v27  ;;  %v5218_v54 = vadd.f32 %v5217_v29, %v5216_v49  ;;  %v5282_v36 = vadd.f32 %v5281_v30, %v5280_v48 }
 0x288   : > { %v7294_v62 = vadd.f32 %v5279_v47, %v3968_v9  ;;  %v3971_v11 = vadd.f32 %v5218_v54, %v7249_v31 }
 0x28a   : > { %v7297_v63 = vadd.f32 %v5282_v36, %v3971_v11  ;;  %v5219_v15 = vpop.f32.mrb[92].mxu1  ;;  %v5283_v53 = vpop.f32.mrb[92].mxu0 }
 0x28b   : > { %v5220_v44 = vpop.f32.mrb[93].mxu1  ;;  %v5284_v28 = vpop.f32.mrb[93].mxu0 }
 0x28c   : > { %v5221_v8 = vadd.f32 %v5220_v44, %v5219_v15  ;;  %v5285_v2 = vadd.f32 %v5284_v28, %v5283_v53  ;;  %v5222_v3 = vpop.f32.mrb[94].mxu1  ;;  %v5286_v10 = vpop.f32.mrb[94].mxu0 }
 0x28d   : > { %v5223_v55 = vpop.f32.mrb[95].mxu1  ;;  %v5287_v7 = vpop.f32.mrb[95].mxu0 }
 0x28e   : > { %v3976_v27 = vadd.f32 %v5221_v8, %v7252_v50  ;;  %v5224_v20 = vadd.f32 %v5223_v55, %v5222_v3  ;;  %v5288_v57 = vadd.f32 %v5287_v7, %v5286_v10 }
 0x290   : > { %v7300_v14 = vadd.f32 %v5285_v2, %v3976_v27  ;;  %v3979_v31 = vadd.f32 %v5224_v20, %v7255_v51 }
 0x292   : > { %v7303_v16 = vadd.f32 %v5288_v57, %v3979_v31  ;;  %v5225_v37 = vpop.f32.mrb[96].mxu1  ;;  %v5289_v52 = vpop.f32.mrb[96].mxu0 }
 0x293   : > { %v5226_v18 = vpop.f32.mrb[97].mxu1  ;;  %v5290_v40 = vpop.f32.mrb[97].mxu0 }
 0x294   : > { %v5227_v34 = vadd.f32 %v5226_v18, %v5225_v37  ;;  %v5291_v23 = vadd.f32 %v5290_v40, %v5289_v52  ;;  %v5228_v24 = vpop.f32.mrb[98].mxu1  ;;  %v5292_v38 = vpop.f32.mrb[98].mxu0 }
 0x295   : > { %v5229_v17 = vpop.f32.mrb[99].mxu1  ;;  %v5293_v26 = vpop.f32.mrb[99].mxu0 }
 0x296   : > { %v3984_v50 = vadd.f32 %v5227_v34, %v7258_v6  ;;  %v5230_v13 = vadd.f32 %v5229_v17, %v5228_v24  ;;  %v5294_v19 = vadd.f32 %v5293_v26, %v5292_v38 }
 0x298   : > { %v7306_v32 = vadd.f32 %v5291_v23, %v3984_v50  ;;  %v3987_v51 = vadd.f32 %v5230_v13, %v7261_v61 }
 0x29a   : > { %v7309_v33 = vadd.f32 %v5294_v19, %v3987_v51  ;;  %v5231_v12 = vpop.f32.mrb[100].mxu1  ;;  %v5295_v35 = vpop.f32.mrb[100].mxu0 }
 0x29b   : > { %v5232_v39 = vpop.f32.mrb[101].mxu1  ;;  %v5296_v58 = vpop.f32.mrb[101].mxu0 }
 0x29c   : > { %v5233_v56 = vadd.f32 %v5232_v39, %v5231_v12  ;;  %v5297_v21 = vadd.f32 %v5296_v58, %v5295_v35  ;;  %v5234_v43 = vpop.f32.mrb[102].mxu1  ;;  %v5298_v59 = vpop.f32.mrb[102].mxu0 }
 0x29d   : > { %v5235_v46 = vpop.f32.mrb[103].mxu1  ;;  %v5299_v47 = vpop.f32.mrb[103].mxu0 }
 0x29e   : > { %v3992_v6 = vadd.f32 %v5233_v56, %v7264_v25  ;;  %v5236_v49 = vadd.f32 %v5235_v46, %v5234_v43  ;;  %v5300_v48 = vadd.f32 %v5299_v47, %v5298_v59 }
 0x2a0   : > { %v7312_v29 = vadd.f32 %v5297_v21, %v3992_v6  ;;  %v3995_v61 = vadd.f32 %v5236_v49, %v7267_v60 }
 0x2a2   : > { %v7315_v30 = vadd.f32 %v5300_v48, %v3995_v61  ;;  %v5237_v9 = vpop.f32.mrb[104].mxu1  ;;  %v5301_v54 = vpop.f32.mrb[104].mxu0 }
 0x2a3   : > { %v5238_v36 = vpop.f32.mrb[105].mxu1  ;;  %v5302_v11 = vpop.f32.mrb[105].mxu0 }
 0x2a4   : > { %v5239_v15 = vadd.f32 %v5238_v36, %v5237_v9  ;;  %v5303_v53 = vadd.f32 %v5302_v11, %v5301_v54  ;;  %v5240_v44 = vpop.f32.mrb[106].mxu1  ;;  %v5304_v28 = vpop.f32.mrb[106].mxu0 }
 0x2a5   : > { %v5241_v8 = vpop.f32.mrb[107].mxu1  ;;  %v5305_v2 = vpop.f32.mrb[107].mxu0 }
 0x2a6   : > { %v4000_v25 = vadd.f32 %v5239_v15, %v7270_v4  ;;  %v5242_v3 = vadd.f32 %v5241_v8, %v5240_v44  ;;  %v5306_v10 = vadd.f32 %v5305_v2, %v5304_v28 }
 0x2a8   : > { %v7318_v55 = vadd.f32 %v5303_v53, %v4000_v25  ;;  %v4003_v60 = vadd.f32 %v5242_v3, %v7273_v45 }
 0x2aa   : > { %v7321_v7 = vadd.f32 %v5306_v10, %v4003_v60  ;;  %v5243_v27 = vpop.f32.mrb[108].mxu1  ;;  %v5307_v20 = vpop.f32.mrb[108].mxu0 }
 0x2ab   : > { %v5244_v57 = vpop.f32.mrb[109].mxu1  ;;  %v5308_v31 = vpop.f32.mrb[109].mxu0 }
 0x2ac   : > { %v5245_v37 = vadd.f32 %v5244_v57, %v5243_v27  ;;  %v5309_v52 = vadd.f32 %v5308_v31, %v5307_v20  ;;  %v5246_v18 = vpop.f32.mrb[110].mxu1  ;;  %v5310_v40 = vpop.f32.mrb[110].mxu0 }
 0x2ad   : > { %v5247_v34 = vpop.f32.mrb[111].mxu1  ;;  %v5311_v23 = vpop.f32.mrb[111].mxu0 }
 0x2ae   : > { %v4008_v4 = vadd.f32 %v5245_v37, %v7276_v0  ;;  %v5248_v24 = vadd.f32 %v5247_v34, %v5246_v18  ;;  %v5312_v38 = vadd.f32 %v5311_v23, %v5310_v40 }
 0x2b0   : > { %v7324_v17 = vadd.f32 %v5309_v52, %v4008_v4  ;;  %v4011_v45 = vadd.f32 %v5248_v24, %v7279_v1 }
 0x2b2   : > { %v7327_v26 = vadd.f32 %v5312_v38, %v4011_v45  ;;  %v5329_v50 = vpop.f32.mrb[112].mxu1  ;;  %v5393_v13 = vpop.f32.mrb[112].mxu0 }
 0x2b3   : > { %v5330_v19 = vpop.f32.mrb[113].mxu1  ;;  %v5394_v51 = vpop.f32.mrb[113].mxu0 }
 0x2b4   : > { %v5331_v12 = vadd.f32 %v5330_v19, %v5329_v50  ;;  %v5395_v35 = vadd.f32 %v5394_v51, %v5393_v13  ;;  %v5332_v39 = vpop.f32.mrb[114].mxu1  ;;  %v5396_v58 = vpop.f32.mrb[114].mxu0 }
 0x2b5   : > { %v5333_v56 = vpop.f32.mrb[115].mxu1  ;;  %v5397_v21 = vpop.f32.mrb[115].mxu0 }
 0x2b6   : > { %v4146_v0 = vadd.f32 %v5331_v12, %v7282_v5  ;;  %v5334_v43 = vadd.f32 %v5333_v56, %v5332_v39  ;;  %v5398_v59 = vadd.f32 %v5397_v21, %v5396_v58 }
 0x2b8   : > { %v4243_v46 = vadd.f32 %v5395_v35, %v4146_v0  ;;  %v4149_v1 = vadd.f32 %v5334_v43, %v7285_v22 }
 0x2ba   : > { %vm4305_vm0 = vcmp.gt.f32.partialorder %v4243_v46, 0.0  ;;  %v4321_v47 = vmul.f32 0.2, %v4243_v46  ;;  %v4246_v6 = vadd.f32 %v5398_v59, %v4149_v1  ;;  %v5335_v49 = vpop.f32.mrb[116].mxu1  ;;  %v5399_v48 = vpop.f32.mrb[116].mxu0 }
 0x2bb   : > { %v5336_v61 = vpop.f32.mrb[117].mxu1  ;;  %v5400_v9 = vpop.f32.mrb[117].mxu0 }
 0x2bc   : > { %v4337_v54 = vsel %vm4305_vm0, %v4243_v46, %v4321_v47  ;;  %vm4306_vm1 = vcmp.gt.f32.partialorder %v4246_v6, 0.0  ;;  %v4322_v36 = vmul.f32 0.2, %v4246_v6  ;;  %v5337_v11 = vadd.f32 %v5336_v61, %v5335_v49  ;;  %v5338_v15 = vpop.f32.mrb[118].mxu1  ;;  %v5402_v5 = vpop.f32.mrb[118].mxu0 }
 0x2bd   : > { %4353 = vst [vmem:[%s7333_s4] sm:$0xff] %v4337_v54  ;;  %v5401_v53 = vadd.f32 %v5400_v9, %v5399_v48  ;;  %v5339_v22 = vpop.f32.mrb[119].mxu1  ;;  %v5403_v44 = vpop.f32.mrb[119].mxu0 }
 0x2be   : > { %v4338_v28 = vsel %vm4306_vm1, %v4246_v6, %v4322_v36  ;;  %v4154_v8 = vadd.f32 %v5337_v11, %v7288_v41  ;;  %v5340_v2 = vadd.f32 %v5339_v22, %v5338_v15  ;;  %v5404_v25 = vadd.f32 %v5403_v44, %v5402_v5 }
 0x2bf   : > { %4354 = vst [vmem:[%s7333_s4 + $0x8] sm:$0xff] %v4338_v28 }
 0x2c0   : > { %v4251_v3 = vadd.f32 %v5401_v53, %v4154_v8  ;;  %v4157_v10 = vadd.f32 %v5340_v2, %v7291_v42 }
 0x2c2   : > { %vm4307_vm2 = vcmp.gt.f32.partialorder %v4251_v3, 0.0  ;;  %v4323_v60 = vmul.f32 0.2, %v4251_v3  ;;  %v4254_v27 = vadd.f32 %v5404_v25, %v4157_v10  ;;  %v5341_v20 = vpop.f32.mrb[120].mxu1  ;;  %v5405_v57 = vpop.f32.mrb[120].mxu0 }
 0x2c3   : > { %v5342_v31 = vpop.f32.mrb[121].mxu1  ;;  %v5406_v37 = vpop.f32.mrb[121].mxu0 }
 0x2c4   : > { %v4339_v52 = vsel %vm4307_vm2, %v4251_v3, %v4323_v60  ;;  %vm4308_vm3 = vcmp.gt.f32.partialorder %v4254_v27, 0.0  ;;  %v4324_v18 = vmul.f32 0.2, %v4254_v27  ;;  %v5343_v40 = vadd.f32 %v5342_v31, %v5341_v20  ;;  %v5344_v41 = vpop.f32.mrb[122].mxu1  ;;  %v5408_v34 = vpop.f32.mrb[122].mxu0 }
 0x2c5   : > { %4355 = vst [vmem:[%s7333_s4 + $0x10] sm:$0xff] %v4339_v52  ;;  %v5407_v23 = vadd.f32 %v5406_v37, %v5405_v57  ;;  %v5345_v4 = vpop.f32.mrb[123].mxu1  ;;  %v5409_v24 = vpop.f32.mrb[123].mxu0 }
 0x2c6   : > { %v4340_v38 = vsel %vm4308_vm3, %v4254_v27, %v4324_v18  ;;  %v4162_v42 = vadd.f32 %v5343_v40, %v7294_v62  ;;  %v5346_v45 = vadd.f32 %v5345_v4, %v5344_v41  ;;  %v5410_v50 = vadd.f32 %v5409_v24, %v5408_v34 }
 0x2c7   : > { %4356 = vst [vmem:[%s7333_s4 + $0x18] sm:$0xff] %v4340_v38 }
 0x2c8   : > { %v4259_v13 = vadd.f32 %v5407_v23, %v4162_v42  ;;  %v4165_v19 = vadd.f32 %v5346_v45, %v7297_v63 }
 0x2ca   : > { %vm4309_vm4 = vcmp.gt.f32.partialorder %v4259_v13, 0.0  ;;  %v4325_v51 = vmul.f32 0.2, %v4259_v13  ;;  %v4262_v12 = vadd.f32 %v5410_v50, %v4165_v19  ;;  %v5347_v35 = vpop.f32.mrb[124].mxu1  ;;  %v5411_v39 = vpop.f32.mrb[124].mxu0 }
 0x2cb   : > { %v5348_v58 = vpop.f32.mrb[125].mxu1  ;;  %v5412_v56 = vpop.f32.mrb[125].mxu0 }
 0x2cc   : > { %v4341_v21 = vsel %vm4309_vm4, %v4259_v13, %v4325_v51  ;;  %vm4310_vm5 = vcmp.gt.f32.partialorder %v4262_v12, 0.0  ;;  %v4326_v0 = vmul.f32 0.2, %v4262_v12  ;;  %v5349_v43 = vadd.f32 %v5348_v58, %v5347_v35  ;;  %v5350_v62 = vpop.f32.mrb[126].mxu1  ;;  %v5414_v59 = vpop.f32.mrb[126].mxu0 }
 0x2cd   : > { %4357 = vst [vmem:[%s7333_s4 + $0x20] sm:$0xff] %v4341_v21  ;;  %v5413_v46 = vadd.f32 %v5412_v56, %v5411_v39  ;;  %v5351_v1 = vpop.f32.mrb[127].mxu1  ;;  %v5415_v47 = vpop.f32.mrb[127].mxu0 }
 0x2ce   : > { %v4342_v6 = vsel %vm4310_vm5, %v4262_v12, %v4326_v0  ;;  %v4170_v63 = vadd.f32 %v5349_v43, %v7300_v14  ;;  %v5352_v49 = vadd.f32 %v5351_v1, %v5350_v62  ;;  %v5416_v48 = vadd.f32 %v5415_v47, %v5414_v59 }
 0x2cf   : > { %4358 = vst [vmem:[%s7333_s4 + $0x28] sm:$0xff] %v4342_v6 }
 0x2d0   : > { %v4267_v61 = vadd.f32 %v5413_v46, %v4170_v63  ;;  %v4173_v9 = vadd.f32 %v5352_v49, %v7303_v16 }
 0x2d2   : > { %vm4311_vm6 = vcmp.gt.f32.partialorder %v4267_v61, 0.0  ;;  %v4327_v54 = vmul.f32 0.2, %v4267_v61  ;;  %v4270_v36 = vadd.f32 %v5416_v48, %v4173_v9  ;;  %v5353_v11 = vpop.f32.mrb[128].mxu1  ;;  %v5417_v15 = vpop.f32.mrb[128].mxu0 }
 0x2d3   : > { %v5354_v5 = vpop.f32.mrb[129].mxu1  ;;  %v5418_v53 = vpop.f32.mrb[129].mxu0 }
 0x2d4   : > { %v4343_v22 = vsel %vm4311_vm6, %v4267_v61, %v4327_v54  ;;  %vm4312_vm7 = vcmp.gt.f32.partialorder %v4270_v36, 0.0  ;;  %v4328_v44 = vmul.f32 0.2, %v4270_v36  ;;  %v5355_v28 = vadd.f32 %v5354_v5, %v5353_v11  ;;  %v5356_v14 = vpop.f32.mrb[130].mxu1  ;;  %v5420_v8 = vpop.f32.mrb[130].mxu0 }
 0x2d5   : > { %4359 = vst [vmem:[%s7333_s4 + $0x30] sm:$0xff] %v4343_v22  ;;  %v5419_v2 = vadd.f32 %v5418_v53, %v5417_v15  ;;  %v5357_v25 = vpop.f32.mrb[131].mxu1  ;;  %v5421_v3 = vpop.f32.mrb[131].mxu0 }
 0x2d6   : > { %v4344_v10 = vsel %vm4312_vm7, %v4270_v36, %v4328_v44  ;;  %v4178_v16 = vadd.f32 %v5355_v28, %v7306_v32  ;;  %v5358_v60 = vadd.f32 %v5357_v25, %v5356_v14  ;;  %v5422_v27 = vadd.f32 %v5421_v3, %v5420_v8 }
 0x2d7   : > { %4360 = vst [vmem:[%s7333_s4 + $0x38] sm:$0xff] %v4344_v10 }
 0x2d8   : > { %v4275_v20 = vadd.f32 %v5419_v2, %v4178_v16  ;;  %v4181_v57 = vadd.f32 %v5358_v60, %v7309_v33 }
 0x2da   : > { %vm4313_vm8 = vcmp.gt.f32.partialorder %v4275_v20, 0.0  ;;  %v4329_v31 = vmul.f32 0.2, %v4275_v20  ;;  %v4278_v37 = vadd.f32 %v5422_v27, %v4181_v57  ;;  %v5359_v52 = vpop.f32.mrb[132].mxu1  ;;  %v5423_v18 = vpop.f32.mrb[132].mxu0 }
 0x2db   : > { %v5360_v40 = vpop.f32.mrb[133].mxu1  ;;  %v5424_v41 = vpop.f32.mrb[133].mxu0 }
 0x2dc   : > { %v4345_v34 = vsel %vm4313_vm8, %v4275_v20, %v4329_v31  ;;  %vm4314_vm9 = vcmp.gt.f32.partialorder %v4278_v37, 0.0  ;;  %v4330_v23 = vmul.f32 0.2, %v4278_v37  ;;  %v5361_v4 = vadd.f32 %v5360_v40, %v5359_v52  ;;  %v5362_v32 = vpop.f32.mrb[134].mxu1  ;;  %v5426_v24 = vpop.f32.mrb[134].mxu0  ;;  %v4444_v40 = vld [vmem:[%s7333_s4 + $0x18] sm:$0xff] (%p5954_p6) }
 0x2dd   : > { %4361 = vst [vmem:[%s7333_s4 + $0x40] sm:$0xff] %v4345_v34  ;;  %v5425_v38 = vadd.f32 %v5424_v41, %v5423_v18  ;;  %v5363_v42 = vpop.f32.mrb[135].mxu1  ;;  %v5427_v45 = vpop.f32.mrb[135].mxu0  ;;  %v4442_v18 = vld [vmem:[%s7333_s4 + $0x10] sm:$0xff] (%p5954_p6)  ;;  %v4446_v41 = vld [vmem:[%s7333_s4 + $0x20] sm:$0xff] (%p5954_p6)  ;;  %v4448_v34 = vld [vmem:[%s7333_s4 + $0x28] sm:$0xff] (%p5954_p6) }
 0x2de   : > { %v4346_v50 = vsel %vm4314_vm9, %v4278_v37, %v4330_v23  ;;  %v4186_v33 = vadd.f32 %v5361_v4, %v7312_v29  ;;  %v5364_v13 = vadd.f32 %v5363_v42, %v5362_v32  ;;  %v5428_v19 = vadd.f32 %v5427_v45, %v5426_v24  ;;  %4443 = vst [vmem:[%s4380_s5 + $0x40] sm:$0xff] (%p5954_p6), %v4442_v18  ;;  %v4450_v23 = vld [vmem:[%s7333_s4 + $0x30] sm:$0xff] (%p5954_p6)  ;;  %v4452_v4 = vld [vmem:[%s7333_s4 + $0x38] sm:$0xff] (%p5954_p6) }
 0x2df   : > { %4362 = vst [vmem:[%s7333_s4 + $0x48] sm:$0xff] %v4346_v50  ;;  %4445 = vst [vmem:[%s4380_s5 + $0x60] sm:$0xff] (%p5954_p6), %v4444_v40 }
 0x2e0   : > { %v4283_v51 = vadd.f32 %v5425_v38, %v4186_v33  ;;  %v4189_v12 = vadd.f32 %v5364_v13, %v7315_v30  ;;  %4447 = vst [vmem:[%s4380_s5 + $0x80] sm:$0xff] (%p5954_p6), %v4446_v41  ;;  %4449 = vst [vmem:[%s4380_s5 + $0xa0] sm:$0xff] (%p5954_p6), %v4448_v34 }
 0x2e1   : > { %4451 = vst [vmem:[%s4380_s5 + $0xc0] sm:$0xff] (%p5954_p6), %v4450_v23  ;;  %4453 = vst [vmem:[%s4380_s5 + $0xe0] sm:$0xff] (%p5954_p6), %v4452_v4 }
 0x2e2   : > { %vm4315_vm10 = vcmp.gt.f32.partialorder %v4283_v51, 0.0  ;;  %v4331_v35 = vmul.f32 0.2, %v4283_v51  ;;  %v4286_v39 = vadd.f32 %v5428_v19, %v4189_v12  ;;  %v5365_v58 = vpop.f32.mrb[136].mxu1  ;;  %v5429_v56 = vpop.f32.mrb[136].mxu0 }
 0x2e3   : > { %v5366_v21 = vpop.f32.mrb[137].mxu1  ;;  %v5430_v0 = vpop.f32.mrb[137].mxu0 }
 0x2e4   : > { %v4347_v43 = vsel %vm4315_vm10, %v4283_v51, %v4331_v35  ;;  %vm4316_vm11 = vcmp.gt.f32.partialorder %v4286_v39, 0.0  ;;  %v4332_v62 = vmul.f32 0.2, %v4286_v39  ;;  %v5367_v59 = vadd.f32 %v5366_v21, %v5365_v58  ;;  %v5368_v29 = vpop.f32.mrb[138].mxu1  ;;  %v5432_v46 = vpop.f32.mrb[138].mxu0  ;;  %v4454_v32 = vld [vmem:[%s7333_s4 + $0x40] sm:$0xff] (%p5954_p6) }
 0x2e5   : > { %4363 = vst [vmem:[%s7333_s4 + $0x50] sm:$0xff] %v4347_v43  ;;  %v5431_v1 = vadd.f32 %v5430_v0, %v5429_v56  ;;  %v5369_v47 = vpop.f32.mrb[139].mxu1  ;;  %v5433_v6 = vpop.f32.mrb[139].mxu0  ;;  %4455 = vst [vmem:[%s4380_s5 + $0x100] sm:$0xff] (%p5954_p6), %v4454_v32 }
 0x2e6   : > { %v4348_v63 = vsel %vm4316_vm11, %v4286_v39, %v4332_v62  ;;  %v4194_v30 = vadd.f32 %v5367_v59, %v7318_v55  ;;  %v5370_v49 = vadd.f32 %v5369_v47, %v5368_v29  ;;  %v5434_v48 = vadd.f32 %v5433_v6, %v5432_v46  ;;  %v4456_v24 = vld [vmem:[%s7333_s4 + $0x48] sm:$0xff] (%p5954_p6) }
 0x2e7   : > { %4364 = vst [vmem:[%s7333_s4 + $0x58] sm:$0xff] %v4348_v63  ;;  %4457 = vst [vmem:[%s4380_s5 + $0x120] sm:$0xff] (%p5954_p6), %v4456_v24 }
 0x2e8   : > { %v4291_v61 = vadd.f32 %v5431_v1, %v4194_v30  ;;  %v4197_v9 = vadd.f32 %v5370_v49, %v7321_v7 }
 0x2ea   : > { %vm4317_vm12 = vcmp.gt.f32.partialorder %v4291_v61, 0.0  ;;  %v4333_v54 = vmul.f32 0.2, %v4291_v61  ;;  %v4294_v36 = vadd.f32 %v5434_v48, %v4197_v9  ;;  %v5371_v11 = vpop.f32.mrb[140].mxu1  ;;  %v5435_v15 = vpop.f32.mrb[140].mxu0 }
 0x2eb   : > { %v5372_v5 = vpop.f32.mrb[141].mxu1  ;;  %v5436_v53 = vpop.f32.mrb[141].mxu0 }
 0x2ec   : > { %v4349_v22 = vsel %vm4317_vm12, %v4291_v61, %v4333_v54  ;;  %vm4318_vm13 = vcmp.gt.f32.partialorder %v4294_v36, 0.0  ;;  %v4334_v44 = vmul.f32 0.2, %v4294_v36  ;;  %v5373_v28 = vadd.f32 %v5372_v5, %v5371_v11  ;;  %v5374_v55 = vpop.f32.mrb[142].mxu1  ;;  %v5438_v14 = vpop.f32.mrb[142].mxu0  ;;  %v4458_v38 = vld [vmem:[%s7333_s4 + $0x50] sm:$0xff] (%p5954_p6) }
 0x2ed   : > { %4365 = vst [vmem:[%s7333_s4 + $0x60] sm:$0xff] %v4349_v22  ;;  %v5437_v8 = vadd.f32 %v5436_v53, %v5435_v15  ;;  %v5375_v2 = vpop.f32.mrb[143].mxu1  ;;  %v5439_v25 = vpop.f32.mrb[143].mxu0  ;;  %4459 = vst [vmem:[%s4380_s5 + $0x140] sm:$0xff] (%p5954_p6), %v4458_v38 }
 0x2ee   : > { %v4350_v7 = vsel %vm4318_vm13, %v4294_v36, %v4334_v44  ;;  %v4202_v3 = vadd.f32 %v5373_v28, %v7324_v17  ;;  %v5376_v10 = vadd.f32 %v5375_v2, %v5374_v55  ;;  %v5440_v16 = vadd.f32 %v5439_v25, %v5438_v14  ;;  %v4438_v17 = vld [vmem:[%s7333_s4] sm:$0xff] (%p5954_p6)  ;;  %v4460_v42 = vld [vmem:[%s7333_s4 + $0x58] sm:$0xff] (%p5954_p6) }
 0x2ef   : > { %4366 = vst [vmem:[%s7333_s4 + $0x68] sm:$0xff] %v4350_v7  ;;  %4439 = vst [vmem:[%s4380_s5] sm:$0xff] (%p5954_p6), %v4438_v17 }
 0x2f0   : > { %v4299_v60 = vadd.f32 %v5437_v8, %v4202_v3  ;;  %v4205_v27 = vadd.f32 %v5376_v10, %v7327_v26  ;;  %v4440_v26 = vld [vmem:[%s7333_s4 + $0x8] sm:$0xff] (%p5954_p6)  ;;  %4461 = vst [vmem:[%s4380_s5 + $0x160] sm:$0xff] (%p5954_p6), %v4460_v42 }
 0x2f1   : > { %4375 = sbr.rel (!%p5954_p6) target bundleno = 768 (0x300), region = 77  ;;  %4441 = vst [vmem:[%s4380_s5 + $0x20] sm:$0xff] (%p5954_p6), %v4440_v26 }
 0x2f2   : > { %vm4319_vm14 = vcmp.gt.f32.partialorder %v4299_v60, 0.0  ;;  %v4335_v20 = vmul.f32 0.2, %v4299_v60  ;;  %v4302_v57 = vadd.f32 %v5440_v16, %v4205_v27 }
 0x2f4   : > { %v4351_v31 = vsel %vm4319_vm14, %v4299_v60, %v4335_v20  ;;  %vm4320_vm15 = vcmp.gt.f32.partialorder %v4302_v57, 0.0  ;;  %v4336_v37 = vmul.f32 0.2, %v4302_v57  ;;  %v4462_v45 = vld [vmem:[%s7333_s4 + $0x60] sm:$0xff] (%p5954_p6) }
 0x2f5   : > { %4367 = vst [vmem:[%s7333_s4 + $0x70] sm:$0xff] %v4351_v31  ;;  %4463 = vst [vmem:[%s4380_s5 + $0x180] sm:$0xff] (%p5954_p6), %v4462_v45 }
 0x2f6   : > { %v4352_v52 = vsel %vm4320_vm15, %v4302_v57, %v4336_v37  ;;  %v4464_v50 = vld [vmem:[%s7333_s4 + $0x68] sm:$0xff] (%p5954_p6) }
 0x2f7   : > { %4368 = vst [vmem:[%s7333_s4 + $0x78] sm:$0xff] %v4352_v52  ;;  %4465 = vst [vmem:[%s4380_s5 + $0x1a0] sm:$0xff] (%p5954_p6), %v4464_v50 }
 0x2fc   : > { %v4466_v33 = vld [vmem:[%s7333_s4 + $0x70] sm:$0xff] }
 0x2fd   : > { %4467 = vst [vmem:[%s4380_s5 + $0x1c0] sm:$0xff] %v4466_v33 }
 0x2fe   : > { %v4468_v13 = vld [vmem:[%s7333_s4 + $0x78] sm:$0xff] }
 0x2ff   : > { %4469 = vst [vmem:[%s4380_s5 + $0x1e0] sm:$0xff] %v4468_v13 }
 0x300 PF: > { %s13_s16 = sadd.s32 1, %s5897_s16   ;;  %s7407_s12 = smov %s5885_s13 }
 0x301   : > { %p10_p12 = scmp.ge.s32.totalorder %s13_s16, 6   ;;  %s7408_s13 = smov %s5959_s22 }
 0x302   : > { %s7409_s14 = smov %s5893_s15  ;;  %s7410_s15 = smov %s7412_s17 }
 0x303   :  { %12 = sbr.rel (!%p10_p12) target bundleno = 3 (0x3), region = 152 }

// kernel: discriminator_forward.13
= control target key start
LH: loop header
LB: loop body
LE: loop exit
PB: predicated region body
PF: predicated region fallthrough
CT: control target
= control target key end

     0   :  { %s2210_s12 = smov 0   ;;  %s2399_s0 = inlined_call_operand.vmem [shape: bf16[2,32768], index: 0, kind: input, shape index: {}]   ;;  %s2400_s1 = inlined_call_operand.vmem [shape: bf16[32768,128], index: 1, kind: input, shape index: {}]   ;;  %s2401_s2 = inlined_call_operand.vmem [shape: f32[1,128], index: 2, kind: input, shape index: {}]   ;;  %s2402_s3 = inlined_call_operand.vmem [shape: f32[2,128], index: 3, kind: output, shape index: {}]  }
   0x1 LB: > { %s2216_s13 = sadd.s32 4294967295, %s2186_s12   ;;  %p1723_p0 = scmp.ge.s32.totalorder %s2186_s12, 1  ;;  %s2186_s12 = sphi %s2210_s12, %s13_s12  }
   0x2   : > { %p143_p1 = scmp.lt.s32.totalorder %s2186_s12, 17 }
   0x4   : > { %p144_p2 = pnand %p1723_p0, %p143_p1 }
   0x5   : > { %s1724_s14 = sshll.u32 (!%p144_p2), %s2216_s13, 4  ;;  %s1725_s15 = sshll.u32 (!%p144_p2), %s2216_s13, 8 }
   0x6   : > { %147 = sbr.rel (%p144_p2) target bundleno = 701 (0x2bd), region = 32  ;;  %p167_p3 = scmp.lt.s32.totalorder (!%p144_p2), %s1724_s14, 255 }
   0x7   : > { %p172_p4 = scmp.lt.s32.totalorder (!%p144_p2), %s1725_s15, 4095  ;;  %p1727_p5 = scmp.ne.s32.totalorder (!%p144_p2), %s2216_s13, 0 }
   0xd   : > { %s2404_s14 = smov (!%p167_p3, %s1724_s14), 255  ;;  %s2406_s15 = smov (!%p172_p4, %s1725_s15), 4095 }
   0xe   : > { %s2225_s18 = scalar_lea.vmem %s2399_s0, %s2404_s14  ;;  %s1726_s19 = sshll.u32 %s2406_s15, 2  ;;  %v2188_v0 = vmov (!%p1727_p5), 0.0  }
   0xf   : > { %s2230_s22 = scalar_lea.vmem %s2400_s1, %s1726_s19  ;;  %181 = sbr.rel (%p1727_p5) target bundleno = 22 (0x16), region = 36  ;;  %182 = vst [vmem:[#allocation2] sm:$0x3] (!%p1727_p5), %v2188_v0 }
  0x16 PF: > { %v2046_v1 = vld [vmem:[%s2230_s22 + $0x40] sm:$0xff]   ;;  %v2050_v5 = vld [vmem:[%s2230_s22 + $0x48] sm:$0xff]   ;;  %v2054_v9 = vld [vmem:[%s2230_s22 + $0x50] sm:$0xff]   ;;  %v448_v29 = vlaneseq  ;;  %v2189_v37 = vmov 1966171168   ;;  %p1856_p6 = scmp.ne.s32.totalorder %s2216_s13, 15 }
  0x17   : > { %v2047_v2 = vld [vmem:[%s2230_s22 + $0xc0] sm:$0xff]   ;;  %1860 = vmatprep.subr.bf16.mxu0 %v2046_v1  ;;  %v2051_v6 = vld [vmem:[%s2230_s22 + $0xc8] sm:$0xff]   ;;  %v2055_v10 = vld [vmem:[%s2230_s22 + $0xd0] sm:$0xff]   ;;  %v446_v38 = vunpack.c.l.s4 %v2189_v37  ;;  %vm1667_vm2 = vcmask (!%p1856_p6), 1041408  }
  0x18   : > { %v2048_v3 = vld [vmem:[%s2230_s22] sm:$0xff]   ;;  %1882 = vmatprep.subr.bf16.mxu1 %v2047_v2  ;;  %v2052_v7 = vld [vmem:[%s2230_s22 + $0x8] sm:$0xff]   ;;  %v2056_v11 = vld [vmem:[%s2230_s22 + $0x10] sm:$0xff]   ;;  %v449_v34 = vshrl.u32 %v448_v29, 7 }
  0x19   : > { %v2049_v4 = vld [vmem:[%s2230_s22 + $0x80] sm:$0xff]   ;;  %1861 = vmatpush3.bf16.msra.mxu0 %v2048_v3  ;;  %v2053_v8 = vld [vmem:[%s2230_s22 + $0x88] sm:$0xff]   ;;  %v2057_v12 = vld [vmem:[%s2230_s22 + $0x90] sm:$0xff]   ;;  %v447_v41 = vunpack.c.0.s8 %v446_v38 }
  0x1a   : > { %1883 = vmatpush3.bf16.msra.mxu1 %v2049_v4  ;;  %1862 = vmatprep.subr.bf16.mxu0 %v2050_v5  ;;  %v2058_v13 = vld [vmem:[%s2230_s22 + $0x58] sm:$0xff]   ;;  %v2062_v17 = vld [vmem:[%s2230_s22 + $0x60] sm:$0xff]   ;;  %v2066_v21 = vld [vmem:[%s2230_s22 + $0x68] sm:$0xff]  }
  0x1b   : > { %1884 = vmatprep.subr.bf16.mxu1 %v2051_v6  ;;  %v2059_v14 = vld [vmem:[%s2230_s22 + $0xd8] sm:$0xff]   ;;  %v2063_v18 = vld [vmem:[%s2230_s22 + $0xe0] sm:$0xff]   ;;  %v2067_v22 = vld [vmem:[%s2230_s22 + $0xe8] sm:$0xff]   ;;  %v2269_v42 = vsub.s32 %v447_v41, %v449_v34 }
  0x1c   : > { %v2060_v15 = vld [vmem:[%s2230_s22 + $0x18] sm:$0xff]   ;;  %v2064_v19 = vld [vmem:[%s2230_s22 + $0x20] sm:$0xff]   ;;  %v2068_v23 = vld [vmem:[%s2230_s22 + $0x28] sm:$0xff]  }
  0x1d   : > { %1863 = vmatpush3.bf16.msra.mxu0 %v2052_v7  ;;  %v2061_v16 = vld [vmem:[%s2230_s22 + $0x98] sm:$0xff]   ;;  %v2065_v20 = vld [vmem:[%s2230_s22 + $0xa0] sm:$0xff]   ;;  %v2069_v24 = vld [vmem:[%s2230_s22 + $0xa8] sm:$0xff]  }
  0x1e   : > { %1885 = vmatpush3.bf16.msra.mxu1 %v2053_v8  ;;  %1864 = vmatprep.subr.bf16.mxu0 %v2054_v9  ;;  %v2070_v25 = vld [vmem:[%s2230_s22 + $0x70] sm:$0xff]   ;;  %v2074_v30 = vld [vmem:[%s2230_s22 + $0x78] sm:$0xff]   ;;  %v184_v35 = vld [vmem:[%s2225_s18] sm:$0xff] }
  0x1f   : > { %1886 = vmatprep.subr.bf16.mxu1 %v2055_v10  ;;  %v2071_v26 = vld [vmem:[%s2230_s22 + $0xf0] sm:$0xff]   ;;  %v2075_v31 = vld [vmem:[%s2230_s22 + $0xf8] sm:$0xff]   ;;  %v2079_v36 = vld [vmem:[%s2230_s22 + $0x140] sm:$0xff]   ;;  %v444_v40 = vcombine.high %v184_v35, %v184_v35  ;;  %v451_v43 = vrot.slane %v184_v35, %v2269_v42 }
  0x20   : > { %v2072_v27 = vld [vmem:[%s2230_s22 + $0x30] sm:$0xff]   ;;  %v2076_v32 = vld [vmem:[%s2230_s22 + $0x38] sm:$0xff]   ;;  %v2080_v39 = vld [vmem:[%s2230_s22 + $0x1c0] sm:$0xff]  }
  0x21   : > { %1865 = vmatpush3.bf16.msra.mxu0 %v2056_v11  ;;  %v2073_v28 = vld [vmem:[%s2230_s22 + $0xb0] sm:$0xff]   ;;  %v2077_v33 = vld [vmem:[%s2230_s22 + $0xb8] sm:$0xff]   ;;  %v2273_v44 = vrot.slane %v444_v40, %v2269_v42  ;;  %v459_v45 = vcombine.high %v451_v43, %v451_v43  ;;  %v467_v46 = vrot.slane %v451_v43, %v2269_v42  ;;  %v2081_v49 = vld [vmem:[%s2230_s22 + $0x100] sm:$0xff]  }
  0x22   : > { %1887 = vmatpush3.bf16.msra.mxu1 %v2057_v12  ;;  %1866 = vmatprep.subr.bf16.mxu0 %v2058_v13  ;;  %v2083_v52 = vld [vmem:[%s2230_s22 + $0x148] sm:$0xff]   ;;  %v2082_v54 = vld [vmem:[%s2230_s22 + $0x180] sm:$0xff]   ;;  %v2087_v58 = vld [vmem:[%s2230_s22 + $0x150] sm:$0xff]  }
  0x23   : > { %1888 = vmatprep.subr.bf16.mxu1 %v2059_v14  ;;  %v460_v47 = vcombine.high %v2273_v44, %v2273_v44  ;;  %v481_v48 = vrot.slane %v459_v45, %v2269_v42  ;;  %v489_v51 = vcombine.high %v467_v46, %v467_v46  ;;  %v2084_v55 = vld [vmem:[%s2230_s22 + $0x1c8] sm:$0xff]   ;;  %v2088_v60 = vld [vmem:[%s2230_s22 + $0x1d0] sm:$0xff]   ;;  %v2091_v62 = vld [vmem:[%s2230_s22 + $0x158] sm:$0xff]  }
  0x24   : > { %v2085_v57 = vld [vmem:[%s2230_s22 + $0x108] sm:$0xff]   ;;  %v2089_v61 = vld [vmem:[%s2230_s22 + $0x110] sm:$0xff]   ;;  %v2092_v0 = vld [vmem:[%s2230_s22 + $0x1d8] sm:$0xff]  }
  0x25   : > { %1867 = vmatpush3.bf16.msra.mxu0 %v2060_v15  ;;  %v488_v50 = vrot.slane %v460_v47, %v2269_v42  ;;  %1358 = vmatprep.mubr.bf16.mxu0 %v481_v48  ;;  %v491_v53 = vcombine.high %v481_v48, %v481_v48  ;;  %v2086_v59 = vld [vmem:[%s2230_s22 + $0x188] sm:$0xff]   ;;  %v2090_v63 = vld [vmem:[%s2230_s22 + $0x190] sm:$0xff]   ;;  %v2093_v1 = vld [vmem:[%s2230_s22 + $0x118] sm:$0xff]  }
  0x26   : > { %1889 = vmatpush3.bf16.msra.mxu1 %v2061_v16  ;;  %1868 = vmatprep.subr.bf16.mxu0 %v2062_v17  ;;  %v2095_v2 = vld [vmem:[%s2230_s22 + $0x160] sm:$0xff]   ;;  %v2094_v3 = vld [vmem:[%s2230_s22 + $0x198] sm:$0xff]   ;;  %v2099_v6 = vld [vmem:[%s2230_s22 + $0x168] sm:$0xff]  }
  0x27   : > { %1890 = vmatprep.subr.bf16.mxu1 %v2063_v18  ;;  %v492_v56 = vcombine.high %v488_v50, %v488_v50  ;;  %1398 = vmatprep.mubr.bf16.mxu1 %v491_v53  ;;  %v2096_v4 = vld [vmem:[%s2230_s22 + $0x1e0] sm:$0xff]   ;;  %v2100_v8 = vld [vmem:[%s2230_s22 + $0x1e8] sm:$0xff]   ;;  %v2103_v10 = vld [vmem:[%s2230_s22 + $0x170] sm:$0xff]   ;;  %v474_v18 = vrot.slane %v2273_v44, %v2269_v42 }
  0x28   : > { %v2097_v5 = vld [vmem:[%s2230_s22 + $0x120] sm:$0xff]   ;;  %v2101_v9 = vld [vmem:[%s2230_s22 + $0x128] sm:$0xff]   ;;  %v2104_v12 = vld [vmem:[%s2230_s22 + $0x1f0] sm:$0xff]  }
  0x29   : > { %1869 = vmatpush3.bf16.msra.mxu0 %v2064_v19  ;;  %v2098_v7 = vld [vmem:[%s2230_s22 + $0x1a0] sm:$0xff]   ;;  %v2102_v11 = vld [vmem:[%s2230_s22 + $0x1a8] sm:$0xff]   ;;  %v2105_v13 = vld [vmem:[%s2230_s22 + $0x130] sm:$0xff]  }
  0x2a   : > { %1891 = vmatpush3.bf16.msra.mxu1 %v2065_v20  ;;  %1870 = vmatprep.subr.bf16.mxu0 %v2066_v21  ;;  %v2107_v14 = vld [vmem:[%s2230_s22 + $0x178] sm:$0xff]   ;;  %v2106_v15 = vld [vmem:[%s2230_s22 + $0x1b0] sm:$0xff]   ;;  %v2111_v19 = vld [vmem:[%s2230_s22 + $0x240] sm:$0xff]  }
  0x2b   : > { %1892 = vmatprep.subr.bf16.mxu1 %v2067_v22  ;;  %v2108_v16 = vld [vmem:[%s2230_s22 + $0x1f8] sm:$0xff]   ;;  %v2112_v21 = vld [vmem:[%s2230_s22 + $0x2c0] sm:$0xff]   ;;  %v2122_v34 = vld [vmem:[%s2230_s22 + $0x290] sm:$0xff]  }
  0x2c   : > { %v2109_v17 = vld [vmem:[%s2230_s22 + $0x138] sm:$0xff]   ;;  %v2113_v22 = vld [vmem:[%s2230_s22 + $0x200] sm:$0xff]   ;;  %v2131_v41 = vld [vmem:[%s2230_s22 + $0x268] sm:$0xff]  }
  0x2d   : > { %1871 = vmatpush3.bf16.msra.mxu0 %v2068_v23  ;;  %v2110_v20 = vld [vmem:[%s2230_s22 + $0x1b8] sm:$0xff]   ;;  %v490_v23 = vcombine.high %v474_v18, %v474_v18  ;;  %v2127_v37 = vld [vmem:[%s2230_s22 + $0x260] sm:$0xff]   ;;  %v2132_v44 = vld [vmem:[%s2230_s22 + $0x2e8] sm:$0xff]  }
  0x2e   : > { %1893 = vmatpush3.bf16.msra.mxu1 %v2069_v24  ;;  %1872 = vmatprep.subr.bf16.mxu0 %v2070_v25  ;;  %v2115_v24 = vld [vmem:[%s2230_s22 + $0x248] sm:$0xff]   ;;  %v2114_v25 = vld [vmem:[%s2230_s22 + $0x280] sm:$0xff]   ;;  %v2124_v35 = vld [vmem:[%s2230_s22 + $0x2d8] sm:$0xff]  }
  0x2f   : > { %1894 = vmatprep.subr.bf16.mxu1 %v2071_v26  ;;  %v2116_v26 = vld [vmem:[%s2230_s22 + $0x2c8] sm:$0xff]   ;;  %v2126_v38 = vld [vmem:[%s2230_s22 + $0x298] sm:$0xff]   ;;  %v2129_v40 = vld [vmem:[%s2230_s22 + $0x220] sm:$0xff]  }
  0x30   : > { %v2130_v43 = vld [vmem:[%s2230_s22 + $0x2a0] sm:$0xff]   ;;  %v2133_v45 = vld [vmem:[%s2230_s22 + $0x228] sm:$0xff]  }
  0x31   : > { %1873 = vmatpush3.bf16.msra.mxu0 %v2072_v27  ;;  %v2117_v27 = vld [vmem:[%s2230_s22 + $0x208] sm:$0xff]  }
  0x32   : > { %1895 = vmatpush3.bf16.msra.mxu1 %v2073_v28  ;;  %1874 = vmatprep.subr.bf16.mxu0 %v2074_v30  ;;  %v2119_v28 = vld [vmem:[%s2230_s22 + $0x250] sm:$0xff]   ;;  %v2118_v30 = vld [vmem:[%s2230_s22 + $0x288] sm:$0xff]  }
  0x33   : > { %1896 = vmatprep.subr.bf16.mxu1 %v2075_v31  ;;  %v2120_v31 = vld [vmem:[%s2230_s22 + $0x2d0] sm:$0xff]   ;;  %v185_v47 = vld [vmem:[%s2225_s18 + $0x8] sm:$0xff] }
  0x34   : > { %v2134_v48 = vld [vmem:[%s2230_s22 + $0x2a8] sm:$0xff]  }
  0x35   : > { %1875 = vmatpush3.bf16.msra.mxu0 %v2076_v32  ;;  %v2121_v32 = vld [vmem:[%s2230_s22 + $0x210] sm:$0xff]  }
  0x36   : > { %1897 = vmatpush3.bf16.msra.mxu1 %v2077_v33  ;;  %1904 = vmatprep.subr.bf16.mxu0 %v2079_v36  ;;  %v2123_v33 = vld [vmem:[%s2230_s22 + $0x258] sm:$0xff]  }
  0x37   : > { %1926 = vmatprep.subr.bf16.mxu1 %v2080_v39  ;;  %v2125_v36 = vld [vmem:[%s2230_s22 + $0x218] sm:$0xff]   ;;  %v2128_v39 = vld [vmem:[%s2230_s22 + $0x2e0] sm:$0xff]  }
  0x38   : > { %1359 = vmatmul.mubr.bf16.vlgmr.msra.gmra.mrb[0].mxu0 %v467_v46  ;;  %v2135_v46 = vld [vmem:[%s2230_s22 + $0x270] sm:$0xff]  }
  0x39   : > { %1905 = vmatpush3.bf16.msra.mxu0 %v2081_v49  ;;  %1399 = vmatmul.mubr.bf16.vlgmr.msra.gmra.mrb[0].mxu1 %v489_v51  ;;  %v500_v49 = vrot.slane %v185_v47, %v2269_v42  ;;  %v2136_v51 = vld [vmem:[%s2230_s22 + $0x2f0] sm:$0xff]  }
  0x3a   : > { %1906 = vmatprep.subr.bf16.mxu0 %v2083_v52  ;;  %1927 = vmatpush3.bf16.msra.mxu1 %v2082_v54  ;;  %v2137_v52 = vld [vmem:[%s2230_s22 + $0x230] sm:$0xff]  }
  0x3b   : > { %1438 = vmatprep.mubr.bf16.mxu0 %v488_v50  ;;  %1928 = vmatprep.subr.bf16.mxu1 %v2084_v55  ;;  %v493_v50 = vcombine.high %v185_v47, %v185_v47  ;;  %v508_v53 = vcombine.high %v500_v49, %v500_v49  ;;  %v2139_v55 = vld [vmem:[%s2230_s22 + $0x278] sm:$0xff]  }
  0x3c   : > { %1478 = vmatprep.mubr.bf16.mxu1 %v492_v56  ;;  %v2138_v56 = vld [vmem:[%s2230_s22 + $0x2b0] sm:$0xff]  }
  0x3d   : > { %1907 = vmatpush3.bf16.msra.mxu0 %v2085_v57  ;;  %v2342_v54 = vrot.slane %v493_v50, %v2269_v42  ;;  %v530_v57 = vrot.slane %v508_v53, %v2269_v42 }
  0x3e   : > { %1908 = vmatprep.subr.bf16.mxu0 %v2087_v58  ;;  %1929 = vmatpush3.bf16.msra.mxu1 %v2086_v59  ;;  %v2140_v59 = vld [vmem:[%s2230_s22 + $0x2f8] sm:$0xff]  }
  0x3f   : > { %1930 = vmatprep.subr.bf16.mxu1 %v2088_v60  ;;  %v509_v58 = vcombine.high %v2342_v54, %v2342_v54  ;;  %v2141_v60 = vld [vmem:[%s2230_s22 + $0x238] sm:$0xff]  }
  0x41   : > { %1909 = vmatpush3.bf16.msra.mxu0 %v2089_v61  ;;  %v540_v61 = vcombine.high %v530_v57, %v530_v57 }
  0x42   : > { %1910 = vmatprep.subr.bf16.mxu0 %v2091_v62  ;;  %1931 = vmatpush3.bf16.msra.mxu1 %v2090_v63  ;;  %v516_v62 = vrot.slane %v500_v49, %v2269_v42  ;;  %v2143_v63 = vld [vmem:[%s2230_s22 + $0x340] sm:$0xff]  }
  0x43   : > { %1932 = vmatprep.subr.bf16.mxu1 %v2092_v0  ;;  %v2142_v0 = vld [vmem:[%s2230_s22 + $0x2b8] sm:$0xff]  }
  0x45   : > { %1911 = vmatpush3.bf16.msra.mxu0 %v2093_v1  ;;  %v537_v1 = vrot.slane %v509_v58, %v2269_v42 }
  0x46   : > { %1912 = vmatprep.subr.bf16.mxu0 %v2095_v2  ;;  %1933 = vmatpush3.bf16.msra.mxu1 %v2094_v3  ;;  %v2144_v2 = vld [vmem:[%s2230_s22 + $0x3c0] sm:$0xff]  }
  0x47   : > { %1934 = vmatprep.subr.bf16.mxu1 %v2096_v4  ;;  %v2145_v3 = vld [vmem:[%s2230_s22 + $0x300] sm:$0xff]   ;;  %v538_v4 = vcombine.high %v516_v62, %v516_v62 }
  0x49   : > { %1913 = vmatpush3.bf16.msra.mxu0 %v2097_v5  ;;  %v2147_v5 = vld [vmem:[%s2230_s22 + $0x348] sm:$0xff]  }
  0x4a   : > { %1914 = vmatprep.subr.bf16.mxu0 %v2099_v6  ;;  %1935 = vmatpush3.bf16.msra.mxu1 %v2098_v7  ;;  %v2146_v6 = vld [vmem:[%s2230_s22 + $0x380] sm:$0xff]   ;;  %v541_v7 = vcombine.high %v537_v1, %v537_v1 }
  0x4b   : > { %1936 = vmatprep.subr.bf16.mxu1 %v2100_v8  ;;  %v2148_v8 = vld [vmem:[%s2230_s22 + $0x3c8] sm:$0xff]  }
  0x4d   : > { %1915 = vmatpush3.bf16.msra.mxu0 %v2101_v9  ;;  %v2149_v9 = vld [vmem:[%s2230_s22 + $0x308] sm:$0xff]  }
  0x4e   : > { %1916 = vmatprep.subr.bf16.mxu0 %v2103_v10  ;;  %1937 = vmatpush3.bf16.msra.mxu1 %v2102_v11  ;;  %v2151_v10 = vld [vmem:[%s2230_s22 + $0x350] sm:$0xff]   ;;  %v2150_v11 = vld [vmem:[%s2230_s22 + $0x388] sm:$0xff]  }
  0x4f   : > { %1938 = vmatprep.subr.bf16.mxu1 %v2104_v12  ;;  %v2152_v12 = vld [vmem:[%s2230_s22 + $0x3d0] sm:$0xff]  }
  0x51   : > { %1917 = vmatpush3.bf16.msra.mxu0 %v2105_v13  ;;  %v2153_v13 = vld [vmem:[%s2230_s22 + $0x310] sm:$0xff]  }
  0x52   : > { %1918 = vmatprep.subr.bf16.mxu0 %v2107_v14  ;;  %1939 = vmatpush3.bf16.msra.mxu1 %v2106_v15  ;;  %v2155_v14 = vld [vmem:[%s2230_s22 + $0x358] sm:$0xff]   ;;  %v2154_v15 = vld [vmem:[%s2230_s22 + $0x390] sm:$0xff]  }
  0x53   : > { %1940 = vmatprep.subr.bf16.mxu1 %v2108_v16  ;;  %v2156_v16 = vld [vmem:[%s2230_s22 + $0x3d8] sm:$0xff]  }
  0x55   : > { %1919 = vmatpush3.bf16.msra.mxu0 %v2109_v17  ;;  %v2157_v17 = vld [vmem:[%s2230_s22 + $0x318] sm:$0xff]  }
  0x56   : > { %1948 = vmatprep.subr.bf16.mxu0 %v2111_v19  ;;  %1941 = vmatpush3.bf16.msra.mxu1 %v2110_v20  ;;  %v2158_v19 = vld [vmem:[%s2230_s22 + $0x398] sm:$0xff]   ;;  %v2160_v20 = vld [vmem:[%s2230_s22 + $0x3e0] sm:$0xff]  }
  0x57   : > { %1970 = vmatprep.subr.bf16.mxu1 %v2112_v21  ;;  %v2161_v21 = vld [vmem:[%s2230_s22 + $0x320] sm:$0xff]  }
  0x58   : > { %1439 = vmatmul.mubr.bf16.vlgmr.msra.gmra.mrb[4].mxu0 %v474_v18  ;;  %v2159_v18 = vld [vmem:[%s2230_s22 + $0x360] sm:$0xff]  }
  0x59   : > { %1949 = vmatpush3.bf16.msra.mxu0 %v2113_v22  ;;  %1479 = vmatmul.mubr.bf16.vlgmr.msra.gmra.mrb[4].mxu1 %v490_v23  ;;  %v2163_v22 = vld [vmem:[%s2230_s22 + $0x368] sm:$0xff]   ;;  %v2162_v23 = vld [vmem:[%s2230_s22 + $0x3a0] sm:$0xff]  }
  0x5a   : > { %1950 = vmatprep.subr.bf16.mxu0 %v2115_v24  ;;  %1971 = vmatpush3.bf16.msra.mxu1 %v2114_v25  ;;  %v2164_v24 = vld [vmem:[%s2230_s22 + $0x3e8] sm:$0xff]  }
  0x5b   : > { %1972 = vmatprep.subr.bf16.mxu1 %v2116_v26  ;;  %1518 = vmatprep.mubr.bf16.mxu0 %v530_v57  ;;  %v2165_v25 = vld [vmem:[%s2230_s22 + $0x328] sm:$0xff]   ;;  %v2167_v26 = vld [vmem:[%s2230_s22 + $0x370] sm:$0xff]  }
  0x5c   : > { %1558 = vmatprep.mubr.bf16.mxu1 %v540_v61 }
  0x5d   : > { %1951 = vmatpush3.bf16.msra.mxu0 %v2117_v27  ;;  %v2166_v27 = vld [vmem:[%s2230_s22 + $0x3a8] sm:$0xff]  }
  0x5e   : > { %1952 = vmatprep.subr.bf16.mxu0 %v2119_v28  ;;  %1973 = vmatpush3.bf16.msra.mxu1 %v2118_v30  ;;  %v2168_v28 = vld [vmem:[%s2230_s22 + $0x3f0] sm:$0xff]  }
  0x5f   : > { %1974 = vmatprep.subr.bf16.mxu1 %v2120_v31  ;;  %v2169_v30 = vld [vmem:[%s2230_s22 + $0x330] sm:$0xff]   ;;  %v2171_v31 = vld [vmem:[%s2230_s22 + $0x378] sm:$0xff]  }
  0x61   : > { %1953 = vmatpush3.bf16.msra.mxu0 %v2121_v32  ;;  %v2170_v32 = vld [vmem:[%s2230_s22 + $0x3b0] sm:$0xff]  }
  0x62   : > { %1954 = vmatprep.subr.bf16.mxu0 %v2123_v33  ;;  %1975 = vmatpush3.bf16.msra.mxu1 %v2122_v34  ;;  %v2172_v33 = vld [vmem:[%s2230_s22 + $0x3f8] sm:$0xff]  }
  0x63   : > { %1976 = vmatprep.subr.bf16.mxu1 %v2124_v35  ;;  %v2173_v34 = vld [vmem:[%s2230_s22 + $0x338] sm:$0xff]   ;;  %v523_v35 = vrot.slane %v2342_v54, %v2269_v42 }
  0x65   : > { %1955 = vmatpush3.bf16.msra.mxu0 %v2125_v36  ;;  %v2174_v36 = vld [vmem:[%s2230_s22 + $0x3b8] sm:$0xff]  }
  0x66   : > { %1956 = vmatprep.subr.bf16.mxu0 %v2127_v37  ;;  %1977 = vmatpush3.bf16.msra.mxu1 %v2126_v38  ;;  %v539_v37 = vcombine.high %v523_v35, %v523_v35 }
  0x67   : > { %1978 = vmatprep.subr.bf16.mxu1 %v2128_v39 }
  0x69   : > { %1957 = vmatpush3.bf16.msra.mxu0 %v2129_v40 }
  0x6a   : > { %1958 = vmatprep.subr.bf16.mxu0 %v2131_v41  ;;  %1979 = vmatpush3.bf16.msra.mxu1 %v2130_v43 }
  0x6b   : > { %1980 = vmatprep.subr.bf16.mxu1 %v2132_v44 }
  0x6d   : > { %1959 = vmatpush3.bf16.msra.mxu0 %v2133_v45 }
  0x6e   : > { %1960 = vmatprep.subr.bf16.mxu0 %v2135_v46  ;;  %1981 = vmatpush3.bf16.msra.mxu1 %v2134_v48 }
  0x6f   : > { %1982 = vmatprep.subr.bf16.mxu1 %v2136_v51 }
  0x71   : > { %1961 = vmatpush3.bf16.msra.mxu0 %v2137_v52 }
  0x72   : > { %1962 = vmatprep.subr.bf16.mxu0 %v2139_v55  ;;  %1983 = vmatpush3.bf16.msra.mxu1 %v2138_v56 }
  0x73   : > { %1984 = vmatprep.subr.bf16.mxu1 %v2140_v59 }
  0x75   : > { %1963 = vmatpush3.bf16.msra.mxu0 %v2141_v60 }
  0x76   : > { %1992 = vmatprep.subr.bf16.mxu0 %v2143_v63  ;;  %1985 = vmatpush3.bf16.msra.mxu1 %v2142_v0 }
  0x77   : > { %2014 = vmatprep.subr.bf16.mxu1 %v2144_v2 }
  0x78   : > { %1519 = vmatmul.mubr.bf16.vlgmr.msra.gmra.mrb[8].mxu0 %v516_v62 }
  0x79   : > { %1993 = vmatpush3.bf16.msra.mxu0 %v2145_v3  ;;  %1598 = vmatprep.mubr.bf16.mxu0 %v537_v1 }
  0x7a   : > { %1559 = vmatmul.mubr.bf16.vlgmr.msra.gmra.mrb[8].mxu1 %v538_v4  ;;  %1994 = vmatprep.subr.bf16.mxu0 %v2147_v5 }
  0x7b   : > { %2015 = vmatpush3.bf16.msra.mxu1 %v2146_v6  ;;  %1638 = vmatprep.mubr.bf16.mxu1 %v541_v7 }
  0x7c   : > { %2016 = vmatprep.subr.bf16.mxu1 %v2148_v8 }
  0x7d   : > { %1995 = vmatpush3.bf16.msra.mxu0 %v2149_v9 }
  0x7e   : > { %1996 = vmatprep.subr.bf16.mxu0 %v2151_v10 }
  0x7f   : > { %2017 = vmatpush3.bf16.msra.mxu1 %v2150_v11 }
  0x80   : > { %2018 = vmatprep.subr.bf16.mxu1 %v2152_v12 }
  0x81   : > { %1997 = vmatpush3.bf16.msra.mxu0 %v2153_v13 }
  0x82   : > { %1998 = vmatprep.subr.bf16.mxu0 %v2155_v14 }
  0x83   : > { %2019 = vmatpush3.bf16.msra.mxu1 %v2154_v15 }
  0x84   : > { %2020 = vmatprep.subr.bf16.mxu1 %v2156_v16 }
  0x85   : > { %1999 = vmatpush3.bf16.msra.mxu0 %v2157_v17 }
  0x86   : > { %2000 = vmatprep.subr.bf16.mxu0 %v2159_v18 }
  0x87   : > { %2021 = vmatpush3.bf16.msra.mxu1 %v2158_v19  ;;  %v183_v19 = vld [vmem:[#allocation2] sm:$0x3] }
  0x88   : > { %2022 = vmatprep.subr.bf16.mxu1 %v2160_v20 }
  0x89   : > { %2001 = vmatpush3.bf16.msra.mxu0 %v2161_v21 }
  0x8a   : > { %2002 = vmatprep.subr.bf16.mxu0 %v2163_v22 }
  0x8b   : > { %2023 = vmatpush3.bf16.msra.mxu1 %v2162_v23 }
  0x8c   : > { %2024 = vmatprep.subr.bf16.mxu1 %v2164_v24  ;;  %v1857_v24 = vld [vmem:[%s2401_s2] ss:$0 sm:$0xff] (!%p1856_p6) }
  0x8d   : > { %2003 = vmatpush3.bf16.msra.mxu0 %v2165_v25  ;;  %v1662_v25 = vand.u32 (!%p1856_p6), 127, %v448_v29 }
  0x8e   : > { %2004 = vmatprep.subr.bf16.mxu0 %v2167_v26 }
  0x8f   : > { %2025 = vmatpush3.bf16.msra.mxu1 %v2166_v27  ;;  %vm1663_vm0 = vcmp.ge.s32.totalorder (!%p1856_p6), %v1662_v25, 1  ;;  %vm1664_vm1 = vcmp.le.s32.totalorder (!%p1856_p6), %v1662_v25, 10  ;;  %vm1680_vm4 = vcmp.eq.s32.totalorder (!%p1856_p6), %v1662_v25, 0 }
  0x90   : > { %2026 = vmatprep.subr.bf16.mxu1 %v2168_v28  ;;  %vm1665_vm3 = vmand (!%p1856_p6), %vm1663_vm0, %vm1664_vm1 }
  0x91   : > { %2005 = vmatpush3.bf16.msra.mxu0 %v2169_v30 }
  0x92   : > { %2006 = vmatprep.subr.bf16.mxu0 %v2171_v31 }
  0x93   : > { %2027 = vmatpush3.bf16.msra.mxu1 %v2170_v32 }
  0x94   : > { %2028 = vmatprep.subr.bf16.mxu1 %v2172_v33 }
  0x95   : > { %2007 = vmatpush3.bf16.msra.mxu0 %v2173_v34 }
  0x97   : > { %2029 = vmatpush3.bf16.msra.mxu1 %v2174_v36 }
  0x98   : > { %1599 = vmatmul.mubr.bf16.vlgmr.msra.gmra.mrb[12].mxu0 %v523_v35 }
  0x9a   : > { %1639 = vmatmul.mubr.bf16.vlgmr.msra.gmra.mrb[12].mxu1 %v539_v37 }
 0x10b   : > { %v1876_v38 = vpop.f32.mrb[0].mxu0 }
 0x10c   : > { %v1877_v39 = vpop.f32.mrb[1].mxu0  ;;  %v1898_v40 = vpop.f32.mrb[0].mxu1 }
 0x10d   : > { %v1878_v41 = vadd.f32 %v1877_v39, %v1876_v38  ;;  %v1879_v43 = vpop.f32.mrb[2].mxu0  ;;  %v1899_v44 = vpop.f32.mrb[1].mxu1 }
 0x10e   : > { %v1880_v45 = vpop.f32.mrb[3].mxu0  ;;  %v1900_v46 = vadd.f32 %v1899_v44, %v1898_v40  ;;  %v1901_v47 = vpop.f32.mrb[2].mxu1 }
 0x10f   : > { %v1902_v48 = vpop.f32.mrb[3].mxu1 }
 0x110   : > { %v1401_v49 = vadd.f32 %v1900_v46, %v1878_v41 }
 0x12b   : > { %v1920_v42 = vpop.f32.mrb[4].mxu0 }
 0x12c   : > { %v1921_v50 = vpop.f32.mrb[5].mxu0  ;;  %v1942_v51 = vpop.f32.mrb[4].mxu1 }
 0x12d   : > { %v1922_v52 = vadd.f32 %v1921_v50, %v1920_v42  ;;  %v1923_v53 = vpop.f32.mrb[6].mxu0  ;;  %v1943_v54 = vpop.f32.mrb[5].mxu1 }
 0x12e   : > { %v1924_v55 = vpop.f32.mrb[7].mxu0  ;;  %v1944_v57 = vadd.f32 %v1943_v54, %v1942_v51  ;;  %v1945_v58 = vpop.f32.mrb[6].mxu1 }
 0x12f   : > { %v1441_v56 = vadd.f32 %v1922_v52, %v1401_v49  ;;  %v1946_v59 = vpop.f32.mrb[7].mxu1 }
 0x131   : > { %v1481_v60 = vadd.f32 %v1944_v57, %v1441_v56 }
 0x14b   : > { %v1964_v61 = vpop.f32.mrb[8].mxu0 }
 0x14c   : > { %v1965_v62 = vpop.f32.mrb[9].mxu0 }
 0x14d   : > { %v1986_v63 = vpop.f32.mrb[8].mxu1  ;;  %v1966_v0 = vadd.f32 %v1965_v62, %v1964_v61  ;;  %v1967_v1 = vpop.f32.mrb[10].mxu0 }
 0x14e   : > { %v1987_v2 = vpop.f32.mrb[9].mxu1  ;;  %v1968_v3 = vpop.f32.mrb[11].mxu0 }
 0x14f   : > { %v1521_v4 = vadd.f32 %v1966_v0, %v1481_v60  ;;  %v1988_v5 = vadd.f32 %v1987_v2, %v1986_v63  ;;  %v1989_v6 = vpop.f32.mrb[10].mxu1 }
 0x150   : > { %v1990_v7 = vpop.f32.mrb[11].mxu1 }
 0x151   : > { %v1561_v8 = vadd.f32 %v1988_v5, %v1521_v4 }
 0x16b   : > { %v2008_v9 = vpop.f32.mrb[12].mxu0 }
 0x16c   : > { %v2009_v10 = vpop.f32.mrb[13].mxu0 }
 0x16d   : > { %v2030_v11 = vpop.f32.mrb[12].mxu1  ;;  %v2010_v12 = vadd.f32 %v2009_v10, %v2008_v9  ;;  %v2011_v13 = vpop.f32.mrb[14].mxu0 }
 0x16e   : > { %v2031_v14 = vpop.f32.mrb[13].mxu1  ;;  %v2012_v15 = vpop.f32.mrb[15].mxu0 }
 0x16f   : > { %v1601_v16 = vadd.f32 %v2010_v12, %v1561_v8  ;;  %v2032_v17 = vadd.f32 %v2031_v14, %v2030_v11  ;;  %v2033_v18 = vpop.f32.mrb[14].mxu1  ;;  %1651 = sbr.rel (%p1856_p6) target bundleno = 701 (0x2bd), region = 40 }
 0x170   : > { %v2034_v20 = vpop.f32.mrb[15].mxu1 }
 0x171   : > { %v1641_v21 = vadd.f32 %v2032_v17, %v1601_v16 }
 0x173   : > { %v1646_v22 = vadd.f32 %v1641_v21, %v183_v19 }
 0x175   : > { %1647 = vst [vmem:[#allocation2] sm:$0x3] %v1646_v22 }
 0x17c   : > { %v1652_v23 = vld [vmem:[#allocation2] sm:$0x3] }
 0x17d   : > { %v1660_v26 = vadd.f32 %v1857_v24, %v1652_v23 }
 0x17f   : > { %v1666_v27 = vsel %vm1665_vm3, %v1660_v26, -inf }
 0x180   : > { %v1668_v28 = vsel %vm1667_vm2, %v1666_v27, -inf }
 0x181   : > { %1669 = vmax.xlane.f32.xlu0 %v1668_v28 }
 0x20e   : > { %v1670_v30 = vpop.xlane.xlu0 %1669 }
 0x20f   : > { %v1671_v31 = vsub.f32 %v1666_v27, %v1670_v30 }
 0x211   : > { %v1672_v32 = vmul.f32 1.442695, %v1671_v31 }
 0x213   : > { %2176 = vpow2.f32 %v1672_v32 }
 0x21d   : > { %v2177_v33 = vpop.eup %2176 }
 0x21e   : > { %v1674_v34 = vsel %vm1665_vm3, %v2177_v33, 0.0 }
 0x21f   : > { %v1675_v35 = vsel %vm1667_vm2, %v1674_v34, 0.0 }
 0x220   : > { %1676 = vadd.xlane.f32.xlu0 %v1675_v35 }
 0x2ad   : > { %v1677_v36 = vpop.xlane.xlu0 %1676 }
 0x2ae   : > { %2178 = vrcp.f32 %v1677_v36 }
 0x2b8   : > { %v2179_v37 = vpop.eup %2178 }
 0x2b9   : > { %v1679_v29 = vmul.f32 %v2179_v37, %v1674_v34 }
 0x2bb   : > { %v1681_v38 = vsel %vm1680_vm4, %v1660_v26, %v1679_v29 }
 0x2bc   : > { %1682 = vst [vmem:[%s2402_s3] sm:$0x3] %v1681_v38 }
 0x2bd PF: > { %s13_s12 = sadd.s32 1, %s2186_s12  }
 0x2be   : > { %p10_p7 = scmp.ge.s32.totalorder %s13_s12, 18  }
 0x2c0   :  { %12 = sbr.rel (!%p10_p7) target bundleno = 1 (0x1), region = 69 }

</bundles_post_ra>
